<compile_context>
chip_gen: v7x
topology: tpu7x:2x2x1
jax: 0.10.0
libtpu: 0.0.40
codegen_flags: <defaults>
</compile_context>

<pallas_src>
import numpy as np
import jax
import jax.numpy as jnp
from jax.experimental import pallas as pl
from jax.experimental.pallas import tpu as pltpu

LEAKY_SLOPE = 0.1
CORR_KS = 7                          # DispEstimator.corrks
NTAP = CORR_KS * CORR_KS             # 49 correlation taps
NTAP_PAD = 56                        # 49 rounded to a multiple of 8 sublanes
UNFOLD_DIL = 4
UNFOLD_PAD = 2 * (CORR_KS - 1)       # 12
BLUR_K = 13
BLUR_R = BLUR_K // 2                 # 6
BN_EPS = 1e-5

# 13-tap gaussian, sigma=3 (kornia get_gaussian_kernel1d(13, 3), normalized)
_x = np.arange(BLUR_K, dtype=np.float64) - (BLUR_K - 1) / 2.0
_g = np.exp(-(_x ** 2) / (2.0 * 3.0 ** 2))
GAUSS_W = tuple(float(v) for v in (_g / _g.sum()))


def _ceil8(n):
    return ((n + 7) // 8) * 8


def layer_defs(C):
    """(cin_real_total, cout_real, dilation, act, batchnorm) per conv layer."""
    return (
        (C,         C,      1, False, False),   # preprocessor        (act=None, norm=None)
        (2 * C,     2 * C,  1, True,  False),   # featcompressor[0]
        (2 * C,     C,      1, False, False),   # featcompressor[1]   (act=None)
        (C + NTAP,  C // 2, 1, True,  True),    # estimator[0]        (BatchNorm2d)
        (C // 2,    C // 4, 2, True,  True),    # estimator[1]
        (C // 4,    C // 8, 4, True,  True),    # estimator[2]
        (C // 8,    2,      1, False, False),   # estimator[3]        (act=None, norm=None)
    )


def layer_plan(C):
    """Static per-layer plan; channel blocks padded to multiples of 8 sublanes."""
    defs = layer_defs(C)
    src_real = [(C,), (C, C), (2 * C,), (C, NTAP), (C // 2,), (C // 4,), (C // 8,)]
    plan = []
    for li, ((cin, cout, dil, act, bn), srcs) in enumerate(zip(defs, src_real)):
        assert sum(srcs) == cin
        src_pad = tuple(_ceil8(s) for s in srcs)
        cout_pad = cout if li == len(defs) - 1 else _ceil8(cout)
        plan.append(dict(src_real=srcs, src_pad=src_pad, cout_real=cout,
                         cout_pad=cout_pad, dil=dil, act=act, bn=bn,
                         K=9 * sum(src_pad)))
    return plan


def mask_key_table(H, W):
    """Ordered keys of all precomputed (1, L) mask / correction vectors."""
    keys, idx = [], {}

    def add(k):
        if k not in idx:
            idx[k] = len(keys)
            keys.append(k)

    for d in (1, 2, 4):                         # conv dilations
        for dy in (-d, 0, d):
            for dx in (-d, 0, d):
                add((dy, dx))
    for j in range(BLUR_K):                     # separable blur taps
        add((j - BLUR_R, 0))
        add((0, j - BLUR_R))
    for r in range(BLUR_R):                     # replicate-border corrections
        add(('top', r))
    for r in range(H - BLUR_R, H):
        add(('bot', r))
    for c in range(BLUR_R):
        add(('left', c))
    for c in range(W - BLUR_R, W):
        add(('right', c))
    return keys, idx


def build_masks(H, W, keys):
    """(n_keys, 2*H*W) f32 tap-validity masks / replicate-correction vectors
    over the flattened row-major spatial index (periodic, covers 2 images)."""
    L = 2 * H * W
    i = np.arange(L)
    row = (i // W) % H
    col = i % W
    g = GAUSS_W
    out = np.zeros((len(keys), L), np.float32)
    for n, key in enumerate(keys):
        if isinstance(key[0], str):
            kind, p = key
            if kind == 'top':
                out[n] = np.where(row == p, sum(g[:BLUR_R - p]), 0.0)
            elif kind == 'bot':
                out[n] = np.where(row == p, sum(g[H + BLUR_R - p:]), 0.0)
            elif kind == 'left':
                out[n] = np.where(col == p, sum(g[:BLUR_R - p]), 0.0)
            else:  # 'right'
                out[n] = np.where(col == p, sum(g[W + BLUR_R - p:]), 0.0)
        else:
            dy, dx = key
            ok = (row + dy >= 0) & (row + dy < H) & (col + dx >= 0) & (col + dx < W)
            out[n] = ok.astype(np.float32)
    return out


def build_unfold_maskstack(H, W):
    """(56, H*W): validity of the 49 F.unfold taps (rows 49.. are zero pad)."""
    HW = H * W
    i = np.arange(HW)
    row, col = i // W, i % W
    out = np.zeros((NTAP_PAD, HW), np.float32)
    for ky in range(CORR_KS):
        for kx in range(CORR_KS):
            dy = UNFOLD_DIL * ky - UNFOLD_PAD
            dx = UNFOLD_DIL * kx - UNFOLD_PAD
            ok = (row + dy >= 0) & (row + dy < H) & (col + dx >= 0) & (col + dx < W)
            out[ky * CORR_KS + kx] = ok
    return out


def build_reduce_mat(C):
    """(56, 49*C): row k averages the C channels of unfold tap k (MXU reduction)."""
    R = np.zeros((NTAP_PAD, NTAP * C), np.float32)
    for k in range(NTAP):
        R[k, k * C:(k + 1) * C] = 1.0 / C
    return R


# --------------------------------------------------------------------------
# Fused kernel
# --------------------------------------------------------------------------
def _build_kernel(H, W, C, plan, mask_idx):
    HW = H * W
    L2 = 2 * HW
    n_layers = len(plan)
    g = GAUSS_W

    def kernel(*refs):
        f1_ref, f2_ref = refs[0], refs[1]
        pos = 2
        layer_refs = []
        for _ in range(n_layers):
            layer_refs.append((refs[pos], refs[pos + 1], refs[pos + 2]))
            pos += 3
        masks_ref, mstk_ref, rmat_ref, invs_ref = refs[pos:pos + 4]
        o_ref = refs[pos + 4]
        col_ref = refs[pos + 5]                       # shared im2col / localcorr scratch

        # ---------------- helpers (fully unrolled at trace time) ----------------
        def mrow(key, L):
            k = mask_idx[key]
            return masks_ref[k:k + 1, 0:L]            # (1, L)

        def rollL(x, shift):
            s = shift % x.shape[-1]
            return x if s == 0 else pltpu.roll(x, s, axis=1)

        def tap(x, dy, dx, L):
            """Position i gets x[i + dy*W + dx] (flat row-major), 0 where the read
            falls outside the zero-padded image.  Pure lane rolls + precomputed
            masks: no padded canvases, no masked padding stores."""
            if dy == 0 and dx == 0:
                return x
            return rollL(x, -(dy * W + dx)) * mrow((dy, dx), L)

        def conv(sources, li, L):
            """3x3 dilated conv + folded bias/BN + optional LeakyReLU as ONE
            im2col GEMM: the 9 masked taps of every source are stacked along K
            (aligned sublane blocks) and contracted in a single lane-dense
            (cout, K) @ (K, L) dot."""
            meta = plan[li]
            w_ref, s_ref, t_ref = layer_refs[li]
            d = meta['dil']
            row = 0
            for x in sources:
                cin8 = x.shape[0]                      # multiple of 8 by construction
                for ky in range(3):
                    for kx in range(3):
                        col_ref[row:row + cin8, 0:L] = tap(x, (ky - 1) * d, (kx - 1) * d, L)
                        row += cin8
            y = jnp.dot(w_ref[...], col_ref[0:row, 0:L],
                        preferred_element_type=jnp.float32)      # (cout_pad, L)
            y = y * s_ref[...] + t_ref[...]
            if meta['act']:
                y = jnp.where(y >= 0.0, y, LEAKY_SLOPE * y)
            return y

        def blur_const(x):
            """13-tap separable sigma=3 gaussian, zero ('constant') border."""
            L = x.shape[-1]
            v = jnp.zeros_like(x)
            for j in range(BLUR_K):
                v = v + g[j] * tap(x, j - BLUR_R, 0, L)
            out = jnp.zeros_like(x)
            for j in range(BLUR_K):
                out = out + g[j] * tap(v, 0, j - BLUR_R, L)
            return out

        def blur_replicate(x):
            """13-tap separable gaussian with replicate border: constant-border
            taps + precomputed edge-correction vectors (the clamped tap mass is
            re-added at the image edges, per axis)."""
            L = x.shape[-1]
            v = jnp.zeros_like(x)
            for j in range(BLUR_K):
                v = v + g[j] * tap(x, j - BLUR_R, 0, L)
            for r in range(BLUR_R):
                v = v + rollL(x, r * W) * mrow(('top', r), L)
            for r in range(H - BLUR_R, H):
                v = v + rollL(x, (r - (H - 1)) * W) * mrow(('bot', r), L)
            out = jnp.zeros_like(x)
            for j in range(BLUR_K):
                out = out + g[j] * tap(v, 0, j - BLUR_R, L)
            for c in range(BLUR_R):
                out = out + rollL(v, c) * mrow(('left', c), L)
            for c in range(W - BLUR_R, W):
                out = out + rollL(v, c - (W - 1)) * mrow(('right', c), L)
            return out

        # ---------------- preprocessor: both images in one lane-dense GEMM ------
        f12 = jnp.concatenate([f1_ref[0], f2_ref[0]], axis=1)     # (C, 2*HW)
        both = conv([f12], 0, L2)                                 # (C, 2*HW)
        f1p = both[:, 0:HW]
        f2p = both[:, HW:L2]

        # ---------------- featcompressor (channel concat folded into im2col K) --
        h1 = conv([f1p, f2p], 1, HW)                              # (2C, HW)
        featc = conv([h1], 2, HW)                                 # (C,  HW)

        # ---------------- localcorr ---------------------------------------------
        f1s = blur_const(f1p)                                     # (C, HW)
        # mean_c(feat2^2): value of an out-of-range tap (algebraic boundary trick)
        a_mean = jnp.sum(f2p * f2p, axis=0, keepdims=True) * (1.0 / C)   # (1, HW)
        for k in range(NTAP):
            ky, kx = divmod(k, CORR_KS)
            off = (UNFOLD_DIL * ky - UNFOLD_PAD) * W + (UNFOLD_DIL * kx - UNFOLD_PAD)
            dlt = f2p - rollL(f1s, -off)
            col_ref[k * C:(k + 1) * C, 0:HW] = dlt * dlt
        # all 49 channel-means in ONE K=49*C GEMM
        m = jnp.dot(rmat_ref[...], col_ref[0:NTAP * C, 0:HW],
                    preferred_element_type=jnp.float32)           # (56, HW)
        lc = a_mean + mstk_ref[...] * (m - a_mean)                # (56, HW)

        # ---------------- estimator tower ----------------------------------------
        x = conv([featc, lc], 3, HW)                              # (8, HW)
        x = conv([x], 4, HW)                                      # (8, HW)  4 real ch
        x = conv([x], 5, HW)                                      # (8, HW)  2 real ch
        yfin = conv([x], 6, HW)                                   # (2, HW)

        # ---------------- final blur (replicate) + clamp(-300,300) + /scale ------
        disp = blur_replicate(yfin)
        disp = jnp.clip(disp, -300.0, 300.0) * invs_ref[...]      # (2,1) broadcast
        o_ref[0] = disp                                           # lane-dense store

    return kernel


# --------------------------------------------------------------------------
# Parameters (deterministic synthetic init) and forward pass wrapper
# --------------------------------------------------------------------------
def init_params(key, C):
    """Per layer: Wmat (cout_pad, 9*sum(src_pad)), scale (cout_pad,1), shift (cout_pad,1).
    Conv bias + eval-mode BatchNorm folded: y = conv(x)*scale + shift.  Padded
    channel slots carry zero weights / scale=1 / shift=0 so they stay exactly 0."""
    defs = layer_defs(C)
    plan = layer_plan(C)
    keys = jax.random.split(key, 2 * len(defs))
    params = []
    for li, ((cin, cout, dil, act, bn), meta) in enumerate(zip(defs, plan)):
        w = np.asarray(0.1 * jax.random.normal(keys[2 * li], (cout, cin, 3, 3), jnp.float32))
        b = np.asarray(0.01 * jax.random.normal(keys[2 * li + 1], (cout,), jnp.float32))
        wmat = np.zeros((meta['cout_pad'], meta['K']), np.float32)
        base, off = 0, 0
        for sr, sp in zip(meta['src_real'], meta['src_pad']):
            for k in range(9):
                ky, kx = divmod(k, 3)
                wmat[:cout, base + k * sp: base + k * sp + sr] = w[:, off:off + sr, ky, kx]
            base += 9 * sp
            off += sr
        scale = np.ones((meta['cout_pad'], 1), np.float32)
        shift = np.zeros((meta['cout_pad'], 1), np.float32)
        if bn:   # gamma=1, beta=0, running_mean=0, running_var=1 (eval mode)
            s = 1.0 / np.sqrt(1.0 + BN_EPS)
            scale[:cout, 0] = s
            shift[:cout, 0] = s * b
        else:
            shift[:cout, 0] = b
        params.append((jnp.asarray(wmat), jnp.asarray(scale), jnp.asarray(shift)))
    return params


def disp_estimator_forward(feat1_nchw, feat2_nchw, params):
    B, C, H, W = feat1_nchw.shape
    assert C % 8 == 0 and C >= 16, "channel must be a multiple of 8 and >= 16"
    HW = H * W
    plan = layer_plan(C)
    assert len(params) == len(plan)

    keys, mask_idx = mask_key_table(H, W)
    masks = jnp.asarray(build_masks(H, W, keys))           # (n_keys, 2*HW)
    mstk = jnp.asarray(build_unfold_maskstack(H, W))       # (56, HW)
    rmat = jnp.asarray(build_reduce_mat(C))                # (56, 49*C)
    # disp / scale with scale = [W-1, H-1] (channel 0 /(W-1), channel 1 /(H-1))
    inv_scale = jnp.array([[1.0 / (W - 1.0)], [1.0 / (H - 1.0)]], dtype=jnp.float32)

    # lane-dense inputs: flattened spatial on the lane axis (free reshape of NCHW)
    f1 = feat1_nchw.reshape(B, C, HW).astype(jnp.float32)
    f2 = feat2_nchw.reshape(B, C, HW).astype(jnp.float32)

    img_spec = pl.BlockSpec((1, C, HW), lambda b: (b, 0, 0))
    in_specs = [img_spec, img_spec]
    inputs = [f1, f2]
    for wmat, scale, shift in params:
        in_specs += [pl.BlockSpec(wmat.shape, lambda b: (0, 0)),
                     pl.BlockSpec(scale.shape, lambda b: (0, 0)),
                     pl.BlockSpec(shift.shape, lambda b: (0, 0))]
        inputs += [wmat, scale, shift]
    in_specs += [pl.BlockSpec(masks.shape, lambda b: (0, 0)),
                 pl.BlockSpec(mstk.shape, lambda b: (0, 0)),
                 pl.BlockSpec(rmat.shape, lambda b: (0, 0)),
                 pl.BlockSpec((2, 1), lambda b: (0, 0))]
    inputs += [masks, mstk, rmat, inv_scale]

    # single shared scratch: im2col stacks (K <= 648 rows) and the 49*C localcorr rows
    scr_rows = max(NTAP * C, max(m['K'] for m in plan))

    out = pl.pallas_call(
        _build_kernel(H, W, C, plan, mask_idx),
        out_shape=jax.ShapeDtypeStruct((B, 2, HW), jnp.float32),
        grid=(B,),
        in_specs=in_specs,
        out_specs=pl.BlockSpec((1, 2, HW), lambda b: (b, 0, 0)),
        scratch_shapes=[pltpu.VMEM((scr_rows, 2 * HW), jnp.float32)],
        compiler_params=pltpu.CompilerParams(
            dimension_semantics=("parallel",),           # one image per TensorCore on v7x
            vmem_limit_bytes=32 * 1024 * 1024),
    )(*inputs)
    return out.reshape(B, 2, H, W)                        # NCHW, free reshape


if __name__ == "__main__":
    key = jax.random.PRNGKey(0)
    B, C, H, W = 2, 16, 16, 16      # channel=16 -> estimator tower 65->8->4->2->2
    k1, k2, k3 = jax.random.split(key, 3)
    feat1 = jax.random.normal(k1, (B, C, H, W), jnp.float32)
    feat2 = jax.random.normal(k2, (B, C, H, W), jnp.float32)
    params = init_params(k3, C)

    disp = jax.jit(disp_estimator_forward)(feat1, feat2, params)
    disp = jax.block_until_ready(disp)
    assert disp.shape == (B, 2, H, W), disp.shape
    assert bool(jnp.all(jnp.isfinite(disp)))
    print("KERNEL_OK")
</pallas_src>

<mosaic_0001>
module attributes {stable_mosaic.version = 11 : i64} {
  func.func @kernel(%arg0: i32, %arg1: memref<1x16x256xf32, #tpu.memory_space<vmem>>, %arg2: memref<1x16x256xf32, #tpu.memory_space<vmem>>, %arg3: memref<16x144xf32, #tpu.memory_space<vmem>>, %arg4: memref<16x1xf32, #tpu.memory_space<vmem>>, %arg5: memref<16x1xf32, #tpu.memory_space<vmem>>, %arg6: memref<32x288xf32, #tpu.memory_space<vmem>>, %arg7: memref<32x1xf32, #tpu.memory_space<vmem>>, %arg8: memref<32x1xf32, #tpu.memory_space<vmem>>, %arg9: memref<16x288xf32, #tpu.memory_space<vmem>>, %arg10: memref<16x1xf32, #tpu.memory_space<vmem>>, %arg11: memref<16x1xf32, #tpu.memory_space<vmem>>, %arg12: memref<8x648xf32, #tpu.memory_space<vmem>>, %arg13: memref<8x1xf32, #tpu.memory_space<vmem>>, %arg14: memref<8x1xf32, #tpu.memory_space<vmem>>, %arg15: memref<8x72xf32, #tpu.memory_space<vmem>>, %arg16: memref<8x1xf32, #tpu.memory_space<vmem>>, %arg17: memref<8x1xf32, #tpu.memory_space<vmem>>, %arg18: memref<8x72xf32, #tpu.memory_space<vmem>>, %arg19: memref<8x1xf32, #tpu.memory_space<vmem>>, %arg20: memref<8x1xf32, #tpu.memory_space<vmem>>, %arg21: memref<2x72xf32, #tpu.memory_space<vmem>>, %arg22: memref<2x1xf32, #tpu.memory_space<vmem>>, %arg23: memref<2x1xf32, #tpu.memory_space<vmem>>, %arg24: memref<61x512xf32, #tpu.memory_space<vmem>>, %arg25: memref<56x256xf32, #tpu.memory_space<vmem>>, %arg26: memref<56x784xf32, #tpu.memory_space<vmem>>, %arg27: memref<2x1xf32, #tpu.memory_space<vmem>>, %arg28: memref<1x2x256xf32, #tpu.memory_space<vmem>>, %arg29: memref<784x512xf32, #tpu.memory_space<vmem>>) attributes {dimension_semantics = [#tpu.dimension_semantics<parallel>], iteration_bounds = array<i64: 2>, scalar_prefetch = 0 : i64, scratch_operands = 1 : i64, tpu.core_type = #tpu.core_type<tc>, window_params = [{transform_indices = @transform_0, window_bounds = array<i64: 1, 16, 256>}, {transform_indices = @transform_1, window_bounds = array<i64: 1, 16, 256>}, {pipeline_mode = #tpu.pipeline_mode<synchronous>, transform_indices = @transform_2, window_bounds = array<i64: 16, 144>}, {pipeline_mode = #tpu.pipeline_mode<synchronous>, transform_indices = @transform_3, window_bounds = array<i64: 16, 1>}, {pipeline_mode = #tpu.pipeline_mode<synchronous>, transform_indices = @transform_4, window_bounds = array<i64: 16, 1>}, {pipeline_mode = #tpu.pipeline_mode<synchronous>, transform_indices = @transform_5, window_bounds = array<i64: 32, 288>}, {pipeline_mode = #tpu.pipeline_mode<synchronous>, transform_indices = @transform_6, window_bounds = array<i64: 32, 1>}, {pipeline_mode = #tpu.pipeline_mode<synchronous>, transform_indices = @transform_7, window_bounds = array<i64: 32, 1>}, {pipeline_mode = #tpu.pipeline_mode<synchronous>, transform_indices = @transform_8, window_bounds = array<i64: 16, 288>}, {pipeline_mode = #tpu.pipeline_mode<synchronous>, transform_indices = @transform_9, window_bounds = array<i64: 16, 1>}, {pipeline_mode = #tpu.pipeline_mode<synchronous>, transform_indices = @transform_10, window_bounds = array<i64: 16, 1>}, {pipeline_mode = #tpu.pipeline_mode<synchronous>, transform_indices = @transform_11, window_bounds = array<i64: 8, 648>}, {pipeline_mode = #tpu.pipeline_mode<synchronous>, transform_indices = @transform_12, window_bounds = array<i64: 8, 1>}, {pipeline_mode = #tpu.pipeline_mode<synchronous>, transform_indices = @transform_13, window_bounds = array<i64: 8, 1>}, {pipeline_mode = #tpu.pipeline_mode<synchronous>, transform_indices = @transform_14, window_bounds = array<i64: 8, 72>}, {pipeline_mode = #tpu.pipeline_mode<synchronous>, transform_indices = @transform_15, window_bounds = array<i64: 8, 1>}, {pipeline_mode = #tpu.pipeline_mode<synchronous>, transform_indices = @transform_16, window_bounds = array<i64: 8, 1>}, {pipeline_mode = #tpu.pipeline_mode<synchronous>, transform_indices = @transform_17, window_bounds = array<i64: 8, 72>}, {pipeline_mode = #tpu.pipeline_mode<synchronous>, transform_indices = @transform_18, window_bounds = array<i64: 8, 1>}, {pipeline_mode = #tpu.pipeline_mode<synchronous>, transform_indices = @transform_19, window_bounds = array<i64: 8, 1>}, {pipeline_mode = #tpu.pipeline_mode<synchronous>, transform_indices = @transform_20, window_bounds = array<i64: 2, 72>}, {pipeline_mode = #tpu.pipeline_mode<synchronous>, transform_indices = @transform_21, window_bounds = array<i64: 2, 1>}, {pipeline_mode = #tpu.pipeline_mode<synchronous>, transform_indices = @transform_22, window_bounds = array<i64: 2, 1>}, {pipeline_mode = #tpu.pipeline_mode<synchronous>, transform_indices = @transform_23, window_bounds = array<i64: 61, 512>}, {pipeline_mode = #tpu.pipeline_mode<synchronous>, transform_indices = @transform_24, window_bounds = array<i64: 56, 256>}, {pipeline_mode = #tpu.pipeline_mode<synchronous>, transform_indices = @transform_25, window_bounds = array<i64: 56, 784>}, {pipeline_mode = #tpu.pipeline_mode<synchronous>, transform_indices = @transform_26, window_bounds = array<i64: 2, 1>}, {transform_indices = @transform_27, window_bounds = array<i64: 1, 2, 256>}]} {
    %c0 = arith.constant 0 : index
    %c0_0 = arith.constant 0 : index
    %c0_1 = arith.constant 0 : index
    %0 = vector.load %arg1[%c0, %c0_0, %c0_1] : memref<1x16x256xf32, #tpu.memory_space<vmem>>, vector<1x16x256xf32>
    %1 = vector.shape_cast %0 : vector<1x16x256xf32> to vector<16x256xf32>
    %c0_2 = arith.constant 0 : index
    %c0_3 = arith.constant 0 : index
    %c0_4 = arith.constant 0 : index
    %2 = vector.load %arg2[%c0_2, %c0_3, %c0_4] : memref<1x16x256xf32, #tpu.memory_space<vmem>>, vector<1x16x256xf32>
    %3 = vector.shape_cast %2 : vector<1x16x256xf32> to vector<16x256xf32>
    %4 = tpu.concatenate %1, %3 in 1 : vector<16x256xf32>, vector<16x256xf32> -> vector<16x512xf32>
    %c17_i32 = arith.constant 17 : i32
    %5 = tpu.dynamic_rotate %4 by %c17_i32 dim 1 : vector<16x512xf32>, i32 -> vector<16x512xf32>
    %c0_5 = arith.constant 0 : index
    %c0_6 = arith.constant 0 : index
    %6 = vector.load %arg24[%c0_5, %c0_6] : memref<61x512xf32, #tpu.memory_space<vmem>>, vector<1x512xf32>
    %7 = vector.broadcast %6 : vector<1x512xf32> to vector<16x512xf32>
    %8 = arith.mulf %5, %7 : vector<16x512xf32>
    %c0_7 = arith.constant 0 : index
    %c0_8 = arith.constant 0 : index
    %9 = vector.load %arg29[%c0_7, %c0_8] : memref<784x512xf32, #tpu.memory_space<vmem>>, vector<16x512xf32>
    tpu.vector_store %arg29[%c0_7, %c0_8], %8 {strides = array<i32>} : memref<784x512xf32, #tpu.memory_space<vmem>>, vector<16x512xf32>,
    %c16_i32 = arith.constant 16 : i32
    %10 = tpu.dynamic_rotate %4 by %c16_i32 dim 1 : vector<16x512xf32>, i32 -> vector<16x512xf32>
    %c1 = arith.constant 1 : index
    %c0_9 = arith.constant 0 : index
    %11 = vector.load %arg24[%c1, %c0_9] : memref<61x512xf32, #tpu.memory_space<vmem>>, vector<1x512xf32>
    %12 = vector.broadcast %11 : vector<1x512xf32> to vector<16x512xf32>
    %13 = arith.mulf %10, %12 : vector<16x512xf32>
    %c16 = arith.constant 16 : index
    %c0_10 = arith.constant 0 : index
    %14 = vector.load %arg29[%c16, %c0_10] : memref<784x512xf32, #tpu.memory_space<vmem>>, vector<16x512xf32>
    tpu.vector_store %arg29[%c16, %c0_10], %13 {strides = array<i32>} : memref<784x512xf32, #tpu.memory_space<vmem>>, vector<16x512xf32>,
    %c15_i32 = arith.constant 15 : i32
    %15 = tpu.dynamic_rotate %4 by %c15_i32 dim 1 : vector<16x512xf32>, i32 -> vector<16x512xf32>
    %c2 = arith.constant 2 : index
    %c0_11 = arith.constant 0 : index
    %16 = vector.load %arg24[%c2, %c0_11] : memref<61x512xf32, #tpu.memory_space<vmem>>, vector<1x512xf32>
    %17 = vector.broadcast %16 : vector<1x512xf32> to vector<16x512xf32>
    %18 = arith.mulf %15, %17 : vector<16x512xf32>
    %c32 = arith.constant 32 : index
    %c0_12 = arith.constant 0 : index
    %19 = vector.load %arg29[%c32, %c0_12] : memref<784x512xf32, #tpu.memory_space<vmem>>, vector<16x512xf32>
    tpu.vector_store %arg29[%c32, %c0_12], %18 {strides = array<i32>} : memref<784x512xf32, #tpu.memory_space<vmem>>, vector<16x512xf32>,
    %c1_i32 = arith.constant 1 : i32
    %20 = tpu.dynamic_rotate %4 by %c1_i32 dim 1 : vector<16x512xf32>, i32 -> vector<16x512xf32>
    %c3 = arith.constant 3 : index
    %c0_13 = arith.constant 0 : index
    %21 = vector.load %arg24[%c3, %c0_13] : memref<61x512xf32, #tpu.memory_space<vmem>>, vector<1x512xf32>
    %22 = vector.broadcast %21 : vector<1x512xf32> to vector<16x512xf32>
    %23 = arith.mulf %20, %22 : vector<16x512xf32>
    %c48 = arith.constant 48 : index
    %c0_14 = arith.constant 0 : index
    %24 = vector.load %arg29[%c48, %c0_14] : memref<784x512xf32, #tpu.memory_space<vmem>>, vector<16x512xf32>
    tpu.vector_store %arg29[%c48, %c0_14], %23 {strides = array<i32>} : memref<784x512xf32, #tpu.memory_space<vmem>>, vector<16x512xf32>,
    %c64 = arith.constant 64 : index
    %c0_15 = arith.constant 0 : index
    %25 = vector.load %arg29[%c64, %c0_15] : memref<784x512xf32, #tpu.memory_space<vmem>>, vector<16x512xf32>
    tpu.vector_store %arg29[%c64, %c0_15], %4 {strides = array<i32>} : memref<784x512xf32, #tpu.memory_space<vmem>>, vector<16x512xf32>,
    %c511_i32 = arith.constant 511 : i32
    %26 = tpu.dynamic_rotate %4 by %c511_i32 dim 1 : vector<16x512xf32>, i32 -> vector<16x512xf32>
    %c5 = arith.constant 5 : index
    %c0_16 = arith.constant 0 : index
    %27 = vector.load %arg24[%c5, %c0_16] : memref<61x512xf32, #tpu.memory_space<vmem>>, vector<1x512xf32>
    %28 = vector.broadcast %27 : vector<1x512xf32> to vector<16x512xf32>
    %29 = arith.mulf %26, %28 : vector<16x512xf32>
    %c80 = arith.constant 80 : index
    %c0_17 = arith.constant 0 : index
    %30 = vector.load %arg29[%c80, %c0_17] : memref<784x512xf32, #tpu.memory_space<vmem>>, vector<16x512xf32>
    tpu.vector_store %arg29[%c80, %c0_17], %29 {strides = array<i32>} : memref<784x512xf32, #tpu.memory_space<vmem>>, vector<16x512xf32>,
    %c497_i32 = arith.constant 497 : i32
    %31 = tpu.dynamic_rotate %4 by %c497_i32 dim 1 : vector<16x512xf32>, i32 -> vector<16x512xf32>
    %c6 = arith.constant 6 : index
    %c0_18 = arith.constant 0 : index
    %32 = vector.load %arg24[%c6, %c0_18] : memref<61x512xf32, #tpu.memory_space<vmem>>, vector<1x512xf32>
    %33 = vector.broadcast %32 : vector<1x512xf32> to vector<16x512xf32>
    %34 = arith.mulf %31, %33 : vector<16x512xf32>
    %c96 = arith.constant 96 : index
    %c0_19 = arith.constant 0 : index
    %35 = vector.load %arg29[%c96, %c0_19] : memref<784x512xf32, #tpu.memory_space<vmem>>, vector<16x512xf32>
    tpu.vector_store %arg29[%c96, %c0_19], %34 {strides = array<i32>} : memref<784x512xf32, #tpu.memory_space<vmem>>, vector<16x512xf32>,
    %c496_i32 = arith.constant 496 : i32
    %36 = tpu.dynamic_rotate %4 by %c496_i32 dim 1 : vector<16x512xf32>, i32 -> vector<16x512xf32>
    %c7 = arith.constant 7 : index
    %c0_20 = arith.constant 0 : index
    %37 = vector.load %arg24[%c7, %c0_20] : memref<61x512xf32, #tpu.memory_space<vmem>>, vector<1x512xf32>
    %38 = vector.broadcast %37 : vector<1x512xf32> to vector<16x512xf32>
    %39 = arith.mulf %36, %38 : vector<16x512xf32>
    %c112 = arith.constant 112 : index
    %c0_21 = arith.constant 0 : index
    %40 = vector.load %arg29[%c112, %c0_21] : memref<784x512xf32, #tpu.memory_space<vmem>>, vector<16x512xf32>
    tpu.vector_store %arg29[%c112, %c0_21], %39 {strides = array<i32>} : memref<784x512xf32, #tpu.memory_space<vmem>>, vector<16x512xf32>,
    %c495_i32 = arith.constant 495 : i32
    %41 = tpu.dynamic_rotate %4 by %c495_i32 dim 1 : vector<16x512xf32>, i32 -> vector<16x512xf32>
    %c8 = arith.constant 8 : index
    %c0_22 = arith.constant 0 : index
    %42 = vector.load %arg24[%c8, %c0_22] : memref<61x512xf32, #tpu.memory_space<vmem>>, vector<1x512xf32>
    %43 = vector.broadcast %42 : vector<1x512xf32> to vector<16x512xf32>
    %44 = arith.mulf %41, %43 : vector<16x512xf32>
    %c128 = arith.constant 128 : index
    %c0_23 = arith.constant 0 : index
    %45 = vector.load %arg29[%c128, %c0_23] : memref<784x512xf32, #tpu.memory_space<vmem>>, vector<16x512xf32>
    tpu.vector_store %arg29[%c128, %c0_23], %44 {strides = array<i32>} : memref<784x512xf32, #tpu.memory_space<vmem>>, vector<16x512xf32>,
    %c0_24 = arith.constant 0 : index
    %c0_25 = arith.constant 0 : index
    %46 = vector.load %arg3[%c0_24, %c0_25] : memref<16x144xf32, #tpu.memory_space<vmem>>, vector<16x144xf32>
    %c0_26 = arith.constant 0 : index
    %c0_27 = arith.constant 0 : index
    %47 = vector.load %arg29[%c0_26, %c0_27] : memref<784x512xf32, #tpu.memory_space<vmem>>, vector<144x512xf32>
    %cst = arith.constant dense<0.000000e+00> : vector<16x512xf32>
    %48 = tpu.matmul %46, %47, %cst {dimension_numbers = #tpu.dot_dimension_numbers<[1], [0], [0], [1], [0, 0, 1, 1], [], []>} : vector<16x144xf32>, vector<144x512xf32>, vector<16x512xf32> -> vector<16x512xf32>
    %c0_28 = arith.constant 0 : index
    %c0_29 = arith.constant 0 : index
    %49 = vector.load %arg4[%c0_28, %c0_29] : memref<16x1xf32, #tpu.memory_space<vmem>>, vector<16x1xf32>
    %50 = vector.broadcast %49 : vector<16x1xf32> to vector<16x512xf32>
    %51 = arith.mulf %48, %50 : vector<16x512xf32>
    %c0_30 = arith.constant 0 : index
    %c0_31 = arith.constant 0 : index
    %52 = vector.load %arg5[%c0_30, %c0_31] : memref<16x1xf32, #tpu.memory_space<vmem>>, vector<16x1xf32>
    %53 = vector.broadcast %52 : vector<16x1xf32> to vector<16x512xf32>
    %54 = arith.addf %51, %53 : vector<16x512xf32>
    %55 = vector.extract_strided_slice %54 {offsets = [0, 0], sizes = [16, 256], strides = [1, 1]} : vector<16x512xf32> to vector<16x256xf32>
    %56 = vector.extract_strided_slice %54 {offsets = [0, 256], sizes = [16, 256], strides = [1, 1]} : vector<16x512xf32> to vector<16x256xf32>
    %c17_i32_32 = arith.constant 17 : i32
    %57 = tpu.dynamic_rotate %55 by %c17_i32_32 dim 1 : vector<16x256xf32>, i32 -> vector<16x256xf32>
    %c0_33 = arith.constant 0 : index
    %c0_34 = arith.constant 0 : index
    %58 = vector.load %arg24[%c0_33, %c0_34] : memref<61x512xf32, #tpu.memory_space<vmem>>, vector<1x256xf32>
    %59 = vector.broadcast %58 : vector<1x256xf32> to vector<16x256xf32>
    %60 = arith.mulf %57, %59 : vector<16x256xf32>
    %c0_35 = arith.constant 0 : index
    %c0_36 = arith.constant 0 : index
    %61 = vector.load %arg29[%c0_35, %c0_36] : memref<784x512xf32, #tpu.memory_space<vmem>>, vector<16x256xf32>
    tpu.vector_store %arg29[%c0_35, %c0_36], %60 {strides = array<i32>} : memref<784x512xf32, #tpu.memory_space<vmem>>, vector<16x256xf32>,
    %c16_i32_37 = arith.constant 16 : i32
    %62 = tpu.dynamic_rotate %55 by %c16_i32_37 dim 1 : vector<16x256xf32>, i32 -> vector<16x256xf32>
    %c1_38 = arith.constant 1 : index
    %c0_39 = arith.constant 0 : index
    %63 = vector.load %arg24[%c1_38, %c0_39] : memref<61x512xf32, #tpu.memory_space<vmem>>, vector<1x256xf32>
    %64 = vector.broadcast %63 : vector<1x256xf32> to vector<16x256xf32>
    %65 = arith.mulf %62, %64 : vector<16x256xf32>
    %c16_40 = arith.constant 16 : index
    %c0_41 = arith.constant 0 : index
    %66 = vector.load %arg29[%c16_40, %c0_41] : memref<784x512xf32, #tpu.memory_space<vmem>>, vector<16x256xf32>
    tpu.vector_store %arg29[%c16_40, %c0_41], %65 {strides = array<i32>} : memref<784x512xf32, #tpu.memory_space<vmem>>, vector<16x256xf32>,
    %c15_i32_42 = arith.constant 15 : i32
    %67 = tpu.dynamic_rotate %55 by %c15_i32_42 dim 1 : vector<16x256xf32>, i32 -> vector<16x256xf32>
    %c2_43 = arith.constant 2 : index
    %c0_44 = arith.constant 0 : index
    %68 = vector.load %arg24[%c2_43, %c0_44] : memref<61x512xf32, #tpu.memory_space<vmem>>, vector<1x256xf32>
    %69 = vector.broadcast %68 : vector<1x256xf32> to vector<16x256xf32>
    %70 = arith.mulf %67, %69 : vector<16x256xf32>
    %c32_45 = arith.constant 32 : index
    %c0_46 = arith.constant 0 : index
    %71 = vector.load %arg29[%c32_45, %c0_46] : memref<784x512xf32, #tpu.memory_space<vmem>>, vector<16x256xf32>
    tpu.vector_store %arg29[%c32_45, %c0_46], %70 {strides = array<i32>} : memref<784x512xf32, #tpu.memory_space<vmem>>, vector<16x256xf32>,
    %c1_i32_47 = arith.constant 1 : i32
    %72 = tpu.dynamic_rotate %55 by %c1_i32_47 dim 1 : vector<16x256xf32>, i32 -> vector<16x256xf32>
    %c3_48 = arith.constant 3 : index
    %c0_49 = arith.constant 0 : index
    %73 = vector.load %arg24[%c3_48, %c0_49] : memref<61x512xf32, #tpu.memory_space<vmem>>, vector<1x256xf32>
    %74 = vector.broadcast %73 : vector<1x256xf32> to vector<16x256xf32>
    %75 = arith.mulf %72, %74 : vector<16x256xf32>
    %c48_50 = arith.constant 48 : index
    %c0_51 = arith.constant 0 : index
    %76 = vector.load %arg29[%c48_50, %c0_51] : memref<784x512xf32, #tpu.memory_space<vmem>>, vector<16x256xf32>
    tpu.vector_store %arg29[%c48_50, %c0_51], %75 {strides = array<i32>} : memref<784x512xf32, #tpu.memory_space<vmem>>, vector<16x256xf32>,
    %c64_52 = arith.constant 64 : index
    %c0_53 = arith.constant 0 : index
    %77 = vector.load %arg29[%c64_52, %c0_53] : memref<784x512xf32, #tpu.memory_space<vmem>>, vector<16x256xf32>
    tpu.vector_store %arg29[%c64_52, %c0_53], %55 {strides = array<i32>} : memref<784x512xf32, #tpu.memory_space<vmem>>, vector<16x256xf32>,
    %c255_i32 = arith.constant 255 : i32
    %78 = tpu.dynamic_rotate %55 by %c255_i32 dim 1 : vector<16x256xf32>, i32 -> vector<16x256xf32>
    %c5_54 = arith.constant 5 : index
    %c0_55 = arith.constant 0 : index
    %79 = vector.load %arg24[%c5_54, %c0_55] : memref<61x512xf32, #tpu.memory_space<vmem>>, vector<1x256xf32>
    %80 = vector.broadcast %79 : vector<1x256xf32> to vector<16x256xf32>
    %81 = arith.mulf %78, %80 : vector<16x256xf32>
    %c80_56 = arith.constant 80 : index
    %c0_57 = arith.constant 0 : index
    %82 = vector.load %arg29[%c80_56, %c0_57] : memref<784x512xf32, #tpu.memory_space<vmem>>, vector<16x256xf32>
    tpu.vector_store %arg29[%c80_56, %c0_57], %81 {strides = array<i32>} : memref<784x512xf32, #tpu.memory_space<vmem>>, vector<16x256xf32>,
    %c241_i32 = arith.constant 241 : i32
    %83 = tpu.dynamic_rotate %55 by %c241_i32 dim 1 : vector<16x256xf32>, i32 -> vector<16x256xf32>
    %c6_58 = arith.constant 6 : index
    %c0_59 = arith.constant 0 : index
    %84 = vector.load %arg24[%c6_58, %c0_59] : memref<61x512xf32, #tpu.memory_space<vmem>>, vector<1x256xf32>
    %85 = vector.broadcast %84 : vector<1x256xf32> to vector<16x256xf32>
    %86 = arith.mulf %83, %85 : vector<16x256xf32>
    %c96_60 = arith.constant 96 : index
    %c0_61 = arith.constant 0 : index
    %87 = vector.load %arg29[%c96_60, %c0_61] : memref<784x512xf32, #tpu.memory_space<vmem>>, vector<16x256xf32>
    tpu.vector_store %arg29[%c96_60, %c0_61], %86 {strides = array<i32>} : memref<784x512xf32, #tpu.memory_space<vmem>>, vector<16x256xf32>,
    %c240_i32 = arith.constant 240 : i32
    %88 = tpu.dynamic_rotate %55 by %c240_i32 dim 1 : vector<16x256xf32>, i32 -> vector<16x256xf32>
    %c7_62 = arith.constant 7 : index
    %c0_63 = arith.constant 0 : index
    %89 = vector.load %arg24[%c7_62, %c0_63] : memref<61x512xf32, #tpu.memory_space<vmem>>, vector<1x256xf32>
    %90 = vector.broadcast %89 : vector<1x256xf32> to vector<16x256xf32>
    %91 = arith.mulf %88, %90 : vector<16x256xf32>
    %c112_64 = arith.constant 112 : index
    %c0_65 = arith.constant 0 : index
    %92 = vector.load %arg29[%c112_64, %c0_65] : memref<784x512xf32, #tpu.memory_space<vmem>>, vector<16x256xf32>
    tpu.vector_store %arg29[%c112_64, %c0_65], %91 {strides = array<i32>} : memref<784x512xf32, #tpu.memory_space<vmem>>, vector<16x256xf32>,
    %c239_i32 = arith.constant 239 : i32
    %93 = tpu.dynamic_rotate %55 by %c239_i32 dim 1 : vector<16x256xf32>, i32 -> vector<16x256xf32>
    %c8_66 = arith.constant 8 : index
    %c0_67 = arith.constant 0 : index
    %94 = vector.load %arg24[%c8_66, %c0_67] : memref<61x512xf32, #tpu.memory_space<vmem>>, vector<1x256xf32>
    %95 = vector.broadcast %94 : vector<1x256xf32> to vector<16x256xf32>
    %96 = arith.mulf %93, %95 : vector<16x256xf32>
    %c128_68 = arith.constant 128 : index
    %c0_69 = arith.constant 0 : index
    %97 = vector.load %arg29[%c128_68, %c0_69] : memref<784x512xf32, #tpu.memory_space<vmem>>, vector<16x256xf32>
    tpu.vector_store %arg29[%c128_68, %c0_69], %96 {strides = array<i32>} : memref<784x512xf32, #tpu.memory_space<vmem>>, vector<16x256xf32>,
    %c17_i32_70 = arith.constant 17 : i32
    %98 = tpu.dynamic_rotate %56 by %c17_i32_70 dim 1 : vector<16x256xf32>, i32 -> vector<16x256xf32>
    %c0_71 = arith.constant 0 : index
    %c0_72 = arith.constant 0 : index
    %99 = vector.load %arg24[%c0_71, %c0_72] : memref<61x512xf32, #tpu.memory_space<vmem>>, vector<1x256xf32>
    %100 = vector.broadcast %99 : vector<1x256xf32> to vector<16x256xf32>
    %101 = arith.mulf %98, %100 : vector<16x256xf32>
    %c144 = arith.constant 144 : index
    %c0_73 = arith.constant 0 : index
    %102 = vector.load %arg29[%c144, %c0_73] : memref<784x512xf32, #tpu.memory_space<vmem>>, vector<16x256xf32>
    tpu.vector_store %arg29[%c144, %c0_73], %101 {strides = array<i32>} : memref<784x512xf32, #tpu.memory_space<vmem>>, vector<16x256xf32>,
    %c16_i32_74 = arith.constant 16 : i32
    %103 = tpu.dynamic_rotate %56 by %c16_i32_74 dim 1 : vector<16x256xf32>, i32 -> vector<16x256xf32>
    %c1_75 = arith.constant 1 : index
    %c0_76 = arith.constant 0 : index
    %104 = vector.load %arg24[%c1_75, %c0_76] : memref<61x512xf32, #tpu.memory_space<vmem>>, vector<1x256xf32>
    %105 = vector.broadcast %104 : vector<1x256xf32> to vector<16x256xf32>
    %106 = arith.mulf %103, %105 : vector<16x256xf32>
    %c160 = arith.constant 160 : index
    %c0_77 = arith.constant 0 : index
    %107 = vector.load %arg29[%c160, %c0_77] : memref<784x512xf32, #tpu.memory_space<vmem>>, vector<16x256xf32>
    tpu.vector_store %arg29[%c160, %c0_77], %106 {strides = array<i32>} : memref<784x512xf32, #tpu.memory_space<vmem>>, vector<16x256xf32>,
    %c15_i32_78 = arith.constant 15 : i32
    %108 = tpu.dynamic_rotate %56 by %c15_i32_78 dim 1 : vector<16x256xf32>, i32 -> vector<16x256xf32>
    %c2_79 = arith.constant 2 : index
    %c0_80 = arith.constant 0 : index
    %109 = vector.load %arg24[%c2_79, %c0_80] : memref<61x512xf32, #tpu.memory_space<vmem>>, vector<1x256xf32>
    %110 = vector.broadcast %109 : vector<1x256xf32> to vector<16x256xf32>
    %111 = arith.mulf %108, %110 : vector<16x256xf32>
    %c176 = arith.constant 176 : index
    %c0_81 = arith.constant 0 : index
    %112 = vector.load %arg29[%c176, %c0_81] : memref<784x512xf32, #tpu.memory_space<vmem>>, vector<16x256xf32>
    tpu.vector_store %arg29[%c176, %c0_81], %111 {strides = array<i32>} : memref<784x512xf32, #tpu.memory_space<vmem>>, vector<16x256xf32>,
    %c1_i32_82 = arith.constant 1 : i32
    %113 = tpu.dynamic_rotate %56 by %c1_i32_82 dim 1 : vector<16x256xf32>, i32 -> vector<16x256xf32>
    %c3_83 = arith.constant 3 : index
    %c0_84 = arith.constant 0 : index
    %114 = vector.load %arg24[%c3_83, %c0_84] : memref<61x512xf32, #tpu.memory_space<vmem>>, vector<1x256xf32>
    %115 = vector.broadcast %114 : vector<1x256xf32> to vector<16x256xf32>
    %116 = arith.mulf %113, %115 : vector<16x256xf32>
    %c192 = arith.constant 192 : index
    %c0_85 = arith.constant 0 : index
    %117 = vector.load %arg29[%c192, %c0_85] : memref<784x512xf32, #tpu.memory_space<vmem>>, vector<16x256xf32>
    tpu.vector_store %arg29[%c192, %c0_85], %116 {strides = array<i32>} : memref<784x512xf32, #tpu.memory_space<vmem>>, vector<16x256xf32>,
    %c208 = arith.constant 208 : index
    %c0_86 = arith.constant 0 : index
    %118 = vector.load %arg29[%c208, %c0_86] : memref<784x512xf32, #tpu.memory_space<vmem>>, vector<16x256xf32>
    tpu.vector_store %arg29[%c208, %c0_86], %56 {strides = array<i32>} : memref<784x512xf32, #tpu.memory_space<vmem>>, vector<16x256xf32>,
    %c255_i32_87 = arith.constant 255 : i32
    %119 = tpu.dynamic_rotate %56 by %c255_i32_87 dim 1 : vector<16x256xf32>, i32 -> vector<16x256xf32>
    %c5_88 = arith.constant 5 : index
    %c0_89 = arith.constant 0 : index
    %120 = vector.load %arg24[%c5_88, %c0_89] : memref<61x512xf32, #tpu.memory_space<vmem>>, vector<1x256xf32>
    %121 = vector.broadcast %120 : vector<1x256xf32> to vector<16x256xf32>
    %122 = arith.mulf %119, %121 : vector<16x256xf32>
    %c224 = arith.constant 224 : index
    %c0_90 = arith.constant 0 : index
    %123 = vector.load %arg29[%c224, %c0_90] : memref<784x512xf32, #tpu.memory_space<vmem>>, vector<16x256xf32>
    tpu.vector_store %arg29[%c224, %c0_90], %122 {strides = array<i32>} : memref<784x512xf32, #tpu.memory_space<vmem>>, vector<16x256xf32>,
    %c241_i32_91 = arith.constant 241 : i32
    %124 = tpu.dynamic_rotate %56 by %c241_i32_91 dim 1 : vector<16x256xf32>, i32 -> vector<16x256xf32>
    %c6_92 = arith.constant 6 : index
    %c0_93 = arith.constant 0 : index
    %125 = vector.load %arg24[%c6_92, %c0_93] : memref<61x512xf32, #tpu.memory_space<vmem>>, vector<1x256xf32>
    %126 = vector.broadcast %125 : vector<1x256xf32> to vector<16x256xf32>
    %127 = arith.mulf %124, %126 : vector<16x256xf32>
    %c240 = arith.constant 240 : index
    %c0_94 = arith.constant 0 : index
    %128 = vector.load %arg29[%c240, %c0_94] : memref<784x512xf32, #tpu.memory_space<vmem>>, vector<16x256xf32>
    tpu.vector_store %arg29[%c240, %c0_94], %127 {strides = array<i32>} : memref<784x512xf32, #tpu.memory_space<vmem>>, vector<16x256xf32>,
    %c240_i32_95 = arith.constant 240 : i32
    %129 = tpu.dynamic_rotate %56 by %c240_i32_95 dim 1 : vector<16x256xf32>, i32 -> vector<16x256xf32>
    %c7_96 = arith.constant 7 : index
    %c0_97 = arith.constant 0 : index
    %130 = vector.load %arg24[%c7_96, %c0_97] : memref<61x512xf32, #tpu.memory_space<vmem>>, vector<1x256xf32>
    %131 = vector.broadcast %130 : vector<1x256xf32> to vector<16x256xf32>
    %132 = arith.mulf %129, %131 : vector<16x256xf32>
    %c256 = arith.constant 256 : index
    %c0_98 = arith.constant 0 : index
    %133 = vector.load %arg29[%c256, %c0_98] : memref<784x512xf32, #tpu.memory_space<vmem>>, vector<16x256xf32>
    tpu.vector_store %arg29[%c256, %c0_98], %132 {strides = array<i32>} : memref<784x512xf32, #tpu.memory_space<vmem>>, vector<16x256xf32>,
    %c239_i32_99 = arith.constant 239 : i32
    %134 = tpu.dynamic_rotate %56 by %c239_i32_99 dim 1 : vector<16x256xf32>, i32 -> vector<16x256xf32>
    %c8_100 = arith.constant 8 : index
    %c0_101 = arith.constant 0 : index
    %135 = vector.load %arg24[%c8_100, %c0_101] : memref<61x512xf32, #tpu.memory_space<vmem>>, vector<1x256xf32>
    %136 = vector.broadcast %135 : vector<1x256xf32> to vector<16x256xf32>
    %137 = arith.mulf %134, %136 : vector<16x256xf32>
    %c272 = arith.constant 272 : index
    %c0_102 = arith.constant 0 : index
    %138 = vector.load %arg29[%c272, %c0_102] : memref<784x512xf32, #tpu.memory_space<vmem>>, vector<16x256xf32>
    tpu.vector_store %arg29[%c272, %c0_102], %137 {strides = array<i32>} : memref<784x512xf32, #tpu.memory_space<vmem>>, vector<16x256xf32>,
    %c0_103 = arith.constant 0 : index
    %c0_104 = arith.constant 0 : index
    %139 = vector.load %arg6[%c0_103, %c0_104] : memref<32x288xf32, #tpu.memory_space<vmem>>, vector<32x288xf32>
    %c0_105 = arith.constant 0 : index
    %c0_106 = arith.constant 0 : index
    %140 = vector.load %arg29[%c0_105, %c0_106] : memref<784x512xf32, #tpu.memory_space<vmem>>, vector<288x256xf32>
    %cst_107 = arith.constant dense<0.000000e+00> : vector<32x256xf32>
    %141 = tpu.matmul %139, %140, %cst_107 {dimension_numbers = #tpu.dot_dimension_numbers<[1], [0], [0], [1], [0, 0, 1, 1], [], []>} : vector<32x288xf32>, vector<288x256xf32>, vector<32x256xf32> -> vector<32x256xf32>
    %c0_108 = arith.constant 0 : index
    %c0_109 = arith.constant 0 : index
    %142 = vector.load %arg7[%c0_108, %c0_109] : memref<32x1xf32, #tpu.memory_space<vmem>>, vector<32x1xf32>
    %143 = vector.broadcast %142 : vector<32x1xf32> to vector<32x256xf32>
    %144 = arith.mulf %141, %143 : vector<32x256xf32>
    %c0_110 = arith.constant 0 : index
    %c0_111 = arith.constant 0 : index
    %145 = vector.load %arg8[%c0_110, %c0_111] : memref<32x1xf32, #tpu.memory_space<vmem>>, vector<32x1xf32>
    %146 = vector.broadcast %145 : vector<32x1xf32> to vector<32x256xf32>
    %147 = arith.addf %144, %146 : vector<32x256xf32>
    %cst_112 = arith.constant 0.000000e+00 : f32
    %148 = vector.broadcast %cst_112 : f32 to vector<32x256xf32>
    %149 = arith.cmpf oge, %147, %148 : vector<32x256xf32>
    %cst_113 = arith.constant 1.000000e-01 : f32
    %150 = vector.broadcast %cst_113 : f32 to vector<32x256xf32>
    %151 = arith.mulf %150, %147 : vector<32x256xf32>
    %152 = arith.select %149, %147, %151 : vector<32x256xi1>, vector<32x256xf32>
    %c17_i32_114 = arith.constant 17 : i32
    %153 = tpu.dynamic_rotate %152 by %c17_i32_114 dim 1 : vector<32x256xf32>, i32 -> vector<32x256xf32>
    %c0_115 = arith.constant 0 : index
    %c0_116 = arith.constant 0 : index
    %154 = vector.load %arg24[%c0_115, %c0_116] : memref<61x512xf32, #tpu.memory_space<vmem>>, vector<1x256xf32>
    %155 = vector.broadcast %154 : vector<1x256xf32> to vector<32x256xf32>
    %156 = arith.mulf %153, %155 : vector<32x256xf32>
    %c0_117 = arith.constant 0 : index
    %c0_118 = arith.constant 0 : index
    %157 = vector.load %arg29[%c0_117, %c0_118] : memref<784x512xf32, #tpu.memory_space<vmem>>, vector<32x256xf32>
    tpu.vector_store %arg29[%c0_117, %c0_118], %156 {strides = array<i32>} : memref<784x512xf32, #tpu.memory_space<vmem>>, vector<32x256xf32>,
    %c16_i32_119 = arith.constant 16 : i32
    %158 = tpu.dynamic_rotate %152 by %c16_i32_119 dim 1 : vector<32x256xf32>, i32 -> vector<32x256xf32>
    %c1_120 = arith.constant 1 : index
    %c0_121 = arith.constant 0 : index
    %159 = vector.load %arg24[%c1_120, %c0_121] : memref<61x512xf32, #tpu.memory_space<vmem>>, vector<1x256xf32>
    %160 = vector.broadcast %159 : vector<1x256xf32> to vector<32x256xf32>
    %161 = arith.mulf %158, %160 : vector<32x256xf32>
    %c32_122 = arith.constant 32 : index
    %c0_123 = arith.constant 0 : index
    %162 = vector.load %arg29[%c32_122, %c0_123] : memref<784x512xf32, #tpu.memory_space<vmem>>, vector<32x256xf32>
    tpu.vector_store %arg29[%c32_122, %c0_123], %161 {strides = array<i32>} : memref<784x512xf32, #tpu.memory_space<vmem>>, vector<32x256xf32>,
    %c15_i32_124 = arith.constant 15 : i32
    %163 = tpu.dynamic_rotate %152 by %c15_i32_124 dim 1 : vector<32x256xf32>, i32 -> vector<32x256xf32>
    %c2_125 = arith.constant 2 : index
    %c0_126 = arith.constant 0 : index
    %164 = vector.load %arg24[%c2_125, %c0_126] : memref<61x512xf32, #tpu.memory_space<vmem>>, vector<1x256xf32>
    %165 = vector.broadcast %164 : vector<1x256xf32> to vector<32x256xf32>
    %166 = arith.mulf %163, %165 : vector<32x256xf32>
    %c64_127 = arith.constant 64 : index
    %c0_128 = arith.constant 0 : index
    %167 = vector.load %arg29[%c64_127, %c0_128] : memref<784x512xf32, #tpu.memory_space<vmem>>, vector<32x256xf32>
    tpu.vector_store %arg29[%c64_127, %c0_128], %166 {strides = array<i32>} : memref<784x512xf32, #tpu.memory_space<vmem>>, vector<32x256xf32>,
    %c1_i32_129 = arith.constant 1 : i32
    %168 = tpu.dynamic_rotate %152 by %c1_i32_129 dim 1 : vector<32x256xf32>, i32 -> vector<32x256xf32>
    %c3_130 = arith.constant 3 : index
    %c0_131 = arith.constant 0 : index
    %169 = vector.load %arg24[%c3_130, %c0_131] : memref<61x512xf32, #tpu.memory_space<vmem>>, vector<1x256xf32>
    %170 = vector.broadcast %169 : vector<1x256xf32> to vector<32x256xf32>
    %171 = arith.mulf %168, %170 : vector<32x256xf32>
    %c96_132 = arith.constant 96 : index
    %c0_133 = arith.constant 0 : index
    %172 = vector.load %arg29[%c96_132, %c0_133] : memref<784x512xf32, #tpu.memory_space<vmem>>, vector<32x256xf32>
    tpu.vector_store %arg29[%c96_132, %c0_133], %171 {strides = array<i32>} : memref<784x512xf32, #tpu.memory_space<vmem>>, vector<32x256xf32>,
    %c128_134 = arith.constant 128 : index
    %c0_135 = arith.constant 0 : index
    %173 = vector.load %arg29[%c128_134, %c0_135] : memref<784x512xf32, #tpu.memory_space<vmem>>, vector<32x256xf32>
    tpu.vector_store %arg29[%c128_134, %c0_135], %152 {strides = array<i32>} : memref<784x512xf32, #tpu.memory_space<vmem>>, vector<32x256xf32>,
    %c255_i32_136 = arith.constant 255 : i32
    %174 = tpu.dynamic_rotate %152 by %c255_i32_136 dim 1 : vector<32x256xf32>, i32 -> vector<32x256xf32>
    %c5_137 = arith.constant 5 : index
    %c0_138 = arith.constant 0 : index
    %175 = vector.load %arg24[%c5_137, %c0_138] : memref<61x512xf32, #tpu.memory_space<vmem>>, vector<1x256xf32>
    %176 = vector.broadcast %175 : vector<1x256xf32> to vector<32x256xf32>
    %177 = arith.mulf %174, %176 : vector<32x256xf32>
    %c160_139 = arith.constant 160 : index
    %c0_140 = arith.constant 0 : index
    %178 = vector.load %arg29[%c160_139, %c0_140] : memref<784x512xf32, #tpu.memory_space<vmem>>, vector<32x256xf32>
    tpu.vector_store %arg29[%c160_139, %c0_140], %177 {strides = array<i32>} : memref<784x512xf32, #tpu.memory_space<vmem>>, vector<32x256xf32>,
    %c241_i32_141 = arith.constant 241 : i32
    %179 = tpu.dynamic_rotate %152 by %c241_i32_141 dim 1 : vector<32x256xf32>, i32 -> vector<32x256xf32>
    %c6_142 = arith.constant 6 : index
    %c0_143 = arith.constant 0 : index
    %180 = vector.load %arg24[%c6_142, %c0_143] : memref<61x512xf32, #tpu.memory_space<vmem>>, vector<1x256xf32>
    %181 = vector.broadcast %180 : vector<1x256xf32> to vector<32x256xf32>
    %182 = arith.mulf %179, %181 : vector<32x256xf32>
    %c192_144 = arith.constant 192 : index
    %c0_145 = arith.constant 0 : index
    %183 = vector.load %arg29[%c192_144, %c0_145] : memref<784x512xf32, #tpu.memory_space<vmem>>, vector<32x256xf32>
    tpu.vector_store %arg29[%c192_144, %c0_145], %182 {strides = array<i32>} : memref<784x512xf32, #tpu.memory_space<vmem>>, vector<32x256xf32>,
    %c240_i32_146 = arith.constant 240 : i32
    %184 = tpu.dynamic_rotate %152 by %c240_i32_146 dim 1 : vector<32x256xf32>, i32 -> vector<32x256xf32>
    %c7_147 = arith.constant 7 : index
    %c0_148 = arith.constant 0 : index
    %185 = vector.load %arg24[%c7_147, %c0_148] : memref<61x512xf32, #tpu.memory_space<vmem>>, vector<1x256xf32>
    %186 = vector.broadcast %185 : vector<1x256xf32> to vector<32x256xf32>
    %187 = arith.mulf %184, %186 : vector<32x256xf32>
    %c224_149 = arith.constant 224 : index
    %c0_150 = arith.constant 0 : index
    %188 = vector.load %arg29[%c224_149, %c0_150] : memref<784x512xf32, #tpu.memory_space<vmem>>, vector<32x256xf32>
    tpu.vector_store %arg29[%c224_149, %c0_150], %187 {strides = array<i32>} : memref<784x512xf32, #tpu.memory_space<vmem>>, vector<32x256xf32>,
    %c239_i32_151 = arith.constant 239 : i32
    %189 = tpu.dynamic_rotate %152 by %c239_i32_151 dim 1 : vector<32x256xf32>, i32 -> vector<32x256xf32>
    %c8_152 = arith.constant 8 : index
    %c0_153 = arith.constant 0 : index
    %190 = vector.load %arg24[%c8_152, %c0_153] : memref<61x512xf32, #tpu.memory_space<vmem>>, vector<1x256xf32>
    %191 = vector.broadcast %190 : vector<1x256xf32> to vector<32x256xf32>
    %192 = arith.mulf %189, %191 : vector<32x256xf32>
    %c256_154 = arith.constant 256 : index
    %c0_155 = arith.constant 0 : index
    %193 = vector.load %arg29[%c256_154, %c0_155] : memref<784x512xf32, #tpu.memory_space<vmem>>, vector<32x256xf32>
    tpu.vector_store %arg29[%c256_154, %c0_155], %192 {strides = array<i32>} : memref<784x512xf32, #tpu.memory_space<vmem>>, vector<32x256xf32>,
    %c0_156 = arith.constant 0 : index
    %c0_157 = arith.constant 0 : index
    %194 = vector.load %arg9[%c0_156, %c0_157] : memref<16x288xf32, #tpu.memory_space<vmem>>, vector<16x288xf32>
    %c0_158 = arith.constant 0 : index
    %c0_159 = arith.constant 0 : index
    %195 = vector.load %arg29[%c0_158, %c0_159] : memref<784x512xf32, #tpu.memory_space<vmem>>, vector<288x256xf32>
    %cst_160 = arith.constant dense<0.000000e+00> : vector<16x256xf32>
    %196 = tpu.matmul %194, %195, %cst_160 {dimension_numbers = #tpu.dot_dimension_numbers<[1], [0], [0], [1], [0, 0, 1, 1], [], []>} : vector<16x288xf32>, vector<288x256xf32>, vector<16x256xf32> -> vector<16x256xf32>
    %c0_161 = arith.constant 0 : index
    %c0_162 = arith.constant 0 : index
    %197 = vector.load %arg10[%c0_161, %c0_162] : memref<16x1xf32, #tpu.memory_space<vmem>>, vector<16x1xf32>
    %198 = vector.broadcast %197 : vector<16x1xf32> to vector<16x256xf32>
    %199 = arith.mulf %196, %198 : vector<16x256xf32>
    %c0_163 = arith.constant 0 : index
    %c0_164 = arith.constant 0 : index
    %200 = vector.load %arg11[%c0_163, %c0_164] : memref<16x1xf32, #tpu.memory_space<vmem>>, vector<16x1xf32>
    %201 = vector.broadcast %200 : vector<16x1xf32> to vector<16x256xf32>
    %202 = arith.addf %199, %201 : vector<16x256xf32>
    %cst_165 = arith.constant 0.000000e+00 : f32
    %203 = vector.broadcast %cst_165 : f32 to vector<16x256xf32>
    %c96_i32 = arith.constant 96 : i32
    %204 = tpu.dynamic_rotate %55 by %c96_i32 dim 1 : vector<16x256xf32>, i32 -> vector<16x256xf32>
    %c25 = arith.constant 25 : index
    %c0_166 = arith.constant 0 : index
    %205 = vector.load %arg24[%c25, %c0_166] : memref<61x512xf32, #tpu.memory_space<vmem>>, vector<1x256xf32>
    %206 = vector.broadcast %205 : vector<1x256xf32> to vector<16x256xf32>
    %207 = arith.mulf %204, %206 : vector<16x256xf32>
    %cst_167 = arith.constant 0.018544022 : f32
    %208 = vector.broadcast %cst_167 : f32 to vector<16x256xf32>
    %209 = arith.mulf %208, %207 : vector<16x256xf32>
    %210 = arith.addf %203, %209 : vector<16x256xf32>
    %c80_i32 = arith.constant 80 : i32
    %211 = tpu.dynamic_rotate %55 by %c80_i32 dim 1 : vector<16x256xf32>, i32 -> vector<16x256xf32>
    %c27 = arith.constant 27 : index
    %c0_168 = arith.constant 0 : index
    %212 = vector.load %arg24[%c27, %c0_168] : memref<61x512xf32, #tpu.memory_space<vmem>>, vector<1x256xf32>
    %213 = vector.broadcast %212 : vector<1x256xf32> to vector<16x256xf32>
    %214 = arith.mulf %211, %213 : vector<16x256xf32>
    %cst_169 = arith.constant 0.0341669433 : f32
    %215 = vector.broadcast %cst_169 : f32 to vector<16x256xf32>
    %216 = arith.mulf %215, %214 : vector<16x256xf32>
    %217 = arith.addf %210, %216 : vector<16x256xf32>
    %c64_i32 = arith.constant 64 : i32
    %218 = tpu.dynamic_rotate %55 by %c64_i32 dim 1 : vector<16x256xf32>, i32 -> vector<16x256xf32>
    %c18 = arith.constant 18 : index
    %c0_170 = arith.constant 0 : index
    %219 = vector.load %arg24[%c18, %c0_170] : memref<61x512xf32, #tpu.memory_space<vmem>>, vector<1x256xf32>
    %220 = vector.broadcast %219 : vector<1x256xf32> to vector<16x256xf32>
    %221 = arith.mulf %218, %220 : vector<16x256xf32>
    %cst_171 = arith.constant 0.0563317649 : f32
    %222 = vector.broadcast %cst_171 : f32 to vector<16x256xf32>
    %223 = arith.mulf %222, %221 : vector<16x256xf32>
    %224 = arith.addf %217, %223 : vector<16x256xf32>
    %c48_i32 = arith.constant 48 : i32
    %225 = tpu.dynamic_rotate %55 by %c48_i32 dim 1 : vector<16x256xf32>, i32 -> vector<16x256xf32>
    %c29 = arith.constant 29 : index
    %c0_172 = arith.constant 0 : index
    %226 = vector.load %arg24[%c29, %c0_172] : memref<61x512xf32, #tpu.memory_space<vmem>>, vector<1x256xf32>
    %227 = vector.broadcast %226 : vector<1x256xf32> to vector<16x256xf32>
    %228 = arith.mulf %225, %227 : vector<16x256xf32>
    %cst_173 = arith.constant 0.0831085368 : f32
    %229 = vector.broadcast %cst_173 : f32 to vector<16x256xf32>
    %230 = arith.mulf %229, %228 : vector<16x256xf32>
    %231 = arith.addf %224, %230 : vector<16x256xf32>
    %c32_i32 = arith.constant 32 : i32
    %232 = tpu.dynamic_rotate %55 by %c32_i32 dim 1 : vector<16x256xf32>, i32 -> vector<16x256xf32>
    %c10 = arith.constant 10 : index
    %c0_174 = arith.constant 0 : index
    %233 = vector.load %arg24[%c10, %c0_174] : memref<61x512xf32, #tpu.memory_space<vmem>>, vector<1x256xf32>
    %234 = vector.broadcast %233 : vector<1x256xf32> to vector<16x256xf32>
    %235 = arith.mulf %232, %234 : vector<16x256xf32>
    %cst_175 = arith.constant 0.109719291 : f32
    %236 = vector.broadcast %cst_175 : f32 to vector<16x256xf32>
    %237 = arith.mulf %236, %235 : vector<16x256xf32>
    %238 = arith.addf %231, %237 : vector<16x256xf32>
    %c16_i32_176 = arith.constant 16 : i32
    %239 = tpu.dynamic_rotate %55 by %c16_i32_176 dim 1 : vector<16x256xf32>, i32 -> vector<16x256xf32>
    %c1_177 = arith.constant 1 : index
    %c0_178 = arith.constant 0 : index
    %240 = vector.load %arg24[%c1_177, %c0_178] : memref<61x512xf32, #tpu.memory_space<vmem>>, vector<1x256xf32>
    %241 = vector.broadcast %240 : vector<1x256xf32> to vector<16x256xf32>
    %242 = arith.mulf %239, %241 : vector<16x256xf32>
    %cst_179 = arith.constant 0.129618034 : f32
    %243 = vector.broadcast %cst_179 : f32 to vector<16x256xf32>
    %244 = arith.mulf %243, %242 : vector<16x256xf32>
    %245 = arith.addf %238, %244 : vector<16x256xf32>
    %cst_180 = arith.constant 0.137022823 : f32
    %246 = vector.broadcast %cst_180 : f32 to vector<16x256xf32>
    %247 = arith.mulf %246, %55 : vector<16x256xf32>
    %248 = arith.addf %245, %247 : vector<16x256xf32>
    %c240_i32_181 = arith.constant 240 : i32
    %249 = tpu.dynamic_rotate %55 by %c240_i32_181 dim 1 : vector<16x256xf32>, i32 -> vector<16x256xf32>
    %c7_182 = arith.constant 7 : index
    %c0_183 = arith.constant 0 : index
    %250 = vector.load %arg24[%c7_182, %c0_183] : memref<61x512xf32, #tpu.memory_space<vmem>>, vector<1x256xf32>
    %251 = vector.broadcast %250 : vector<1x256xf32> to vector<16x256xf32>
    %252 = arith.mulf %249, %251 : vector<16x256xf32>
    %cst_184 = arith.constant 0.129618034 : f32
    %253 = vector.broadcast %cst_184 : f32 to vector<16x256xf32>
    %254 = arith.mulf %253, %252 : vector<16x256xf32>
    %255 = arith.addf %248, %254 : vector<16x256xf32>
    %c224_i32 = arith.constant 224 : i32
    %256 = tpu.dynamic_rotate %55 by %c224_i32 dim 1 : vector<16x256xf32>, i32 -> vector<16x256xf32>
    %c15 = arith.constant 15 : index
    %c0_185 = arith.constant 0 : index
    %257 = vector.load %arg24[%c15, %c0_185] : memref<61x512xf32, #tpu.memory_space<vmem>>, vector<1x256xf32>
    %258 = vector.broadcast %257 : vector<1x256xf32> to vector<16x256xf32>
    %259 = arith.mulf %256, %258 : vector<16x256xf32>
    %cst_186 = arith.constant 0.109719291 : f32
    %260 = vector.broadcast %cst_186 : f32 to vector<16x256xf32>
    %261 = arith.mulf %260, %259 : vector<16x256xf32>
    %262 = arith.addf %255, %261 : vector<16x256xf32>
    %c208_i32 = arith.constant 208 : i32
    %263 = tpu.dynamic_rotate %55 by %c208_i32 dim 1 : vector<16x256xf32>, i32 -> vector<16x256xf32>
    %c31 = arith.constant 31 : index
    %c0_187 = arith.constant 0 : index
    %264 = vector.load %arg24[%c31, %c0_187] : memref<61x512xf32, #tpu.memory_space<vmem>>, vector<1x256xf32>
    %265 = vector.broadcast %264 : vector<1x256xf32> to vector<16x256xf32>
    %266 = arith.mulf %263, %265 : vector<16x256xf32>
    %cst_188 = arith.constant 0.0831085368 : f32
    %267 = vector.broadcast %cst_188 : f32 to vector<16x256xf32>
    %268 = arith.mulf %267, %266 : vector<16x256xf32>
    %269 = arith.addf %262, %268 : vector<16x256xf32>
    %c192_i32 = arith.constant 192 : i32
    %270 = tpu.dynamic_rotate %55 by %c192_i32 dim 1 : vector<16x256xf32>, i32 -> vector<16x256xf32>
    %c23 = arith.constant 23 : index
    %c0_189 = arith.constant 0 : index
    %271 = vector.load %arg24[%c23, %c0_189] : memref<61x512xf32, #tpu.memory_space<vmem>>, vector<1x256xf32>
    %272 = vector.broadcast %271 : vector<1x256xf32> to vector<16x256xf32>
    %273 = arith.mulf %270, %272 : vector<16x256xf32>
    %cst_190 = arith.constant 0.0563317649 : f32
    %274 = vector.broadcast %cst_190 : f32 to vector<16x256xf32>
    %275 = arith.mulf %274, %273 : vector<16x256xf32>
    %276 = arith.addf %269, %275 : vector<16x256xf32>
    %c176_i32 = arith.constant 176 : i32
    %277 = tpu.dynamic_rotate %55 by %c176_i32 dim 1 : vector<16x256xf32>, i32 -> vector<16x256xf32>
    %c33 = arith.constant 33 : index
    %c0_191 = arith.constant 0 : index
    %278 = vector.load %arg24[%c33, %c0_191] : memref<61x512xf32, #tpu.memory_space<vmem>>, vector<1x256xf32>
    %279 = vector.broadcast %278 : vector<1x256xf32> to vector<16x256xf32>
    %280 = arith.mulf %277, %279 : vector<16x256xf32>
    %cst_192 = arith.constant 0.0341669433 : f32
    %281 = vector.broadcast %cst_192 : f32 to vector<16x256xf32>
    %282 = arith.mulf %281, %280 : vector<16x256xf32>
    %283 = arith.addf %276, %282 : vector<16x256xf32>
    %c160_i32 = arith.constant 160 : i32
    %284 = tpu.dynamic_rotate %55 by %c160_i32 dim 1 : vector<16x256xf32>, i32 -> vector<16x256xf32>
    %c35 = arith.constant 35 : index
    %c0_193 = arith.constant 0 : index
    %285 = vector.load %arg24[%c35, %c0_193] : memref<61x512xf32, #tpu.memory_space<vmem>>, vector<1x256xf32>
    %286 = vector.broadcast %285 : vector<1x256xf32> to vector<16x256xf32>
    %287 = arith.mulf %284, %286 : vector<16x256xf32>
    %cst_194 = arith.constant 0.018544022 : f32
    %288 = vector.broadcast %cst_194 : f32 to vector<16x256xf32>
    %289 = arith.mulf %288, %287 : vector<16x256xf32>
    %290 = arith.addf %283, %289 : vector<16x256xf32>
    %cst_195 = arith.constant 0.000000e+00 : f32
    %291 = vector.broadcast %cst_195 : f32 to vector<16x256xf32>
    %c6_i32 = arith.constant 6 : i32
    %292 = tpu.dynamic_rotate %290 by %c6_i32 dim 1 : vector<16x256xf32>, i32 -> vector<16x256xf32>
    %c26 = arith.constant 26 : index
    %c0_196 = arith.constant 0 : index
    %293 = vector.load %arg24[%c26, %c0_196] : memref<61x512xf32, #tpu.memory_space<vmem>>, vector<1x256xf32>
    %294 = vector.broadcast %293 : vector<1x256xf32> to vector<16x256xf32>
    %295 = arith.mulf %292, %294 : vector<16x256xf32>
    %cst_197 = arith.constant 0.018544022 : f32
    %296 = vector.broadcast %cst_197 : f32 to vector<16x256xf32>
    %297 = arith.mulf %296, %295 : vector<16x256xf32>
    %298 = arith.addf %291, %297 : vector<16x256xf32>
    %c5_i32 = arith.constant 5 : i32
    %299 = tpu.dynamic_rotate %290 by %c5_i32 dim 1 : vector<16x256xf32>, i32 -> vector<16x256xf32>
    %c28 = arith.constant 28 : index
    %c0_198 = arith.constant 0 : index
    %300 = vector.load %arg24[%c28, %c0_198] : memref<61x512xf32, #tpu.memory_space<vmem>>, vector<1x256xf32>
    %301 = vector.broadcast %300 : vector<1x256xf32> to vector<16x256xf32>
    %302 = arith.mulf %299, %301 : vector<16x256xf32>
    %cst_199 = arith.constant 0.0341669433 : f32
    %303 = vector.broadcast %cst_199 : f32 to vector<16x256xf32>
    %304 = arith.mulf %303, %302 : vector<16x256xf32>
    %305 = arith.addf %298, %304 : vector<16x256xf32>
    %c4_i32 = arith.constant 4 : i32
    %306 = tpu.dynamic_rotate %290 by %c4_i32 dim 1 : vector<16x256xf32>, i32 -> vector<16x256xf32>
    %c20 = arith.constant 20 : index
    %c0_200 = arith.constant 0 : index
    %307 = vector.load %arg24[%c20, %c0_200] : memref<61x512xf32, #tpu.memory_space<vmem>>, vector<1x256xf32>
    %308 = vector.broadcast %307 : vector<1x256xf32> to vector<16x256xf32>
    %309 = arith.mulf %306, %308 : vector<16x256xf32>
    %cst_201 = arith.constant 0.0563317649 : f32
    %310 = vector.broadcast %cst_201 : f32 to vector<16x256xf32>
    %311 = arith.mulf %310, %309 : vector<16x256xf32>
    %312 = arith.addf %305, %311 : vector<16x256xf32>
    %c3_i32 = arith.constant 3 : i32
    %313 = tpu.dynamic_rotate %290 by %c3_i32 dim 1 : vector<16x256xf32>, i32 -> vector<16x256xf32>
    %c30 = arith.constant 30 : index
    %c0_202 = arith.constant 0 : index
    %314 = vector.load %arg24[%c30, %c0_202] : memref<61x512xf32, #tpu.memory_space<vmem>>, vector<1x256xf32>
    %315 = vector.broadcast %314 : vector<1x256xf32> to vector<16x256xf32>
    %316 = arith.mulf %313, %315 : vector<16x256xf32>
    %cst_203 = arith.constant 0.0831085368 : f32
    %317 = vector.broadcast %cst_203 : f32 to vector<16x256xf32>
    %318 = arith.mulf %317, %316 : vector<16x256xf32>
    %319 = arith.addf %312, %318 : vector<16x256xf32>
    %c2_i32 = arith.constant 2 : i32
    %320 = tpu.dynamic_rotate %290 by %c2_i32 dim 1 : vector<16x256xf32>, i32 -> vector<16x256xf32>
    %c12 = arith.constant 12 : index
    %c0_204 = arith.constant 0 : index
    %321 = vector.load %arg24[%c12, %c0_204] : memref<61x512xf32, #tpu.memory_space<vmem>>, vector<1x256xf32>
    %322 = vector.broadcast %321 : vector<1x256xf32> to vector<16x256xf32>
    %323 = arith.mulf %320, %322 : vector<16x256xf32>
    %cst_205 = arith.constant 0.109719291 : f32
    %324 = vector.broadcast %cst_205 : f32 to vector<16x256xf32>
    %325 = arith.mulf %324, %323 : vector<16x256xf32>
    %326 = arith.addf %319, %325 : vector<16x256xf32>
    %c1_i32_206 = arith.constant 1 : i32
    %327 = tpu.dynamic_rotate %290 by %c1_i32_206 dim 1 : vector<16x256xf32>, i32 -> vector<16x256xf32>
    %c3_207 = arith.constant 3 : index
    %c0_208 = arith.constant 0 : index
    %328 = vector.load %arg24[%c3_207, %c0_208] : memref<61x512xf32, #tpu.memory_space<vmem>>, vector<1x256xf32>
    %329 = vector.broadcast %328 : vector<1x256xf32> to vector<16x256xf32>
    %330 = arith.mulf %327, %329 : vector<16x256xf32>
    %cst_209 = arith.constant 0.129618034 : f32
    %331 = vector.broadcast %cst_209 : f32 to vector<16x256xf32>
    %332 = arith.mulf %331, %330 : vector<16x256xf32>
    %333 = arith.addf %326, %332 : vector<16x256xf32>
    %cst_210 = arith.constant 0.137022823 : f32
    %334 = vector.broadcast %cst_210 : f32 to vector<16x256xf32>
    %335 = arith.mulf %334, %290 : vector<16x256xf32>
    %336 = arith.addf %333, %335 : vector<16x256xf32>
    %c255_i32_211 = arith.constant 255 : i32
    %337 = tpu.dynamic_rotate %290 by %c255_i32_211 dim 1 : vector<16x256xf32>, i32 -> vector<16x256xf32>
    %c5_212 = arith.constant 5 : index
    %c0_213 = arith.constant 0 : index
    %338 = vector.load %arg24[%c5_212, %c0_213] : memref<61x512xf32, #tpu.memory_space<vmem>>, vector<1x256xf32>
    %339 = vector.broadcast %338 : vector<1x256xf32> to vector<16x256xf32>
    %340 = arith.mulf %337, %339 : vector<16x256xf32>
    %cst_214 = arith.constant 0.129618034 : f32
    %341 = vector.broadcast %cst_214 : f32 to vector<16x256xf32>
    %342 = arith.mulf %341, %340 : vector<16x256xf32>
    %343 = arith.addf %336, %342 : vector<16x256xf32>
    %c254_i32 = arith.constant 254 : i32
    %344 = tpu.dynamic_rotate %290 by %c254_i32 dim 1 : vector<16x256xf32>, i32 -> vector<16x256xf32>
    %c13 = arith.constant 13 : index
    %c0_215 = arith.constant 0 : index
    %345 = vector.load %arg24[%c13, %c0_215] : memref<61x512xf32, #tpu.memory_space<vmem>>, vector<1x256xf32>
    %346 = vector.broadcast %345 : vector<1x256xf32> to vector<16x256xf32>
    %347 = arith.mulf %344, %346 : vector<16x256xf32>
    %cst_216 = arith.constant 0.109719291 : f32
    %348 = vector.broadcast %cst_216 : f32 to vector<16x256xf32>
    %349 = arith.mulf %348, %347 : vector<16x256xf32>
    %350 = arith.addf %343, %349 : vector<16x256xf32>
    %c253_i32 = arith.constant 253 : i32
    %351 = tpu.dynamic_rotate %290 by %c253_i32 dim 1 : vector<16x256xf32>, i32 -> vector<16x256xf32>
    %c32_217 = arith.constant 32 : index
    %c0_218 = arith.constant 0 : index
    %352 = vector.load %arg24[%c32_217, %c0_218] : memref<61x512xf32, #tpu.memory_space<vmem>>, vector<1x256xf32>
    %353 = vector.broadcast %352 : vector<1x256xf32> to vector<16x256xf32>
    %354 = arith.mulf %351, %353 : vector<16x256xf32>
    %cst_219 = arith.constant 0.0831085368 : f32
    %355 = vector.broadcast %cst_219 : f32 to vector<16x256xf32>
    %356 = arith.mulf %355, %354 : vector<16x256xf32>
    %357 = arith.addf %350, %356 : vector<16x256xf32>
    %c252_i32 = arith.constant 252 : i32
    %358 = tpu.dynamic_rotate %290 by %c252_i32 dim 1 : vector<16x256xf32>, i32 -> vector<16x256xf32>
    %c21 = arith.constant 21 : index
    %c0_220 = arith.constant 0 : index
    %359 = vector.load %arg24[%c21, %c0_220] : memref<61x512xf32, #tpu.memory_space<vmem>>, vector<1x256xf32>
    %360 = vector.broadcast %359 : vector<1x256xf32> to vector<16x256xf32>
    %361 = arith.mulf %358, %360 : vector<16x256xf32>
    %cst_221 = arith.constant 0.0563317649 : f32
    %362 = vector.broadcast %cst_221 : f32 to vector<16x256xf32>
    %363 = arith.mulf %362, %361 : vector<16x256xf32>
    %364 = arith.addf %357, %363 : vector<16x256xf32>
    %c251_i32 = arith.constant 251 : i32
    %365 = tpu.dynamic_rotate %290 by %c251_i32 dim 1 : vector<16x256xf32>, i32 -> vector<16x256xf32>
    %c34 = arith.constant 34 : index
    %c0_222 = arith.constant 0 : index
    %366 = vector.load %arg24[%c34, %c0_222] : memref<61x512xf32, #tpu.memory_space<vmem>>, vector<1x256xf32>
    %367 = vector.broadcast %366 : vector<1x256xf32> to vector<16x256xf32>
    %368 = arith.mulf %365, %367 : vector<16x256xf32>
    %cst_223 = arith.constant 0.0341669433 : f32
    %369 = vector.broadcast %cst_223 : f32 to vector<16x256xf32>
    %370 = arith.mulf %369, %368 : vector<16x256xf32>
    %371 = arith.addf %364, %370 : vector<16x256xf32>
    %c250_i32 = arith.constant 250 : i32
    %372 = tpu.dynamic_rotate %290 by %c250_i32 dim 1 : vector<16x256xf32>, i32 -> vector<16x256xf32>
    %c36 = arith.constant 36 : index
    %c0_224 = arith.constant 0 : index
    %373 = vector.load %arg24[%c36, %c0_224] : memref<61x512xf32, #tpu.memory_space<vmem>>, vector<1x256xf32>
    %374 = vector.broadcast %373 : vector<1x256xf32> to vector<16x256xf32>
    %375 = arith.mulf %372, %374 : vector<16x256xf32>
    %cst_225 = arith.constant 0.018544022 : f32
    %376 = vector.broadcast %cst_225 : f32 to vector<16x256xf32>
    %377 = arith.mulf %376, %375 : vector<16x256xf32>
    %378 = arith.addf %371, %377 : vector<16x256xf32>
    %379 = arith.mulf %56, %56 : vector<16x256xf32>
    %cst_226 = arith.constant dense<0.000000e+00> : vector<256xf32>
    %380 = vector.multi_reduction <add>, %379, %cst_226 [0] : vector<16x256xf32> to vector<256xf32>
    %381 = vector.shape_cast %380 : vector<256xf32> to vector<1x256xf32>
    %cst_227 = arith.constant 6.250000e-02 : f32
    %382 = vector.broadcast %cst_227 : f32 to vector<1x256xf32>
    %383 = arith.mulf %381, %382 : vector<1x256xf32>
    %c204_i32 = arith.constant 204 : i32
    %384 = tpu.dynamic_rotate %378 by %c204_i32 dim 1 : vector<16x256xf32>, i32 -> vector<16x256xf32>
    %385 = arith.subf %56, %384 : vector<16x256xf32>
    %386 = arith.mulf %385, %385 : vector<16x256xf32>
    %c0_228 = arith.constant 0 : index
    %c0_229 = arith.constant 0 : index
    %387 = vector.load %arg29[%c0_228, %c0_229] : memref<784x512xf32, #tpu.memory_space<vmem>>, vector<16x256xf32>
    tpu.vector_store %arg29[%c0_228, %c0_229], %386 {strides = array<i32>} : memref<784x512xf32, #tpu.memory_space<vmem>>, vector<16x256xf32>,
    %c200_i32 = arith.constant 200 : i32
    %388 = tpu.dynamic_rotate %378 by %c200_i32 dim 1 : vector<16x256xf32>, i32 -> vector<16x256xf32>
    %389 = arith.subf %56, %388 : vector<16x256xf32>
    %390 = arith.mulf %389, %389 : vector<16x256xf32>
    %c16_230 = arith.constant 16 : index
    %c0_231 = arith.constant 0 : index
    %391 = vector.load %arg29[%c16_230, %c0_231] : memref<784x512xf32, #tpu.memory_space<vmem>>, vector<16x256xf32>
    tpu.vector_store %arg29[%c16_230, %c0_231], %390 {strides = array<i32>} : memref<784x512xf32, #tpu.memory_space<vmem>>, vector<16x256xf32>,
    %c196_i32 = arith.constant 196 : i32
    %392 = tpu.dynamic_rotate %378 by %c196_i32 dim 1 : vector<16x256xf32>, i32 -> vector<16x256xf32>
    %393 = arith.subf %56, %392 : vector<16x256xf32>
    %394 = arith.mulf %393, %393 : vector<16x256xf32>
    %c32_232 = arith.constant 32 : index
    %c0_233 = arith.constant 0 : index
    %395 = vector.load %arg29[%c32_232, %c0_233] : memref<784x512xf32, #tpu.memory_space<vmem>>, vector<16x256xf32>
    tpu.vector_store %arg29[%c32_232, %c0_233], %394 {strides = array<i32>} : memref<784x512xf32, #tpu.memory_space<vmem>>, vector<16x256xf32>,
    %c192_i32_234 = arith.constant 192 : i32
    %396 = tpu.dynamic_rotate %378 by %c192_i32_234 dim 1 : vector<16x256xf32>, i32 -> vector<16x256xf32>
    %397 = arith.subf %56, %396 : vector<16x256xf32>
    %398 = arith.mulf %397, %397 : vector<16x256xf32>
    %c48_235 = arith.constant 48 : index
    %c0_236 = arith.constant 0 : index
    %399 = vector.load %arg29[%c48_235, %c0_236] : memref<784x512xf32, #tpu.memory_space<vmem>>, vector<16x256xf32>
    tpu.vector_store %arg29[%c48_235, %c0_236], %398 {strides = array<i32>} : memref<784x512xf32, #tpu.memory_space<vmem>>, vector<16x256xf32>,
    %c188_i32 = arith.constant 188 : i32
    %400 = tpu.dynamic_rotate %378 by %c188_i32 dim 1 : vector<16x256xf32>, i32 -> vector<16x256xf32>
    %401 = arith.subf %56, %400 : vector<16x256xf32>
    %402 = arith.mulf %401, %401 : vector<16x256xf32>
    %c64_237 = arith.constant 64 : index
    %c0_238 = arith.constant 0 : index
    %403 = vector.load %arg29[%c64_237, %c0_238] : memref<784x512xf32, #tpu.memory_space<vmem>>, vector<16x256xf32>
    tpu.vector_store %arg29[%c64_237, %c0_238], %402 {strides = array<i32>} : memref<784x512xf32, #tpu.memory_space<vmem>>, vector<16x256xf32>,
    %c184_i32 = arith.constant 184 : i32
    %404 = tpu.dynamic_rotate %378 by %c184_i32 dim 1 : vector<16x256xf32>, i32 -> vector<16x256xf32>
    %405 = arith.subf %56, %404 : vector<16x256xf32>
    %406 = arith.mulf %405, %405 : vector<16x256xf32>
    %c80_239 = arith.constant 80 : index
    %c0_240 = arith.constant 0 : index
    %407 = vector.load %arg29[%c80_239, %c0_240] : memref<784x512xf32, #tpu.memory_space<vmem>>, vector<16x256xf32>
    tpu.vector_store %arg29[%c80_239, %c0_240], %406 {strides = array<i32>} : memref<784x512xf32, #tpu.memory_space<vmem>>, vector<16x256xf32>,
    %c180_i32 = arith.constant 180 : i32
    %408 = tpu.dynamic_rotate %378 by %c180_i32 dim 1 : vector<16x256xf32>, i32 -> vector<16x256xf32>
    %409 = arith.subf %56, %408 : vector<16x256xf32>
    %410 = arith.mulf %409, %409 : vector<16x256xf32>
    %c96_241 = arith.constant 96 : index
    %c0_242 = arith.constant 0 : index
    %411 = vector.load %arg29[%c96_241, %c0_242] : memref<784x512xf32, #tpu.memory_space<vmem>>, vector<16x256xf32>
    tpu.vector_store %arg29[%c96_241, %c0_242], %410 {strides = array<i32>} : memref<784x512xf32, #tpu.memory_space<vmem>>, vector<16x256xf32>,
    %c140_i32 = arith.constant 140 : i32
    %412 = tpu.dynamic_rotate %378 by %c140_i32 dim 1 : vector<16x256xf32>, i32 -> vector<16x256xf32>
    %413 = arith.subf %56, %412 : vector<16x256xf32>
    %414 = arith.mulf %413, %413 : vector<16x256xf32>
    %c112_243 = arith.constant 112 : index
    %c0_244 = arith.constant 0 : index
    %415 = vector.load %arg29[%c112_243, %c0_244] : memref<784x512xf32, #tpu.memory_space<vmem>>, vector<16x256xf32>
    tpu.vector_store %arg29[%c112_243, %c0_244], %414 {strides = array<i32>} : memref<784x512xf32, #tpu.memory_space<vmem>>, vector<16x256xf32>,
    %c136_i32 = arith.constant 136 : i32
    %416 = tpu.dynamic_rotate %378 by %c136_i32 dim 1 : vector<16x256xf32>, i32 -> vector<16x256xf32>
    %417 = arith.subf %56, %416 : vector<16x256xf32>
    %418 = arith.mulf %417, %417 : vector<16x256xf32>
    %c128_245 = arith.constant 128 : index
    %c0_246 = arith.constant 0 : index
    %419 = vector.load %arg29[%c128_245, %c0_246] : memref<784x512xf32, #tpu.memory_space<vmem>>, vector<16x256xf32>
    tpu.vector_store %arg29[%c128_245, %c0_246], %418 {strides = array<i32>} : memref<784x512xf32, #tpu.memory_space<vmem>>, vector<16x256xf32>,
    %c132_i32 = arith.constant 132 : i32
    %420 = tpu.dynamic_rotate %378 by %c132_i32 dim 1 : vector<16x256xf32>, i32 -> vector<16x256xf32>
    %421 = arith.subf %56, %420 : vector<16x256xf32>
    %422 = arith.mulf %421, %421 : vector<16x256xf32>
    %c144_247 = arith.constant 144 : index
    %c0_248 = arith.constant 0 : index
    %423 = vector.load %arg29[%c144_247, %c0_248] : memref<784x512xf32, #tpu.memory_space<vmem>>, vector<16x256xf32>
    tpu.vector_store %arg29[%c144_247, %c0_248], %422 {strides = array<i32>} : memref<784x512xf32, #tpu.memory_space<vmem>>, vector<16x256xf32>,
    %c128_i32 = arith.constant 128 : i32
    %424 = tpu.dynamic_rotate %378 by %c128_i32 dim 1 : vector<16x256xf32>, i32 -> vector<16x256xf32>
    %425 = arith.subf %56, %424 : vector<16x256xf32>
    %426 = arith.mulf %425, %425 : vector<16x256xf32>
    %c160_249 = arith.constant 160 : index
    %c0_250 = arith.constant 0 : index
    %427 = vector.load %arg29[%c160_249, %c0_250] : memref<784x512xf32, #tpu.memory_space<vmem>>, vector<16x256xf32>
    tpu.vector_store %arg29[%c160_249, %c0_250], %426 {strides = array<i32>} : memref<784x512xf32, #tpu.memory_space<vmem>>, vector<16x256xf32>,
    %c124_i32 = arith.constant 124 : i32
    %428 = tpu.dynamic_rotate %378 by %c124_i32 dim 1 : vector<16x256xf32>, i32 -> vector<16x256xf32>
    %429 = arith.subf %56, %428 : vector<16x256xf32>
    %430 = arith.mulf %429, %429 : vector<16x256xf32>
    %c176_251 = arith.constant 176 : index
    %c0_252 = arith.constant 0 : index
    %431 = vector.load %arg29[%c176_251, %c0_252] : memref<784x512xf32, #tpu.memory_space<vmem>>, vector<16x256xf32>
    tpu.vector_store %arg29[%c176_251, %c0_252], %430 {strides = array<i32>} : memref<784x512xf32, #tpu.memory_space<vmem>>, vector<16x256xf32>,
    %c120_i32 = arith.constant 120 : i32
    %432 = tpu.dynamic_rotate %378 by %c120_i32 dim 1 : vector<16x256xf32>, i32 -> vector<16x256xf32>
    %433 = arith.subf %56, %432 : vector<16x256xf32>
    %434 = arith.mulf %433, %433 : vector<16x256xf32>
    %c192_253 = arith.constant 192 : index
    %c0_254 = arith.constant 0 : index
    %435 = vector.load %arg29[%c192_253, %c0_254] : memref<784x512xf32, #tpu.memory_space<vmem>>, vector<16x256xf32>
    tpu.vector_store %arg29[%c192_253, %c0_254], %434 {strides = array<i32>} : memref<784x512xf32, #tpu.memory_space<vmem>>, vector<16x256xf32>,
    %c116_i32 = arith.constant 116 : i32
    %436 = tpu.dynamic_rotate %378 by %c116_i32 dim 1 : vector<16x256xf32>, i32 -> vector<16x256xf32>
    %437 = arith.subf %56, %436 : vector<16x256xf32>
    %438 = arith.mulf %437, %437 : vector<16x256xf32>
    %c208_255 = arith.constant 208 : index
    %c0_256 = arith.constant 0 : index
    %439 = vector.load %arg29[%c208_255, %c0_256] : memref<784x512xf32, #tpu.memory_space<vmem>>, vector<16x256xf32>
    tpu.vector_store %arg29[%c208_255, %c0_256], %438 {strides = array<i32>} : memref<784x512xf32, #tpu.memory_space<vmem>>, vector<16x256xf32>,
    %c76_i32 = arith.constant 76 : i32
    %440 = tpu.dynamic_rotate %378 by %c76_i32 dim 1 : vector<16x256xf32>, i32 -> vector<16x256xf32>
    %441 = arith.subf %56, %440 : vector<16x256xf32>
    %442 = arith.mulf %441, %441 : vector<16x256xf32>
    %c224_257 = arith.constant 224 : index
    %c0_258 = arith.constant 0 : index
    %443 = vector.load %arg29[%c224_257, %c0_258] : memref<784x512xf32, #tpu.memory_space<vmem>>, vector<16x256xf32>
    tpu.vector_store %arg29[%c224_257, %c0_258], %442 {strides = array<i32>} : memref<784x512xf32, #tpu.memory_space<vmem>>, vector<16x256xf32>,
    %c72_i32 = arith.constant 72 : i32
    %444 = tpu.dynamic_rotate %378 by %c72_i32 dim 1 : vector<16x256xf32>, i32 -> vector<16x256xf32>
    %445 = arith.subf %56, %444 : vector<16x256xf32>
    %446 = arith.mulf %445, %445 : vector<16x256xf32>
    %c240_259 = arith.constant 240 : index
    %c0_260 = arith.constant 0 : index
    %447 = vector.load %arg29[%c240_259, %c0_260] : memref<784x512xf32, #tpu.memory_space<vmem>>, vector<16x256xf32>
    tpu.vector_store %arg29[%c240_259, %c0_260], %446 {strides = array<i32>} : memref<784x512xf32, #tpu.memory_space<vmem>>, vector<16x256xf32>,
    %c68_i32 = arith.constant 68 : i32
    %448 = tpu.dynamic_rotate %378 by %c68_i32 dim 1 : vector<16x256xf32>, i32 -> vector<16x256xf32>
    %449 = arith.subf %56, %448 : vector<16x256xf32>
    %450 = arith.mulf %449, %449 : vector<16x256xf32>
    %c256_261 = arith.constant 256 : index
    %c0_262 = arith.constant 0 : index
    %451 = vector.load %arg29[%c256_261, %c0_262] : memref<784x512xf32, #tpu.memory_space<vmem>>, vector<16x256xf32>
    tpu.vector_store %arg29[%c256_261, %c0_262], %450 {strides = array<i32>} : memref<784x512xf32, #tpu.memory_space<vmem>>, vector<16x256xf32>,
    %c64_i32_263 = arith.constant 64 : i32
    %452 = tpu.dynamic_rotate %378 by %c64_i32_263 dim 1 : vector<16x256xf32>, i32 -> vector<16x256xf32>
    %453 = arith.subf %56, %452 : vector<16x256xf32>
    %454 = arith.mulf %453, %453 : vector<16x256xf32>
    %c272_264 = arith.constant 272 : index
    %c0_265 = arith.constant 0 : index
    %455 = vector.load %arg29[%c272_264, %c0_265] : memref<784x512xf32, #tpu.memory_space<vmem>>, vector<16x256xf32>
    tpu.vector_store %arg29[%c272_264, %c0_265], %454 {strides = array<i32>} : memref<784x512xf32, #tpu.memory_space<vmem>>, vector<16x256xf32>,
    %c60_i32 = arith.constant 60 : i32
    %456 = tpu.dynamic_rotate %378 by %c60_i32 dim 1 : vector<16x256xf32>, i32 -> vector<16x256xf32>
    %457 = arith.subf %56, %456 : vector<16x256xf32>
    %458 = arith.mulf %457, %457 : vector<16x256xf32>
    %c288 = arith.constant 288 : index
    %c0_266 = arith.constant 0 : index
    %459 = vector.load %arg29[%c288, %c0_266] : memref<784x512xf32, #tpu.memory_space<vmem>>, vector<16x256xf32>
    tpu.vector_store %arg29[%c288, %c0_266], %458 {strides = array<i32>} : memref<784x512xf32, #tpu.memory_space<vmem>>, vector<16x256xf32>,
    %c56_i32 = arith.constant 56 : i32
    %460 = tpu.dynamic_rotate %378 by %c56_i32 dim 1 : vector<16x256xf32>, i32 -> vector<16x256xf32>
    %461 = arith.subf %56, %460 : vector<16x256xf32>
    %462 = arith.mulf %461, %461 : vector<16x256xf32>
    %c304 = arith.constant 304 : index
    %c0_267 = arith.constant 0 : index
    %463 = vector.load %arg29[%c304, %c0_267] : memref<784x512xf32, #tpu.memory_space<vmem>>, vector<16x256xf32>
    tpu.vector_store %arg29[%c304, %c0_267], %462 {strides = array<i32>} : memref<784x512xf32, #tpu.memory_space<vmem>>, vector<16x256xf32>,
    %c52_i32 = arith.constant 52 : i32
    %464 = tpu.dynamic_rotate %378 by %c52_i32 dim 1 : vector<16x256xf32>, i32 -> vector<16x256xf32>
    %465 = arith.subf %56, %464 : vector<16x256xf32>
    %466 = arith.mulf %465, %465 : vector<16x256xf32>
    %c320 = arith.constant 320 : index
    %c0_268 = arith.constant 0 : index
    %467 = vector.load %arg29[%c320, %c0_268] : memref<784x512xf32, #tpu.memory_space<vmem>>, vector<16x256xf32>
    tpu.vector_store %arg29[%c320, %c0_268], %466 {strides = array<i32>} : memref<784x512xf32, #tpu.memory_space<vmem>>, vector<16x256xf32>,
    %c12_i32 = arith.constant 12 : i32
    %468 = tpu.dynamic_rotate %378 by %c12_i32 dim 1 : vector<16x256xf32>, i32 -> vector<16x256xf32>
    %469 = arith.subf %56, %468 : vector<16x256xf32>
    %470 = arith.mulf %469, %469 : vector<16x256xf32>
    %c336 = arith.constant 336 : index
    %c0_269 = arith.constant 0 : index
    %471 = vector.load %arg29[%c336, %c0_269] : memref<784x512xf32, #tpu.memory_space<vmem>>, vector<16x256xf32>
    tpu.vector_store %arg29[%c336, %c0_269], %470 {strides = array<i32>} : memref<784x512xf32, #tpu.memory_space<vmem>>, vector<16x256xf32>,
    %c8_i32 = arith.constant 8 : i32
    %472 = tpu.dynamic_rotate %378 by %c8_i32 dim 1 : vector<16x256xf32>, i32 -> vector<16x256xf32>
    %473 = arith.subf %56, %472 : vector<16x256xf32>
    %474 = arith.mulf %473, %473 : vector<16x256xf32>
    %c352 = arith.constant 352 : index
    %c0_270 = arith.constant 0 : index
    %475 = vector.load %arg29[%c352, %c0_270] : memref<784x512xf32, #tpu.memory_space<vmem>>, vector<16x256xf32>
    tpu.vector_store %arg29[%c352, %c0_270], %474 {strides = array<i32>} : memref<784x512xf32, #tpu.memory_space<vmem>>, vector<16x256xf32>,
    %c4_i32_271 = arith.constant 4 : i32
    %476 = tpu.dynamic_rotate %378 by %c4_i32_271 dim 1 : vector<16x256xf32>, i32 -> vector<16x256xf32>
    %477 = arith.subf %56, %476 : vector<16x256xf32>
    %478 = arith.mulf %477, %477 : vector<16x256xf32>
    %c368 = arith.constant 368 : index
    %c0_272 = arith.constant 0 : index
    %479 = vector.load %arg29[%c368, %c0_272] : memref<784x512xf32, #tpu.memory_space<vmem>>, vector<16x256xf32>
    tpu.vector_store %arg29[%c368, %c0_272], %478 {strides = array<i32>} : memref<784x512xf32, #tpu.memory_space<vmem>>, vector<16x256xf32>,
    %480 = arith.subf %56, %378 : vector<16x256xf32>
    %481 = arith.mulf %480, %480 : vector<16x256xf32>
    %c384 = arith.constant 384 : index
    %c0_273 = arith.constant 0 : index
    %482 = vector.load %arg29[%c384, %c0_273] : memref<784x512xf32, #tpu.memory_space<vmem>>, vector<16x256xf32>
    tpu.vector_store %arg29[%c384, %c0_273], %481 {strides = array<i32>} : memref<784x512xf32, #tpu.memory_space<vmem>>, vector<16x256xf32>,
    %c252_i32_274 = arith.constant 252 : i32
    %483 = tpu.dynamic_rotate %378 by %c252_i32_274 dim 1 : vector<16x256xf32>, i32 -> vector<16x256xf32>
    %484 = arith.subf %56, %483 : vector<16x256xf32>
    %485 = arith.mulf %484, %484 : vector<16x256xf32>
    %c400 = arith.constant 400 : index
    %c0_275 = arith.constant 0 : index
    %486 = vector.load %arg29[%c400, %c0_275] : memref<784x512xf32, #tpu.memory_space<vmem>>, vector<16x256xf32>
    tpu.vector_store %arg29[%c400, %c0_275], %485 {strides = array<i32>} : memref<784x512xf32, #tpu.memory_space<vmem>>, vector<16x256xf32>,
    %c248_i32 = arith.constant 248 : i32
    %487 = tpu.dynamic_rotate %378 by %c248_i32 dim 1 : vector<16x256xf32>, i32 -> vector<16x256xf32>
    %488 = arith.subf %56, %487 : vector<16x256xf32>
    %489 = arith.mulf %488, %488 : vector<16x256xf32>
    %c416 = arith.constant 416 : index
    %c0_276 = arith.constant 0 : index
    %490 = vector.load %arg29[%c416, %c0_276] : memref<784x512xf32, #tpu.memory_space<vmem>>, vector<16x256xf32>
    tpu.vector_store %arg29[%c416, %c0_276], %489 {strides = array<i32>} : memref<784x512xf32, #tpu.memory_space<vmem>>, vector<16x256xf32>,
    %c244_i32 = arith.constant 244 : i32
    %491 = tpu.dynamic_rotate %378 by %c244_i32 dim 1 : vector<16x256xf32>, i32 -> vector<16x256xf32>
    %492 = arith.subf %56, %491 : vector<16x256xf32>
    %493 = arith.mulf %492, %492 : vector<16x256xf32>
    %c432 = arith.constant 432 : index
    %c0_277 = arith.constant 0 : index
    %494 = vector.load %arg29[%c432, %c0_277] : memref<784x512xf32, #tpu.memory_space<vmem>>, vector<16x256xf32>
    tpu.vector_store %arg29[%c432, %c0_277], %493 {strides = array<i32>} : memref<784x512xf32, #tpu.memory_space<vmem>>, vector<16x256xf32>,
    %c204_i32_278 = arith.constant 204 : i32
    %495 = tpu.dynamic_rotate %378 by %c204_i32_278 dim 1 : vector<16x256xf32>, i32 -> vector<16x256xf32>
    %496 = arith.subf %56, %495 : vector<16x256xf32>
    %497 = arith.mulf %496, %496 : vector<16x256xf32>
    %c448 = arith.constant 448 : index
    %c0_279 = arith.constant 0 : index
    %498 = vector.load %arg29[%c448, %c0_279] : memref<784x512xf32, #tpu.memory_space<vmem>>, vector<16x256xf32>
    tpu.vector_store %arg29[%c448, %c0_279], %497 {strides = array<i32>} : memref<784x512xf32, #tpu.memory_space<vmem>>, vector<16x256xf32>,
    %c200_i32_280 = arith.constant 200 : i32
    %499 = tpu.dynamic_rotate %378 by %c200_i32_280 dim 1 : vector<16x256xf32>, i32 -> vector<16x256xf32>
    %500 = arith.subf %56, %499 : vector<16x256xf32>
    %501 = arith.mulf %500, %500 : vector<16x256xf32>
    %c464 = arith.constant 464 : index
    %c0_281 = arith.constant 0 : index
    %502 = vector.load %arg29[%c464, %c0_281] : memref<784x512xf32, #tpu.memory_space<vmem>>, vector<16x256xf32>
    tpu.vector_store %arg29[%c464, %c0_281], %501 {strides = array<i32>} : memref<784x512xf32, #tpu.memory_space<vmem>>, vector<16x256xf32>,
    %c196_i32_282 = arith.constant 196 : i32
    %503 = tpu.dynamic_rotate %378 by %c196_i32_282 dim 1 : vector<16x256xf32>, i32 -> vector<16x256xf32>
    %504 = arith.subf %56, %503 : vector<16x256xf32>
    %505 = arith.mulf %504, %504 : vector<16x256xf32>
    %c480 = arith.constant 480 : index
    %c0_283 = arith.constant 0 : index
    %506 = vector.load %arg29[%c480, %c0_283] : memref<784x512xf32, #tpu.memory_space<vmem>>, vector<16x256xf32>
    tpu.vector_store %arg29[%c480, %c0_283], %505 {strides = array<i32>} : memref<784x512xf32, #tpu.memory_space<vmem>>, vector<16x256xf32>,
    %c192_i32_284 = arith.constant 192 : i32
    %507 = tpu.dynamic_rotate %378 by %c192_i32_284 dim 1 : vector<16x256xf32>, i32 -> vector<16x256xf32>
    %508 = arith.subf %56, %507 : vector<16x256xf32>
    %509 = arith.mulf %508, %508 : vector<16x256xf32>
    %c496 = arith.constant 496 : index
    %c0_285 = arith.constant 0 : index
    %510 = vector.load %arg29[%c496, %c0_285] : memref<784x512xf32, #tpu.memory_space<vmem>>, vector<16x256xf32>
    tpu.vector_store %arg29[%c496, %c0_285], %509 {strides = array<i32>} : memref<784x512xf32, #tpu.memory_space<vmem>>, vector<16x256xf32>,
    %c188_i32_286 = arith.constant 188 : i32
    %511 = tpu.dynamic_rotate %378 by %c188_i32_286 dim 1 : vector<16x256xf32>, i32 -> vector<16x256xf32>
    %512 = arith.subf %56, %511 : vector<16x256xf32>
    %513 = arith.mulf %512, %512 : vector<16x256xf32>
    %c512 = arith.constant 512 : index
    %c0_287 = arith.constant 0 : index
    %514 = vector.load %arg29[%c512, %c0_287] : memref<784x512xf32, #tpu.memory_space<vmem>>, vector<16x256xf32>
    tpu.vector_store %arg29[%c512, %c0_287], %513 {strides = array<i32>} : memref<784x512xf32, #tpu.memory_space<vmem>>, vector<16x256xf32>,
    %c184_i32_288 = arith.constant 184 : i32
    %515 = tpu.dynamic_rotate %378 by %c184_i32_288 dim 1 : vector<16x256xf32>, i32 -> vector<16x256xf32>
    %516 = arith.subf %56, %515 : vector<16x256xf32>
    %517 = arith.mulf %516, %516 : vector<16x256xf32>
    %c528 = arith.constant 528 : index
    %c0_289 = arith.constant 0 : index
    %518 = vector.load %arg29[%c528, %c0_289] : memref<784x512xf32, #tpu.memory_space<vmem>>, vector<16x256xf32>
    tpu.vector_store %arg29[%c528, %c0_289], %517 {strides = array<i32>} : memref<784x512xf32, #tpu.memory_space<vmem>>, vector<16x256xf32>,
    %c180_i32_290 = arith.constant 180 : i32
    %519 = tpu.dynamic_rotate %378 by %c180_i32_290 dim 1 : vector<16x256xf32>, i32 -> vector<16x256xf32>
    %520 = arith.subf %56, %519 : vector<16x256xf32>
    %521 = arith.mulf %520, %520 : vector<16x256xf32>
    %c544 = arith.constant 544 : index
    %c0_291 = arith.constant 0 : index
    %522 = vector.load %arg29[%c544, %c0_291] : memref<784x512xf32, #tpu.memory_space<vmem>>, vector<16x256xf32>
    tpu.vector_store %arg29[%c544, %c0_291], %521 {strides = array<i32>} : memref<784x512xf32, #tpu.memory_space<vmem>>, vector<16x256xf32>,
    %c140_i32_292 = arith.constant 140 : i32
    %523 = tpu.dynamic_rotate %378 by %c140_i32_292 dim 1 : vector<16x256xf32>, i32 -> vector<16x256xf32>
    %524 = arith.subf %56, %523 : vector<16x256xf32>
    %525 = arith.mulf %524, %524 : vector<16x256xf32>
    %c560 = arith.constant 560 : index
    %c0_293 = arith.constant 0 : index
    %526 = vector.load %arg29[%c560, %c0_293] : memref<784x512xf32, #tpu.memory_space<vmem>>, vector<16x256xf32>
    tpu.vector_store %arg29[%c560, %c0_293], %525 {strides = array<i32>} : memref<784x512xf32, #tpu.memory_space<vmem>>, vector<16x256xf32>,
    %c136_i32_294 = arith.constant 136 : i32
    %527 = tpu.dynamic_rotate %378 by %c136_i32_294 dim 1 : vector<16x256xf32>, i32 -> vector<16x256xf32>
    %528 = arith.subf %56, %527 : vector<16x256xf32>
    %529 = arith.mulf %528, %528 : vector<16x256xf32>
    %c576 = arith.constant 576 : index
    %c0_295 = arith.constant 0 : index
    %530 = vector.load %arg29[%c576, %c0_295] : memref<784x512xf32, #tpu.memory_space<vmem>>, vector<16x256xf32>
    tpu.vector_store %arg29[%c576, %c0_295], %529 {strides = array<i32>} : memref<784x512xf32, #tpu.memory_space<vmem>>, vector<16x256xf32>,
    %c132_i32_296 = arith.constant 132 : i32
    %531 = tpu.dynamic_rotate %378 by %c132_i32_296 dim 1 : vector<16x256xf32>, i32 -> vector<16x256xf32>
    %532 = arith.subf %56, %531 : vector<16x256xf32>
    %533 = arith.mulf %532, %532 : vector<16x256xf32>
    %c592 = arith.constant 592 : index
    %c0_297 = arith.constant 0 : index
    %534 = vector.load %arg29[%c592, %c0_297] : memref<784x512xf32, #tpu.memory_space<vmem>>, vector<16x256xf32>
    tpu.vector_store %arg29[%c592, %c0_297], %533 {strides = array<i32>} : memref<784x512xf32, #tpu.memory_space<vmem>>, vector<16x256xf32>,
    %c128_i32_298 = arith.constant 128 : i32
    %535 = tpu.dynamic_rotate %378 by %c128_i32_298 dim 1 : vector<16x256xf32>, i32 -> vector<16x256xf32>
    %536 = arith.subf %56, %535 : vector<16x256xf32>
    %537 = arith.mulf %536, %536 : vector<16x256xf32>
    %c608 = arith.constant 608 : index
    %c0_299 = arith.constant 0 : index
    %538 = vector.load %arg29[%c608, %c0_299] : memref<784x512xf32, #tpu.memory_space<vmem>>, vector<16x256xf32>
    tpu.vector_store %arg29[%c608, %c0_299], %537 {strides = array<i32>} : memref<784x512xf32, #tpu.memory_space<vmem>>, vector<16x256xf32>,
    %c124_i32_300 = arith.constant 124 : i32
    %539 = tpu.dynamic_rotate %378 by %c124_i32_300 dim 1 : vector<16x256xf32>, i32 -> vector<16x256xf32>
    %540 = arith.subf %56, %539 : vector<16x256xf32>
    %541 = arith.mulf %540, %540 : vector<16x256xf32>
    %c624 = arith.constant 624 : index
    %c0_301 = arith.constant 0 : index
    %542 = vector.load %arg29[%c624, %c0_301] : memref<784x512xf32, #tpu.memory_space<vmem>>, vector<16x256xf32>
    tpu.vector_store %arg29[%c624, %c0_301], %541 {strides = array<i32>} : memref<784x512xf32, #tpu.memory_space<vmem>>, vector<16x256xf32>,
    %c120_i32_302 = arith.constant 120 : i32
    %543 = tpu.dynamic_rotate %378 by %c120_i32_302 dim 1 : vector<16x256xf32>, i32 -> vector<16x256xf32>
    %544 = arith.subf %56, %543 : vector<16x256xf32>
    %545 = arith.mulf %544, %544 : vector<16x256xf32>
    %c640 = arith.constant 640 : index
    %c0_303 = arith.constant 0 : index
    %546 = vector.load %arg29[%c640, %c0_303] : memref<784x512xf32, #tpu.memory_space<vmem>>, vector<16x256xf32>
    tpu.vector_store %arg29[%c640, %c0_303], %545 {strides = array<i32>} : memref<784x512xf32, #tpu.memory_space<vmem>>, vector<16x256xf32>,
    %c116_i32_304 = arith.constant 116 : i32
    %547 = tpu.dynamic_rotate %378 by %c116_i32_304 dim 1 : vector<16x256xf32>, i32 -> vector<16x256xf32>
    %548 = arith.subf %56, %547 : vector<16x256xf32>
    %549 = arith.mulf %548, %548 : vector<16x256xf32>
    %c656 = arith.constant 656 : index
    %c0_305 = arith.constant 0 : index
    %550 = vector.load %arg29[%c656, %c0_305] : memref<784x512xf32, #tpu.memory_space<vmem>>, vector<16x256xf32>
    tpu.vector_store %arg29[%c656, %c0_305], %549 {strides = array<i32>} : memref<784x512xf32, #tpu.memory_space<vmem>>, vector<16x256xf32>,
    %c76_i32_306 = arith.constant 76 : i32
    %551 = tpu.dynamic_rotate %378 by %c76_i32_306 dim 1 : vector<16x256xf32>, i32 -> vector<16x256xf32>
    %552 = arith.subf %56, %551 : vector<16x256xf32>
    %553 = arith.mulf %552, %552 : vector<16x256xf32>
    %c672 = arith.constant 672 : index
    %c0_307 = arith.constant 0 : index
    %554 = vector.load %arg29[%c672, %c0_307] : memref<784x512xf32, #tpu.memory_space<vmem>>, vector<16x256xf32>
    tpu.vector_store %arg29[%c672, %c0_307], %553 {strides = array<i32>} : memref<784x512xf32, #tpu.memory_space<vmem>>, vector<16x256xf32>,
    %c72_i32_308 = arith.constant 72 : i32
    %555 = tpu.dynamic_rotate %378 by %c72_i32_308 dim 1 : vector<16x256xf32>, i32 -> vector<16x256xf32>
    %556 = arith.subf %56, %555 : vector<16x256xf32>
    %557 = arith.mulf %556, %556 : vector<16x256xf32>
    %c688 = arith.constant 688 : index
    %c0_309 = arith.constant 0 : index
    %558 = vector.load %arg29[%c688, %c0_309] : memref<784x512xf32, #tpu.memory_space<vmem>>, vector<16x256xf32>
    tpu.vector_store %arg29[%c688, %c0_309], %557 {strides = array<i32>} : memref<784x512xf32, #tpu.memory_space<vmem>>, vector<16x256xf32>,
    %c68_i32_310 = arith.constant 68 : i32
    %559 = tpu.dynamic_rotate %378 by %c68_i32_310 dim 1 : vector<16x256xf32>, i32 -> vector<16x256xf32>
    %560 = arith.subf %56, %559 : vector<16x256xf32>
    %561 = arith.mulf %560, %560 : vector<16x256xf32>
    %c704 = arith.constant 704 : index
    %c0_311 = arith.constant 0 : index
    %562 = vector.load %arg29[%c704, %c0_311] : memref<784x512xf32, #tpu.memory_space<vmem>>, vector<16x256xf32>
    tpu.vector_store %arg29[%c704, %c0_311], %561 {strides = array<i32>} : memref<784x512xf32, #tpu.memory_space<vmem>>, vector<16x256xf32>,
    %c64_i32_312 = arith.constant 64 : i32
    %563 = tpu.dynamic_rotate %378 by %c64_i32_312 dim 1 : vector<16x256xf32>, i32 -> vector<16x256xf32>
    %564 = arith.subf %56, %563 : vector<16x256xf32>
    %565 = arith.mulf %564, %564 : vector<16x256xf32>
    %c720 = arith.constant 720 : index
    %c0_313 = arith.constant 0 : index
    %566 = vector.load %arg29[%c720, %c0_313] : memref<784x512xf32, #tpu.memory_space<vmem>>, vector<16x256xf32>
    tpu.vector_store %arg29[%c720, %c0_313], %565 {strides = array<i32>} : memref<784x512xf32, #tpu.memory_space<vmem>>, vector<16x256xf32>,
    %c60_i32_314 = arith.constant 60 : i32
    %567 = tpu.dynamic_rotate %378 by %c60_i32_314 dim 1 : vector<16x256xf32>, i32 -> vector<16x256xf32>
    %568 = arith.subf %56, %567 : vector<16x256xf32>
    %569 = arith.mulf %568, %568 : vector<16x256xf32>
    %c736 = arith.constant 736 : index
    %c0_315 = arith.constant 0 : index
    %570 = vector.load %arg29[%c736, %c0_315] : memref<784x512xf32, #tpu.memory_space<vmem>>, vector<16x256xf32>
    tpu.vector_store %arg29[%c736, %c0_315], %569 {strides = array<i32>} : memref<784x512xf32, #tpu.memory_space<vmem>>, vector<16x256xf32>,
    %c56_i32_316 = arith.constant 56 : i32
    %571 = tpu.dynamic_rotate %378 by %c56_i32_316 dim 1 : vector<16x256xf32>, i32 -> vector<16x256xf32>
    %572 = arith.subf %56, %571 : vector<16x256xf32>
    %573 = arith.mulf %572, %572 : vector<16x256xf32>
    %c752 = arith.constant 752 : index
    %c0_317 = arith.constant 0 : index
    %574 = vector.load %arg29[%c752, %c0_317] : memref<784x512xf32, #tpu.memory_space<vmem>>, vector<16x256xf32>
    tpu.vector_store %arg29[%c752, %c0_317], %573 {strides = array<i32>} : memref<784x512xf32, #tpu.memory_space<vmem>>, vector<16x256xf32>,
    %c52_i32_318 = arith.constant 52 : i32
    %575 = tpu.dynamic_rotate %378 by %c52_i32_318 dim 1 : vector<16x256xf32>, i32 -> vector<16x256xf32>
    %576 = arith.subf %56, %575 : vector<16x256xf32>
    %577 = arith.mulf %576, %576 : vector<16x256xf32>
    %c768 = arith.constant 768 : index
    %c0_319 = arith.constant 0 : index
    %578 = vector.load %arg29[%c768, %c0_319] : memref<784x512xf32, #tpu.memory_space<vmem>>, vector<16x256xf32>
    tpu.vector_store %arg29[%c768, %c0_319], %577 {strides = array<i32>} : memref<784x512xf32, #tpu.memory_space<vmem>>, vector<16x256xf32>,
    %c0_320 = arith.constant 0 : index
    %c0_321 = arith.constant 0 : index
    %579 = vector.load %arg26[%c0_320, %c0_321] : memref<56x784xf32, #tpu.memory_space<vmem>>, vector<56x784xf32>
    %c0_322 = arith.constant 0 : index
    %c0_323 = arith.constant 0 : index
    %580 = vector.load %arg29[%c0_322, %c0_323] : memref<784x512xf32, #tpu.memory_space<vmem>>, vector<784x256xf32>
    %cst_324 = arith.constant dense<0.000000e+00> : vector<56x256xf32>
    %581 = tpu.matmul %579, %580, %cst_324 {dimension_numbers = #tpu.dot_dimension_numbers<[1], [0], [0], [1], [0, 0, 1, 1], [], []>} : vector<56x784xf32>, vector<784x256xf32>, vector<56x256xf32> -> vector<56x256xf32>
    %c0_325 = arith.constant 0 : index
    %c0_326 = arith.constant 0 : index
    %582 = vector.load %arg25[%c0_325, %c0_326] : memref<56x256xf32, #tpu.memory_space<vmem>>, vector<56x256xf32>
    %583 = vector.broadcast %383 : vector<1x256xf32> to vector<56x256xf32>
    %584 = arith.subf %581, %583 : vector<56x256xf32>
    %585 = arith.mulf %582, %584 : vector<56x256xf32>
    %586 = vector.broadcast %383 : vector<1x256xf32> to vector<56x256xf32>
    %587 = arith.addf %586, %585 : vector<56x256xf32>
    %c17_i32_327 = arith.constant 17 : i32
    %588 = tpu.dynamic_rotate %202 by %c17_i32_327 dim 1 : vector<16x256xf32>, i32 -> vector<16x256xf32>
    %c0_328 = arith.constant 0 : index
    %c0_329 = arith.constant 0 : index
    %589 = vector.load %arg24[%c0_328, %c0_329] : memref<61x512xf32, #tpu.memory_space<vmem>>, vector<1x256xf32>
    %590 = vector.broadcast %589 : vector<1x256xf32> to vector<16x256xf32>
    %591 = arith.mulf %588, %590 : vector<16x256xf32>
    %c0_330 = arith.constant 0 : index
    %c0_331 = arith.constant 0 : index
    %592 = vector.load %arg29[%c0_330, %c0_331] : memref<784x512xf32, #tpu.memory_space<vmem>>, vector<16x256xf32>
    tpu.vector_store %arg29[%c0_330, %c0_331], %591 {strides = array<i32>} : memref<784x512xf32, #tpu.memory_space<vmem>>, vector<16x256xf32>,
    %c16_i32_332 = arith.constant 16 : i32
    %593 = tpu.dynamic_rotate %202 by %c16_i32_332 dim 1 : vector<16x256xf32>, i32 -> vector<16x256xf32>
    %c1_333 = arith.constant 1 : index
    %c0_334 = arith.constant 0 : index
    %594 = vector.load %arg24[%c1_333, %c0_334] : memref<61x512xf32, #tpu.memory_space<vmem>>, vector<1x256xf32>
    %595 = vector.broadcast %594 : vector<1x256xf32> to vector<16x256xf32>
    %596 = arith.mulf %593, %595 : vector<16x256xf32>
    %c16_335 = arith.constant 16 : index
    %c0_336 = arith.constant 0 : index
    %597 = vector.load %arg29[%c16_335, %c0_336] : memref<784x512xf32, #tpu.memory_space<vmem>>, vector<16x256xf32>
    tpu.vector_store %arg29[%c16_335, %c0_336], %596 {strides = array<i32>} : memref<784x512xf32, #tpu.memory_space<vmem>>, vector<16x256xf32>,
    %c15_i32_337 = arith.constant 15 : i32
    %598 = tpu.dynamic_rotate %202 by %c15_i32_337 dim 1 : vector<16x256xf32>, i32 -> vector<16x256xf32>
    %c2_338 = arith.constant 2 : index
    %c0_339 = arith.constant 0 : index
    %599 = vector.load %arg24[%c2_338, %c0_339] : memref<61x512xf32, #tpu.memory_space<vmem>>, vector<1x256xf32>
    %600 = vector.broadcast %599 : vector<1x256xf32> to vector<16x256xf32>
    %601 = arith.mulf %598, %600 : vector<16x256xf32>
    %c32_340 = arith.constant 32 : index
    %c0_341 = arith.constant 0 : index
    %602 = vector.load %arg29[%c32_340, %c0_341] : memref<784x512xf32, #tpu.memory_space<vmem>>, vector<16x256xf32>
    tpu.vector_store %arg29[%c32_340, %c0_341], %601 {strides = array<i32>} : memref<784x512xf32, #tpu.memory_space<vmem>>, vector<16x256xf32>,
    %c1_i32_342 = arith.constant 1 : i32
    %603 = tpu.dynamic_rotate %202 by %c1_i32_342 dim 1 : vector<16x256xf32>, i32 -> vector<16x256xf32>
    %c3_343 = arith.constant 3 : index
    %c0_344 = arith.constant 0 : index
    %604 = vector.load %arg24[%c3_343, %c0_344] : memref<61x512xf32, #tpu.memory_space<vmem>>, vector<1x256xf32>
    %605 = vector.broadcast %604 : vector<1x256xf32> to vector<16x256xf32>
    %606 = arith.mulf %603, %605 : vector<16x256xf32>
    %c48_345 = arith.constant 48 : index
    %c0_346 = arith.constant 0 : index
    %607 = vector.load %arg29[%c48_345, %c0_346] : memref<784x512xf32, #tpu.memory_space<vmem>>, vector<16x256xf32>
    tpu.vector_store %arg29[%c48_345, %c0_346], %606 {strides = array<i32>} : memref<784x512xf32, #tpu.memory_space<vmem>>, vector<16x256xf32>,
    %c64_347 = arith.constant 64 : index
    %c0_348 = arith.constant 0 : index
    %608 = vector.load %arg29[%c64_347, %c0_348] : memref<784x512xf32, #tpu.memory_space<vmem>>, vector<16x256xf32>
    tpu.vector_store %arg29[%c64_347, %c0_348], %202 {strides = array<i32>} : memref<784x512xf32, #tpu.memory_space<vmem>>, vector<16x256xf32>,
    %c255_i32_349 = arith.constant 255 : i32
    %609 = tpu.dynamic_rotate %202 by %c255_i32_349 dim 1 : vector<16x256xf32>, i32 -> vector<16x256xf32>
    %c5_350 = arith.constant 5 : index
    %c0_351 = arith.constant 0 : index
    %610 = vector.load %arg24[%c5_350, %c0_351] : memref<61x512xf32, #tpu.memory_space<vmem>>, vector<1x256xf32>
    %611 = vector.broadcast %610 : vector<1x256xf32> to vector<16x256xf32>
    %612 = arith.mulf %609, %611 : vector<16x256xf32>
    %c80_352 = arith.constant 80 : index
    %c0_353 = arith.constant 0 : index
    %613 = vector.load %arg29[%c80_352, %c0_353] : memref<784x512xf32, #tpu.memory_space<vmem>>, vector<16x256xf32>
    tpu.vector_store %arg29[%c80_352, %c0_353], %612 {strides = array<i32>} : memref<784x512xf32, #tpu.memory_space<vmem>>, vector<16x256xf32>,
    %c241_i32_354 = arith.constant 241 : i32
    %614 = tpu.dynamic_rotate %202 by %c241_i32_354 dim 1 : vector<16x256xf32>, i32 -> vector<16x256xf32>
    %c6_355 = arith.constant 6 : index
    %c0_356 = arith.constant 0 : index
    %615 = vector.load %arg24[%c6_355, %c0_356] : memref<61x512xf32, #tpu.memory_space<vmem>>, vector<1x256xf32>
    %616 = vector.broadcast %615 : vector<1x256xf32> to vector<16x256xf32>
    %617 = arith.mulf %614, %616 : vector<16x256xf32>
    %c96_357 = arith.constant 96 : index
    %c0_358 = arith.constant 0 : index
    %618 = vector.load %arg29[%c96_357, %c0_358] : memref<784x512xf32, #tpu.memory_space<vmem>>, vector<16x256xf32>
    tpu.vector_store %arg29[%c96_357, %c0_358], %617 {strides = array<i32>} : memref<784x512xf32, #tpu.memory_space<vmem>>, vector<16x256xf32>,
    %c240_i32_359 = arith.constant 240 : i32
    %619 = tpu.dynamic_rotate %202 by %c240_i32_359 dim 1 : vector<16x256xf32>, i32 -> vector<16x256xf32>
    %c7_360 = arith.constant 7 : index
    %c0_361 = arith.constant 0 : index
    %620 = vector.load %arg24[%c7_360, %c0_361] : memref<61x512xf32, #tpu.memory_space<vmem>>, vector<1x256xf32>
    %621 = vector.broadcast %620 : vector<1x256xf32> to vector<16x256xf32>
    %622 = arith.mulf %619, %621 : vector<16x256xf32>
    %c112_362 = arith.constant 112 : index
    %c0_363 = arith.constant 0 : index
    %623 = vector.load %arg29[%c112_362, %c0_363] : memref<784x512xf32, #tpu.memory_space<vmem>>, vector<16x256xf32>
    tpu.vector_store %arg29[%c112_362, %c0_363], %622 {strides = array<i32>} : memref<784x512xf32, #tpu.memory_space<vmem>>, vector<16x256xf32>,
    %c239_i32_364 = arith.constant 239 : i32
    %624 = tpu.dynamic_rotate %202 by %c239_i32_364 dim 1 : vector<16x256xf32>, i32 -> vector<16x256xf32>
    %c8_365 = arith.constant 8 : index
    %c0_366 = arith.constant 0 : index
    %625 = vector.load %arg24[%c8_365, %c0_366] : memref<61x512xf32, #tpu.memory_space<vmem>>, vector<1x256xf32>
    %626 = vector.broadcast %625 : vector<1x256xf32> to vector<16x256xf32>
    %627 = arith.mulf %624, %626 : vector<16x256xf32>
    %c128_367 = arith.constant 128 : index
    %c0_368 = arith.constant 0 : index
    %628 = vector.load %arg29[%c128_367, %c0_368] : memref<784x512xf32, #tpu.memory_space<vmem>>, vector<16x256xf32>
    tpu.vector_store %arg29[%c128_367, %c0_368], %627 {strides = array<i32>} : memref<784x512xf32, #tpu.memory_space<vmem>>, vector<16x256xf32>,
    %c17_i32_369 = arith.constant 17 : i32
    %629 = tpu.dynamic_rotate %587 by %c17_i32_369 dim 1 : vector<56x256xf32>, i32 -> vector<56x256xf32>
    %c0_370 = arith.constant 0 : index
    %c0_371 = arith.constant 0 : index
    %630 = vector.load %arg24[%c0_370, %c0_371] : memref<61x512xf32, #tpu.memory_space<vmem>>, vector<1x256xf32>
    %631 = vector.broadcast %630 : vector<1x256xf32> to vector<56x256xf32>
    %632 = arith.mulf %629, %631 : vector<56x256xf32>
    %c144_372 = arith.constant 144 : index
    %c0_373 = arith.constant 0 : index
    %633 = vector.load %arg29[%c144_372, %c0_373] : memref<784x512xf32, #tpu.memory_space<vmem>>, vector<56x256xf32>
    tpu.vector_store %arg29[%c144_372, %c0_373], %632 {strides = array<i32>} : memref<784x512xf32, #tpu.memory_space<vmem>>, vector<56x256xf32>,
    %c16_i32_374 = arith.constant 16 : i32
    %634 = tpu.dynamic_rotate %587 by %c16_i32_374 dim 1 : vector<56x256xf32>, i32 -> vector<56x256xf32>
    %c1_375 = arith.constant 1 : index
    %c0_376 = arith.constant 0 : index
    %635 = vector.load %arg24[%c1_375, %c0_376] : memref<61x512xf32, #tpu.memory_space<vmem>>, vector<1x256xf32>
    %636 = vector.broadcast %635 : vector<1x256xf32> to vector<56x256xf32>
    %637 = arith.mulf %634, %636 : vector<56x256xf32>
    %c200 = arith.constant 200 : index
    %c0_377 = arith.constant 0 : index
    %638 = vector.load %arg29[%c200, %c0_377] : memref<784x512xf32, #tpu.memory_space<vmem>>, vector<56x256xf32>
    tpu.vector_store %arg29[%c200, %c0_377], %637 {strides = array<i32>} : memref<784x512xf32, #tpu.memory_space<vmem>>, vector<56x256xf32>,
    %c15_i32_378 = arith.constant 15 : i32
    %639 = tpu.dynamic_rotate %587 by %c15_i32_378 dim 1 : vector<56x256xf32>, i32 -> vector<56x256xf32>
    %c2_379 = arith.constant 2 : index
    %c0_380 = arith.constant 0 : index
    %640 = vector.load %arg24[%c2_379, %c0_380] : memref<61x512xf32, #tpu.memory_space<vmem>>, vector<1x256xf32>
    %641 = vector.broadcast %640 : vector<1x256xf32> to vector<56x256xf32>
    %642 = arith.mulf %639, %641 : vector<56x256xf32>
    %c256_381 = arith.constant 256 : index
    %c0_382 = arith.constant 0 : index
    %643 = vector.load %arg29[%c256_381, %c0_382] : memref<784x512xf32, #tpu.memory_space<vmem>>, vector<56x256xf32>
    tpu.vector_store %arg29[%c256_381, %c0_382], %642 {strides = array<i32>} : memref<784x512xf32, #tpu.memory_space<vmem>>, vector<56x256xf32>,
    %c1_i32_383 = arith.constant 1 : i32
    %644 = tpu.dynamic_rotate %587 by %c1_i32_383 dim 1 : vector<56x256xf32>, i32 -> vector<56x256xf32>
    %c3_384 = arith.constant 3 : index
    %c0_385 = arith.constant 0 : index
    %645 = vector.load %arg24[%c3_384, %c0_385] : memref<61x512xf32, #tpu.memory_space<vmem>>, vector<1x256xf32>
    %646 = vector.broadcast %645 : vector<1x256xf32> to vector<56x256xf32>
    %647 = arith.mulf %644, %646 : vector<56x256xf32>
    %c312 = arith.constant 312 : index
    %c0_386 = arith.constant 0 : index
    %648 = vector.load %arg29[%c312, %c0_386] : memref<784x512xf32, #tpu.memory_space<vmem>>, vector<56x256xf32>
    tpu.vector_store %arg29[%c312, %c0_386], %647 {strides = array<i32>} : memref<784x512xf32, #tpu.memory_space<vmem>>, vector<56x256xf32>,
    %c368_387 = arith.constant 368 : index
    %c0_388 = arith.constant 0 : index
    %649 = vector.load %arg29[%c368_387, %c0_388] : memref<784x512xf32, #tpu.memory_space<vmem>>, vector<56x256xf32>
    tpu.vector_store %arg29[%c368_387, %c0_388], %587 {strides = array<i32>} : memref<784x512xf32, #tpu.memory_space<vmem>>, vector<56x256xf32>,
    %c255_i32_389 = arith.constant 255 : i32
    %650 = tpu.dynamic_rotate %587 by %c255_i32_389 dim 1 : vector<56x256xf32>, i32 -> vector<56x256xf32>
    %c5_390 = arith.constant 5 : index
    %c0_391 = arith.constant 0 : index
    %651 = vector.load %arg24[%c5_390, %c0_391] : memref<61x512xf32, #tpu.memory_space<vmem>>, vector<1x256xf32>
    %652 = vector.broadcast %651 : vector<1x256xf32> to vector<56x256xf32>
    %653 = arith.mulf %650, %652 : vector<56x256xf32>
    %c424 = arith.constant 424 : index
    %c0_392 = arith.constant 0 : index
    %654 = vector.load %arg29[%c424, %c0_392] : memref<784x512xf32, #tpu.memory_space<vmem>>, vector<56x256xf32>
    tpu.vector_store %arg29[%c424, %c0_392], %653 {strides = array<i32>} : memref<784x512xf32, #tpu.memory_space<vmem>>, vector<56x256xf32>,
    %c241_i32_393 = arith.constant 241 : i32
    %655 = tpu.dynamic_rotate %587 by %c241_i32_393 dim 1 : vector<56x256xf32>, i32 -> vector<56x256xf32>
    %c6_394 = arith.constant 6 : index
    %c0_395 = arith.constant 0 : index
    %656 = vector.load %arg24[%c6_394, %c0_395] : memref<61x512xf32, #tpu.memory_space<vmem>>, vector<1x256xf32>
    %657 = vector.broadcast %656 : vector<1x256xf32> to vector<56x256xf32>
    %658 = arith.mulf %655, %657 : vector<56x256xf32>
    %c480_396 = arith.constant 480 : index
    %c0_397 = arith.constant 0 : index
    %659 = vector.load %arg29[%c480_396, %c0_397] : memref<784x512xf32, #tpu.memory_space<vmem>>, vector<56x256xf32>
    tpu.vector_store %arg29[%c480_396, %c0_397], %658 {strides = array<i32>} : memref<784x512xf32, #tpu.memory_space<vmem>>, vector<56x256xf32>,
    %c240_i32_398 = arith.constant 240 : i32
    %660 = tpu.dynamic_rotate %587 by %c240_i32_398 dim 1 : vector<56x256xf32>, i32 -> vector<56x256xf32>
    %c7_399 = arith.constant 7 : index
    %c0_400 = arith.constant 0 : index
    %661 = vector.load %arg24[%c7_399, %c0_400] : memref<61x512xf32, #tpu.memory_space<vmem>>, vector<1x256xf32>
    %662 = vector.broadcast %661 : vector<1x256xf32> to vector<56x256xf32>
    %663 = arith.mulf %660, %662 : vector<56x256xf32>
    %c536 = arith.constant 536 : index
    %c0_401 = arith.constant 0 : index
    %664 = vector.load %arg29[%c536, %c0_401] : memref<784x512xf32, #tpu.memory_space<vmem>>, vector<56x256xf32>
    tpu.vector_store %arg29[%c536, %c0_401], %663 {strides = array<i32>} : memref<784x512xf32, #tpu.memory_space<vmem>>, vector<56x256xf32>,
    %c239_i32_402 = arith.constant 239 : i32
    %665 = tpu.dynamic_rotate %587 by %c239_i32_402 dim 1 : vector<56x256xf32>, i32 -> vector<56x256xf32>
    %c8_403 = arith.constant 8 : index
    %c0_404 = arith.constant 0 : index
    %666 = vector.load %arg24[%c8_403, %c0_404] : memref<61x512xf32, #tpu.memory_space<vmem>>, vector<1x256xf32>
    %667 = vector.broadcast %666 : vector<1x256xf32> to vector<56x256xf32>
    %668 = arith.mulf %665, %667 : vector<56x256xf32>
    %c592_405 = arith.constant 592 : index
    %c0_406 = arith.constant 0 : index
    %669 = vector.load %arg29[%c592_405, %c0_406] : memref<784x512xf32, #tpu.memory_space<vmem>>, vector<56x256xf32>
    tpu.vector_store %arg29[%c592_405, %c0_406], %668 {strides = array<i32>} : memref<784x512xf32, #tpu.memory_space<vmem>>, vector<56x256xf32>,
    %c0_407 = arith.constant 0 : index
    %c0_408 = arith.constant 0 : index
    %670 = vector.load %arg12[%c0_407, %c0_408] : memref<8x648xf32, #tpu.memory_space<vmem>>, vector<8x648xf32>
    %c0_409 = arith.constant 0 : index
    %c0_410 = arith.constant 0 : index
    %671 = vector.load %arg29[%c0_409, %c0_410] : memref<784x512xf32, #tpu.memory_space<vmem>>, vector<648x256xf32>
    %cst_411 = arith.constant dense<0.000000e+00> : vector<8x256xf32>
    %672 = tpu.matmul %670, %671, %cst_411 {dimension_numbers = #tpu.dot_dimension_numbers<[1], [0], [0], [1], [0, 0, 1, 1], [], []>} : vector<8x648xf32>, vector<648x256xf32>, vector<8x256xf32> -> vector<8x256xf32>
    %c0_412 = arith.constant 0 : index
    %c0_413 = arith.constant 0 : index
    %673 = vector.load %arg13[%c0_412, %c0_413] : memref<8x1xf32, #tpu.memory_space<vmem>>, vector<8x1xf32>
    %674 = vector.broadcast %673 : vector<8x1xf32> to vector<8x256xf32>
    %675 = arith.mulf %672, %674 : vector<8x256xf32>
    %c0_414 = arith.constant 0 : index
    %c0_415 = arith.constant 0 : index
    %676 = vector.load %arg14[%c0_414, %c0_415] : memref<8x1xf32, #tpu.memory_space<vmem>>, vector<8x1xf32>
    %677 = vector.broadcast %676 : vector<8x1xf32> to vector<8x256xf32>
    %678 = arith.addf %675, %677 : vector<8x256xf32>
    %cst_416 = arith.constant 0.000000e+00 : f32
    %679 = vector.broadcast %cst_416 : f32 to vector<8x256xf32>
    %680 = arith.cmpf oge, %678, %679 : vector<8x256xf32>
    %cst_417 = arith.constant 1.000000e-01 : f32
    %681 = vector.broadcast %cst_417 : f32 to vector<8x256xf32>
    %682 = arith.mulf %681, %678 : vector<8x256xf32>
    %683 = arith.select %680, %678, %682 : vector<8x256xi1>, vector<8x256xf32>
    %c34_i32 = arith.constant 34 : i32
    %684 = tpu.dynamic_rotate %683 by %c34_i32 dim 1 : vector<8x256xf32>, i32 -> vector<8x256xf32>
    %c9 = arith.constant 9 : index
    %c0_418 = arith.constant 0 : index
    %685 = vector.load %arg24[%c9, %c0_418] : memref<61x512xf32, #tpu.memory_space<vmem>>, vector<1x256xf32>
    %686 = vector.broadcast %685 : vector<1x256xf32> to vector<8x256xf32>
    %687 = arith.mulf %684, %686 : vector<8x256xf32>
    %c0_419 = arith.constant 0 : index
    %c0_420 = arith.constant 0 : index
    %688 = vector.load %arg29[%c0_419, %c0_420] : memref<784x512xf32, #tpu.memory_space<vmem>>, vector<8x256xf32>
    tpu.vector_store %arg29[%c0_419, %c0_420], %687 {strides = array<i32>} : memref<784x512xf32, #tpu.memory_space<vmem>>, vector<8x256xf32>,
    %c32_i32_421 = arith.constant 32 : i32
    %689 = tpu.dynamic_rotate %683 by %c32_i32_421 dim 1 : vector<8x256xf32>, i32 -> vector<8x256xf32>
    %c10_422 = arith.constant 10 : index
    %c0_423 = arith.constant 0 : index
    %690 = vector.load %arg24[%c10_422, %c0_423] : memref<61x512xf32, #tpu.memory_space<vmem>>, vector<1x256xf32>
    %691 = vector.broadcast %690 : vector<1x256xf32> to vector<8x256xf32>
    %692 = arith.mulf %689, %691 : vector<8x256xf32>
    %c8_424 = arith.constant 8 : index
    %c0_425 = arith.constant 0 : index
    %693 = vector.load %arg29[%c8_424, %c0_425] : memref<784x512xf32, #tpu.memory_space<vmem>>, vector<8x256xf32>
    tpu.vector_store %arg29[%c8_424, %c0_425], %692 {strides = array<i32>} : memref<784x512xf32, #tpu.memory_space<vmem>>, vector<8x256xf32>,
    %c30_i32 = arith.constant 30 : i32
    %694 = tpu.dynamic_rotate %683 by %c30_i32 dim 1 : vector<8x256xf32>, i32 -> vector<8x256xf32>
    %c11 = arith.constant 11 : index
    %c0_426 = arith.constant 0 : index
    %695 = vector.load %arg24[%c11, %c0_426] : memref<61x512xf32, #tpu.memory_space<vmem>>, vector<1x256xf32>
    %696 = vector.broadcast %695 : vector<1x256xf32> to vector<8x256xf32>
    %697 = arith.mulf %694, %696 : vector<8x256xf32>
    %c16_427 = arith.constant 16 : index
    %c0_428 = arith.constant 0 : index
    %698 = vector.load %arg29[%c16_427, %c0_428] : memref<784x512xf32, #tpu.memory_space<vmem>>, vector<8x256xf32>
    tpu.vector_store %arg29[%c16_427, %c0_428], %697 {strides = array<i32>} : memref<784x512xf32, #tpu.memory_space<vmem>>, vector<8x256xf32>,
    %c2_i32_429 = arith.constant 2 : i32
    %699 = tpu.dynamic_rotate %683 by %c2_i32_429 dim 1 : vector<8x256xf32>, i32 -> vector<8x256xf32>
    %c12_430 = arith.constant 12 : index
    %c0_431 = arith.constant 0 : index
    %700 = vector.load %arg24[%c12_430, %c0_431] : memref<61x512xf32, #tpu.memory_space<vmem>>, vector<1x256xf32>
    %701 = vector.broadcast %700 : vector<1x256xf32> to vector<8x256xf32>
    %702 = arith.mulf %699, %701 : vector<8x256xf32>
    %c24 = arith.constant 24 : index
    %c0_432 = arith.constant 0 : index
    %703 = vector.load %arg29[%c24, %c0_432] : memref<784x512xf32, #tpu.memory_space<vmem>>, vector<8x256xf32>
    tpu.vector_store %arg29[%c24, %c0_432], %702 {strides = array<i32>} : memref<784x512xf32, #tpu.memory_space<vmem>>, vector<8x256xf32>,
    %c32_433 = arith.constant 32 : index
    %c0_434 = arith.constant 0 : index
    %704 = vector.load %arg29[%c32_433, %c0_434] : memref<784x512xf32, #tpu.memory_space<vmem>>, vector<8x256xf32>
    tpu.vector_store %arg29[%c32_433, %c0_434], %683 {strides = array<i32>} : memref<784x512xf32, #tpu.memory_space<vmem>>, vector<8x256xf32>,
    %c254_i32_435 = arith.constant 254 : i32
    %705 = tpu.dynamic_rotate %683 by %c254_i32_435 dim 1 : vector<8x256xf32>, i32 -> vector<8x256xf32>
    %c13_436 = arith.constant 13 : index
    %c0_437 = arith.constant 0 : index
    %706 = vector.load %arg24[%c13_436, %c0_437] : memref<61x512xf32, #tpu.memory_space<vmem>>, vector<1x256xf32>
    %707 = vector.broadcast %706 : vector<1x256xf32> to vector<8x256xf32>
    %708 = arith.mulf %705, %707 : vector<8x256xf32>
    %c40 = arith.constant 40 : index
    %c0_438 = arith.constant 0 : index
    %709 = vector.load %arg29[%c40, %c0_438] : memref<784x512xf32, #tpu.memory_space<vmem>>, vector<8x256xf32>
    tpu.vector_store %arg29[%c40, %c0_438], %708 {strides = array<i32>} : memref<784x512xf32, #tpu.memory_space<vmem>>, vector<8x256xf32>,
    %c226_i32 = arith.constant 226 : i32
    %710 = tpu.dynamic_rotate %683 by %c226_i32 dim 1 : vector<8x256xf32>, i32 -> vector<8x256xf32>
    %c14 = arith.constant 14 : index
    %c0_439 = arith.constant 0 : index
    %711 = vector.load %arg24[%c14, %c0_439] : memref<61x512xf32, #tpu.memory_space<vmem>>, vector<1x256xf32>
    %712 = vector.broadcast %711 : vector<1x256xf32> to vector<8x256xf32>
    %713 = arith.mulf %710, %712 : vector<8x256xf32>
    %c48_440 = arith.constant 48 : index
    %c0_441 = arith.constant 0 : index
    %714 = vector.load %arg29[%c48_440, %c0_441] : memref<784x512xf32, #tpu.memory_space<vmem>>, vector<8x256xf32>
    tpu.vector_store %arg29[%c48_440, %c0_441], %713 {strides = array<i32>} : memref<784x512xf32, #tpu.memory_space<vmem>>, vector<8x256xf32>,
    %c224_i32_442 = arith.constant 224 : i32
    %715 = tpu.dynamic_rotate %683 by %c224_i32_442 dim 1 : vector<8x256xf32>, i32 -> vector<8x256xf32>
    %c15_443 = arith.constant 15 : index
    %c0_444 = arith.constant 0 : index
    %716 = vector.load %arg24[%c15_443, %c0_444] : memref<61x512xf32, #tpu.memory_space<vmem>>, vector<1x256xf32>
    %717 = vector.broadcast %716 : vector<1x256xf32> to vector<8x256xf32>
    %718 = arith.mulf %715, %717 : vector<8x256xf32>
    %c56 = arith.constant 56 : index
    %c0_445 = arith.constant 0 : index
    %719 = vector.load %arg29[%c56, %c0_445] : memref<784x512xf32, #tpu.memory_space<vmem>>, vector<8x256xf32>
    tpu.vector_store %arg29[%c56, %c0_445], %718 {strides = array<i32>} : memref<784x512xf32, #tpu.memory_space<vmem>>, vector<8x256xf32>,
    %c222_i32 = arith.constant 222 : i32
    %720 = tpu.dynamic_rotate %683 by %c222_i32 dim 1 : vector<8x256xf32>, i32 -> vector<8x256xf32>
    %c16_446 = arith.constant 16 : index
    %c0_447 = arith.constant 0 : index
    %721 = vector.load %arg24[%c16_446, %c0_447] : memref<61x512xf32, #tpu.memory_space<vmem>>, vector<1x256xf32>
    %722 = vector.broadcast %721 : vector<1x256xf32> to vector<8x256xf32>
    %723 = arith.mulf %720, %722 : vector<8x256xf32>
    %c64_448 = arith.constant 64 : index
    %c0_449 = arith.constant 0 : index
    %724 = vector.load %arg29[%c64_448, %c0_449] : memref<784x512xf32, #tpu.memory_space<vmem>>, vector<8x256xf32>
    tpu.vector_store %arg29[%c64_448, %c0_449], %723 {strides = array<i32>} : memref<784x512xf32, #tpu.memory_space<vmem>>, vector<8x256xf32>,
    %c0_450 = arith.constant 0 : index
    %c0_451 = arith.constant 0 : index
    %725 = vector.load %arg15[%c0_450, %c0_451] : memref<8x72xf32, #tpu.memory_space<vmem>>, vector<8x72xf32>
    %c0_452 = arith.constant 0 : index
    %c0_453 = arith.constant 0 : index
    %726 = vector.load %arg29[%c0_452, %c0_453] : memref<784x512xf32, #tpu.memory_space<vmem>>, vector<72x256xf32>
    %cst_454 = arith.constant dense<0.000000e+00> : vector<8x256xf32>
    %727 = tpu.matmul %725, %726, %cst_454 {dimension_numbers = #tpu.dot_dimension_numbers<[1], [0], [0], [1], [0, 0, 1, 1], [], []>} : vector<8x72xf32>, vector<72x256xf32>, vector<8x256xf32> -> vector<8x256xf32>
    %c0_455 = arith.constant 0 : index
    %c0_456 = arith.constant 0 : index
    %728 = vector.load %arg16[%c0_455, %c0_456] : memref<8x1xf32, #tpu.memory_space<vmem>>, vector<8x1xf32>
    %729 = vector.broadcast %728 : vector<8x1xf32> to vector<8x256xf32>
    %730 = arith.mulf %727, %729 : vector<8x256xf32>
    %c0_457 = arith.constant 0 : index
    %c0_458 = arith.constant 0 : index
    %731 = vector.load %arg17[%c0_457, %c0_458] : memref<8x1xf32, #tpu.memory_space<vmem>>, vector<8x1xf32>
    %732 = vector.broadcast %731 : vector<8x1xf32> to vector<8x256xf32>
    %733 = arith.addf %730, %732 : vector<8x256xf32>
    %cst_459 = arith.constant 0.000000e+00 : f32
    %734 = vector.broadcast %cst_459 : f32 to vector<8x256xf32>
    %735 = arith.cmpf oge, %733, %734 : vector<8x256xf32>
    %cst_460 = arith.constant 1.000000e-01 : f32
    %736 = vector.broadcast %cst_460 : f32 to vector<8x256xf32>
    %737 = arith.mulf %736, %733 : vector<8x256xf32>
    %738 = arith.select %735, %733, %737 : vector<8x256xi1>, vector<8x256xf32>
    %c68_i32_461 = arith.constant 68 : i32
    %739 = tpu.dynamic_rotate %738 by %c68_i32_461 dim 1 : vector<8x256xf32>, i32 -> vector<8x256xf32>
    %c17 = arith.constant 17 : index
    %c0_462 = arith.constant 0 : index
    %740 = vector.load %arg24[%c17, %c0_462] : memref<61x512xf32, #tpu.memory_space<vmem>>, vector<1x256xf32>
    %741 = vector.broadcast %740 : vector<1x256xf32> to vector<8x256xf32>
    %742 = arith.mulf %739, %741 : vector<8x256xf32>
    %c0_463 = arith.constant 0 : index
    %c0_464 = arith.constant 0 : index
    %743 = vector.load %arg29[%c0_463, %c0_464] : memref<784x512xf32, #tpu.memory_space<vmem>>, vector<8x256xf32>
    tpu.vector_store %arg29[%c0_463, %c0_464], %742 {strides = array<i32>} : memref<784x512xf32, #tpu.memory_space<vmem>>, vector<8x256xf32>,
    %c64_i32_465 = arith.constant 64 : i32
    %744 = tpu.dynamic_rotate %738 by %c64_i32_465 dim 1 : vector<8x256xf32>, i32 -> vector<8x256xf32>
    %c18_466 = arith.constant 18 : index
    %c0_467 = arith.constant 0 : index
    %745 = vector.load %arg24[%c18_466, %c0_467] : memref<61x512xf32, #tpu.memory_space<vmem>>, vector<1x256xf32>
    %746 = vector.broadcast %745 : vector<1x256xf32> to vector<8x256xf32>
    %747 = arith.mulf %744, %746 : vector<8x256xf32>
    %c8_468 = arith.constant 8 : index
    %c0_469 = arith.constant 0 : index
    %748 = vector.load %arg29[%c8_468, %c0_469] : memref<784x512xf32, #tpu.memory_space<vmem>>, vector<8x256xf32>
    tpu.vector_store %arg29[%c8_468, %c0_469], %747 {strides = array<i32>} : memref<784x512xf32, #tpu.memory_space<vmem>>, vector<8x256xf32>,
    %c60_i32_470 = arith.constant 60 : i32
    %749 = tpu.dynamic_rotate %738 by %c60_i32_470 dim 1 : vector<8x256xf32>, i32 -> vector<8x256xf32>
    %c19 = arith.constant 19 : index
    %c0_471 = arith.constant 0 : index
    %750 = vector.load %arg24[%c19, %c0_471] : memref<61x512xf32, #tpu.memory_space<vmem>>, vector<1x256xf32>
    %751 = vector.broadcast %750 : vector<1x256xf32> to vector<8x256xf32>
    %752 = arith.mulf %749, %751 : vector<8x256xf32>
    %c16_472 = arith.constant 16 : index
    %c0_473 = arith.constant 0 : index
    %753 = vector.load %arg29[%c16_472, %c0_473] : memref<784x512xf32, #tpu.memory_space<vmem>>, vector<8x256xf32>
    tpu.vector_store %arg29[%c16_472, %c0_473], %752 {strides = array<i32>} : memref<784x512xf32, #tpu.memory_space<vmem>>, vector<8x256xf32>,
    %c4_i32_474 = arith.constant 4 : i32
    %754 = tpu.dynamic_rotate %738 by %c4_i32_474 dim 1 : vector<8x256xf32>, i32 -> vector<8x256xf32>
    %c20_475 = arith.constant 20 : index
    %c0_476 = arith.constant 0 : index
    %755 = vector.load %arg24[%c20_475, %c0_476] : memref<61x512xf32, #tpu.memory_space<vmem>>, vector<1x256xf32>
    %756 = vector.broadcast %755 : vector<1x256xf32> to vector<8x256xf32>
    %757 = arith.mulf %754, %756 : vector<8x256xf32>
    %c24_477 = arith.constant 24 : index
    %c0_478 = arith.constant 0 : index
    %758 = vector.load %arg29[%c24_477, %c0_478] : memref<784x512xf32, #tpu.memory_space<vmem>>, vector<8x256xf32>
    tpu.vector_store %arg29[%c24_477, %c0_478], %757 {strides = array<i32>} : memref<784x512xf32, #tpu.memory_space<vmem>>, vector<8x256xf32>,
    %c32_479 = arith.constant 32 : index
    %c0_480 = arith.constant 0 : index
    %759 = vector.load %arg29[%c32_479, %c0_480] : memref<784x512xf32, #tpu.memory_space<vmem>>, vector<8x256xf32>
    tpu.vector_store %arg29[%c32_479, %c0_480], %738 {strides = array<i32>} : memref<784x512xf32, #tpu.memory_space<vmem>>, vector<8x256xf32>,
    %c252_i32_481 = arith.constant 252 : i32
    %760 = tpu.dynamic_rotate %738 by %c252_i32_481 dim 1 : vector<8x256xf32>, i32 -> vector<8x256xf32>
    %c21_482 = arith.constant 21 : index
    %c0_483 = arith.constant 0 : index
    %761 = vector.load %arg24[%c21_482, %c0_483] : memref<61x512xf32, #tpu.memory_space<vmem>>, vector<1x256xf32>
    %762 = vector.broadcast %761 : vector<1x256xf32> to vector<8x256xf32>
    %763 = arith.mulf %760, %762 : vector<8x256xf32>
    %c40_484 = arith.constant 40 : index
    %c0_485 = arith.constant 0 : index
    %764 = vector.load %arg29[%c40_484, %c0_485] : memref<784x512xf32, #tpu.memory_space<vmem>>, vector<8x256xf32>
    tpu.vector_store %arg29[%c40_484, %c0_485], %763 {strides = array<i32>} : memref<784x512xf32, #tpu.memory_space<vmem>>, vector<8x256xf32>,
    %c196_i32_486 = arith.constant 196 : i32
    %765 = tpu.dynamic_rotate %738 by %c196_i32_486 dim 1 : vector<8x256xf32>, i32 -> vector<8x256xf32>
    %c22 = arith.constant 22 : index
    %c0_487 = arith.constant 0 : index
    %766 = vector.load %arg24[%c22, %c0_487] : memref<61x512xf32, #tpu.memory_space<vmem>>, vector<1x256xf32>
    %767 = vector.broadcast %766 : vector<1x256xf32> to vector<8x256xf32>
    %768 = arith.mulf %765, %767 : vector<8x256xf32>
    %c48_488 = arith.constant 48 : index
    %c0_489 = arith.constant 0 : index
    %769 = vector.load %arg29[%c48_488, %c0_489] : memref<784x512xf32, #tpu.memory_space<vmem>>, vector<8x256xf32>
    tpu.vector_store %arg29[%c48_488, %c0_489], %768 {strides = array<i32>} : memref<784x512xf32, #tpu.memory_space<vmem>>, vector<8x256xf32>,
    %c192_i32_490 = arith.constant 192 : i32
    %770 = tpu.dynamic_rotate %738 by %c192_i32_490 dim 1 : vector<8x256xf32>, i32 -> vector<8x256xf32>
    %c23_491 = arith.constant 23 : index
    %c0_492 = arith.constant 0 : index
    %771 = vector.load %arg24[%c23_491, %c0_492] : memref<61x512xf32, #tpu.memory_space<vmem>>, vector<1x256xf32>
    %772 = vector.broadcast %771 : vector<1x256xf32> to vector<8x256xf32>
    %773 = arith.mulf %770, %772 : vector<8x256xf32>
    %c56_493 = arith.constant 56 : index
    %c0_494 = arith.constant 0 : index
    %774 = vector.load %arg29[%c56_493, %c0_494] : memref<784x512xf32, #tpu.memory_space<vmem>>, vector<8x256xf32>
    tpu.vector_store %arg29[%c56_493, %c0_494], %773 {strides = array<i32>} : memref<784x512xf32, #tpu.memory_space<vmem>>, vector<8x256xf32>,
    %c188_i32_495 = arith.constant 188 : i32
    %775 = tpu.dynamic_rotate %738 by %c188_i32_495 dim 1 : vector<8x256xf32>, i32 -> vector<8x256xf32>
    %c24_496 = arith.constant 24 : index
    %c0_497 = arith.constant 0 : index
    %776 = vector.load %arg24[%c24_496, %c0_497] : memref<61x512xf32, #tpu.memory_space<vmem>>, vector<1x256xf32>
    %777 = vector.broadcast %776 : vector<1x256xf32> to vector<8x256xf32>
    %778 = arith.mulf %775, %777 : vector<8x256xf32>
    %c64_498 = arith.constant 64 : index
    %c0_499 = arith.constant 0 : index
    %779 = vector.load %arg29[%c64_498, %c0_499] : memref<784x512xf32, #tpu.memory_space<vmem>>, vector<8x256xf32>
    tpu.vector_store %arg29[%c64_498, %c0_499], %778 {strides = array<i32>} : memref<784x512xf32, #tpu.memory_space<vmem>>, vector<8x256xf32>,
    %c0_500 = arith.constant 0 : index
    %c0_501 = arith.constant 0 : index
    %780 = vector.load %arg18[%c0_500, %c0_501] : memref<8x72xf32, #tpu.memory_space<vmem>>, vector<8x72xf32>
    %c0_502 = arith.constant 0 : index
    %c0_503 = arith.constant 0 : index
    %781 = vector.load %arg29[%c0_502, %c0_503] : memref<784x512xf32, #tpu.memory_space<vmem>>, vector<72x256xf32>
    %cst_504 = arith.constant dense<0.000000e+00> : vector<8x256xf32>
    %782 = tpu.matmul %780, %781, %cst_504 {dimension_numbers = #tpu.dot_dimension_numbers<[1], [0], [0], [1], [0, 0, 1, 1], [], []>} : vector<8x72xf32>, vector<72x256xf32>, vector<8x256xf32> -> vector<8x256xf32>
    %c0_505 = arith.constant 0 : index
    %c0_506 = arith.constant 0 : index
    %783 = vector.load %arg19[%c0_505, %c0_506] : memref<8x1xf32, #tpu.memory_space<vmem>>, vector<8x1xf32>
    %784 = vector.broadcast %783 : vector<8x1xf32> to vector<8x256xf32>
    %785 = arith.mulf %782, %784 : vector<8x256xf32>
    %c0_507 = arith.constant 0 : index
    %c0_508 = arith.constant 0 : index
    %786 = vector.load %arg20[%c0_507, %c0_508] : memref<8x1xf32, #tpu.memory_space<vmem>>, vector<8x1xf32>
    %787 = vector.broadcast %786 : vector<8x1xf32> to vector<8x256xf32>
    %788 = arith.addf %785, %787 : vector<8x256xf32>
    %cst_509 = arith.constant 0.000000e+00 : f32
    %789 = vector.broadcast %cst_509 : f32 to vector<8x256xf32>
    %790 = arith.cmpf oge, %788, %789 : vector<8x256xf32>
    %cst_510 = arith.constant 1.000000e-01 : f32
    %791 = vector.broadcast %cst_510 : f32 to vector<8x256xf32>
    %792 = arith.mulf %791, %788 : vector<8x256xf32>
    %793 = arith.select %790, %788, %792 : vector<8x256xi1>, vector<8x256xf32>
    %c17_i32_511 = arith.constant 17 : i32
    %794 = tpu.dynamic_rotate %793 by %c17_i32_511 dim 1 : vector<8x256xf32>, i32 -> vector<8x256xf32>
    %c0_512 = arith.constant 0 : index
    %c0_513 = arith.constant 0 : index
    %795 = vector.load %arg24[%c0_512, %c0_513] : memref<61x512xf32, #tpu.memory_space<vmem>>, vector<1x256xf32>
    %796 = vector.broadcast %795 : vector<1x256xf32> to vector<8x256xf32>
    %797 = arith.mulf %794, %796 : vector<8x256xf32>
    %c0_514 = arith.constant 0 : index
    %c0_515 = arith.constant 0 : index
    %798 = vector.load %arg29[%c0_514, %c0_515] : memref<784x512xf32, #tpu.memory_space<vmem>>, vector<8x256xf32>
    tpu.vector_store %arg29[%c0_514, %c0_515], %797 {strides = array<i32>} : memref<784x512xf32, #tpu.memory_space<vmem>>, vector<8x256xf32>,
    %c16_i32_516 = arith.constant 16 : i32
    %799 = tpu.dynamic_rotate %793 by %c16_i32_516 dim 1 : vector<8x256xf32>, i32 -> vector<8x256xf32>
    %c1_517 = arith.constant 1 : index
    %c0_518 = arith.constant 0 : index
    %800 = vector.load %arg24[%c1_517, %c0_518] : memref<61x512xf32, #tpu.memory_space<vmem>>, vector<1x256xf32>
    %801 = vector.broadcast %800 : vector<1x256xf32> to vector<8x256xf32>
    %802 = arith.mulf %799, %801 : vector<8x256xf32>
    %c8_519 = arith.constant 8 : index
    %c0_520 = arith.constant 0 : index
    %803 = vector.load %arg29[%c8_519, %c0_520] : memref<784x512xf32, #tpu.memory_space<vmem>>, vector<8x256xf32>
    tpu.vector_store %arg29[%c8_519, %c0_520], %802 {strides = array<i32>} : memref<784x512xf32, #tpu.memory_space<vmem>>, vector<8x256xf32>,
    %c15_i32_521 = arith.constant 15 : i32
    %804 = tpu.dynamic_rotate %793 by %c15_i32_521 dim 1 : vector<8x256xf32>, i32 -> vector<8x256xf32>
    %c2_522 = arith.constant 2 : index
    %c0_523 = arith.constant 0 : index
    %805 = vector.load %arg24[%c2_522, %c0_523] : memref<61x512xf32, #tpu.memory_space<vmem>>, vector<1x256xf32>
    %806 = vector.broadcast %805 : vector<1x256xf32> to vector<8x256xf32>
    %807 = arith.mulf %804, %806 : vector<8x256xf32>
    %c16_524 = arith.constant 16 : index
    %c0_525 = arith.constant 0 : index
    %808 = vector.load %arg29[%c16_524, %c0_525] : memref<784x512xf32, #tpu.memory_space<vmem>>, vector<8x256xf32>
    tpu.vector_store %arg29[%c16_524, %c0_525], %807 {strides = array<i32>} : memref<784x512xf32, #tpu.memory_space<vmem>>, vector<8x256xf32>,
    %c1_i32_526 = arith.constant 1 : i32
    %809 = tpu.dynamic_rotate %793 by %c1_i32_526 dim 1 : vector<8x256xf32>, i32 -> vector<8x256xf32>
    %c3_527 = arith.constant 3 : index
    %c0_528 = arith.constant 0 : index
    %810 = vector.load %arg24[%c3_527, %c0_528] : memref<61x512xf32, #tpu.memory_space<vmem>>, vector<1x256xf32>
    %811 = vector.broadcast %810 : vector<1x256xf32> to vector<8x256xf32>
    %812 = arith.mulf %809, %811 : vector<8x256xf32>
    %c24_529 = arith.constant 24 : index
    %c0_530 = arith.constant 0 : index
    %813 = vector.load %arg29[%c24_529, %c0_530] : memref<784x512xf32, #tpu.memory_space<vmem>>, vector<8x256xf32>
    tpu.vector_store %arg29[%c24_529, %c0_530], %812 {strides = array<i32>} : memref<784x512xf32, #tpu.memory_space<vmem>>, vector<8x256xf32>,
    %c32_531 = arith.constant 32 : index
    %c0_532 = arith.constant 0 : index
    %814 = vector.load %arg29[%c32_531, %c0_532] : memref<784x512xf32, #tpu.memory_space<vmem>>, vector<8x256xf32>
    tpu.vector_store %arg29[%c32_531, %c0_532], %793 {strides = array<i32>} : memref<784x512xf32, #tpu.memory_space<vmem>>, vector<8x256xf32>,
    %c255_i32_533 = arith.constant 255 : i32
    %815 = tpu.dynamic_rotate %793 by %c255_i32_533 dim 1 : vector<8x256xf32>, i32 -> vector<8x256xf32>
    %c5_534 = arith.constant 5 : index
    %c0_535 = arith.constant 0 : index
    %816 = vector.load %arg24[%c5_534, %c0_535] : memref<61x512xf32, #tpu.memory_space<vmem>>, vector<1x256xf32>
    %817 = vector.broadcast %816 : vector<1x256xf32> to vector<8x256xf32>
    %818 = arith.mulf %815, %817 : vector<8x256xf32>
    %c40_536 = arith.constant 40 : index
    %c0_537 = arith.constant 0 : index
    %819 = vector.load %arg29[%c40_536, %c0_537] : memref<784x512xf32, #tpu.memory_space<vmem>>, vector<8x256xf32>
    tpu.vector_store %arg29[%c40_536, %c0_537], %818 {strides = array<i32>} : memref<784x512xf32, #tpu.memory_space<vmem>>, vector<8x256xf32>,
    %c241_i32_538 = arith.constant 241 : i32
    %820 = tpu.dynamic_rotate %793 by %c241_i32_538 dim 1 : vector<8x256xf32>, i32 -> vector<8x256xf32>
    %c6_539 = arith.constant 6 : index
    %c0_540 = arith.constant 0 : index
    %821 = vector.load %arg24[%c6_539, %c0_540] : memref<61x512xf32, #tpu.memory_space<vmem>>, vector<1x256xf32>
    %822 = vector.broadcast %821 : vector<1x256xf32> to vector<8x256xf32>
    %823 = arith.mulf %820, %822 : vector<8x256xf32>
    %c48_541 = arith.constant 48 : index
    %c0_542 = arith.constant 0 : index
    %824 = vector.load %arg29[%c48_541, %c0_542] : memref<784x512xf32, #tpu.memory_space<vmem>>, vector<8x256xf32>
    tpu.vector_store %arg29[%c48_541, %c0_542], %823 {strides = array<i32>} : memref<784x512xf32, #tpu.memory_space<vmem>>, vector<8x256xf32>,
    %c240_i32_543 = arith.constant 240 : i32
    %825 = tpu.dynamic_rotate %793 by %c240_i32_543 dim 1 : vector<8x256xf32>, i32 -> vector<8x256xf32>
    %c7_544 = arith.constant 7 : index
    %c0_545 = arith.constant 0 : index
    %826 = vector.load %arg24[%c7_544, %c0_545] : memref<61x512xf32, #tpu.memory_space<vmem>>, vector<1x256xf32>
    %827 = vector.broadcast %826 : vector<1x256xf32> to vector<8x256xf32>
    %828 = arith.mulf %825, %827 : vector<8x256xf32>
    %c56_546 = arith.constant 56 : index
    %c0_547 = arith.constant 0 : index
    %829 = vector.load %arg29[%c56_546, %c0_547] : memref<784x512xf32, #tpu.memory_space<vmem>>, vector<8x256xf32>
    tpu.vector_store %arg29[%c56_546, %c0_547], %828 {strides = array<i32>} : memref<784x512xf32, #tpu.memory_space<vmem>>, vector<8x256xf32>,
    %c239_i32_548 = arith.constant 239 : i32
    %830 = tpu.dynamic_rotate %793 by %c239_i32_548 dim 1 : vector<8x256xf32>, i32 -> vector<8x256xf32>
    %c8_549 = arith.constant 8 : index
    %c0_550 = arith.constant 0 : index
    %831 = vector.load %arg24[%c8_549, %c0_550] : memref<61x512xf32, #tpu.memory_space<vmem>>, vector<1x256xf32>
    %832 = vector.broadcast %831 : vector<1x256xf32> to vector<8x256xf32>
    %833 = arith.mulf %830, %832 : vector<8x256xf32>
    %c64_551 = arith.constant 64 : index
    %c0_552 = arith.constant 0 : index
    %834 = vector.load %arg29[%c64_551, %c0_552] : memref<784x512xf32, #tpu.memory_space<vmem>>, vector<8x256xf32>
    tpu.vector_store %arg29[%c64_551, %c0_552], %833 {strides = array<i32>} : memref<784x512xf32, #tpu.memory_space<vmem>>, vector<8x256xf32>,
    %c0_553 = arith.constant 0 : index
    %c0_554 = arith.constant 0 : index
    %835 = vector.load %arg21[%c0_553, %c0_554] : memref<2x72xf32, #tpu.memory_space<vmem>>, vector<2x72xf32>
    %c0_555 = arith.constant 0 : index
    %c0_556 = arith.constant 0 : index
    %836 = vector.load %arg29[%c0_555, %c0_556] : memref<784x512xf32, #tpu.memory_space<vmem>>, vector<72x256xf32>
    %cst_557 = arith.constant dense<0.000000e+00> : vector<2x256xf32>
    %837 = tpu.matmul %835, %836, %cst_557 {dimension_numbers = #tpu.dot_dimension_numbers<[1], [0], [0], [1], [0, 0, 1, 1], [], []>} : vector<2x72xf32>, vector<72x256xf32>, vector<2x256xf32> -> vector<2x256xf32>
    %c0_558 = arith.constant 0 : index
    %c0_559 = arith.constant 0 : index
    %838 = vector.load %arg22[%c0_558, %c0_559] : memref<2x1xf32, #tpu.memory_space<vmem>>, vector<2x1xf32>
    %839 = vector.broadcast %838 : vector<2x1xf32> to vector<2x256xf32>
    %840 = arith.mulf %837, %839 : vector<2x256xf32>
    %c0_560 = arith.constant 0 : index
    %c0_561 = arith.constant 0 : index
    %841 = vector.load %arg23[%c0_560, %c0_561] : memref<2x1xf32, #tpu.memory_space<vmem>>, vector<2x1xf32>
    %842 = vector.broadcast %841 : vector<2x1xf32> to vector<2x256xf32>
    %843 = arith.addf %840, %842 : vector<2x256xf32>
    %cst_562 = arith.constant 0.000000e+00 : f32
    %844 = vector.broadcast %cst_562 : f32 to vector<2x256xf32>
    %c96_i32_563 = arith.constant 96 : i32
    %845 = tpu.dynamic_rotate %843 by %c96_i32_563 dim 1 : vector<2x256xf32>, i32 -> vector<2x256xf32>
    %c25_564 = arith.constant 25 : index
    %c0_565 = arith.constant 0 : index
    %846 = vector.load %arg24[%c25_564, %c0_565] : memref<61x512xf32, #tpu.memory_space<vmem>>, vector<1x256xf32>
    %847 = vector.broadcast %846 : vector<1x256xf32> to vector<2x256xf32>
    %848 = arith.mulf %845, %847 : vector<2x256xf32>
    %cst_566 = arith.constant 0.018544022 : f32
    %849 = vector.broadcast %cst_566 : f32 to vector<2x256xf32>
    %850 = arith.mulf %849, %848 : vector<2x256xf32>
    %851 = arith.addf %844, %850 : vector<2x256xf32>
    %c80_i32_567 = arith.constant 80 : i32
    %852 = tpu.dynamic_rotate %843 by %c80_i32_567 dim 1 : vector<2x256xf32>, i32 -> vector<2x256xf32>
    %c27_568 = arith.constant 27 : index
    %c0_569 = arith.constant 0 : index
    %853 = vector.load %arg24[%c27_568, %c0_569] : memref<61x512xf32, #tpu.memory_space<vmem>>, vector<1x256xf32>
    %854 = vector.broadcast %853 : vector<1x256xf32> to vector<2x256xf32>
    %855 = arith.mulf %852, %854 : vector<2x256xf32>
    %cst_570 = arith.constant 0.0341669433 : f32
    %856 = vector.broadcast %cst_570 : f32 to vector<2x256xf32>
    %857 = arith.mulf %856, %855 : vector<2x256xf32>
    %858 = arith.addf %851, %857 : vector<2x256xf32>
    %c64_i32_571 = arith.constant 64 : i32
    %859 = tpu.dynamic_rotate %843 by %c64_i32_571 dim 1 : vector<2x256xf32>, i32 -> vector<2x256xf32>
    %c18_572 = arith.constant 18 : index
    %c0_573 = arith.constant 0 : index
    %860 = vector.load %arg24[%c18_572, %c0_573] : memref<61x512xf32, #tpu.memory_space<vmem>>, vector<1x256xf32>
    %861 = vector.broadcast %860 : vector<1x256xf32> to vector<2x256xf32>
    %862 = arith.mulf %859, %861 : vector<2x256xf32>
    %cst_574 = arith.constant 0.0563317649 : f32
    %863 = vector.broadcast %cst_574 : f32 to vector<2x256xf32>
    %864 = arith.mulf %863, %862 : vector<2x256xf32>
    %865 = arith.addf %858, %864 : vector<2x256xf32>
    %c48_i32_575 = arith.constant 48 : i32
    %866 = tpu.dynamic_rotate %843 by %c48_i32_575 dim 1 : vector<2x256xf32>, i32 -> vector<2x256xf32>
    %c29_576 = arith.constant 29 : index
    %c0_577 = arith.constant 0 : index
    %867 = vector.load %arg24[%c29_576, %c0_577] : memref<61x512xf32, #tpu.memory_space<vmem>>, vector<1x256xf32>
    %868 = vector.broadcast %867 : vector<1x256xf32> to vector<2x256xf32>
    %869 = arith.mulf %866, %868 : vector<2x256xf32>
    %cst_578 = arith.constant 0.0831085368 : f32
    %870 = vector.broadcast %cst_578 : f32 to vector<2x256xf32>
    %871 = arith.mulf %870, %869 : vector<2x256xf32>
    %872 = arith.addf %865, %871 : vector<2x256xf32>
    %c32_i32_579 = arith.constant 32 : i32
    %873 = tpu.dynamic_rotate %843 by %c32_i32_579 dim 1 : vector<2x256xf32>, i32 -> vector<2x256xf32>
    %c10_580 = arith.constant 10 : index
    %c0_581 = arith.constant 0 : index
    %874 = vector.load %arg24[%c10_580, %c0_581] : memref<61x512xf32, #tpu.memory_space<vmem>>, vector<1x256xf32>
    %875 = vector.broadcast %874 : vector<1x256xf32> to vector<2x256xf32>
    %876 = arith.mulf %873, %875 : vector<2x256xf32>
    %cst_582 = arith.constant 0.109719291 : f32
    %877 = vector.broadcast %cst_582 : f32 to vector<2x256xf32>
    %878 = arith.mulf %877, %876 : vector<2x256xf32>
    %879 = arith.addf %872, %878 : vector<2x256xf32>
    %c16_i32_583 = arith.constant 16 : i32
    %880 = tpu.dynamic_rotate %843 by %c16_i32_583 dim 1 : vector<2x256xf32>, i32 -> vector<2x256xf32>
    %c1_584 = arith.constant 1 : index
    %c0_585 = arith.constant 0 : index
    %881 = vector.load %arg24[%c1_584, %c0_585] : memref<61x512xf32, #tpu.memory_space<vmem>>, vector<1x256xf32>
    %882 = vector.broadcast %881 : vector<1x256xf32> to vector<2x256xf32>
    %883 = arith.mulf %880, %882 : vector<2x256xf32>
    %cst_586 = arith.constant 0.129618034 : f32
    %884 = vector.broadcast %cst_586 : f32 to vector<2x256xf32>
    %885 = arith.mulf %884, %883 : vector<2x256xf32>
    %886 = arith.addf %879, %885 : vector<2x256xf32>
    %cst_587 = arith.constant 0.137022823 : f32
    %887 = vector.broadcast %cst_587 : f32 to vector<2x256xf32>
    %888 = arith.mulf %887, %843 : vector<2x256xf32>
    %889 = arith.addf %886, %888 : vector<2x256xf32>
    %c240_i32_588 = arith.constant 240 : i32
    %890 = tpu.dynamic_rotate %843 by %c240_i32_588 dim 1 : vector<2x256xf32>, i32 -> vector<2x256xf32>
    %c7_589 = arith.constant 7 : index
    %c0_590 = arith.constant 0 : index
    %891 = vector.load %arg24[%c7_589, %c0_590] : memref<61x512xf32, #tpu.memory_space<vmem>>, vector<1x256xf32>
    %892 = vector.broadcast %891 : vector<1x256xf32> to vector<2x256xf32>
    %893 = arith.mulf %890, %892 : vector<2x256xf32>
    %cst_591 = arith.constant 0.129618034 : f32
    %894 = vector.broadcast %cst_591 : f32 to vector<2x256xf32>
    %895 = arith.mulf %894, %893 : vector<2x256xf32>
    %896 = arith.addf %889, %895 : vector<2x256xf32>
    %c224_i32_592 = arith.constant 224 : i32
    %897 = tpu.dynamic_rotate %843 by %c224_i32_592 dim 1 : vector<2x256xf32>, i32 -> vector<2x256xf32>
    %c15_593 = arith.constant 15 : index
    %c0_594 = arith.constant 0 : index
    %898 = vector.load %arg24[%c15_593, %c0_594] : memref<61x512xf32, #tpu.memory_space<vmem>>, vector<1x256xf32>
    %899 = vector.broadcast %898 : vector<1x256xf32> to vector<2x256xf32>
    %900 = arith.mulf %897, %899 : vector<2x256xf32>
    %cst_595 = arith.constant 0.109719291 : f32
    %901 = vector.broadcast %cst_595 : f32 to vector<2x256xf32>
    %902 = arith.mulf %901, %900 : vector<2x256xf32>
    %903 = arith.addf %896, %902 : vector<2x256xf32>
    %c208_i32_596 = arith.constant 208 : i32
    %904 = tpu.dynamic_rotate %843 by %c208_i32_596 dim 1 : vector<2x256xf32>, i32 -> vector<2x256xf32>
    %c31_597 = arith.constant 31 : index
    %c0_598 = arith.constant 0 : index
    %905 = vector.load %arg24[%c31_597, %c0_598] : memref<61x512xf32, #tpu.memory_space<vmem>>, vector<1x256xf32>
    %906 = vector.broadcast %905 : vector<1x256xf32> to vector<2x256xf32>
    %907 = arith.mulf %904, %906 : vector<2x256xf32>
    %cst_599 = arith.constant 0.0831085368 : f32
    %908 = vector.broadcast %cst_599 : f32 to vector<2x256xf32>
    %909 = arith.mulf %908, %907 : vector<2x256xf32>
    %910 = arith.addf %903, %909 : vector<2x256xf32>
    %c192_i32_600 = arith.constant 192 : i32
    %911 = tpu.dynamic_rotate %843 by %c192_i32_600 dim 1 : vector<2x256xf32>, i32 -> vector<2x256xf32>
    %c23_601 = arith.constant 23 : index
    %c0_602 = arith.constant 0 : index
    %912 = vector.load %arg24[%c23_601, %c0_602] : memref<61x512xf32, #tpu.memory_space<vmem>>, vector<1x256xf32>
    %913 = vector.broadcast %912 : vector<1x256xf32> to vector<2x256xf32>
    %914 = arith.mulf %911, %913 : vector<2x256xf32>
    %cst_603 = arith.constant 0.0563317649 : f32
    %915 = vector.broadcast %cst_603 : f32 to vector<2x256xf32>
    %916 = arith.mulf %915, %914 : vector<2x256xf32>
    %917 = arith.addf %910, %916 : vector<2x256xf32>
    %c176_i32_604 = arith.constant 176 : i32
    %918 = tpu.dynamic_rotate %843 by %c176_i32_604 dim 1 : vector<2x256xf32>, i32 -> vector<2x256xf32>
    %c33_605 = arith.constant 33 : index
    %c0_606 = arith.constant 0 : index
    %919 = vector.load %arg24[%c33_605, %c0_606] : memref<61x512xf32, #tpu.memory_space<vmem>>, vector<1x256xf32>
    %920 = vector.broadcast %919 : vector<1x256xf32> to vector<2x256xf32>
    %921 = arith.mulf %918, %920 : vector<2x256xf32>
    %cst_607 = arith.constant 0.0341669433 : f32
    %922 = vector.broadcast %cst_607 : f32 to vector<2x256xf32>
    %923 = arith.mulf %922, %921 : vector<2x256xf32>
    %924 = arith.addf %917, %923 : vector<2x256xf32>
    %c160_i32_608 = arith.constant 160 : i32
    %925 = tpu.dynamic_rotate %843 by %c160_i32_608 dim 1 : vector<2x256xf32>, i32 -> vector<2x256xf32>
    %c35_609 = arith.constant 35 : index
    %c0_610 = arith.constant 0 : index
    %926 = vector.load %arg24[%c35_609, %c0_610] : memref<61x512xf32, #tpu.memory_space<vmem>>, vector<1x256xf32>
    %927 = vector.broadcast %926 : vector<1x256xf32> to vector<2x256xf32>
    %928 = arith.mulf %925, %927 : vector<2x256xf32>
    %cst_611 = arith.constant 0.018544022 : f32
    %929 = vector.broadcast %cst_611 : f32 to vector<2x256xf32>
    %930 = arith.mulf %929, %928 : vector<2x256xf32>
    %931 = arith.addf %924, %930 : vector<2x256xf32>
    %c37 = arith.constant 37 : index
    %c0_612 = arith.constant 0 : index
    %932 = vector.load %arg24[%c37, %c0_612] : memref<61x512xf32, #tpu.memory_space<vmem>>, vector<1x256xf32>
    %933 = vector.broadcast %932 : vector<1x256xf32> to vector<2x256xf32>
    %934 = arith.mulf %843, %933 : vector<2x256xf32>
    %935 = arith.addf %931, %934 : vector<2x256xf32>
    %c16_i32_613 = arith.constant 16 : i32
    %936 = tpu.dynamic_rotate %843 by %c16_i32_613 dim 1 : vector<2x256xf32>, i32 -> vector<2x256xf32>
    %c38 = arith.constant 38 : index
    %c0_614 = arith.constant 0 : index
    %937 = vector.load %arg24[%c38, %c0_614] : memref<61x512xf32, #tpu.memory_space<vmem>>, vector<1x256xf32>
    %938 = vector.broadcast %937 : vector<1x256xf32> to vector<2x256xf32>
    %939 = arith.mulf %936, %938 : vector<2x256xf32>
    %940 = arith.addf %935, %939 : vector<2x256xf32>
    %c32_i32_615 = arith.constant 32 : i32
    %941 = tpu.dynamic_rotate %843 by %c32_i32_615 dim 1 : vector<2x256xf32>, i32 -> vector<2x256xf32>
    %c39 = arith.constant 39 : index
    %c0_616 = arith.constant 0 : index
    %942 = vector.load %arg24[%c39, %c0_616] : memref<61x512xf32, #tpu.memory_space<vmem>>, vector<1x256xf32>
    %943 = vector.broadcast %942 : vector<1x256xf32> to vector<2x256xf32>
    %944 = arith.mulf %941, %943 : vector<2x256xf32>
    %945 = arith.addf %940, %944 : vector<2x256xf32>
    %c48_i32_617 = arith.constant 48 : i32
    %946 = tpu.dynamic_rotate %843 by %c48_i32_617 dim 1 : vector<2x256xf32>, i32 -> vector<2x256xf32>
    %c40_618 = arith.constant 40 : index
    %c0_619 = arith.constant 0 : index
    %947 = vector.load %arg24[%c40_618, %c0_619] : memref<61x512xf32, #tpu.memory_space<vmem>>, vector<1x256xf32>
    %948 = vector.broadcast %947 : vector<1x256xf32> to vector<2x256xf32>
    %949 = arith.mulf %946, %948 : vector<2x256xf32>
    %950 = arith.addf %945, %949 : vector<2x256xf32>
    %c64_i32_620 = arith.constant 64 : i32
    %951 = tpu.dynamic_rotate %843 by %c64_i32_620 dim 1 : vector<2x256xf32>, i32 -> vector<2x256xf32>
    %c41 = arith.constant 41 : index
    %c0_621 = arith.constant 0 : index
    %952 = vector.load %arg24[%c41, %c0_621] : memref<61x512xf32, #tpu.memory_space<vmem>>, vector<1x256xf32>
    %953 = vector.broadcast %952 : vector<1x256xf32> to vector<2x256xf32>
    %954 = arith.mulf %951, %953 : vector<2x256xf32>
    %955 = arith.addf %950, %954 : vector<2x256xf32>
    %c80_i32_622 = arith.constant 80 : i32
    %956 = tpu.dynamic_rotate %843 by %c80_i32_622 dim 1 : vector<2x256xf32>, i32 -> vector<2x256xf32>
    %c42 = arith.constant 42 : index
    %c0_623 = arith.constant 0 : index
    %957 = vector.load %arg24[%c42, %c0_623] : memref<61x512xf32, #tpu.memory_space<vmem>>, vector<1x256xf32>
    %958 = vector.broadcast %957 : vector<1x256xf32> to vector<2x256xf32>
    %959 = arith.mulf %956, %958 : vector<2x256xf32>
    %960 = arith.addf %955, %959 : vector<2x256xf32>
    %c176_i32_624 = arith.constant 176 : i32
    %961 = tpu.dynamic_rotate %843 by %c176_i32_624 dim 1 : vector<2x256xf32>, i32 -> vector<2x256xf32>
    %c43 = arith.constant 43 : index
    %c0_625 = arith.constant 0 : index
    %962 = vector.load %arg24[%c43, %c0_625] : memref<61x512xf32, #tpu.memory_space<vmem>>, vector<1x256xf32>
    %963 = vector.broadcast %962 : vector<1x256xf32> to vector<2x256xf32>
    %964 = arith.mulf %961, %963 : vector<2x256xf32>
    %965 = arith.addf %960, %964 : vector<2x256xf32>
    %c192_i32_626 = arith.constant 192 : i32
    %966 = tpu.dynamic_rotate %843 by %c192_i32_626 dim 1 : vector<2x256xf32>, i32 -> vector<2x256xf32>
    %c44 = arith.constant 44 : index
    %c0_627 = arith.constant 0 : index
    %967 = vector.load %arg24[%c44, %c0_627] : memref<61x512xf32, #tpu.memory_space<vmem>>, vector<1x256xf32>
    %968 = vector.broadcast %967 : vector<1x256xf32> to vector<2x256xf32>
    %969 = arith.mulf %966, %968 : vector<2x256xf32>
    %970 = arith.addf %965, %969 : vector<2x256xf32>
    %c208_i32_628 = arith.constant 208 : i32
    %971 = tpu.dynamic_rotate %843 by %c208_i32_628 dim 1 : vector<2x256xf32>, i32 -> vector<2x256xf32>
    %c45 = arith.constant 45 : index
    %c0_629 = arith.constant 0 : index
    %972 = vector.load %arg24[%c45, %c0_629] : memref<61x512xf32, #tpu.memory_space<vmem>>, vector<1x256xf32>
    %973 = vector.broadcast %972 : vector<1x256xf32> to vector<2x256xf32>
    %974 = arith.mulf %971, %973 : vector<2x256xf32>
    %975 = arith.addf %970, %974 : vector<2x256xf32>
    %c224_i32_630 = arith.constant 224 : i32
    %976 = tpu.dynamic_rotate %843 by %c224_i32_630 dim 1 : vector<2x256xf32>, i32 -> vector<2x256xf32>
    %c46 = arith.constant 46 : index
    %c0_631 = arith.constant 0 : index
    %977 = vector.load %arg24[%c46, %c0_631] : memref<61x512xf32, #tpu.memory_space<vmem>>, vector<1x256xf32>
    %978 = vector.broadcast %977 : vector<1x256xf32> to vector<2x256xf32>
    %979 = arith.mulf %976, %978 : vector<2x256xf32>
    %980 = arith.addf %975, %979 : vector<2x256xf32>
    %c240_i32_632 = arith.constant 240 : i32
    %981 = tpu.dynamic_rotate %843 by %c240_i32_632 dim 1 : vector<2x256xf32>, i32 -> vector<2x256xf32>
    %c47 = arith.constant 47 : index
    %c0_633 = arith.constant 0 : index
    %982 = vector.load %arg24[%c47, %c0_633] : memref<61x512xf32, #tpu.memory_space<vmem>>, vector<1x256xf32>
    %983 = vector.broadcast %982 : vector<1x256xf32> to vector<2x256xf32>
    %984 = arith.mulf %981, %983 : vector<2x256xf32>
    %985 = arith.addf %980, %984 : vector<2x256xf32>
    %c48_634 = arith.constant 48 : index
    %c0_635 = arith.constant 0 : index
    %986 = vector.load %arg24[%c48_634, %c0_635] : memref<61x512xf32, #tpu.memory_space<vmem>>, vector<1x256xf32>
    %987 = vector.broadcast %986 : vector<1x256xf32> to vector<2x256xf32>
    %988 = arith.mulf %843, %987 : vector<2x256xf32>
    %989 = arith.addf %985, %988 : vector<2x256xf32>
    %cst_636 = arith.constant 0.000000e+00 : f32
    %990 = vector.broadcast %cst_636 : f32 to vector<2x256xf32>
    %c6_i32_637 = arith.constant 6 : i32
    %991 = tpu.dynamic_rotate %989 by %c6_i32_637 dim 1 : vector<2x256xf32>, i32 -> vector<2x256xf32>
    %c26_638 = arith.constant 26 : index
    %c0_639 = arith.constant 0 : index
    %992 = vector.load %arg24[%c26_638, %c0_639] : memref<61x512xf32, #tpu.memory_space<vmem>>, vector<1x256xf32>
    %993 = vector.broadcast %992 : vector<1x256xf32> to vector<2x256xf32>
    %994 = arith.mulf %991, %993 : vector<2x256xf32>
    %cst_640 = arith.constant 0.018544022 : f32
    %995 = vector.broadcast %cst_640 : f32 to vector<2x256xf32>
    %996 = arith.mulf %995, %994 : vector<2x256xf32>
    %997 = arith.addf %990, %996 : vector<2x256xf32>
    %c5_i32_641 = arith.constant 5 : i32
    %998 = tpu.dynamic_rotate %989 by %c5_i32_641 dim 1 : vector<2x256xf32>, i32 -> vector<2x256xf32>
    %c28_642 = arith.constant 28 : index
    %c0_643 = arith.constant 0 : index
    %999 = vector.load %arg24[%c28_642, %c0_643] : memref<61x512xf32, #tpu.memory_space<vmem>>, vector<1x256xf32>
    %1000 = vector.broadcast %999 : vector<1x256xf32> to vector<2x256xf32>
    %1001 = arith.mulf %998, %1000 : vector<2x256xf32>
    %cst_644 = arith.constant 0.0341669433 : f32
    %1002 = vector.broadcast %cst_644 : f32 to vector<2x256xf32>
    %1003 = arith.mulf %1002, %1001 : vector<2x256xf32>
    %1004 = arith.addf %997, %1003 : vector<2x256xf32>
    %c4_i32_645 = arith.constant 4 : i32
    %1005 = tpu.dynamic_rotate %989 by %c4_i32_645 dim 1 : vector<2x256xf32>, i32 -> vector<2x256xf32>
    %c20_646 = arith.constant 20 : index
    %c0_647 = arith.constant 0 : index
    %1006 = vector.load %arg24[%c20_646, %c0_647] : memref<61x512xf32, #tpu.memory_space<vmem>>, vector<1x256xf32>
    %1007 = vector.broadcast %1006 : vector<1x256xf32> to vector<2x256xf32>
    %1008 = arith.mulf %1005, %1007 : vector<2x256xf32>
    %cst_648 = arith.constant 0.0563317649 : f32
    %1009 = vector.broadcast %cst_648 : f32 to vector<2x256xf32>
    %1010 = arith.mulf %1009, %1008 : vector<2x256xf32>
    %1011 = arith.addf %1004, %1010 : vector<2x256xf32>
    %c3_i32_649 = arith.constant 3 : i32
    %1012 = tpu.dynamic_rotate %989 by %c3_i32_649 dim 1 : vector<2x256xf32>, i32 -> vector<2x256xf32>
    %c30_650 = arith.constant 30 : index
    %c0_651 = arith.constant 0 : index
    %1013 = vector.load %arg24[%c30_650, %c0_651] : memref<61x512xf32, #tpu.memory_space<vmem>>, vector<1x256xf32>
    %1014 = vector.broadcast %1013 : vector<1x256xf32> to vector<2x256xf32>
    %1015 = arith.mulf %1012, %1014 : vector<2x256xf32>
    %cst_652 = arith.constant 0.0831085368 : f32
    %1016 = vector.broadcast %cst_652 : f32 to vector<2x256xf32>
    %1017 = arith.mulf %1016, %1015 : vector<2x256xf32>
    %1018 = arith.addf %1011, %1017 : vector<2x256xf32>
    %c2_i32_653 = arith.constant 2 : i32
    %1019 = tpu.dynamic_rotate %989 by %c2_i32_653 dim 1 : vector<2x256xf32>, i32 -> vector<2x256xf32>
    %c12_654 = arith.constant 12 : index
    %c0_655 = arith.constant 0 : index
    %1020 = vector.load %arg24[%c12_654, %c0_655] : memref<61x512xf32, #tpu.memory_space<vmem>>, vector<1x256xf32>
    %1021 = vector.broadcast %1020 : vector<1x256xf32> to vector<2x256xf32>
    %1022 = arith.mulf %1019, %1021 : vector<2x256xf32>
    %cst_656 = arith.constant 0.109719291 : f32
    %1023 = vector.broadcast %cst_656 : f32 to vector<2x256xf32>
    %1024 = arith.mulf %1023, %1022 : vector<2x256xf32>
    %1025 = arith.addf %1018, %1024 : vector<2x256xf32>
    %c1_i32_657 = arith.constant 1 : i32
    %1026 = tpu.dynamic_rotate %989 by %c1_i32_657 dim 1 : vector<2x256xf32>, i32 -> vector<2x256xf32>
    %c3_658 = arith.constant 3 : index
    %c0_659 = arith.constant 0 : index
    %1027 = vector.load %arg24[%c3_658, %c0_659] : memref<61x512xf32, #tpu.memory_space<vmem>>, vector<1x256xf32>
    %1028 = vector.broadcast %1027 : vector<1x256xf32> to vector<2x256xf32>
    %1029 = arith.mulf %1026, %1028 : vector<2x256xf32>
    %cst_660 = arith.constant 0.129618034 : f32
    %1030 = vector.broadcast %cst_660 : f32 to vector<2x256xf32>
    %1031 = arith.mulf %1030, %1029 : vector<2x256xf32>
    %1032 = arith.addf %1025, %1031 : vector<2x256xf32>
    %cst_661 = arith.constant 0.137022823 : f32
    %1033 = vector.broadcast %cst_661 : f32 to vector<2x256xf32>
    %1034 = arith.mulf %1033, %989 : vector<2x256xf32>
    %1035 = arith.addf %1032, %1034 : vector<2x256xf32>
    %c255_i32_662 = arith.constant 255 : i32
    %1036 = tpu.dynamic_rotate %989 by %c255_i32_662 dim 1 : vector<2x256xf32>, i32 -> vector<2x256xf32>
    %c5_663 = arith.constant 5 : index
    %c0_664 = arith.constant 0 : index
    %1037 = vector.load %arg24[%c5_663, %c0_664] : memref<61x512xf32, #tpu.memory_space<vmem>>, vector<1x256xf32>
    %1038 = vector.broadcast %1037 : vector<1x256xf32> to vector<2x256xf32>
    %1039 = arith.mulf %1036, %1038 : vector<2x256xf32>
    %cst_665 = arith.constant 0.129618034 : f32
    %1040 = vector.broadcast %cst_665 : f32 to vector<2x256xf32>
    %1041 = arith.mulf %1040, %1039 : vector<2x256xf32>
    %1042 = arith.addf %1035, %1041 : vector<2x256xf32>
    %c254_i32_666 = arith.constant 254 : i32
    %1043 = tpu.dynamic_rotate %989 by %c254_i32_666 dim 1 : vector<2x256xf32>, i32 -> vector<2x256xf32>
    %c13_667 = arith.constant 13 : index
    %c0_668 = arith.constant 0 : index
    %1044 = vector.load %arg24[%c13_667, %c0_668] : memref<61x512xf32, #tpu.memory_space<vmem>>, vector<1x256xf32>
    %1045 = vector.broadcast %1044 : vector<1x256xf32> to vector<2x256xf32>
    %1046 = arith.mulf %1043, %1045 : vector<2x256xf32>
    %cst_669 = arith.constant 0.109719291 : f32
    %1047 = vector.broadcast %cst_669 : f32 to vector<2x256xf32>
    %1048 = arith.mulf %1047, %1046 : vector<2x256xf32>
    %1049 = arith.addf %1042, %1048 : vector<2x256xf32>
    %c253_i32_670 = arith.constant 253 : i32
    %1050 = tpu.dynamic_rotate %989 by %c253_i32_670 dim 1 : vector<2x256xf32>, i32 -> vector<2x256xf32>
    %c32_671 = arith.constant 32 : index
    %c0_672 = arith.constant 0 : index
    %1051 = vector.load %arg24[%c32_671, %c0_672] : memref<61x512xf32, #tpu.memory_space<vmem>>, vector<1x256xf32>
    %1052 = vector.broadcast %1051 : vector<1x256xf32> to vector<2x256xf32>
    %1053 = arith.mulf %1050, %1052 : vector<2x256xf32>
    %cst_673 = arith.constant 0.0831085368 : f32
    %1054 = vector.broadcast %cst_673 : f32 to vector<2x256xf32>
    %1055 = arith.mulf %1054, %1053 : vector<2x256xf32>
    %1056 = arith.addf %1049, %1055 : vector<2x256xf32>
    %c252_i32_674 = arith.constant 252 : i32
    %1057 = tpu.dynamic_rotate %989 by %c252_i32_674 dim 1 : vector<2x256xf32>, i32 -> vector<2x256xf32>
    %c21_675 = arith.constant 21 : index
    %c0_676 = arith.constant 0 : index
    %1058 = vector.load %arg24[%c21_675, %c0_676] : memref<61x512xf32, #tpu.memory_space<vmem>>, vector<1x256xf32>
    %1059 = vector.broadcast %1058 : vector<1x256xf32> to vector<2x256xf32>
    %1060 = arith.mulf %1057, %1059 : vector<2x256xf32>
    %cst_677 = arith.constant 0.0563317649 : f32
    %1061 = vector.broadcast %cst_677 : f32 to vector<2x256xf32>
    %1062 = arith.mulf %1061, %1060 : vector<2x256xf32>
    %1063 = arith.addf %1056, %1062 : vector<2x256xf32>
    %c251_i32_678 = arith.constant 251 : i32
    %1064 = tpu.dynamic_rotate %989 by %c251_i32_678 dim 1 : vector<2x256xf32>, i32 -> vector<2x256xf32>
    %c34_679 = arith.constant 34 : index
    %c0_680 = arith.constant 0 : index
    %1065 = vector.load %arg24[%c34_679, %c0_680] : memref<61x512xf32, #tpu.memory_space<vmem>>, vector<1x256xf32>
    %1066 = vector.broadcast %1065 : vector<1x256xf32> to vector<2x256xf32>
    %1067 = arith.mulf %1064, %1066 : vector<2x256xf32>
    %cst_681 = arith.constant 0.0341669433 : f32
    %1068 = vector.broadcast %cst_681 : f32 to vector<2x256xf32>
    %1069 = arith.mulf %1068, %1067 : vector<2x256xf32>
    %1070 = arith.addf %1063, %1069 : vector<2x256xf32>
    %c250_i32_682 = arith.constant 250 : i32
    %1071 = tpu.dynamic_rotate %989 by %c250_i32_682 dim 1 : vector<2x256xf32>, i32 -> vector<2x256xf32>
    %c36_683 = arith.constant 36 : index
    %c0_684 = arith.constant 0 : index
    %1072 = vector.load %arg24[%c36_683, %c0_684] : memref<61x512xf32, #tpu.memory_space<vmem>>, vector<1x256xf32>
    %1073 = vector.broadcast %1072 : vector<1x256xf32> to vector<2x256xf32>
    %1074 = arith.mulf %1071, %1073 : vector<2x256xf32>
    %cst_685 = arith.constant 0.018544022 : f32
    %1075 = vector.broadcast %cst_685 : f32 to vector<2x256xf32>
    %1076 = arith.mulf %1075, %1074 : vector<2x256xf32>
    %1077 = arith.addf %1070, %1076 : vector<2x256xf32>
    %c49 = arith.constant 49 : index
    %c0_686 = arith.constant 0 : index
    %1078 = vector.load %arg24[%c49, %c0_686] : memref<61x512xf32, #tpu.memory_space<vmem>>, vector<1x256xf32>
    %1079 = vector.broadcast %1078 : vector<1x256xf32> to vector<2x256xf32>
    %1080 = arith.mulf %989, %1079 : vector<2x256xf32>
    %1081 = arith.addf %1077, %1080 : vector<2x256xf32>
    %c1_i32_687 = arith.constant 1 : i32
    %1082 = tpu.dynamic_rotate %989 by %c1_i32_687 dim 1 : vector<2x256xf32>, i32 -> vector<2x256xf32>
    %c50 = arith.constant 50 : index
    %c0_688 = arith.constant 0 : index
    %1083 = vector.load %arg24[%c50, %c0_688] : memref<61x512xf32, #tpu.memory_space<vmem>>, vector<1x256xf32>
    %1084 = vector.broadcast %1083 : vector<1x256xf32> to vector<2x256xf32>
    %1085 = arith.mulf %1082, %1084 : vector<2x256xf32>
    %1086 = arith.addf %1081, %1085 : vector<2x256xf32>
    %c2_i32_689 = arith.constant 2 : i32
    %1087 = tpu.dynamic_rotate %989 by %c2_i32_689 dim 1 : vector<2x256xf32>, i32 -> vector<2x256xf32>
    %c51 = arith.constant 51 : index
    %c0_690 = arith.constant 0 : index
    %1088 = vector.load %arg24[%c51, %c0_690] : memref<61x512xf32, #tpu.memory_space<vmem>>, vector<1x256xf32>
    %1089 = vector.broadcast %1088 : vector<1x256xf32> to vector<2x256xf32>
    %1090 = arith.mulf %1087, %1089 : vector<2x256xf32>
    %1091 = arith.addf %1086, %1090 : vector<2x256xf32>
    %c3_i32_691 = arith.constant 3 : i32
    %1092 = tpu.dynamic_rotate %989 by %c3_i32_691 dim 1 : vector<2x256xf32>, i32 -> vector<2x256xf32>
    %c52 = arith.constant 52 : index
    %c0_692 = arith.constant 0 : index
    %1093 = vector.load %arg24[%c52, %c0_692] : memref<61x512xf32, #tpu.memory_space<vmem>>, vector<1x256xf32>
    %1094 = vector.broadcast %1093 : vector<1x256xf32> to vector<2x256xf32>
    %1095 = arith.mulf %1092, %1094 : vector<2x256xf32>
    %1096 = arith.addf %1091, %1095 : vector<2x256xf32>
    %c4_i32_693 = arith.constant 4 : i32
    %1097 = tpu.dynamic_rotate %989 by %c4_i32_693 dim 1 : vector<2x256xf32>, i32 -> vector<2x256xf32>
    %c53 = arith.constant 53 : index
    %c0_694 = arith.constant 0 : index
    %1098 = vector.load %arg24[%c53, %c0_694] : memref<61x512xf32, #tpu.memory_space<vmem>>, vector<1x256xf32>
    %1099 = vector.broadcast %1098 : vector<1x256xf32> to vector<2x256xf32>
    %1100 = arith.mulf %1097, %1099 : vector<2x256xf32>
    %1101 = arith.addf %1096, %1100 : vector<2x256xf32>
    %c5_i32_695 = arith.constant 5 : i32
    %1102 = tpu.dynamic_rotate %989 by %c5_i32_695 dim 1 : vector<2x256xf32>, i32 -> vector<2x256xf32>
    %c54 = arith.constant 54 : index
    %c0_696 = arith.constant 0 : index
    %1103 = vector.load %arg24[%c54, %c0_696] : memref<61x512xf32, #tpu.memory_space<vmem>>, vector<1x256xf32>
    %1104 = vector.broadcast %1103 : vector<1x256xf32> to vector<2x256xf32>
    %1105 = arith.mulf %1102, %1104 : vector<2x256xf32>
    %1106 = arith.addf %1101, %1105 : vector<2x256xf32>
    %c251_i32_697 = arith.constant 251 : i32
    %1107 = tpu.dynamic_rotate %989 by %c251_i32_697 dim 1 : vector<2x256xf32>, i32 -> vector<2x256xf32>
    %c55 = arith.constant 55 : index
    %c0_698 = arith.constant 0 : index
    %1108 = vector.load %arg24[%c55, %c0_698] : memref<61x512xf32, #tpu.memory_space<vmem>>, vector<1x256xf32>
    %1109 = vector.broadcast %1108 : vector<1x256xf32> to vector<2x256xf32>
    %1110 = arith.mulf %1107, %1109 : vector<2x256xf32>
    %1111 = arith.addf %1106, %1110 : vector<2x256xf32>
    %c252_i32_699 = arith.constant 252 : i32
    %1112 = tpu.dynamic_rotate %989 by %c252_i32_699 dim 1 : vector<2x256xf32>, i32 -> vector<2x256xf32>
    %c56_700 = arith.constant 56 : index
    %c0_701 = arith.constant 0 : index
    %1113 = vector.load %arg24[%c56_700, %c0_701] : memref<61x512xf32, #tpu.memory_space<vmem>>, vector<1x256xf32>
    %1114 = vector.broadcast %1113 : vector<1x256xf32> to vector<2x256xf32>
    %1115 = arith.mulf %1112, %1114 : vector<2x256xf32>
    %1116 = arith.addf %1111, %1115 : vector<2x256xf32>
    %c253_i32_702 = arith.constant 253 : i32
    %1117 = tpu.dynamic_rotate %989 by %c253_i32_702 dim 1 : vector<2x256xf32>, i32 -> vector<2x256xf32>
    %c57 = arith.constant 57 : index
    %c0_703 = arith.constant 0 : index
    %1118 = vector.load %arg24[%c57, %c0_703] : memref<61x512xf32, #tpu.memory_space<vmem>>, vector<1x256xf32>
    %1119 = vector.broadcast %1118 : vector<1x256xf32> to vector<2x256xf32>
    %1120 = arith.mulf %1117, %1119 : vector<2x256xf32>
    %1121 = arith.addf %1116, %1120 : vector<2x256xf32>
    %c254_i32_704 = arith.constant 254 : i32
    %1122 = tpu.dynamic_rotate %989 by %c254_i32_704 dim 1 : vector<2x256xf32>, i32 -> vector<2x256xf32>
    %c58 = arith.constant 58 : index
    %c0_705 = arith.constant 0 : index
    %1123 = vector.load %arg24[%c58, %c0_705] : memref<61x512xf32, #tpu.memory_space<vmem>>, vector<1x256xf32>
    %1124 = vector.broadcast %1123 : vector<1x256xf32> to vector<2x256xf32>
    %1125 = arith.mulf %1122, %1124 : vector<2x256xf32>
    %1126 = arith.addf %1121, %1125 : vector<2x256xf32>
    %c255_i32_706 = arith.constant 255 : i32
    %1127 = tpu.dynamic_rotate %989 by %c255_i32_706 dim 1 : vector<2x256xf32>, i32 -> vector<2x256xf32>
    %c59 = arith.constant 59 : index
    %c0_707 = arith.constant 0 : index
    %1128 = vector.load %arg24[%c59, %c0_707] : memref<61x512xf32, #tpu.memory_space<vmem>>, vector<1x256xf32>
    %1129 = vector.broadcast %1128 : vector<1x256xf32> to vector<2x256xf32>
    %1130 = arith.mulf %1127, %1129 : vector<2x256xf32>
    %1131 = arith.addf %1126, %1130 : vector<2x256xf32>
    %c60 = arith.constant 60 : index
    %c0_708 = arith.constant 0 : index
    %1132 = vector.load %arg24[%c60, %c0_708] : memref<61x512xf32, #tpu.memory_space<vmem>>, vector<1x256xf32>
    %1133 = vector.broadcast %1132 : vector<1x256xf32> to vector<2x256xf32>
    %1134 = arith.mulf %989, %1133 : vector<2x256xf32>
    %1135 = arith.addf %1131, %1134 : vector<2x256xf32>
    %cst_709 = arith.constant -3.000000e+02 : f32
    %cst_710 = arith.constant 3.000000e+02 : f32
    %1136 = vector.broadcast %cst_709 : f32 to vector<2x256xf32>
    %1137 = arith.maximumf %1136, %1135 : vector<2x256xf32>
    %1138 = vector.broadcast %cst_710 : f32 to vector<2x256xf32>
    %1139 = arith.minimumf %1138, %1137 : vector<2x256xf32>
    %c0_711 = arith.constant 0 : index
    %c0_712 = arith.constant 0 : index
    %1140 = vector.load %arg27[%c0_711, %c0_712] : memref<2x1xf32, #tpu.memory_space<vmem>>, vector<2x1xf32>
    %1141 = vector.broadcast %1140 : vector<2x1xf32> to vector<2x256xf32>
    %1142 = arith.mulf %1139, %1141 : vector<2x256xf32>
    %c0_713 = arith.constant 0 : index
    %c0_714 = arith.constant 0 : index
    %c0_715 = arith.constant 0 : index
    %1143 = vector.load %arg28[%c0_713, %c0_714, %c0_715] : memref<1x2x256xf32, #tpu.memory_space<vmem>>, vector<1x2x256xf32>
    %1144 = vector.shape_cast %1143 : vector<1x2x256xf32> to vector<2x256xf32>
    %1145 = vector.shape_cast %1142 : vector<2x256xf32> to vector<1x2x256xf32>
    tpu.vector_store %arg28[%c0_713, %c0_714, %c0_715], %1145 {strides = array<i32>} : memref<1x2x256xf32, #tpu.memory_space<vmem>>, vector<1x2x256xf32>,
    return
  }
  func.func @transform_0(%arg0: i32) -> (i32, i32, i32) {
    %c0_i32 = arith.constant 0 : i32
    %c0_i32_0 = arith.constant 0 : i32
    %c0_i32_1 = arith.constant 0 : i32
    return %arg0, %c0_i32, %c0_i32_0 : i32, i32, i32
  }
  func.func @transform_1(%arg0: i32) -> (i32, i32, i32) {
    %c0_i32 = arith.constant 0 : i32
    %c0_i32_0 = arith.constant 0 : i32
    %c0_i32_1 = arith.constant 0 : i32
    return %arg0, %c0_i32, %c0_i32_0 : i32, i32, i32
  }
  func.func @transform_2(%arg0: i32) -> (i32, i32) {
    %c0_i32 = arith.constant 0 : i32
    %c0_i32_0 = arith.constant 0 : i32
    %c0_i32_1 = arith.constant 0 : i32
    return %c0_i32, %c0_i32_0 : i32, i32
  }
  func.func @transform_3(%arg0: i32) -> (i32, i32) {
    %c0_i32 = arith.constant 0 : i32
    %c0_i32_0 = arith.constant 0 : i32
    %c0_i32_1 = arith.constant 0 : i32
    return %c0_i32, %c0_i32_0 : i32, i32
  }
  func.func @transform_4(%arg0: i32) -> (i32, i32) {
    %c0_i32 = arith.constant 0 : i32
    %c0_i32_0 = arith.constant 0 : i32
    %c0_i32_1 = arith.constant 0 : i32
    return %c0_i32, %c0_i32_0 : i32, i32
  }
  func.func @transform_5(%arg0: i32) -> (i32, i32) {
    %c0_i32 = arith.constant 0 : i32
    %c0_i32_0 = arith.constant 0 : i32
    %c0_i32_1 = arith.constant 0 : i32
    return %c0_i32, %c0_i32_0 : i32, i32
  }
  func.func @transform_6(%arg0: i32) -> (i32, i32) {
    %c0_i32 = arith.constant 0 : i32
    %c0_i32_0 = arith.constant 0 : i32
    %c0_i32_1 = arith.constant 0 : i32
    return %c0_i32, %c0_i32_0 : i32, i32
  }
  func.func @transform_7(%arg0: i32) -> (i32, i32) {
    %c0_i32 = arith.constant 0 : i32
    %c0_i32_0 = arith.constant 0 : i32
    %c0_i32_1 = arith.constant 0 : i32
    return %c0_i32, %c0_i32_0 : i32, i32
  }
  func.func @transform_8(%arg0: i32) -> (i32, i32) {
    %c0_i32 = arith.constant 0 : i32
    %c0_i32_0 = arith.constant 0 : i32
    %c0_i32_1 = arith.constant 0 : i32
    return %c0_i32, %c0_i32_0 : i32, i32
  }
  func.func @transform_9(%arg0: i32) -> (i32, i32) {
    %c0_i32 = arith.constant 0 : i32
    %c0_i32_0 = arith.constant 0 : i32
    %c0_i32_1 = arith.constant 0 : i32
    return %c0_i32, %c0_i32_0 : i32, i32
  }
  func.func @transform_10(%arg0: i32) -> (i32, i32) {
    %c0_i32 = arith.constant 0 : i32
    %c0_i32_0 = arith.constant 0 : i32
    %c0_i32_1 = arith.constant 0 : i32
    return %c0_i32, %c0_i32_0 : i32, i32
  }
  func.func @transform_11(%arg0: i32) -> (i32, i32) {
    %c0_i32 = arith.constant 0 : i32
    %c0_i32_0 = arith.constant 0 : i32
    %c0_i32_1 = arith.constant 0 : i32
    return %c0_i32, %c0_i32_0 : i32, i32
  }
  func.func @transform_12(%arg0: i32) -> (i32, i32) {
    %c0_i32 = arith.constant 0 : i32
    %c0_i32_0 = arith.constant 0 : i32
    %c0_i32_1 = arith.constant 0 : i32
    return %c0_i32, %c0_i32_0 : i32, i32
  }
  func.func @transform_13(%arg0: i32) -> (i32, i32) {
    %c0_i32 = arith.constant 0 : i32
    %c0_i32_0 = arith.constant 0 : i32
    %c0_i32_1 = arith.constant 0 : i32
    return %c0_i32, %c0_i32_0 : i32, i32
  }
  func.func @transform_14(%arg0: i32) -> (i32, i32) {
    %c0_i32 = arith.constant 0 : i32
    %c0_i32_0 = arith.constant 0 : i32
    %c0_i32_1 = arith.constant 0 : i32
    return %c0_i32, %c0_i32_0 : i32, i32
  }
  func.func @transform_15(%arg0: i32) -> (i32, i32) {
    %c0_i32 = arith.constant 0 : i32
    %c0_i32_0 = arith.constant 0 : i32
    %c0_i32_1 = arith.constant 0 : i32
    return %c0_i32, %c0_i32_0 : i32, i32
  }
  func.func @transform_16(%arg0: i32) -> (i32, i32) {
    %c0_i32 = arith.constant 0 : i32
    %c0_i32_0 = arith.constant 0 : i32
    %c0_i32_1 = arith.constant 0 : i32
    return %c0_i32, %c0_i32_0 : i32, i32
  }
  func.func @transform_17(%arg0: i32) -> (i32, i32) {
    %c0_i32 = arith.constant 0 : i32
    %c0_i32_0 = arith.constant 0 : i32
    %c0_i32_1 = arith.constant 0 : i32
    return %c0_i32, %c0_i32_0 : i32, i32
  }
  func.func @transform_18(%arg0: i32) -> (i32, i32) {
    %c0_i32 = arith.constant 0 : i32
    %c0_i32_0 = arith.constant 0 : i32
    %c0_i32_1 = arith.constant 0 : i32
    return %c0_i32, %c0_i32_0 : i32, i32
  }
  func.func @transform_19(%arg0: i32) -> (i32, i32) {
    %c0_i32 = arith.constant 0 : i32
    %c0_i32_0 = arith.constant 0 : i32
    %c0_i32_1 = arith.constant 0 : i32
    return %c0_i32, %c0_i32_0 : i32, i32
  }
  func.func @transform_20(%arg0: i32) -> (i32, i32) {
    %c0_i32 = arith.constant 0 : i32
    %c0_i32_0 = arith.constant 0 : i32
    %c0_i32_1 = arith.constant 0 : i32
    return %c0_i32, %c0_i32_0 : i32, i32
  }
  func.func @transform_21(%arg0: i32) -> (i32, i32) {
    %c0_i32 = arith.constant 0 : i32
    %c0_i32_0 = arith.constant 0 : i32
    %c0_i32_1 = arith.constant 0 : i32
    return %c0_i32, %c0_i32_0 : i32, i32
  }
  func.func @transform_22(%arg0: i32) -> (i32, i32) {
    %c0_i32 = arith.constant 0 : i32
    %c0_i32_0 = arith.constant 0 : i32
    %c0_i32_1 = arith.constant 0 : i32
    return %c0_i32, %c0_i32_0 : i32, i32
  }
  func.func @transform_23(%arg0: i32) -> (i32, i32) {
    %c0_i32 = arith.constant 0 : i32
    %c0_i32_0 = arith.constant 0 : i32
    %c0_i32_1 = arith.constant 0 : i32
    return %c0_i32, %c0_i32_0 : i32, i32
  }
  func.func @transform_24(%arg0: i32) -> (i32, i32) {
    %c0_i32 = arith.constant 0 : i32
    %c0_i32_0 = arith.constant 0 : i32
    %c0_i32_1 = arith.constant 0 : i32
    return %c0_i32, %c0_i32_0 : i32, i32
  }
  func.func @transform_25(%arg0: i32) -> (i32, i32) {
    %c0_i32 = arith.constant 0 : i32
    %c0_i32_0 = arith.constant 0 : i32
    %c0_i32_1 = arith.constant 0 : i32
    return %c0_i32, %c0_i32_0 : i32, i32
  }
  func.func @transform_26(%arg0: i32) -> (i32, i32) {
    %c0_i32 = arith.constant 0 : i32
    %c0_i32_0 = arith.constant 0 : i32
    %c0_i32_1 = arith.constant 0 : i32
    return %c0_i32, %c0_i32_0 : i32, i32
  }
  func.func @transform_27(%arg0: i32) -> (i32, i32, i32) {
    %c0_i32 = arith.constant 0 : i32
    %c0_i32_0 = arith.constant 0 : i32
    %c0_i32_1 = arith.constant 0 : i32
    return %arg0, %c0_i32, %c0_i32_0 : i32, i32, i32
  }
}

</mosaic_0001>

<bundles_post_ra>
// kernel: disp_estimator_forward.1
= control target key start
LH: loop header
LB: loop body
LE: loop exit
PB: predicated region body
PF: predicated region fallthrough
CT: control target
= control target key end

     0   :  { %s15754_s0 = inlined_call_operand.vmem [shape: f32[2,16,256], index: 0, kind: input, shape index: {}]   ;;  %s15755_s1 = inlined_call_operand.vmem [shape: f32[2,16,256], index: 1, kind: input, shape index: {}]   ;;  %s15756_s2 = inlined_call_operand.hbm [shape: f32[16,144], index: 2, kind: input, shape index: {}]   ;;  %s15757_s3 = inlined_call_operand.vmem [shape: f32[16,1], index: 3, kind: input, shape index: {}]   ;;  %s15758_s4 = inlined_call_operand.vmem [shape: f32[16,1], index: 4, kind: input, shape index: {}]   ;;  %s15759_s5 = inlined_call_operand.hbm [shape: f32[32,288], index: 5, kind: input, shape index: {}]   ;;  %s15760_s6 = inlined_call_operand.vmem [shape: f32[32,1], index: 6, kind: input, shape index: {}]   ;;  %s15761_s7 = inlined_call_operand.vmem [shape: f32[32,1], index: 7, kind: input, shape index: {}]   ;;  %s15762_s8 = inlined_call_operand.vmem [shape: f32[16,288], index: 8, kind: input, shape index: {}]   ;;  %s15763_s9 = inlined_call_operand.vmem [shape: f32[16,1], index: 9, kind: input, shape index: {}]   ;;  %s15764_s10 = inlined_call_operand.vmem [shape: f32[16,1], index: 10, kind: input, shape index: {}]   ;;  %s15765_s11 = inlined_call_operand.vmem [shape: f32[8,648], index: 11, kind: input, shape index: {}]   ;;  %s15766_s12 = inlined_call_operand.vmem [shape: f32[8,1], index: 12, kind: input, shape index: {}]   ;;  %s15767_s13 = inlined_call_operand.vmem [shape: f32[8,1], index: 13, kind: input, shape index: {}]   ;;  %s15768_s14 = inlined_call_operand.vmem [shape: f32[8,72], index: 14, kind: input, shape index: {}]   ;;  %s15769_s15 = inlined_call_operand.vmem [shape: f32[8,1], index: 15, kind: input, shape index: {}]   ;;  %s15770_s16 = inlined_call_operand.vmem [shape: f32[8,1], index: 16, kind: input, shape index: {}]   ;;  %s15771_s17 = inlined_call_operand.vmem [shape: f32[8,72], index: 17, kind: input, shape index: {}]   ;;  %s15772_s18 = inlined_call_operand.vmem [shape: f32[8,1], index: 18, kind: input, shape index: {}]   ;;  %s15773_s19 = inlined_call_operand.vmem [shape: f32[8,1], index: 19, kind: input, shape index: {}]   ;;  %s15774_s20 = inlined_call_operand.vmem [shape: f32[2,72], index: 20, kind: input, shape index: {}]   ;;  %s15775_s21 = inlined_call_operand.vmem [shape: f32[2,1], index: 21, kind: input, shape index: {}]   ;;  %s15776_s22 = inlined_call_operand.vmem [shape: f32[2,1], index: 22, kind: input, shape index: {}]   ;;  %s15777_s23 = inlined_call_operand.vmem [shape: f32[61,512], index: 23, kind: input, shape index: {}]   ;;  %s15778_s24 = inlined_call_operand.vmem [shape: f32[56,256], index: 24, kind: input, shape index: {}]   ;;  %s15779_s25 = inlined_call_operand.vmem [shape: f32[56,784], index: 25, kind: input, shape index: {}]   ;;  %s15780_s26 = inlined_call_operand.vmem [shape: f32[2,1], index: 26, kind: input, shape index: {}]   ;;  %s15781_s27 = inlined_call_operand.vmem [shape: f32[2,2,256], index: 27, kind: output, shape index: {}]  }
   0x1   :  { %15991 = sst [smem:[#allocation56_spill]] %s15754_s0 }
   0x2   :  { %15992 = sst [smem:[#allocation57_spill]] %s15755_s1 }
   0x3   :  { %15993 = sst [smem:[#allocation58_spill]] %s15756_s2 }
   0x4   :  { %15994 = sst [smem:[#allocation59_spill]] %s15757_s3 }
   0x5   :  { %15995 = sst [smem:[#allocation60_spill]] %s15758_s4 }
   0x6   :  { %15996 = sst [smem:[#allocation61_spill]] %s15759_s5 }
   0x7   :  { %15997 = sst [smem:[#allocation62_spill]] %s15760_s6 }
   0x8   :  { %15998 = sst [smem:[#allocation63_spill]] %s15761_s7 }
   0x9   :  { %15999 = sst [smem:[#allocation64_spill]] %s15762_s8 }
   0xa   :  { %16000 = sst [smem:[#allocation65_spill]] %s15763_s9 }
   0xb   :  { %16001 = sst [smem:[#allocation66_spill]] %s15764_s10 }
   0xc   :  { %16002 = sst [smem:[#allocation67_spill]] %s15765_s11 }
   0xd   :  { %16003 = sst [smem:[#allocation68_spill]] %s15766_s12 }
   0xe   :  { %16004 = sst [smem:[#allocation69_spill]] %s15767_s13 }
   0xf   :  { %16005 = sst [smem:[#allocation70_spill]] %s15771_s17 }
  0x10   :  { %16006 = sst [smem:[#allocation71_spill]] %s15774_s20 }
  0x11   :  { %16007 = sst [smem:[#allocation72_spill]] %s15775_s21 }
  0x12   :  { %16008 = sst [smem:[#allocation73_spill]] %s15776_s22 }
  0x13   :  { %16009 = sst [smem:[#allocation74_spill]] %s15778_s24 }
  0x14   :  { %16010 = sst [smem:[#allocation75_spill]] %s15779_s25 }
  0x15   :  { %16011 = sst [smem:[#allocation76_spill]] %s15780_s26 }
  0x16   :  { %16012 = sst [smem:[#allocation77_spill]] %s15781_s27 }
  0x17   :  { %32 = vsyncpa [#allocation4], 0 }
  0x18   :  { %33 = vsyncpa [#allocation6], 0  ;;  %s9909_s7 = smov 0  }
  0x19 LB: > { %16013 = sst [smem:[#allocation9_spill]] %s9722_s7  ;;  %s9724_s4 = smov [#allocation3]   ;;  %s9722_s7 = sphi %s9909_s7, %s39_s7  }
  0x1a   : > { %s659_s8 = sshll.u32 %s9724_s4, 4  ;;  %s9915_s30 = sadd.s32 4294967295, %s9722_s7   ;;  %s660_s8 = int_to_ptr.vmem [resolvable:$true] %s659_s8 }
  0x1b   : > { %p8721_p0 = scmp.ge.s32.totalorder %s9722_s7, 1  ;;  %p647_p1 = scmp.lt.s32.totalorder %s9722_s7, 3 }
  0x1c   : > { %p15792_p3 = scmp.eq.s32.totalorder %s9915_s30, 0  ;;  %s9725_s5 = smov [#allocation5]  }
  0x1d   : > { %p9919_p2 = pnand %p8721_p0, %p647_p1  ;;  %s678_s28 = sshll.u32 %s9725_s5, 4  ;;  %s9932_s28 = int_to_ptr.vmem [resolvable:$true] %s678_s28 }
  0x1e   : > { %s16016_s1 = sld [smem:[#allocation58_spill]] }
  0x1f   : > { %s16014_s9 = scalar_select %p9919_p2, 1, 0 }
  0x20   : > { %p9586_p4 = pneg %p9919_p2 }
  0x22   : > { %p9928_p5 = pnand %p15792_p3, %p9586_p4 }
  0x24   : > { %s9652_s6 = scalar_lea.hbm %s16016_s1, 512  ;;  %p9654_p7 = pneg %p9928_p5 }
  0x25   : > { %p9653_p6 = scmp.ne.s32.totalorder %s16016_s1, %s9652_s6  ;;  %p9659_p10 = scmp.lt.u32.totalorder %s9652_s6, %s16016_s1 }
  0x27   : > { %p9655_p8 = pnand %p9654_p7, %p9653_p6 }
  0x29   : > { %p9656_p9 = pneg %p9655_p8 }
  0x2b   : > { %p9661_p11 = pnand %p9659_p10, %p9656_p9 }
  0x2d   : > { %9664 = shalt.err (!%p9661_p11)
}
  0x2e   : > { %s9665_s5 = scalar_lea.vmem %s660_s8, 512  ;;  %p9673_p1 = scmp.lt.s32.totalorder %s660_s8, %s660_s8 }
  0x2f   : > { %p9666_p12 = scmp.ne.s32.totalorder %s660_s8, %s9665_s5  ;;  %p9674_p4 = scmp.lt.s32.totalorder %s9665_s5, %s9665_s5 }
  0x31   : > { %p9668_p13 = pnand %p9666_p12, %p9654_p7  ;;  %p9675_p3 = por %p9674_p4, %p9673_p1 }
  0x33   : > { %p9669_p0 = pneg %p9668_p13 }
  0x35   : > { %p9676_p2 = pnand %p9675_p3, %p9669_p0 }
  0x37   : > { %9679 = shalt.err (!%p9676_p2)
}
  0x38   : > { %s9726_s10 = smov 256   ;;  %s9727_s29 = smov 16  }
  0x39   : > { %9589 = dma.hbm_to_vmem [thread:$0]  (!%p9928_p5), %s16016_s1, 512, %s660_s8, [#allocation4], %s9726_s10, %s9726_s10, %s9727_s29  }
  0x3a   : > { %s16017_s4 = sld [smem:[#allocation61_spill]] }
  0x40   : > { %s9680_s7 = scalar_lea.hbm %s16017_s4, 1536 }
  0x41   : > { %p9681_p6 = scmp.ne.s32.totalorder %s16017_s4, %s9680_s7  ;;  %p9687_p8 = scmp.lt.u32.totalorder %s9680_s7, %s16017_s4 }
  0x43   : > { %p9683_p2 = pnand %p9681_p6, %p9654_p7 }
  0x45   : > { %p9684_p3 = pneg %p9683_p2 }
  0x47   : > { %p9689_p9 = pnand %p9687_p8, %p9684_p3 }
  0x49   : > { %9692 = shalt.err (!%p9689_p9)
}
  0x4a   : > { %s9693_s8 = scalar_lea.vmem %s9932_s28, 1536  ;;  %p9701_p13 = scmp.lt.s32.totalorder %s9932_s28, %s9932_s28 }
  0x4b   : > { %p9694_p10 = scmp.ne.s32.totalorder %s9932_s28, %s9693_s8  ;;  %p9702_p0 = scmp.lt.s32.totalorder %s9693_s8, %s9693_s8 }
  0x4d   : > { %p9696_p11 = pnand %p9694_p10, %p9654_p7  ;;  %p9703_p1 = por %p9702_p0, %p9701_p13 }
  0x4f   : > { %p9697_p12 = pneg %p9696_p11 }
  0x51   : > { %p9704_p4 = pnand %p9703_p1, %p9697_p12 }
  0x53   : > { %9707 = shalt.err (!%p9704_p4)
}
  0x54   : > { %s9728_s20 = smov 384   ;;  %s9729_s26 = smov 24  }
  0x55   : > { %9592 = dma.hbm_to_vmem [thread:$0]  (!%p9928_p5), %s16017_s4, 1536, %s9932_s28, [#allocation6], %s9728_s20, %s9728_s20, %s9729_s26  }
  0x56   : > { %p16018_p6 = scmp.ne.s32.totalorder %s16014_s9, 0 }
  0x58   : > { %773 = sbr.rel (%p16018_p6) target bundleno = 3860 (0xf14), region = 128 }
  0x5f   : > { %p16019_p7 = scmp.eq.s32.totalorder %s9915_s30, 0 }
  0x61   : > { %9713 = dma.done.wait (%p16019_p7), [#allocation4], 512   ;;  %p16020_p2 = pmov %p16019_p7 }
  0x63   : > { %9715 = vsyncadd (%p16020_p2), [#allocation4], 4294966784  ;;  %p16021_p3 = pmov %p16020_p2 }
  0x64   : > { %p16022_p8 = pmov %p16020_p2 }
  0x65   : > { %9717 = dma.done.wait (%p16021_p3), [#allocation6], 1536  }
  0x66   : > { %9719 = vsyncadd (%p16022_p8), [#allocation6], 4294965760  ;;  %p854_p9 = scmp.lt.s32.totalorder %s9915_s30, 1  ;;  %s16024_s10 = sld [smem:[#allocation56_spill]]  ;;  %v1399_v8 = vld [vmem:[#allocation3 + $0x8] sm:$0xff]  ;;  %vm15866_vm0 = vcmask 130048   ;;  %v893_v9 = vlaneseq }
  0x67   : > { %s15809_s6 = smov 17   ;;  %s16025_s3 = sld [smem:[#allocation57_spill]]  ;;  %8741 = vmatprep.mubr.msk.f32.mxu0 %vm15866_vm0, %v1399_v8  ;;  %8743 = vmatprep.mubr.msk.f32.mxu1 %vm15866_vm0, %v1399_v8  ;;  %v10154_v14 = vld [vmem:[%s15777_s23] ss:$8 sm:$0xf]  ;;  %v9738_v40 = vmov 0  }
  0x68   : > { %s16377_s30 = smov (!%p854_p9, %s9915_s30), 1  ;;  %s15807_s8 = smov 16   ;;  %v10140_v11 = vshrl.u32 %v893_v9, 7  ;;  %v10142_v12 = vand.u32 127, %v893_v9  ;;  %9651 = vset.pattern.permute.xlu1 %v9738_v40  ;;  %9650 = vset.pattern.permute.xlu0 %v9738_v40  ;;  %vm15867_vm9 = vcmask 261120  }
  0x69   : > { %16023 = sst [smem:[#allocation10_spill]] %s16377_s30  ;;  %s8897_s9 = sshll.u32 %s16377_s30, 5  ;;  %v10199_v33 = vld [vmem:[%s15777_s23 + $0x1] ss:$8 sm:$0xf] }
  0x6a   : > { %s15805_s20 = smov 15   ;;  %s15813_s26 = smov 1   ;;  %v10149_v13 = vsub.s32 1, %v10140_v11  ;;  %vm895_vm1 = vcmp.lt.s32.totalorder %v10142_v12, 17  ;;  %v10164_v17 = vsub.s32 0, %v10140_v11  ;;  %vm958_vm2 = vcmp.lt.s32.totalorder %v10142_v12, 16 }
  0x6b   : > { %s15811_s27 = smov 127   ;;  %s15803_s7 = smov 113   ;;  %v10241_v57 = vld [vmem:[%s15777_s23 + $0x2] ss:$8 sm:$0xf]  ;;  %vm1022_vm3 = vcmp.lt.s32.totalorder %v10142_v12, 15 }
  0x6c   : > { %s858_s29 = scalar_lea.vmem %s16024_s10, %s8897_s9  ;;  %s15799_s28 = smov 111   ;;  %16026 = vst [vmem:[#allocation11_spill] sm:$0xff] %v10149_v13  ;;  %16027 = vst [vmem:[#allocation12_spill] sm:$0xff] %v10164_v17  ;;  %v913_v18 = vrot.slane %v10154_v14, %v10149_v13  ;;  %v909_v25 = vrot.slane %v10154_v14, %v10164_v17  ;;  %v977_v37 = vrot.slane %v10199_v33, %v10149_v13  ;;  %vm1086_vm4 = vcmp.lt.s32.totalorder %v10142_v12, 1 }
  0x6d   : > { %v9999_v0 = vld [vmem:[%s858_s29 + $0x8] sm:$0xff]  ;;  %v10001_v1 = vld [vmem:[%s858_s29] sm:$0xff]  ;;  %v10007_v2 = vld [vmem:[%s858_s29 + $0x18] sm:$0xff]  ;;  %s10014_s5 = scalar_lea.vmem %s16025_s3, %s8897_s9  ;;  %s15801_s9 = smov 112   ;;  %v973_v49 = vrot.slane %v10199_v33, %v10164_v17  ;;  %v1041_v61 = vrot.slane %v10241_v57, %v10149_v13  ;;  %vm1158_vm5 = vcmp.lt.s32.totalorder %v10142_v12, 127  ;;  %vm1222_vm6 = vcmp.lt.s32.totalorder %v10142_v12, 113 }
  0x6e   : > { %881 = vrot.lane.b32.xlu1 %v9999_v0, %s15809_s6  ;;  %877 = vrot.lane.b32.xlu0 %v10001_v1, %s15809_s6  ;;  %v10009_v3 = vld [vmem:[%s858_s29 + $0x10] sm:$0xff]  ;;  %v10021_v4 = vld [vmem:[%s10014_s5 + $0x18] sm:$0xff]  ;;  %s16029_s2 = sld [smem:[#allocation60_spill]]  ;;  %vm15872_vm7 = vcmp.lt.s32.totalorder %v10142_v12, 112  ;;  %vm15868_vm8 = vcmp.lt.s32.totalorder %v10142_v12, 111  ;;  %s15840_s11 = smov 96  }
  0x6f   : > { %v10024_v5 = vld [vmem:[%s10014_s5 + $0x8] sm:$0xff]  ;;  %v10071_v6 = vld [vmem:[%s10014_s5 + $0x10] sm:$0xff]  ;;  %v10074_v7 = vld [vmem:[%s10014_s5] sm:$0xff]  ;;  %s16028_s5 = sld [smem:[#allocation59_spill]]  ;;  %s15834_s3 = smov 80   ;;  %vm15859_vm10 = vcmp.lt.s32.totalorder %v10142_v12, 80 }
  0x70   : > { %s15817_s0 = smov 64   ;;  %s15815_s10 = smov 48   ;;  %vm15860_vm11 = vcmp.lt.s32.totalorder %v10142_v12, 96  ;;  %vm15869_vm12 = vcmp.lt.s32.totalorder %v10142_v12, 64  ;;  %vm15858_vm13 = vcmp.lt.s32.totalorder %v10142_v12, 48  ;;  %vm15861_vm14 = vcmp.lt.s32.totalorder %v10142_v12, 32 }
  0x71   : > { %s15854_s29 = smov 32   ;;  %vm15990_vm15 = vcmp.lt.s32.totalorder %v10142_v12, 5  ;;  %s15883_s1 = smov 56  }
  0x72   : > { %883 = vrot.lane.b32.xlu1 %v10007_v2, %s15809_s6  ;;  %879 = vrot.lane.b32.xlu0 %v10009_v3, %s15809_s6  ;;  %s15899_s4 = smov 120   ;;  %s16119_s22 = sld [smem:[#allocation66_spill]] }
  0x73   : > { %s16159_s25 = sld [smem:[#allocation75_spill]]  ;;  %s16263_s24 = sld [smem:[#allocation74_spill]] }
  0x74   : > { %v1655_v45 = vld [vmem:[%s16029_s2] sm:$0xff]  ;;  %v1656_v46 = vld [vmem:[%s16029_s2 + $0x8] sm:$0xff]  ;;  %s16104_s2 = smov 56   ;;  %s16278_s30 = sld [smem:[#allocation67_spill]] }
  0x75   : > { %v1636_v38 = vld [vmem:[%s16028_s5 + $0x8] sm:$0xff]  ;;  %v1635_v39 = vld [vmem:[%s16028_s5] sm:$0xff]  ;;  %s16111_s5 = smov 12   ;;  %s16282_s12 = sld [smem:[#allocation68_spill]] }
  0x76   : > { %891 = vrot.lane.b32.xlu1 %v10021_v4, %s15809_s6  ;;  %889 = vrot.lane.b32.xlu0 %v10024_v5, %s15809_s6  ;;  %s16283_s13 = sld [smem:[#allocation69_spill]]  ;;  %s9766_s17 = smov 30  }
  0x77   : > { %s16321_s21 = smov 2  }
  0x7a   : > { %944 = vrot.lane.b32.xlu1 %v10009_v3, %s15807_s8  ;;  %942 = vrot.lane.b32.xlu0 %v10001_v1, %s15807_s8 }
  0x7e   : > { %948 = vrot.lane.b32.xlu1 %v10007_v2, %s15807_s8  ;;  %946 = vrot.lane.b32.xlu0 %v9999_v0, %s15807_s8 }
  0x82   : > { %956 = vrot.lane.b32.xlu1 %v10021_v4, %s15807_s8  ;;  %954 = vrot.lane.b32.xlu0 %v10024_v5, %s15807_s8 }
  0x86   : > { %1008 = vrot.lane.b32.xlu1 %v10009_v3, %s15805_s20  ;;  %1006 = vrot.lane.b32.xlu0 %v10001_v1, %s15805_s20 }
  0x8a   : > { %1012 = vrot.lane.b32.xlu1 %v10007_v2, %s15805_s20  ;;  %1010 = vrot.lane.b32.xlu0 %v9999_v0, %s15805_s20 }
  0x8e   : > { %1020 = vrot.lane.b32.xlu1 %v10021_v4, %s15805_s20  ;;  %1018 = vrot.lane.b32.xlu0 %v10024_v5, %s15805_s20 }
  0x92   : > { %1072 = vrot.lane.b32.xlu1 %v10009_v3, %s15813_s26  ;;  %1070 = vrot.lane.b32.xlu0 %v10001_v1, %s15813_s26 }
  0x96   : > { %1076 = vrot.lane.b32.xlu1 %v10007_v2, %s15813_s26  ;;  %1074 = vrot.lane.b32.xlu0 %v9999_v0, %s15813_s26 }
  0x9a   : > { %1084 = vrot.lane.b32.xlu1 %v10021_v4, %s15813_s26  ;;  %1082 = vrot.lane.b32.xlu0 %v10024_v5, %s15813_s26 }
  0x9e   : > { %1148 = vrot.lane.b32.xlu1 %v10007_v2, %s15811_s27  ;;  %1146 = vrot.lane.b32.xlu0 %v9999_v0, %s15811_s27 }
  0xa2   : > { %1152 = vrot.lane.b32.xlu1 %v10071_v6, %s15811_s27  ;;  %1150 = vrot.lane.b32.xlu0 %v10074_v7, %s15811_s27 }
  0xa6   : > { %1144 = vrot.lane.b32.xlu1 %v10009_v3, %s15811_s27  ;;  %1142 = vrot.lane.b32.xlu0 %v10001_v1, %s15811_s27 }
  0xaa   : > { %1212 = vrot.lane.b32.xlu1 %v10007_v2, %s15803_s7  ;;  %1210 = vrot.lane.b32.xlu0 %v9999_v0, %s15803_s7 }
  0xae   : > { %1216 = vrot.lane.b32.xlu1 %v10071_v6, %s15803_s7  ;;  %1214 = vrot.lane.b32.xlu0 %v10074_v7, %s15803_s7 }
  0xb2   : > { %1208 = vrot.lane.b32.xlu1 %v10009_v3, %s15803_s7  ;;  %1206 = vrot.lane.b32.xlu0 %v10001_v1, %s15803_s7 }
  0xb6   : > { %1276 = vrot.lane.b32.xlu1 %v10007_v2, %s15801_s9  ;;  %1274 = vrot.lane.b32.xlu0 %v9999_v0, %s15801_s9 }
  0xba   : > { %1280 = vrot.lane.b32.xlu1 %v10071_v6, %s15801_s9  ;;  %1278 = vrot.lane.b32.xlu0 %v10074_v7, %s15801_s9 }
  0xbe   : > { %1272 = vrot.lane.b32.xlu1 %v10009_v3, %s15801_s9  ;;  %1270 = vrot.lane.b32.xlu0 %v10001_v1, %s15801_s9 }
  0xc2   : > { %1340 = vrot.lane.b32.xlu1 %v10007_v2, %s15799_s28  ;;  %1338 = vrot.lane.b32.xlu0 %v9999_v0, %s15799_s28 }
  0xc6   : > { %1344 = vrot.lane.b32.xlu1 %v10071_v6, %s15799_s28  ;;  %1342 = vrot.lane.b32.xlu0 %v10074_v7, %s15799_s28 }
  0xca   : > { %1336 = vrot.lane.b32.xlu1 %v10009_v3, %s15799_s28  ;;  %1334 = vrot.lane.b32.xlu0 %v10001_v1, %s15799_s28 }
  0xce   : > { %887 = vrot.lane.b32.xlu1 %v10071_v6, %s15809_s6  ;;  %885 = vrot.lane.b32.xlu0 %v10074_v7, %s15809_s6 }
  0xd2   : > { %952 = vrot.lane.b32.xlu1 %v10071_v6, %s15807_s8  ;;  %950 = vrot.lane.b32.xlu0 %v10074_v7, %s15807_s8 }
  0xd6   : > { %1016 = vrot.lane.b32.xlu1 %v10071_v6, %s15805_s20  ;;  %1014 = vrot.lane.b32.xlu0 %v10074_v7, %s15805_s20 }
  0xda   : > { %1080 = vrot.lane.b32.xlu1 %v10071_v6, %s15813_s26  ;;  %1078 = vrot.lane.b32.xlu0 %v10074_v7, %s15813_s26 }
  0xde   : > { %1156 = vrot.lane.b32.xlu1 %v10021_v4, %s15811_s27  ;;  %1154 = vrot.lane.b32.xlu0 %v10024_v5, %s15811_s27 }
  0xe0   : > { %v10156_v15 = vpop.permute.xlu1 %881  ;;  %v878_v16 = vpop.permute.xlu0 %877 }
  0xe1   : > { %v900_v19 = vsel %vm895_vm1, %v878_v16, %v10156_v15 }
  0xe2   : > { %1220 = vrot.lane.b32.xlu1 %v10021_v4, %s15803_s7  ;;  %1218 = vrot.lane.b32.xlu0 %v10024_v5, %s15803_s7  ;;  %v927_v23 = vmul.f32 %v913_v18, %v900_v19  ;;  %v1037_v19 = vrot.slane %v10241_v57, %v10164_v17 }
  0xe4   : > { %v10171_v20 = vpop.permute.xlu1 %883  ;;  %v880_v21 = vpop.permute.xlu0 %879 }
  0xe5   : > { %v901_v22 = vsel %vm895_vm1, %v880_v21, %v10171_v20 }
  0xe6   : > { %1284 = vrot.lane.b32.xlu1 %v10021_v4, %s15801_s9  ;;  %1282 = vrot.lane.b32.xlu0 %v10024_v5, %s15801_s9  ;;  %v931_v24 = vmul.f32 %v913_v18, %v901_v22 }
  0xe8   : > { %v10182_v26 = vpop.permute.xlu1 %891  ;;  %v10184_v27 = vpop.permute.xlu0 %889  ;;  %v8900_v28 = vpack.c.bf16 %v931_v24, %v927_v23 }
  0xe9   : > { %v903_v29 = vsel %vm895_vm1, %v10182_v26, %v880_v21  ;;  %v902_v30 = vsel %vm895_vm1, %v10184_v27, %v878_v16 }
  0xea   : > { %1348 = vrot.lane.b32.xlu1 %v10021_v4, %s15799_s28  ;;  %1346 = vrot.lane.b32.xlu0 %v10024_v5, %s15799_s28  ;;  %v926_v31 = vmul.f32 %v909_v25, %v902_v30  ;;  %v930_v32 = vmul.f32 %v909_v25, %v903_v29  ;;  %v10271_v30 = vld [vmem:[%s15777_s23 + $0x3] ss:$8 sm:$0xf] }
  0xeb   : > { %8901 = vmatprep.subr.bf16.mxu0 %v8900_v28 }
  0xec   : > { %v945_v34 = vpop.permute.xlu1 %944  ;;  %v943_v35 = vpop.permute.xlu0 %942  ;;  %v8902_v36 = vpack.c.bf16 %v930_v32, %v926_v31 }
  0xee   : > { %8903 = vmatpush1.bf16.msra.mxu0 %v8902_v36  ;;  %1644 = vperm.xlu1 %9651, %v1636_v38  }
  0xef   : > { %1639 = vperm.xlu0 %9650, %v1635_v39  }
  0xf0   : > { %v10210_v41 = vpop.permute.xlu1 %948  ;;  %v10212_v42 = vpop.permute.xlu0 %946 }
  0xf1   : > { %v964_v43 = vsel %vm958_vm2, %v945_v34, %v10210_v41  ;;  %v963_v44 = vsel %vm958_vm2, %v943_v35, %v10212_v42 }
  0xf2   : > { %v995_v47 = vmul.f32 %v977_v37, %v964_v43  ;;  %v991_v48 = vmul.f32 %v977_v37, %v963_v44  ;;  %1659 = vperm.xlu1 %9651, %v1655_v45   ;;  %v1101_v44 = vrot.slane %v10271_v30, %v10164_v17 }
  0xf3   : > { %1664 = vperm.xlu0 %9650, %v1656_v46  }
  0xf4   : > { %v10228_v50 = vpop.permute.xlu1 %956  ;;  %v10230_v51 = vpop.permute.xlu0 %954  ;;  %v8904_v52 = vpack.c.bf16 %v995_v47, %v991_v48 }
  0xf5   : > { %v966_v53 = vsel %vm958_vm2, %v10228_v50, %v945_v34  ;;  %v965_v54 = vsel %vm958_vm2, %v10230_v51, %v943_v35  ;;  %v1105_v35 = vrot.slane %v10271_v30, %v10149_v13 }
  0xf6   : > { %v994_v55 = vmul.f32 %v973_v49, %v966_v53  ;;  %v990_v56 = vmul.f32 %v973_v49, %v965_v54  ;;  %8905 = vmatprep.subr.bf16.mxu0 %v8904_v52  ;;  %v10301_v54 = vld [vmem:[%s15777_s23 + $0x5] ss:$8 sm:$0xf] }
  0xf8   : > { %v1009_v58 = vpop.permute.xlu1 %1008  ;;  %v1007_v59 = vpop.permute.xlu0 %1006  ;;  %v8906_v60 = vpack.c.bf16 %v994_v55, %v990_v56  ;;  %v8916_v55 = vpack.c.bf16 %v10007_v2, %v9999_v0 }
  0xfa   : > { %8907 = vmatpush1.bf16.msra.mxu0 %v8906_v60  ;;  %v1177_v60 = vrot.slane %v10301_v54, %v10149_v13 }
  0xfc   : > { %v10246_v62 = vpop.permute.xlu1 %1012  ;;  %v10248_v63 = vpop.permute.xlu0 %1010 }
  0xfd   : > { %v1028_v8 = vsel %vm1022_vm3, %v1009_v58, %v10246_v62  ;;  %v1027_v9 = vsel %vm1022_vm3, %v1007_v59, %v10248_v63 }
  0xfe   : > { %v1059_v16 = vmul.f32 %v1041_v61, %v1028_v8  ;;  %v1055_v18 = vmul.f32 %v1041_v61, %v1027_v9  ;;  %v8918_v61 = vpack.c.bf16 %v10009_v3, %v10001_v1 }
 0x100   : > { %v10258_v21 = vpop.permute.xlu1 %1020  ;;  %v10260_v22 = vpop.permute.xlu0 %1018  ;;  %v8908_v23 = vpack.c.bf16 %v1059_v16, %v1055_v18 }
 0x101   : > { %v1030_v24 = vsel %vm1022_vm3, %v10258_v21, %v1009_v58  ;;  %v1029_v25 = vsel %vm1022_vm3, %v10260_v22, %v1007_v59 }
 0x102   : > { %v1058_v28 = vmul.f32 %v1037_v19, %v1030_v24  ;;  %v1054_v29 = vmul.f32 %v1037_v19, %v1029_v25  ;;  %8909 = vmatprep.subr.bf16.mxu0 %v8908_v23  ;;  %v1173_v19 = vrot.slane %v10301_v54, %v10164_v17 }
 0x104   : > { %v1073_v31 = vpop.permute.xlu1 %1072  ;;  %v1071_v32 = vpop.permute.xlu0 %1070  ;;  %v8910_v34 = vpack.c.bf16 %v1058_v28, %v1054_v29 }
 0x106   : > { %8911 = vmatpush1.bf16.msra.mxu0 %v8910_v34 }
 0x108   : > { %v10276_v36 = vpop.permute.xlu1 %1076  ;;  %v10278_v37 = vpop.permute.xlu0 %1074 }
 0x109   : > { %v1092_v38 = vsel %vm1086_vm4, %v1073_v31, %v10276_v36  ;;  %v1091_v39 = vsel %vm1086_vm4, %v1071_v32, %v10278_v37 }
 0x10a   : > { %v1123_v40 = vmul.f32 %v1105_v35, %v1092_v38  ;;  %v1119_v43 = vmul.f32 %v1105_v35, %v1091_v39 }
 0x10c   : > { %v10288_v45 = vpop.permute.xlu1 %1084  ;;  %v10290_v46 = vpop.permute.xlu0 %1082  ;;  %v8912_v47 = vpack.c.bf16 %v1123_v40, %v1119_v43 }
 0x10d   : > { %v1094_v48 = vsel %vm1086_vm4, %v10288_v45, %v1073_v31  ;;  %v1093_v49 = vsel %vm1086_vm4, %v10290_v46, %v1071_v32  ;;  %v10335_v31 = vld [vmem:[%s15777_s23 + $0x6] ss:$8 sm:$0xf] }
 0x10e   : > { %v1122_v52 = vmul.f32 %v1101_v44, %v1094_v48  ;;  %v1118_v53 = vmul.f32 %v1101_v44, %v1093_v49  ;;  %8913 = vmatprep.subr.bf16.mxu0 %v8912_v47  ;;  %v1241_v38 = vrot.slane %v10335_v31, %v10149_v13  ;;  %v1237_v49 = vrot.slane %v10335_v31, %v10164_v17 }
 0x110   : > { %v1149_v56 = vpop.permute.xlu1 %1148  ;;  %v1147_v58 = vpop.permute.xlu0 %1146  ;;  %v8914_v59 = vpack.c.bf16 %v1122_v52, %v1118_v53 }
 0x112   : > { %8915 = vmatpush1.bf16.msra.mxu0 %v8914_v59 }
 0x113   : > { %8917 = vmatprep.subr.bf16.mxu0 %v8916_v55 }
 0x114   : > { %v10310_v8 = vpop.permute.xlu1 %1152  ;;  %v10312_v9 = vpop.permute.xlu0 %1150 }
 0x115   : > { %v1162_v0 = vsel %vm1158_vm5, %v1149_v56, %v10310_v8  ;;  %v1161_v2 = vsel %vm1158_vm5, %v1147_v58, %v10312_v9 }
 0x116   : > { %v1195_v16 = vmul.f32 %v1177_v60, %v1162_v0  ;;  %v1191_v18 = vmul.f32 %v1177_v60, %v1161_v2  ;;  %8919 = vmatpush1.bf16.msra.mxu0 %v8918_v61  ;;  %v10365_v61 = vld [vmem:[%s15777_s23 + $0x7] ss:$8 sm:$0xf] }
 0x118   : > { %v10322_v1 = vpop.permute.xlu1 %1144  ;;  %v10324_v3 = vpop.permute.xlu0 %1142  ;;  %v8920_v23 = vpack.c.bf16 %v1195_v16, %v1191_v18  ;;  %v1305_v18 = vrot.slane %v10365_v61, %v10149_v13 }
 0x119   : > { %v1164_v24 = vsel %vm1158_vm5, %v10322_v1, %v1149_v56  ;;  %v1163_v25 = vsel %vm1158_vm5, %v10324_v3, %v1147_v58 }
 0x11a   : > { %v1194_v28 = vmul.f32 %v1173_v19, %v1164_v24  ;;  %v1190_v29 = vmul.f32 %v1173_v19, %v1163_v25  ;;  %8921 = vmatprep.subr.bf16.mxu0 %v8920_v23 }
 0x11c   : > { %v1213_v32 = vpop.permute.xlu1 %1212  ;;  %v1211_v34 = vpop.permute.xlu0 %1210  ;;  %v8922_v35 = vpack.c.bf16 %v1194_v28, %v1190_v29 }
 0x11e   : > { %8923 = vmatpush1.bf16.msra.mxu0 %v8922_v35 }
 0x120   : > { %v10340_v39 = vpop.permute.xlu1 %1216  ;;  %v10342_v40 = vpop.permute.xlu0 %1214 }
 0x121   : > { %v1226_v43 = vsel %vm1222_vm6, %v1213_v32, %v10340_v39  ;;  %v1225_v44 = vsel %vm1222_vm6, %v1211_v34, %v10342_v40 }
 0x122   : > { %v1259_v47 = vmul.f32 %v1241_v38, %v1226_v43  ;;  %v1255_v48 = vmul.f32 %v1241_v38, %v1225_v44 }
 0x124   : > { %v10352_v52 = vpop.permute.xlu1 %1208  ;;  %v10354_v53 = vpop.permute.xlu0 %1206  ;;  %v8924_v55 = vpack.c.bf16 %v1259_v47, %v1255_v48 }
 0x125   : > { %v1228_v56 = vsel %vm1222_vm6, %v10352_v52, %v1213_v32  ;;  %v1227_v58 = vsel %vm1222_vm6, %v10354_v53, %v1211_v34  ;;  %v1301_v32 = vrot.slane %v10365_v61, %v10164_v17 }
 0x126   : > { %v1258_v59 = vmul.f32 %v1237_v49, %v1228_v56  ;;  %v1254_v60 = vmul.f32 %v1237_v49, %v1227_v58  ;;  %8925 = vmatprep.subr.bf16.mxu0 %v8924_v55  ;;  %v10395_v49 = vld [vmem:[%s15777_s23 + $0x20] ss:$8 sm:$0xf] }
 0x128   : > { %v1277_v0 = vpop.permute.xlu1 %1276  ;;  %v1275_v2 = vpop.permute.xlu0 %1274  ;;  %v8926_v16 = vpack.c.bf16 %v1258_v59, %v1254_v60  ;;  %v1369_v59 = vrot.slane %v10395_v49, %v10149_v13 }
 0x12a   : > { %8927 = vmatpush1.bf16.msra.mxu0 %v8926_v16 }
 0x12c   : > { %v10370_v19 = vpop.permute.xlu1 %1280  ;;  %v10372_v23 = vpop.permute.xlu0 %1278 }
 0x12d   : > { %v1290_v24 = vsel %vm15872_vm7, %v1277_v0, %v10370_v19  ;;  %v1289_v25 = vsel %vm15872_vm7, %v1275_v2, %v10372_v23 }
 0x12e   : > { %v1323_v28 = vmul.f32 %v1305_v18, %v1290_v24  ;;  %v1319_v29 = vmul.f32 %v1305_v18, %v1289_v25  ;;  %v1365_v18 = vrot.slane %v10395_v49, %v10164_v17 }
 0x130   : > { %v10382_v34 = vpop.permute.xlu1 %1272  ;;  %v10384_v35 = vpop.permute.xlu0 %1270  ;;  %v8928_v38 = vpack.c.bf16 %v1323_v28, %v1319_v29  ;;  %v10413_v28 = vsub.s32 2, %v10140_v11  ;;  %v10416_v29 = vsub.s32 3, %v10140_v11 }
 0x131   : > { %v1292_v43 = vsel %vm15872_vm7, %v10382_v34, %v1277_v0  ;;  %v1291_v44 = vsel %vm15872_vm7, %v10384_v35, %v1275_v2 }
 0x132   : > { %v1322_v47 = vmul.f32 %v1301_v32, %v1292_v43  ;;  %v1318_v48 = vmul.f32 %v1301_v32, %v1291_v44  ;;  %8929 = vmatprep.subr.bf16.mxu0 %v8928_v38  ;;  %v921_v11 = vrot.slane %v10154_v14, %v10416_v29 }
 0x134   : > { %v1341_v55 = vpop.permute.xlu1 %1340  ;;  %v1339_v56 = vpop.permute.xlu0 %1338  ;;  %v8930_v58 = vpack.c.bf16 %v1322_v47, %v1318_v48 }
 0x136   : > { %8931 = vmatpush1.bf16.msra.mxu0 %v8930_v58 }
 0x138   : > { %v10400_v60 = vpop.permute.xlu1 %1344  ;;  %v10402_v0 = vpop.permute.xlu0 %1342 }
 0x139   : > { %v1354_v2 = vsel %vm15868_vm8, %v1341_v55, %v10400_v60  ;;  %v1353_v16 = vsel %vm15868_vm8, %v1339_v56, %v10402_v0 }
 0x13a   : > { %v1387_v24 = vmul.f32 %v1369_v59, %v1354_v2  ;;  %v1383_v25 = vmul.f32 %v1369_v59, %v1353_v16  ;;  %v917_v59 = vrot.slane %v10154_v14, %v10413_v28 }
 0x13c   : > { %v10418_v32 = vpop.permute.xlu1 %1336  ;;  %v10420_v38 = vpop.permute.xlu0 %1334  ;;  %v8932_v43 = vpack.c.bf16 %v1387_v24, %v1383_v25  ;;  %v981_v25 = vrot.slane %v10199_v33, %v10413_v28 }
 0x13d   : > { %v1356_v44 = vsel %vm15868_vm8, %v10418_v32, %v1341_v55  ;;  %v1355_v47 = vsel %vm15868_vm8, %v10420_v38, %v1339_v56  ;;  %v985_v55 = vrot.slane %v10199_v33, %v10416_v29 }
 0x13e   : > { %v1386_v48 = vmul.f32 %v1365_v18, %v1356_v44  ;;  %v1382_v58 = vmul.f32 %v1365_v18, %v1355_v47  ;;  %8933 = vmatprep.subr.bf16.mxu0 %v8932_v43  ;;  %v10448_v44 = vld [vmem:[#allocation3] sm:$0xff] }
 0x140   : > { %v888_v2 = vpop.permute.xlu1 %887  ;;  %v886_v16 = vpop.permute.xlu0 %885  ;;  %v8934_v24 = vpack.c.bf16 %v1386_v48, %v1382_v58 }
 0x141   : > { %v899_v56 = vsel %vm895_vm1, %v10171_v20, %v888_v2  ;;  %v898_v18 = vsel %vm895_vm1, %v10156_v15, %v886_v16  ;;  %v896_v14 = vsel %vm895_vm1, %v886_v16, %v10184_v27  ;;  %v897_v43 = vsel %vm895_vm1, %v888_v2, %v10182_v26  ;;  %v10454_v16 = vld [vmem:[#allocation3 + $0x18] sm:$0xff] }
 0x142   : > { %8935 = vmatpush1.bf16.msra.mxu0 %v8934_v24  ;;  %v929_v33 = vmul.f32 %v921_v11, %v896_v14  ;;  %v933_v47 = vmul.f32 %v921_v11, %v897_v43  ;;  %v928_v48 = vmul.f32 %v917_v59, %v898_v18  ;;  %v932_v58 = vmul.f32 %v917_v59, %v899_v56 }
 0x143   : > { %v1045_v15 = vrot.slane %v10241_v57, %v10413_v28  ;;  %v1049_v27 = vrot.slane %v10241_v57, %v10416_v29 }
 0x144   : > { %v953_v20 = vpop.permute.xlu1 %952  ;;  %v951_v10 = vpop.permute.xlu0 %950  ;;  %v8936_v13 = vpack.c.bf16 %v933_v47, %v929_v33  ;;  %v8938_v17 = vpack.c.bf16 %v932_v58, %v928_v48 }
 0x145   : > { %v960_v26 = vsel %vm958_vm2, %v953_v20, %v10228_v50  ;;  %v962_v11 = vsel %vm958_vm2, %v10210_v41, %v953_v20  ;;  %v959_v59 = vsel %vm958_vm2, %v951_v10, %v10230_v51  ;;  %v961_v2 = vsel %vm958_vm2, %v10212_v42, %v951_v10  ;;  %1546 = vmatmul.mubr.f32.vlgmr.msra.gmra.mrb[0].mxu0 %v10448_v44  ;;  %v10469_v50 = vld [vmem:[#allocation3 + $0x10] sm:$0xff] }
 0x146   : > { %v996_v57 = vmul.f32 %v981_v25, %v962_v11  ;;  %v997_v24 = vmul.f32 %v985_v55, %v960_v26  ;;  %v992_v56 = vmul.f32 %v981_v25, %v961_v2  ;;  %v993_v18 = vmul.f32 %v985_v55, %v959_v59  ;;  %8937 = vmatprep.subr.bf16.mxu1 %v8936_v13 }
 0x147   : > { %8939 = vmatpush1.bf16.msra.mxu1 %v8938_v17  ;;  %8742 = vmatprep.mubr.msk.f32.mxu0 %vm15866_vm0, %v10454_v16  ;;  %v1109_v10 = vrot.slane %v10271_v30, %v10413_v28  ;;  %v1113_v42 = vrot.slane %v10271_v30, %v10416_v29  ;;  %v1185_v26 = vrot.slane %v10301_v54, %v10416_v29 }
 0x148   : > { %v1017_v41 = vpop.permute.xlu1 %1016  ;;  %v1015_v14 = vpop.permute.xlu0 %1014  ;;  %v8940_v51 = vpack.c.bf16 %v997_v24, %v993_v18  ;;  %v8942_v43 = vpack.c.bf16 %v996_v57, %v992_v56 }
 0x149   : > { %v1024_v13 = vsel %vm1022_vm3, %v1017_v41, %v10258_v21  ;;  %v1026_v17 = vsel %vm1022_vm3, %v10246_v62, %v1017_v41  ;;  %v1023_v25 = vsel %vm1022_vm3, %v1015_v14, %v10260_v22  ;;  %v1025_v55 = vsel %vm1022_vm3, %v10248_v63, %v1015_v14  ;;  %1552 = vmatmul.mubr.f32.gmra.mrb[2].mxu0 %v10469_v50 }
 0x14a   : > { %v1060_v33 = vmul.f32 %v1045_v15, %v1026_v17  ;;  %v1061_v30 = vmul.f32 %v1049_v27, %v1024_v13  ;;  %v1056_v47 = vmul.f32 %v1045_v15, %v1025_v55  ;;  %v1057_v48 = vmul.f32 %v1049_v27, %v1023_v25  ;;  %8941 = vmatprep.subr.bf16.mxu1 %v8940_v51 }
 0x14b   : > { %8943 = vmatpush1.bf16.msra.mxu1 %v8942_v43  ;;  %v1313_v55 = vrot.slane %v10365_v61, %v10416_v29 }
 0x14c   : > { %v1081_v21 = vpop.permute.xlu1 %1080  ;;  %v1079_v58 = vpop.permute.xlu0 %1078  ;;  %v8944_v20 = vpack.c.bf16 %v1061_v30, %v1057_v48  ;;  %v8946_v62 = vpack.c.bf16 %v1060_v33, %v1056_v47  ;;  %v1309_v47 = vrot.slane %v10365_v61, %v10413_v28 }
 0x14d   : > { %v1088_v22 = vsel %vm1086_vm4, %v1081_v21, %v10288_v45  ;;  %v1090_v63 = vsel %vm1086_vm4, %v10276_v36, %v1081_v21  ;;  %v1087_v15 = vsel %vm1086_vm4, %v1079_v58, %v10290_v46  ;;  %v1089_v27 = vsel %vm1086_vm4, %v10278_v37, %v1079_v58 }
 0x14e   : > { %v1124_v11 = vmul.f32 %v1109_v10, %v1090_v63  ;;  %v1125_v59 = vmul.f32 %v1113_v42, %v1088_v22  ;;  %v1120_v2 = vmul.f32 %v1109_v10, %v1089_v27  ;;  %v1121_v57 = vmul.f32 %v1113_v42, %v1087_v15  ;;  %8945 = vmatprep.subr.bf16.mxu1 %v8944_v20 }
 0x14f   : > { %8947 = vmatpush1.bf16.msra.mxu1 %v8946_v62  ;;  %v1181_v45 = vrot.slane %v10301_v54, %v10413_v28  ;;  %v8952_v46 = vpack.c.bf16 %v10021_v4, %v10024_v5  ;;  %v1249_v4 = vrot.slane %v10335_v31, %v10416_v29 }
 0x150   : > { %v1157_v24 = vpop.permute.xlu1 %1156  ;;  %v1155_v56 = vpop.permute.xlu0 %1154  ;;  %v8948_v36 = vpack.c.bf16 %v1125_v59, %v1121_v57  ;;  %v8950_v18 = vpack.c.bf16 %v1124_v11, %v1120_v2 }
 0x151   : > { %v1160_v37 = vsel %vm1158_vm5, %v10310_v8, %v1157_v24  ;;  %v1166_v41 = vsel %vm1158_vm5, %v1157_v24, %v10322_v1  ;;  %v1159_v14 = vsel %vm1158_vm5, %v10312_v9, %v1155_v56  ;;  %v1165_v54 = vsel %vm1158_vm5, %v1155_v56, %v10324_v3 }
 0x152   : > { %v1197_v51 = vmul.f32 %v1185_v26, %v1166_v41  ;;  %v1193_v43 = vmul.f32 %v1185_v26, %v1165_v54  ;;  %8949 = vmatprep.subr.bf16.mxu1 %v8948_v36  ;;  %v1196_v5 = vmul.f32 %v1181_v45, %v1160_v37  ;;  %v1192_v8 = vmul.f32 %v1181_v45, %v1159_v14 }
 0x153   : > { %8951 = vmatpush1.bf16.msra.mxu1 %v8950_v18  ;;  %v1245_v1 = vrot.slane %v10335_v31, %v10413_v28 }
 0x154   : > { %v1221_v10 = vpop.permute.xlu1 %1220  ;;  %v1219_v42 = vpop.permute.xlu0 %1218  ;;  %8953 = vmatprep.subr.bf16.mxu1 %v8952_v46  ;;  %v8956_v33 = vpack.c.bf16 %v1197_v51, %v1193_v43  ;;  %v8958_v58 = vpack.c.bf16 %v1196_v5, %v1192_v8 }
 0x155   : > { %v1224_v9 = vsel %vm1222_vm6, %v10340_v39, %v1221_v10  ;;  %v1230_v3 = vsel %vm1222_vm6, %v1221_v10, %v10352_v52  ;;  %v1223_v13 = vsel %vm1222_vm6, %v10342_v40, %v1219_v42  ;;  %v1229_v17 = vsel %vm1222_vm6, %v1219_v42, %v10354_v53 }
 0x156   : > { %v1261_v31 = vmul.f32 %v1249_v4, %v1230_v3  ;;  %v1257_v25 = vmul.f32 %v1249_v4, %v1229_v17  ;;  %v16030_v39 = vpack.c.bf16 %v10071_v6, %v10074_v7  ;;  %v1260_v30 = vmul.f32 %v1245_v1, %v1224_v9 }
 0x157   : > { %v1256_v52 = vmul.f32 %v1245_v1, %v1223_v13  ;;  %v1377_v53 = vrot.slane %v10395_v49, %v10416_v29 }
 0x158   : > { %8955 = vmatpush1.bf16.msra.mxu1 %v16030_v39  ;;  %v1285_v40 = vpop.permute.xlu1 %1284  ;;  %v1283_v48 = vpop.permute.xlu0 %1282  ;;  %v8960_v29 = vpack.c.bf16 %v1261_v31, %v1257_v25 }
 0x159   : > { %8957 = vmatprep.subr.bf16.mxu1 %v8956_v33  ;;  %v1288_v21 = vsel %vm15872_vm7, %v10370_v19, %v1285_v40  ;;  %v1294_v6 = vsel %vm15872_vm7, %v1285_v40, %v10382_v34  ;;  %v1293_v7 = vsel %vm15872_vm7, %v1283_v48, %v10384_v35  ;;  %v1287_v20 = vsel %vm15872_vm7, %v10372_v23, %v1283_v48 }
 0x15a   : > { %v1325_v61 = vmul.f32 %v1313_v55, %v1294_v6  ;;  %v1321_v62 = vmul.f32 %v1313_v55, %v1293_v7  ;;  %v1324_v26 = vmul.f32 %v1309_v47, %v1288_v21  ;;  %v1373_v19 = vrot.slane %v10395_v49, %v10413_v28  ;;  %v2196_v55 = vld [vmem:[#allocation5 + $0x8] sm:$0xff] }
 0x15b   : > { %v8962_v63 = vpack.c.bf16 %v1260_v30, %v1256_v52  ;;  %v1320_v15 = vmul.f32 %v1309_v47, %v1287_v20  ;;  %2356 = vmatprep.mubr.f32.mxu0 %v2196_v55 }
 0x15c   : > { %8959 = vmatpush1.bf16.msra.mxu1 %v8958_v58  ;;  %v1349_v22 = vpop.permute.xlu1 %1348  ;;  %v1347_v34 = vpop.permute.xlu0 %1346  ;;  %v8964_v27 = vpack.c.bf16 %v1325_v61, %v1321_v62 }
 0x15d   : > { %8961 = vmatprep.subr.bf16.mxu1 %v8960_v29  ;;  %v1358_v35 = vsel %vm15868_vm8, %v1349_v22, %v10418_v32  ;;  %v1357_v23 = vsel %vm15868_vm8, %v1347_v34, %v10420_v38  ;;  %v1352_v11 = vsel %vm15868_vm8, %v10400_v60, %v1349_v22  ;;  %v1351_v49 = vsel %vm15868_vm8, %v10402_v0, %v1347_v34 }
 0x15e   : > { %v1389_v59 = vmul.f32 %v1377_v53, %v1358_v35  ;;  %v1385_v28 = vmul.f32 %v1377_v53, %v1357_v23  ;;  %v1388_v2 = vmul.f32 %v1373_v19, %v1352_v11  ;;  %v1384_v57 = vmul.f32 %v1373_v19, %v1351_v49 }
 0x15f   : > { %v8966_v32 = vpack.c.bf16 %v1324_v26, %v1320_v15 }
 0x160   : > { %8963 = vmatpush1.bf16.msra.mxu1 %v8962_v63  ;;  %v8968_v45 = vpack.c.bf16 %v1389_v59, %v1385_v28  ;;  %v8970_v38 = vpack.c.bf16 %v1388_v2, %v1384_v57  ;;  %v1687_v2 = vld [vmem:[%s15777_s23] ss:$8 sm:$0x3]  ;;  %v8745_v57 = vld [vmem:[%s15777_s23 + $0x1] ss:$8 sm:$0x3] }
 0x161   : > { %8965 = vmatprep.subr.bf16.mxu1 %v8964_v27 }
 0x164   : > { %8967 = vmatpush1.bf16.msra.mxu1 %v8966_v32 }
 0x165   : > { %8969 = vmatprep.subr.bf16.mxu1 %v8968_v45  ;;  %v16039_v45 = vld [vmem:[#allocation12_spill] sm:$0xff] }
 0x168   : > { %8971 = vmatpush1.bf16.msra.mxu1 %v8970_v38  ;;  %v1692_v38 = vrot.slane %v1687_v2, %v16039_v45 }
 0x16b   : > { %1623 = vmatmul.mubr.f32.vlgmr.msra.gmra.mrb[0].mxu1 %v10448_v44 }
 0x16c   : > { %8744 = vmatprep.mubr.msk.f32.mxu1 %vm15866_vm0, %v10454_v16  ;;  %vm3901_vm0 = vcmp.lt.s32.totalorder %v10142_v12, 126 }
 0x16d   : > { %v10575_v60 = vpop.permute.xlu1 %1644 }
 0x16e   : > { %v1640_v0 = vpop.permute.xlu0 %1639 }
 0x16f   : > { %1629 = vmatmul.mubr.f32.gmra.mrb[2].mxu1 %v10469_v50 }
 0x171   : > { %v10577_v56 = vpop.permute.xlu1 %1659 }
 0x172   : > { %v1665_v41 = vpop.permute.xlu0 %1664 }
 0x218   : > { %v1547_v24 = vpop.f32.mrb[0].mxu0 }
 0x219   : > { %v1647_v36 = vmul.f32 %v1640_v0, %v1547_v24  ;;  %v1549_v18 = vpop.f32.mrb[1].mxu0  ;;  %v16040_v24 = vld [vmem:[#allocation11_spill] sm:$0xff] }
 0x21a   : > { %v1648_v10 = vmul.f32 %v1640_v0, %v1549_v18 }
 0x21b   : > { %v10580_v46 = vadd.f32 %v10577_v56, %v1647_v36 }
 0x21c   : > { %v1553_v37 = vpop.f32.mrb[2].mxu0  ;;  %v10638_v42 = vadd.f32 %v10577_v56, %v1648_v10 }
 0x21d   : > { %v1651_v44 = vmul.f32 %v10575_v60, %v1553_v37  ;;  %1675 = vrot.lane.b32.xlu1 %v10580_v46, %s15809_s6  ;;  %v1555_v16 = vpop.f32.mrb[3].mxu0 }
 0x21e   : > { %v1652_v9 = vmul.f32 %v10575_v60, %v1555_v16  ;;  %v8746_v16 = vld [vmem:[%s15777_s23 + $0x2] ss:$8 sm:$0x3] }
 0x21f   : > { %v10585_v50 = vadd.f32 %v1665_v41, %v1651_v44  ;;  %v1728_v44 = vrot.slane %v8745_v57, %v16040_v24  ;;  %v1760_v55 = vrot.slane %v8746_v16, %v16040_v24 }
 0x220   : > { %v10645_v3 = vadd.f32 %v1665_v41, %v1652_v9 }
 0x221   : > { %1707 = vrot.lane.b32.xlu1 %v10580_v46, %s15807_s8  ;;  %1677 = vrot.lane.b32.xlu0 %v10585_v50, %s15809_s6 }
 0x222   : > { %16033 = vst [vmem:[#allocation15_spill] sm:$0xff] %v10645_v3 }
 0x225   : > { %1739 = vrot.lane.b32.xlu1 %v10580_v46, %s15805_s20  ;;  %1709 = vrot.lane.b32.xlu0 %v10585_v50, %s15807_s8 }
 0x229   : > { %1771 = vrot.lane.b32.xlu1 %v10580_v46, %s15813_s26  ;;  %1741 = vrot.lane.b32.xlu0 %v10585_v50, %s15805_s20 }
 0x22d   : > { %1807 = vrot.lane.b32.xlu1 %v10580_v46, %s15811_s27  ;;  %1773 = vrot.lane.b32.xlu0 %v10585_v50, %s15813_s26 }
 0x231   : > { %1839 = vrot.lane.b32.xlu1 %v10580_v46, %s15803_s7  ;;  %1809 = vrot.lane.b32.xlu0 %v10585_v50, %s15811_s27 }
 0x235   : > { %1871 = vrot.lane.b32.xlu1 %v10580_v46, %s15801_s9  ;;  %1841 = vrot.lane.b32.xlu0 %v10585_v50, %s15803_s7 }
 0x239   : > { %1903 = vrot.lane.b32.xlu1 %v10580_v46, %s15799_s28  ;;  %1873 = vrot.lane.b32.xlu0 %v10585_v50, %s15801_s9 }
 0x23d   : > { %1905 = vrot.lane.b32.xlu0 %v10585_v50, %s15799_s28 }
 0x23e   : > { %v1624_v14 = vpop.f32.mrb[0].mxu1 }
 0x23f   : > { %v1649_v54 = vmul.f32 %v1640_v0, %v1624_v14  ;;  %v1626_v51 = vpop.f32.mrb[1].mxu1 }
 0x240   : > { %v1650_v13 = vmul.f32 %v1640_v0, %v1626_v51 }
 0x241   : > { %v10618_v43 = vadd.f32 %v10577_v56, %v1649_v54 }
 0x242   : > { %v1630_v4 = vpop.f32.mrb[2].mxu1  ;;  %v10680_v17 = vadd.f32 %v10577_v56, %v1650_v13  ;;  %v1696_v56 = vrot.slane %v1687_v2, %v16040_v24 }
 0x243   : > { %16031 = vst [vmem:[#allocation13_spill] sm:$0xff] %v10618_v43  ;;  %v1653_v5 = vmul.f32 %v10575_v60, %v1630_v4  ;;  %v1632_v8 = vpop.f32.mrb[3].mxu1  ;;  %1935 = vrot.lane.b32.xlu1 %v10618_v43, %s15809_s6 }
 0x244   : > { %16034 = vst [vmem:[#allocation16_spill] sm:$0xff] %v10680_v17  ;;  %v1654_v31 = vmul.f32 %v10575_v60, %v1632_v8  ;;  %v1724_v8 = vrot.slane %v8745_v57, %v16039_v45  ;;  %v1756_v57 = vrot.slane %v8746_v16, %v16039_v45 }
 0x245   : > { %v10623_v1 = vadd.f32 %v1665_v41, %v1653_v5 }
 0x246   : > { %v10687_v25 = vadd.f32 %v1665_v41, %v1654_v31 }
 0x247   : > { %16032 = vst [vmem:[#allocation14_spill] sm:$0xff] %v10623_v1  ;;  %1967 = vrot.lane.b32.xlu1 %v10618_v43, %s15807_s8  ;;  %1937 = vrot.lane.b32.xlu0 %v10623_v1, %s15809_s6 }
 0x248   : > { %16035 = vst [vmem:[#allocation17_spill] sm:$0xff] %v10687_v25 }
 0x24b   : > { %1999 = vrot.lane.b32.xlu1 %v10618_v43, %s15805_s20  ;;  %1969 = vrot.lane.b32.xlu0 %v10623_v1, %s15807_s8 }
 0x24f   : > { %2031 = vrot.lane.b32.xlu1 %v10618_v43, %s15813_s26  ;;  %2001 = vrot.lane.b32.xlu0 %v10623_v1, %s15805_s20 }
 0x253   : > { %1679 = vrot.lane.b32.xlu1 %v10638_v42, %s15809_s6  ;;  %2033 = vrot.lane.b32.xlu0 %v10623_v1, %s15813_s26 }
 0x257   : > { %1711 = vrot.lane.b32.xlu1 %v10638_v42, %s15807_s8  ;;  %1681 = vrot.lane.b32.xlu0 %v10645_v3, %s15809_s6 }
 0x25b   : > { %1743 = vrot.lane.b32.xlu1 %v10638_v42, %s15805_s20  ;;  %1713 = vrot.lane.b32.xlu0 %v10645_v3, %s15807_s8 }
 0x25f   : > { %1775 = vrot.lane.b32.xlu1 %v10638_v42, %s15813_s26  ;;  %1745 = vrot.lane.b32.xlu0 %v10645_v3, %s15805_s20 }
 0x263   : > { %2067 = vrot.lane.b32.xlu1 %v10618_v43, %s15811_s27  ;;  %1777 = vrot.lane.b32.xlu0 %v10645_v3, %s15813_s26 }
 0x267   : > { %1811 = vrot.lane.b32.xlu1 %v10638_v42, %s15811_s27  ;;  %2069 = vrot.lane.b32.xlu0 %v10623_v1, %s15811_s27 }
 0x26b   : > { %1843 = vrot.lane.b32.xlu1 %v10638_v42, %s15803_s7  ;;  %1813 = vrot.lane.b32.xlu0 %v10645_v3, %s15811_s27 }
 0x26f   : > { %1875 = vrot.lane.b32.xlu1 %v10638_v42, %s15801_s9  ;;  %1845 = vrot.lane.b32.xlu0 %v10645_v3, %s15803_s7 }
 0x273   : > { %1907 = vrot.lane.b32.xlu1 %v10638_v42, %s15799_s28  ;;  %1877 = vrot.lane.b32.xlu0 %v10645_v3, %s15801_s9 }
 0x277   : > { %1939 = vrot.lane.b32.xlu1 %v10680_v17, %s15809_s6  ;;  %1909 = vrot.lane.b32.xlu0 %v10645_v3, %s15799_s28 }
 0x27b   : > { %1971 = vrot.lane.b32.xlu1 %v10680_v17, %s15807_s8  ;;  %1941 = vrot.lane.b32.xlu0 %v10687_v25, %s15809_s6  ;;  %s16042_s6 = smov 48  }
 0x27f   : > { %2003 = vrot.lane.b32.xlu1 %v10680_v17, %s15805_s20  ;;  %1973 = vrot.lane.b32.xlu0 %v10687_v25, %s15807_s8  ;;  %s15836_s8 = smov 6  }
 0x283   : > { %2035 = vrot.lane.b32.xlu1 %v10680_v17, %s15813_s26  ;;  %2005 = vrot.lane.b32.xlu0 %v10687_v25, %s15805_s20 }
 0x287   : > { %2071 = vrot.lane.b32.xlu1 %v10680_v17, %s15811_s27  ;;  %2037 = vrot.lane.b32.xlu0 %v10687_v25, %s15813_s26  ;;  %s16041_s26 = smov 64  }
 0x28b   : > { %2099 = vrot.lane.b32.xlu1 %v10618_v43, %s15803_s7  ;;  %2101 = vrot.lane.b32.xlu0 %v10623_v1, %s15803_s7 }
 0x28f   : > { %2103 = vrot.lane.b32.xlu1 %v10680_v17, %s15803_s7  ;;  %2073 = vrot.lane.b32.xlu0 %v10687_v25, %s15811_s27  ;;  %v10713_v33 = vpop.permute.xlu1 %1675  ;;  %s16038_s27 = sld [smem:[#allocation63_spill]] }
 0x293   : > { %2131 = vrot.lane.b32.xlu1 %v10618_v43, %s15801_s9  ;;  %2105 = vrot.lane.b32.xlu0 %v10687_v25, %s15803_s7  ;;  %v10719_v39 = vpop.permute.xlu1 %1707  ;;  %v10721_v30 = vpop.permute.xlu0 %1677  ;;  %s16036_s7 = sld [smem:[#allocation62_spill]] }
 0x295   : > { %v2503_v63 = vld [vmem:[%s16038_s27 + $0x8] sm:$0xff]  ;;  %v2505_v59 = vld [vmem:[%s16038_s27 + $0x18] sm:$0xff]  ;;  %v2502_v4 = vld [vmem:[%s16038_s27] sm:$0xff] }
 0x297   : > { %2135 = vrot.lane.b32.xlu1 %v10680_v17, %s15801_s9  ;;  %2133 = vrot.lane.b32.xlu0 %v10623_v1, %s15801_s9  ;;  %v10727_v52 = vpop.permute.xlu1 %1739  ;;  %v10729_v47 = vpop.permute.xlu0 %1709 }
 0x299   : > { %s16037_s20 = smov %s16036_s7  ;;  %v2471_v19 = vld [vmem:[%s16036_s7 + $0x8] sm:$0xff]  ;;  %s15877_s7 = smov 4  }
 0x29a   : > { %v2473_v23 = vld [vmem:[%s16037_s20 + $0x18] sm:$0xff]  ;;  %v2470_v32 = vld [vmem:[%s16037_s20] sm:$0xff] }
 0x29b   : > { %2163 = vrot.lane.b32.xlu1 %v10618_v43, %s15799_s28  ;;  %2165 = vrot.lane.b32.xlu0 %v10623_v1, %s15799_s28  ;;  %v10735_v40 = vpop.permute.xlu1 %1771  ;;  %v10737_v48 = vpop.permute.xlu0 %1741 }
 0x29f   : > { %2167 = vrot.lane.b32.xlu1 %v10680_v17, %s15799_s28  ;;  %2137 = vrot.lane.b32.xlu0 %v10687_v25, %s15801_s9  ;;  %v10743_v53 = vpop.permute.xlu1 %1807  ;;  %v10745_v21 = vpop.permute.xlu0 %1773  ;;  %s15842_s9 = smov 3  }
 0x2a3   : > { %3252 = vrot.lane.b32.xlu1 %v10580_v46, %s15840_s11  ;;  %2169 = vrot.lane.b32.xlu0 %v10687_v25, %s15799_s28  ;;  %v10751_v6 = vpop.permute.xlu0 %1809  ;;  %v10753_v7 = vpop.permute.xlu1 %1839  ;;  %s15838_s28 = smov 5  }
 0x2a7   : > { %3256 = vrot.lane.b32.xlu1 %v10638_v42, %s15840_s11  ;;  %3254 = vrot.lane.b32.xlu0 %v10585_v50, %s15840_s11  ;;  %v10759_v58 = vpop.permute.xlu0 %1841  ;;  %v10761_v61 = vpop.permute.xlu1 %1871 }
 0x2ab   : > { %3290 = vrot.lane.b32.xlu1 %v10580_v46, %s15834_s3  ;;  %3292 = vrot.lane.b32.xlu0 %v10585_v50, %s15834_s3  ;;  %v10767_v20 = vpop.permute.xlu0 %1873  ;;  %v10773_v62 = vpop.permute.xlu1 %1903 }
 0x2af   : > { %3294 = vrot.lane.b32.xlu1 %v10638_v42, %s15834_s3  ;;  %3330 = vrot.lane.b32.xlu0 %v10585_v50, %s15817_s0  ;;  %v10779_v29 = vpop.permute.xlu0 %1905 }
 0x2b3   : > { %3328 = vrot.lane.b32.xlu1 %v10580_v46, %s15817_s0  ;;  %3368 = vrot.lane.b32.xlu0 %v10585_v50, %s15815_s10 }
 0x2b5   : > { %v10781_v26 = vpop.permute.xlu1 %1935 }
 0x2b7   : > { %3332 = vrot.lane.b32.xlu1 %v10638_v42, %s15817_s0  ;;  %3406 = vrot.lane.b32.xlu0 %v10585_v50, %s15854_s29  ;;  %s15844_s0 = smov 2  }
 0x2b9   : > { %v10790_v22 = vpop.permute.xlu1 %1967  ;;  %v10792_v34 = vpop.permute.xlu0 %1937 }
 0x2bb   : > { %3366 = vrot.lane.b32.xlu1 %v10580_v46, %s15815_s10  ;;  %2481 = vperm.xlu0 %9650, %v2471_v19  }
 0x2bd   : > { %v10799_v15 = vpop.permute.xlu1 %1999  ;;  %v10801_v35 = vpop.permute.xlu0 %1969 }
 0x2bf   : > { %3370 = vrot.lane.b32.xlu1 %v10638_v42, %s15815_s10  ;;  %2513 = vperm.xlu0 %9650, %v2503_v63   ;;  %s16050_s10 = smov 1  }
 0x2c1   : > { %v10808_v27 = vpop.permute.xlu1 %2031  ;;  %v10810_v11 = vpop.permute.xlu0 %2001 }
 0x2c3   : > { %3404 = vrot.lane.b32.xlu1 %v10580_v46, %s15854_s29  ;;  %2491 = vperm.xlu0 %9650, %v2473_v23  }
 0x2c5   : > { %v1680_v49 = vpop.permute.xlu1 %1679  ;;  %v10817_v28 = vpop.permute.xlu0 %2033 }
 0x2c6   : > { %v1685_v36 = vsel %vm895_vm1, %v1680_v49, %v10713_v33  ;;  %v1683_v41 = vsel %vm895_vm1, %v10713_v33, %v1680_v49 }
 0x2c7   : > { %3408 = vrot.lane.b32.xlu1 %v10638_v42, %s15854_s29  ;;  %2523 = vperm.xlu0 %9650, %v2505_v59   ;;  %v1699_v5 = vmul.f32 %v1692_v38, %v1685_v36  ;;  %v1700_v13 = vmul.f32 %v1696_v56, %v1683_v41 }
 0x2c9   : > { %v1712_v60 = vpop.permute.xlu1 %1711  ;;  %v1682_v0 = vpop.permute.xlu0 %1681 }
 0x2ca   : > { %v1684_v18 = vsel %vm895_vm1, %v10721_v30, %v1682_v0  ;;  %v1686_v37 = vsel %vm895_vm1, %v1682_v0, %v10721_v30  ;;  %v10851_v14 = vsel %vm958_vm2, %v10719_v39, %v1712_v60  ;;  %v10862_v31 = vsel %vm958_vm2, %v1712_v60, %v10719_v39  ;;  %v8747_v39 = vld [vmem:[%s15777_s23 + $0x3] ss:$8 sm:$0x3]  ;;  %v2472_v60 = vld [vmem:[%s16037_s20 + $0x10] sm:$0xff]  ;;  %s16112_s20 = smov 8  }
 0x2cb   : > { %2476 = vperm.xlu1 %9651, %v2470_v32   ;;  %v1701_v54 = vmul.f32 %v1692_v38, %v1686_v37  ;;  %v1702_v51 = vmul.f32 %v1696_v56, %v1684_v18  ;;  %3258 = vrot.lane.b32.xlu0 %v10645_v3, %s15840_s11  ;;  %v1732_v30 = vmul.f32 %v1728_v44, %v10851_v14  ;;  %s15856_s11 = smov 124  }
 0x2cc   : > { %v1792_v36 = vrot.slane %v8747_v39, %v16040_v24 }
 0x2cd   : > { %v1744_v10 = vpop.permute.xlu1 %1743  ;;  %v1714_v9 = vpop.permute.xlu0 %1713  ;;  %v8974_v19 = vpack.c.bf16 %v1701_v54, %v1699_v5  ;;  %v8972_v2 = vpack.c.bf16 %v1702_v51, %v1700_v13 }
 0x2ce   : > { %v10868_v33 = vsel %vm958_vm2, %v10729_v47, %v1714_v9  ;;  %v10874_v63 = vsel %vm958_vm2, %v1714_v9, %v10729_v47  ;;  %v1747_v59 = vsel %vm1022_vm3, %v10727_v52, %v1744_v10  ;;  %v1731_v47 = vmul.f32 %v1724_v8, %v10862_v31 }
 0x2cf   : > { %v1734_v23 = vmul.f32 %v1728_v44, %v10868_v33  ;;  %2508 = vperm.xlu1 %9651, %v2502_v4   ;;  %v1733_v49 = vmul.f32 %v1724_v8, %v10874_v63  ;;  %3296 = vrot.lane.b32.xlu0 %v10645_v3, %s15834_s3  ;;  %v1749_v56 = vsel %vm1022_vm3, %v1744_v10, %v10727_v52  ;;  %s16051_s3 = smov 127  }
 0x2d0   : > { %8973 = vmatprep.subr.bf16.mxu0 %v8972_v2  ;;  %v1764_v18 = vmul.f32 %v1760_v55, %v1747_v59  ;;  %v1763_v51 = vmul.f32 %v1756_v57, %v1749_v56  ;;  %v1788_v4 = vrot.slane %v8747_v39, %v16039_v45 }
 0x2d1   : > { %v1776_v32 = vpop.permute.xlu1 %1775  ;;  %v1746_v38 = vpop.permute.xlu0 %1745  ;;  %v8976_v0 = vpack.c.bf16 %v1734_v23, %v1732_v30  ;;  %v8978_v37 = vpack.c.bf16 %v1733_v49, %v1731_v47  ;;  %8975 = vmatpush1.bf16.msra.mxu0 %v8974_v19 }
 0x2d2   : > { %v1748_v41 = vsel %vm1022_vm3, %v10737_v48, %v1746_v38  ;;  %v1750_v44 = vsel %vm1022_vm3, %v1746_v38, %v10737_v48  ;;  %v1779_v16 = vsel %vm1086_vm4, %v10735_v40, %v1776_v32  ;;  %v2504_v48 = vld [vmem:[%s16038_s27 + $0x10] sm:$0xff]  ;;  %v1781_v10 = vsel %vm1086_vm4, %v1776_v32, %v10735_v40  ;;  %v8748_v40 = vld [vmem:[%s15777_s23 + $0x5] ss:$8 sm:$0x3]  ;;  %s16118_s27 = smov 120  }
 0x2d3   : > { %v1765_v54 = vmul.f32 %v1756_v57, %v1750_v44  ;;  %v1766_v52 = vmul.f32 %v1760_v55, %v1748_v41  ;;  %2486 = vperm.xlu1 %9651, %v2472_v60   ;;  %3334 = vrot.lane.b32.xlu0 %v10645_v3, %s16041_s26  ;;  %v1796_v30 = vmul.f32 %v1792_v36, %v1779_v16 }
 0x2d4   : > { %8977 = vmatprep.subr.bf16.mxu0 %v8976_v0  ;;  %v1795_v59 = vmul.f32 %v1788_v4, %v1781_v10  ;;  %v1828_v57 = vrot.slane %v8748_v40, %v16040_v24  ;;  %v1824_v38 = vrot.slane %v8748_v40, %v16039_v45  ;;  %v8988_v41 = vpack.c.bf16 %v10645_v3, %v10638_v42 }
 0x2d5   : > { %v10907_v5 = vpop.permute.xlu1 %2067  ;;  %v1778_v8 = vpop.permute.xlu0 %1777  ;;  %v8980_v55 = vpack.c.bf16 %v1766_v52, %v1764_v18  ;;  %v8982_v19 = vpack.c.bf16 %v1765_v54, %v1763_v51  ;;  %8979 = vmatpush1.bf16.msra.mxu0 %v8978_v37  ;;  %v8990_v51 = vpack.c.bf16 %v10585_v50, %v10580_v46 }
 0x2d6   : > { %v1780_v9 = vsel %vm1086_vm4, %v10745_v21, %v1778_v8  ;;  %v1782_v13 = vsel %vm1086_vm4, %v1778_v8, %v10745_v21 }
 0x2d7   : > { %v1797_v23 = vmul.f32 %v1788_v4, %v1782_v13  ;;  %v1798_v39 = vmul.f32 %v1792_v36, %v1780_v9  ;;  %2518 = vperm.xlu1 %9651, %v2504_v48   ;;  %3372 = vrot.lane.b32.xlu0 %v10645_v3, %s16042_s6  ;;  %v8749_v36 = vld [vmem:[%s15777_s23 + $0x6] ss:$8 sm:$0x3]  ;;  %v8750_v9 = vld [vmem:[%s15777_s23 + $0x7] ss:$8 sm:$0x3] }
 0x2d8   : > { %8981 = vmatprep.subr.bf16.mxu0 %v8980_v55  ;;  %v1856_v52 = vrot.slane %v8749_v36, %v16039_v45  ;;  %v1860_v10 = vrot.slane %v8749_v36, %v16040_v24  ;;  %v1947_v36 = vld [vmem:[%s15777_s23] ss:$8 sm:$0x3]  ;;  %s16323_s6 = smov 96  }
 0x2d9   : > { %v1812_v49 = vpop.permute.xlu1 %1811  ;;  %v10926_v2 = vpop.permute.xlu0 %2069  ;;  %v8984_v21 = vpack.c.bf16 %v1798_v39, %v1796_v30  ;;  %v8986_v47 = vpack.c.bf16 %v1797_v23, %v1795_v59  ;;  %8983 = vmatpush1.bf16.msra.mxu0 %v8982_v19  ;;  %v1888_v59 = vrot.slane %v8750_v9, %v16039_v45 }
 0x2da   : > { %v1817_v32 = vsel %vm1158_vm5, %v1812_v49, %v10743_v53  ;;  %v1815_v56 = vsel %vm1158_vm5, %v10743_v53, %v1812_v49 }
 0x2db   : > { %3410 = vrot.lane.b32.xlu0 %v10645_v3, %s15854_s29  ;;  %8985 = vmatprep.subr.bf16.mxu0 %v8984_v21  ;;  %v1832_v44 = vmul.f32 %v1828_v57, %v1817_v32  ;;  %v1831_v53 = vmul.f32 %v1824_v38, %v1815_v56  ;;  %s16076_s29 = smov 16  }
 0x2dd   : > { %v1844_v60 = vpop.permute.xlu1 %1843  ;;  %v1814_v0 = vpop.permute.xlu0 %1813  ;;  %8987 = vmatpush1.bf16.msra.mxu0 %v8986_v47 }
 0x2de   : > { %v1816_v18 = vsel %vm1158_vm5, %v10751_v6, %v1814_v0  ;;  %v1818_v37 = vsel %vm1158_vm5, %v1814_v0, %v10751_v6  ;;  %8989 = vmatprep.subr.bf16.mxu0 %v8988_v41  ;;  %v1847_v6 = vsel %vm1222_vm6, %v10753_v7, %v1844_v60  ;;  %v1849_v30 = vsel %vm1222_vm6, %v1844_v60, %v10753_v7  ;;  %v8751_v7 = vld [vmem:[%s15777_s23 + $0x20] ss:$8 sm:$0x3] }
 0x2df   : > { %v1833_v16 = vmul.f32 %v1824_v38, %v1816_v18  ;;  %v1834_v54 = vmul.f32 %v1828_v57, %v1818_v37  ;;  %v1863_v40 = vmul.f32 %v1856_v52, %v1847_v6  ;;  %v1864_v47 = vmul.f32 %v1860_v10, %v1849_v30 }
 0x2e0   : > { %v1892_v57 = vrot.slane %v8750_v9, %v16040_v24  ;;  %v1952_v30 = vrot.slane %v1947_v36, %v16039_v45 }
 0x2e1   : > { %v1876_v4 = vpop.permute.xlu1 %1875  ;;  %v1846_v8 = vpop.permute.xlu0 %1845  ;;  %v8992_v48 = vpack.c.bf16 %v1834_v54, %v1832_v44  ;;  %v8994_v19 = vpack.c.bf16 %v1833_v16, %v1831_v53  ;;  %8991 = vmatpush1.bf16.msra.mxu0 %v8990_v51 }
 0x2e2   : > { %v1848_v13 = vsel %vm1222_vm6, %v10759_v58, %v1846_v8  ;;  %v1850_v55 = vsel %vm1222_vm6, %v1846_v8, %v10759_v58  ;;  %v10973_v58 = vsel %vm15872_vm7, %v10761_v61, %v1876_v4  ;;  %v10986_v38 = vsel %vm15872_vm7, %v1876_v4, %v10761_v61 }
 0x2e3   : > { %v1865_v23 = vmul.f32 %v1856_v52, %v1848_v13  ;;  %v1866_v39 = vmul.f32 %v1860_v10, %v1850_v55  ;;  %8993 = vmatprep.subr.bf16.mxu0 %v8992_v48  ;;  %v1895_v41 = vmul.f32 %v1888_v59, %v10973_v58  ;;  %v1920_v61 = vrot.slane %v8751_v7, %v16039_v45  ;;  %v8752_v10 = vld [vmem:[%s15777_s23 + $0x1] ss:$8 sm:$0x3] }
 0x2e4   : > { %v1896_v54 = vmul.f32 %v1892_v57, %v10986_v38  ;;  %v1956_v52 = vrot.slane %v1947_v36, %v16040_v24 }
 0x2e5   : > { %v1908_v49 = vpop.permute.xlu1 %1907  ;;  %v1878_v21 = vpop.permute.xlu0 %1877  ;;  %v8998_v60 = vpack.c.bf16 %v1865_v23, %v1863_v40  ;;  %8995 = vmatpush1.bf16.msra.mxu0 %v8994_v19  ;;  %v8996_v37 = vpack.c.bf16 %v1866_v39, %v1864_v47  ;;  %v1988_v40 = vrot.slane %v8752_v10, %v16040_v24 }
 0x2e6   : > { %v10981_v32 = vsel %vm15872_vm7, %v10767_v20, %v1878_v21  ;;  %v10991_v0 = vsel %vm15872_vm7, %v1878_v21, %v10767_v20  ;;  %v1924_v20 = vrot.slane %v8751_v7, %v16040_v24  ;;  %v1911_v53 = vsel %vm15868_vm8, %v10773_v62, %v1908_v49  ;;  %v8753_v7 = vld [vmem:[%s15777_s23 + $0x2] ss:$8 sm:$0x3] }
 0x2e7   : > { %v1897_v56 = vmul.f32 %v1888_v59, %v10981_v32  ;;  %v1898_v18 = vmul.f32 %v1892_v57, %v10991_v0  ;;  %8997 = vmatprep.subr.bf16.mxu0 %v8996_v37  ;;  %v1913_v51 = vsel %vm15868_vm8, %v1908_v49, %v10773_v62  ;;  %v1927_v55 = vmul.f32 %v1920_v61, %v1911_v53 }
 0x2e8   : > { %v1928_v39 = vmul.f32 %v1924_v20, %v1913_v51  ;;  %v8754_v51 = vld [vmem:[%s15777_s23 + $0x3] ss:$8 sm:$0x3] }
 0x2e9   : > { %v1940_v44 = vpop.permute.xlu1 %1939  ;;  %v1910_v16 = vpop.permute.xlu0 %1909  ;;  %v9002_v4 = vpack.c.bf16 %v1897_v56, %v1895_v41  ;;  %8999 = vmatpush1.bf16.msra.mxu0 %v8998_v60  ;;  %v9000_v13 = vpack.c.bf16 %v1898_v18, %v1896_v54  ;;  %v1984_v18 = vrot.slane %v8752_v10, %v16039_v45 }
 0x2ea   : > { %v1912_v8 = vsel %vm15868_vm8, %v10779_v29, %v1910_v16  ;;  %v1914_v48 = vsel %vm15868_vm8, %v1910_v16, %v10779_v29  ;;  %v1943_v6 = vsel %vm895_vm1, %v10781_v26, %v1940_v44  ;;  %v1945_v29 = vsel %vm895_vm1, %v1940_v44, %v10781_v26 }
 0x2eb   : > { %v1929_v9 = vmul.f32 %v1920_v61, %v1912_v8  ;;  %v1930_v62 = vmul.f32 %v1924_v20, %v1914_v48  ;;  %9001 = vmatprep.subr.bf16.mxu0 %v9000_v13  ;;  %v1960_v49 = vmul.f32 %v1956_v52, %v1943_v6  ;;  %v1959_v36 = vmul.f32 %v1952_v30, %v1945_v29 }
 0x2ec   : > { %v2020_v44 = vrot.slane %v8753_v7, %v16040_v24  ;;  %v2016_v48 = vrot.slane %v8753_v7, %v16039_v45 }
 0x2ed   : > { %v1972_v19 = vpop.permute.xlu1 %1971  ;;  %v1942_v23 = vpop.permute.xlu0 %1941  ;;  %v9006_v21 = vpack.c.bf16 %v1929_v9, %v1927_v55  ;;  %9003 = vmatpush1.bf16.msra.mxu0 %v9002_v4  ;;  %v9004_v56 = vpack.c.bf16 %v1930_v62, %v1928_v39  ;;  %v2052_v62 = vrot.slane %v8754_v51, %v16040_v24 }
 0x2ee   : > { %v1944_v59 = vsel %vm895_vm1, %v10792_v34, %v1942_v23  ;;  %v1946_v47 = vsel %vm895_vm1, %v1942_v23, %v10792_v34  ;;  %v1975_v26 = vsel %vm958_vm2, %v10790_v22, %v1972_v19  ;;  %v1977_v34 = vsel %vm958_vm2, %v1972_v19, %v10790_v22 }
 0x2ef   : > { %v1962_v57 = vmul.f32 %v1956_v52, %v1944_v59  ;;  %v1961_v60 = vmul.f32 %v1952_v30, %v1946_v47  ;;  %9005 = vmatprep.subr.bf16.mxu0 %v9004_v56  ;;  %v1992_v54 = vmul.f32 %v1988_v40, %v1975_v26  ;;  %v1991_v8 = vmul.f32 %v1984_v18, %v1977_v34  ;;  %v8755_v56 = vld [vmem:[%s15777_s23 + $0x5] ss:$8 sm:$0x3] }
 0x2f1   : > { %v2004_v37 = vpop.permute.xlu1 %2003  ;;  %v1974_v41 = vpop.permute.xlu0 %1973  ;;  %v9008_v61 = vpack.c.bf16 %v1962_v57, %v1960_v49  ;;  %v9010_v20 = vpack.c.bf16 %v1961_v60, %v1959_v36  ;;  %9007 = vmatpush1.bf16.msra.mxu0 %v9006_v21 }
 0x2f2   : > { %v1976_v16 = vsel %vm958_vm2, %v10801_v35, %v1974_v41  ;;  %v1978_v53 = vsel %vm958_vm2, %v1974_v41, %v10801_v35  ;;  %v2007_v22 = vsel %vm1022_vm3, %v10799_v15, %v2004_v37  ;;  %v2009_v35 = vsel %vm1022_vm3, %v2004_v37, %v10799_v15 }
 0x2f3   : > { %v1994_v52 = vmul.f32 %v1988_v40, %v1976_v16  ;;  %v1993_v4 = vmul.f32 %v1984_v18, %v1978_v53  ;;  %9009 = vmatprep.subr.bf16.mxu0 %v9008_v61  ;;  %v2024_v55 = vmul.f32 %v2020_v44, %v2007_v22  ;;  %v2023_v15 = vmul.f32 %v2016_v48, %v2009_v35 }
 0x2f4   : > { %v2048_v40 = vrot.slane %v8754_v51, %v16039_v45  ;;  %v2088_v61 = vrot.slane %v8755_v56, %v16040_v24  ;;  %v2084_v16 = vrot.slane %v8755_v56, %v16039_v45  ;;  %v9024_v22 = vpack.c.bf16 %v10687_v25, %v10680_v17 }
 0x2f5   : > { %v2036_v10 = vpop.permute.xlu1 %2035  ;;  %v2006_v6 = vpop.permute.xlu0 %2005  ;;  %v9012_v9 = vpack.c.bf16 %v1994_v52, %v1992_v54  ;;  %v9014_v30 = vpack.c.bf16 %v1993_v4, %v1991_v8  ;;  %9011 = vmatpush1.bf16.msra.mxu0 %v9010_v20  ;;  %v9026_v35 = vpack.c.bf16 %v10623_v1, %v10618_v43 }
 0x2f6   : > { %v2008_v13 = vsel %vm1022_vm3, %v10810_v11, %v2006_v6  ;;  %v2010_v19 = vsel %vm1022_vm3, %v2006_v6, %v10810_v11  ;;  %v2039_v39 = vsel %vm1086_vm4, %v10808_v27, %v2036_v10  ;;  %v2041_v47 = vsel %vm1086_vm4, %v2036_v10, %v10808_v27 }
 0x2f7   : > { %v2026_v23 = vmul.f32 %v2020_v44, %v2008_v13  ;;  %v2025_v29 = vmul.f32 %v2016_v48, %v2010_v19  ;;  %9013 = vmatprep.subr.bf16.mxu0 %v9012_v9  ;;  %v2056_v57 = vmul.f32 %v2052_v62, %v2039_v39  ;;  %v2055_v18 = vmul.f32 %v2048_v40, %v2041_v47 }
 0x2f9   : > { %v2072_v59 = vpop.permute.xlu1 %2071  ;;  %v2038_v49 = vpop.permute.xlu0 %2037  ;;  %v9016_v21 = vpack.c.bf16 %v2026_v23, %v2024_v55  ;;  %v9018_v7 = vpack.c.bf16 %v2025_v29, %v2023_v15  ;;  %9015 = vmatpush1.bf16.msra.mxu0 %v9014_v30 }
 0x2fa   : > { %v2040_v11 = vsel %vm1086_vm4, %v10817_v28, %v2038_v49  ;;  %v2042_v26 = vsel %vm1086_vm4, %v2038_v49, %v10817_v28  ;;  %v2077_v44 = vsel %vm1158_vm5, %v2072_v59, %v10907_v5  ;;  %v8756_v28 = vld [vmem:[%s15777_s23 + $0x6] ss:$8 sm:$0x3]  ;;  %v2075_v53 = vsel %vm1158_vm5, %v10907_v5, %v2072_v59 }
 0x2fb   : > { %v2058_v60 = vmul.f32 %v2052_v62, %v2040_v11  ;;  %v2057_v36 = vmul.f32 %v2048_v40, %v2042_v26  ;;  %9017 = vmatprep.subr.bf16.mxu0 %v9016_v21  ;;  %v2092_v4 = vmul.f32 %v2088_v61, %v2077_v44  ;;  %v2120_v8 = vrot.slane %v8756_v28, %v16040_v24  ;;  %v8757_v11 = vld [vmem:[%s15777_s23 + $0x7] ss:$8 sm:$0x3] }
 0x2fc   : > { %v2091_v6 = vmul.f32 %v2084_v16, %v2075_v53  ;;  %v2116_v9 = vrot.slane %v8756_v28, %v16039_v45  ;;  %v2148_v26 = vrot.slane %v8757_v11, %v16039_v45  ;;  %v2152_v56 = vrot.slane %v8757_v11, %v16040_v24  ;;  %v2200_v11 = vld [vmem:[#allocation5 + $0x28] sm:$0xff] }
 0x2fd   : > { %v2100_v27 = vpop.permute.xlu1 %2099  ;;  %v2102_v37 = vpop.permute.xlu0 %2101  ;;  %v9020_v41 = vpack.c.bf16 %v2058_v60, %v2056_v57  ;;  %v9022_v34 = vpack.c.bf16 %v2057_v36, %v2055_v18  ;;  %9019 = vmatpush1.bf16.msra.mxu0 %v9018_v7  ;;  %v8758_v60 = vld [vmem:[%s15777_s23 + $0x20] ss:$8 sm:$0x3] }
 0x2fe   : > { %v2195_v18 = vld [vmem:[#allocation5] sm:$0xff]  ;;  %v2184_v28 = vrot.slane %v8758_v60, %v16040_v24 }
 0x2ff   : > { %9021 = vmatprep.subr.bf16.mxu0 %v9020_v41  ;;  %v2180_v41 = vrot.slane %v8758_v60, %v16039_v45 }
 0x301   : > { %v2104_v54 = vpop.permute.xlu1 %2103  ;;  %v2074_v20 = vpop.permute.xlu0 %2073  ;;  %9023 = vmatpush1.bf16.msra.mxu0 %v9022_v34 }
 0x302   : > { %v2076_v52 = vsel %vm1158_vm5, %v10926_v2, %v2074_v20  ;;  %v2078_v51 = vsel %vm1158_vm5, %v2074_v20, %v10926_v2  ;;  %v2109_v5 = vsel %vm1222_vm6, %v2104_v54, %v2100_v27  ;;  %9025 = vmatprep.subr.bf16.mxu0 %v9024_v22  ;;  %v2107_v55 = vsel %vm1222_vm6, %v2100_v27, %v2104_v54  ;;  %v2198_v22 = vld [vmem:[#allocation5 + $0x18] sm:$0xff] }
 0x303   : > { %v2093_v48 = vmul.f32 %v2084_v16, %v2076_v52  ;;  %v2094_v10 = vmul.f32 %v2088_v61, %v2078_v51  ;;  %v2124_v23 = vmul.f32 %v2120_v8, %v2109_v5  ;;  %v2123_v40 = vmul.f32 %v2116_v9, %v2107_v55 }
 0x305   : > { %v2132_v2 = vpop.permute.xlu1 %2131  ;;  %v2106_v62 = vpop.permute.xlu0 %2105  ;;  %v9028_v13 = vpack.c.bf16 %v2094_v10, %v2092_v4  ;;  %v9030_v39 = vpack.c.bf16 %v2093_v48, %v2091_v6  ;;  %9027 = vmatpush1.bf16.msra.mxu0 %v9026_v35 }
 0x306   : > { %v2108_v30 = vsel %vm1222_vm6, %v2102_v37, %v2106_v62  ;;  %v2110_v19 = vsel %vm1222_vm6, %v2106_v62, %v2102_v37  ;;  %v2199_v37 = vld [vmem:[#allocation5 + $0x20] sm:$0xff] }
 0x307   : > { %v2125_v29 = vmul.f32 %v2116_v9, %v2108_v30  ;;  %v2126_v15 = vmul.f32 %v2120_v8, %v2110_v19  ;;  %9029 = vmatprep.subr.bf16.mxu0 %v9028_v13  ;;  %v2202_v8 = vld [vmem:[#allocation5 + $0x38] sm:$0xff]  ;;  %v2201_v30 = vld [vmem:[#allocation5 + $0x30] sm:$0xff] }
 0x308   : > { %v2205_v19 = vld [vmem:[#allocation5 + $0x50] sm:$0xff] }
 0x309   : > { %v2136_v59 = vpop.permute.xlu1 %2135  ;;  %v2134_v49 = vpop.permute.xlu0 %2133  ;;  %v9032_v21 = vpack.c.bf16 %v2126_v15, %v2124_v23  ;;  %v9034_v47 = vpack.c.bf16 %v2125_v29, %v2123_v40  ;;  %9031 = vmatpush1.bf16.msra.mxu0 %v9030_v39  ;;  %v2204_v15 = vld [vmem:[#allocation5 + $0x48] sm:$0xff] }
 0x30a   : > { %v2139_v36 = vsel %vm15872_vm7, %v2132_v2, %v2136_v59  ;;  %v2141_v27 = vsel %vm15872_vm7, %v2136_v59, %v2132_v2 }
 0x30b   : > { %9033 = vmatprep.subr.bf16.mxu0 %v9032_v21  ;;  %v2155_v44 = vmul.f32 %v2148_v26, %v2139_v36  ;;  %v2156_v20 = vmul.f32 %v2152_v56, %v2141_v27  ;;  %v2197_v21 = vld [vmem:[#allocation5 + $0x10] sm:$0xff]  ;;  %v2206_v27 = vld [vmem:[#allocation5 + $0x58] sm:$0xff] }
 0x30d   : > { %v2164_v57 = vpop.permute.xlu1 %2163  ;;  %v2166_v7 = vpop.permute.xlu0 %2165  ;;  %9035 = vmatpush1.bf16.msra.mxu0 %v9034_v47 }
 0x310   : > { %2357 = vmatmul.mubr.f32.vlgmr.msra.gmra.mrb[4].mxu0 %v2195_v18  ;;  %v8772_v18 = vld [vmem:[%s15777_s23 + $0x61] ss:$8 sm:$0x3] }
 0x311   : > { %v2168_v61 = vpop.permute.xlu1 %2167  ;;  %v2138_v34 = vpop.permute.xlu0 %2137  ;;  %2362 = vmatprep.mubr.f32.mxu0 %v2199_v37  ;;  %v8774_v37 = vld [vmem:[%s15777_s23 + $0x42] ss:$8 sm:$0x3] }
 0x312   : > { %v2140_v16 = vsel %vm15872_vm7, %v2134_v49, %v2138_v34  ;;  %v2142_v54 = vsel %vm15872_vm7, %v2138_v34, %v2134_v49  ;;  %v2171_v53 = vsel %vm15868_vm8, %v2164_v57, %v2168_v61  ;;  %v2173_v4 = vsel %vm15868_vm8, %v2168_v61, %v2164_v57 }
 0x313   : > { %v2157_v52 = vmul.f32 %v2148_v26, %v2140_v16  ;;  %v2158_v51 = vmul.f32 %v2152_v56, %v2142_v54  ;;  %v2187_v9 = vmul.f32 %v2180_v41, %v2171_v53  ;;  %v2188_v62 = vmul.f32 %v2184_v28, %v2173_v4  ;;  %v2203_v26 = vld [vmem:[#allocation5 + $0x40] sm:$0xff] }
 0x314   : > { %2363 = vmatmul.mubr.f32.gmra.mrb[6].mxu0 %v2198_v22  ;;  %v15819_v49 = vmov 0.0   ;;  %v8773_v56 = vld [vmem:[%s15777_s23 + $0x63] ss:$8 sm:$0x3]  ;;  %vm15879_vm7 = vcmp.lt.s32.totalorder %v10142_v12, 122 }
 0x315   : > { %v9038_v48 = vpack.c.bf16 %v2157_v52, %v2155_v44  ;;  %v11135_v10 = vpop.permute.xlu1 %3252  ;;  %v2170_v5 = vpop.permute.xlu0 %2169  ;;  %v9036_v6 = vpack.c.bf16 %v2158_v51, %v2156_v20  ;;  %2368 = vmatprep.mubr.f32.mxu0 %v2202_v8  ;;  %v11169_v61 = vrot.slane %v8773_v56, %v16040_v24  ;;  %v11173_v44 = vrot.slane %v8772_v18, %v16039_v45  ;;  %v8775_v20 = vld [vmem:[%s15777_s23 + $0x65] ss:$8 sm:$0x3] }
 0x316   : > { %v2172_v35 = vsel %vm15868_vm8, %v2166_v7, %v2170_v5  ;;  %v2174_v2 = vsel %vm15868_vm8, %v2170_v5, %v2166_v7  ;;  %v11196_v52 = vrot.slane %v8774_v37, %v16039_v45  ;;  %v11199_v51 = vrot.slane %v8774_v37, %v16040_v24  ;;  %v8777_v5 = vld [vmem:[%s15777_s23 + $0x1] ss:$8 sm:$0x3] }
 0x317   : > { %v2189_v13 = vmul.f32 %v2180_v41, %v2172_v35  ;;  %v2190_v55 = vmul.f32 %v2184_v28, %v2174_v2  ;;  %9037 = vmatprep.subr.bf16.mxu0 %v9036_v6  ;;  %v11166_v41 = vrot.slane %v8773_v56, %v16039_v45  ;;  %v11176_v28 = vrot.slane %v8772_v18, %v16040_v24 }
 0x318   : > { %9039 = vmatpush1.bf16.msra.mxu0 %v9038_v48  ;;  %v11229_v35 = vrot.slane %v8775_v20, %v16040_v24  ;;  %vm3977_vm8 = vcmp.lt.s32.totalorder %v10142_v12, 124 }
 0x319   : > { %v9042_v23 = vpack.c.bf16 %v2189_v13, %v2187_v9  ;;  %v3257_v39 = vpop.permute.xlu1 %3256  ;;  %v9040_v29 = vpack.c.bf16 %v2190_v55, %v2188_v62  ;;  %2369 = vmatmul.mubr.f32.gmra.mrb[8].mxu0 %v2201_v30  ;;  %v11141_v59 = vpop.permute.xlu0 %3254  ;;  %v11226_v9 = vrot.slane %v8775_v20, %v16039_v45 }
 0x31a   : > { %2374 = vmatprep.mubr.f32.mxu0 %v2205_v19  ;;  %v11193_v53 = vsel %vm15860_vm11, %v3257_v39, %v11135_v10  ;;  %v11206_v22 = vsel %vm15860_vm11, %v11135_v10, %v3257_v39  ;;  %v8776_v39 = vld [vmem:[%s15777_s23 + $0x22] ss:$8 sm:$0x3] }
 0x31b   : > { %9041 = vmatprep.subr.bf16.mxu0 %v9040_v29  ;;  %v3278_v62 = vmul.f32 %v11173_v44, %v11193_v53  ;;  %v3279_v30 = vmul.f32 %v11176_v28, %v11206_v22  ;;  %v11251_v29 = vrot.slane %v8777_v5, %v16039_v45  ;;  %v11267_v18 = vrot.slane %v8776_v39, %v16039_v45 }
 0x31c   : > { %9043 = vmatpush1.bf16.msra.mxu0 %v9042_v23  ;;  %v11270_v20 = vrot.slane %v8776_v39, %v16040_v24 }
 0x31d   : > { %v3291_v40 = vpop.permute.xlu1 %3290  ;;  %2375 = vmatmul.mubr.f32.gmra.mrb[10].mxu0 %v2204_v15  ;;  %v11146_v57 = vpop.permute.xlu0 %3292  ;;  %v8778_v15 = vld [vmem:[%s15777_s23 + $0x7] ss:$8 sm:$0x3] }
 0x31e   : > { %2445 = vmatprep.mubr.f32.mxu0 %v15819_v49 }
 0x321   : > { %v3295_v47 = vpop.permute.xlu1 %3294  ;;  %8759 = vmatmul.mubr.msk.f32.vlgmr.msra.gmra.mrb[4].mxu0 %vm15867_vm9, %v2197_v21  ;;  %v11153_v36 = vpop.permute.xlu0 %3330 }
 0x322   : > { %2451 = vmatprep.mubr.f32.mxu0 %v15819_v49  ;;  %v11180_v16 = vsel %vm15859_vm10, %v3291_v40, %v3295_v47  ;;  %v11184_v54 = vsel %vm15859_vm10, %v3295_v47, %v3291_v40 }
 0x323   : > { %v3316_v6 = vmul.f32 %v11166_v41, %v11184_v54  ;;  %v3317_v10 = vmul.f32 %v11169_v61, %v11180_v16 }
 0x325   : > { %v3329_v7 = vpop.permute.xlu1 %3328  ;;  %8760 = vmatmul.mubr.msk.f32.gmra.mrb[6].mxu0 %vm15867_vm9, %v2200_v11  ;;  %v11208_v4 = vpop.permute.xlu0 %3368  ;;  %v3320_v40 = vmul.f32 0.034166943, %v3316_v6  ;;  %v3321_v21 = vmul.f32 0.034166943, %v3317_v10  ;;  %v11273_v6 = vrot.slane %v8778_v15, %v16039_v45 }
 0x326   : > { %2457 = vmatprep.mubr.f32.mxu0 %v15819_v49  ;;  %v8779_v10 = vld [vmem:[%s15777_s23 + $0x27] ss:$8 sm:$0x3] }
 0x329   : > { %v3333_v60 = vpop.permute.xlu1 %3332  ;;  %8761 = vmatmul.mubr.msk.f32.gmra.mrb[8].mxu0 %vm15867_vm9, %v2203_v26  ;;  %v11261_v26 = vrot.slane %v8777_v5, %v16040_v24  ;;  %v11263_v56 = vpop.permute.xlu0 %3406  ;;  %v11276_v5 = vrot.slane %v8778_v15, %v16040_v24 }
 0x32a   : > { %2463 = vmatprep.mubr.f32.mxu0 %v15819_v49  ;;  %v11212_v8 = vsel %vm15869_vm12, %v3329_v7, %v3333_v60  ;;  %v11216_v48 = vsel %vm15869_vm12, %v3333_v60, %v3329_v7  ;;  %v3282_v60 = vmul.f32 0.018544022, %v3278_v62 }
 0x32b   : > { %v3354_v19 = vmul.f32 %v11196_v52, %v11216_v48  ;;  %v3355_v23 = vmul.f32 %v11199_v51, %v11212_v8  ;;  %v3487_v3 = vmul.f32 %v11276_v5, %v10986_v38 }
 0x32d   : > { %v3367_v34 = vpop.permute.xlu1 %3366  ;;  %8762 = vmatmul.mubr.msk.f32.gmra.mrb[10].mxu0 %vm15867_vm9, %v2206_v27  ;;  %v3283_v27 = vmul.f32 0.018544022, %v3279_v30  ;;  %v3358_v37 = vmul.f32 0.056331765, %v3354_v19  ;;  %v3454_v19 = vmul.f32 %v11251_v29, %v10862_v31  ;;  %vm15931_vm9 = vcmp.lt.s32.totalorder %v10142_v12, 125 }
 0x32e   : > { %3207 = vmatprep.mubr.f32.mxu0 %v15819_v49 }
 0x32f   : > { %v3325_v62 = vadd.f32 %v3321_v21, %v3283_v27 }
 0x331   : > { %v3371_v2 = vpop.permute.xlu1 %3370 }
 0x332   : > { %v11235_v13 = vsel %vm15858_vm13, %v3367_v34, %v3371_v2  ;;  %v11239_v55 = vsel %vm15858_vm13, %v3371_v2, %v3367_v34  ;;  %v3359_v34 = vmul.f32 0.056331765, %v3355_v23  ;;  %v3324_v2 = vadd.f32 %v3320_v40, %v3282_v60  ;;  %v8780_v40 = vld [vmem:[%s15777_s23 + $0x67] ss:$8 sm:$0x3] }
 0x333   : > { %v3392_v47 = vmul.f32 %v11226_v9, %v11239_v55  ;;  %v3393_v11 = vmul.f32 %v11229_v35, %v11235_v13  ;;  %v3455_v23 = vmul.f32 %v11261_v26, %v10851_v14  ;;  %v11303_v60 = vrot.slane %v8779_v10, %v16040_v24 }
 0x334   : > { %v3362_v21 = vadd.f32 %v3358_v37, %v3324_v2  ;;  %v3486_v2 = vmul.f32 %v11273_v6, %v10973_v58  ;;  %v11314_v25 = vrot.slane %v8780_v40, %v16040_v24 }
 0x335   : > { %v3405_v7 = vpop.permute.xlu1 %3404  ;;  %v3396_v49 = vmul.f32 0.08310854, %v3392_v47  ;;  %v3397_v43 = vmul.f32 0.08310854, %v3393_v11  ;;  %v3363_v47 = vadd.f32 %v3359_v34, %v3325_v62  ;;  %v11300_v11 = vrot.slane %v8779_v10, %v16039_v45 }
 0x336   : > { %v3458_v34 = vmul.f32 0.12961803, %v3454_v19  ;;  %v11311_v62 = vrot.slane %v8780_v40, %v16039_v45  ;;  %v3466_v40 = vmul.f32 0.13702282, %v10580_v46  ;;  %v3512_v38 = vmul.f32 %v11303_v60, %v11193_v53 }
 0x337   : > { %v3400_v27 = vadd.f32 %v3396_v49, %v3362_v21 }
 0x339   : > { %v3409_v30 = vpop.permute.xlu1 %3408 }
 0x33a   : > { %v3413_v39 = vsel %vm15861_vm14, %v3405_v7, %v3409_v30  ;;  %v11289_v15 = vsel %vm15861_vm14, %v3409_v30, %v3405_v7  ;;  %v11291_v1 = vpop.permute.xlu0 %2481  ;;  %v8781_v7 = vld [vmem:[%s15777_s23 + $0x47] ss:$8 sm:$0x3]  ;;  %v3401_v30 = vadd.f32 %v3397_v43, %v3363_v47  ;;  %v8782_v43 = vld [vmem:[%s15777_s23 + $0x81] ss:$8 sm:$0x3] }
 0x33b   : > { %16043 = vst [vmem:[#allocation12_spill] sm:$0xff] %v11291_v1  ;;  %v3430_v31 = vmul.f32 %v11267_v18, %v11289_v15  ;;  %v3431_v14 = vmul.f32 %v11270_v20, %v3413_v39  ;;  %v3459_v1 = vmul.f32 0.12961803, %v3455_v23  ;;  %v11324_v58 = vrot.slane %v8781_v7, %v16039_v45 }
 0x33c   : > { %v11327_v21 = vrot.slane %v8781_v7, %v16040_v24  ;;  %v3467_v47 = vmul.f32 0.13702282, %v10638_v42  ;;  %v3511_v23 = vmul.f32 %v11300_v11, %v11206_v22  ;;  %v3536_v7 = vmul.f32 %v11311_v62, %v11180_v16 }
 0x33d   : > { %v3434_v17 = vmul.f32 0.10971929, %v3430_v31  ;;  %v3435_v37 = vmul.f32 0.10971929, %v3431_v14  ;;  %v11341_v46 = vrot.slane %v8782_v43, %v16039_v45  ;;  %v3537_v22 = vmul.f32 %v11314_v25, %v11184_v54 }
 0x33e   : > { %v11316_v10 = vpop.permute.xlu0 %2513 }
 0x33f   : > { %16044 = vst [vmem:[#allocation11_spill] sm:$0xff] %v11316_v10  ;;  %v3438_v49 = vadd.f32 %v3434_v17, %v3400_v27  ;;  %v3439_v19 = vadd.f32 %v3435_v37, %v3401_v30  ;;  %v8783_v17 = vld [vmem:[%s15777_s23 + $0x83] ss:$8 sm:$0x3]  ;;  %v3490_v27 = vmul.f32 0.12961803, %v3486_v2  ;;  %v3561_v10 = vmul.f32 %v11324_v58, %v11212_v8 }
 0x340   : > { %v3491_v30 = vmul.f32 0.12961803, %v3487_v3  ;;  %v11355_v16 = vrot.slane %v8783_v17, %v16039_v45  ;;  %v3515_v2 = vmul.f32 0.10971929, %v3511_v23  ;;  %v3586_v8 = vmul.f32 %v11341_v46, %v11235_v13 }
 0x341   : > { %v3462_v31 = vadd.f32 %v3458_v34, %v3438_v49  ;;  %v3463_v14 = vadd.f32 %v3459_v1, %v3439_v19  ;;  %v3562_v1 = vmul.f32 %v11327_v21, %v11216_v48  ;;  %v11352_v34 = vrot.slane %v8782_v43, %v16040_v24 }
 0x342   : > { %v11343_v42 = vpop.permute.xlu0 %2491  ;;  %v3516_v49 = vmul.f32 0.10971929, %v3512_v38  ;;  %v3565_v48 = vmul.f32 0.056331765, %v3561_v10  ;;  %v11362_v43 = vrot.slane %v8783_v17, %v16040_v24 }
 0x343   : > { %16045 = vst [vmem:[#allocation18_spill] sm:$0xff] %v11343_v42  ;;  %v3470_v53 = vadd.f32 %v3466_v40, %v3462_v31  ;;  %v3471_v37 = vadd.f32 %v3467_v47, %v3463_v14  ;;  %v3540_v42 = vmul.f32 0.08310854, %v3536_v7  ;;  %v3541_v40 = vmul.f32 0.08310854, %v3537_v22 }
 0x344   : > { %v3566_v14 = vmul.f32 0.056331765, %v3562_v1  ;;  %v3587_v23 = vmul.f32 %v11352_v34, %v11239_v55  ;;  %v3611_v7 = vmul.f32 %v11355_v16, %v3413_v39  ;;  %v3612_v10 = vmul.f32 %v11362_v43, %v11289_v15 }
 0x345   : > { %v3494_v3 = vadd.f32 %v3490_v27, %v3470_v53  ;;  %v3495_v19 = vadd.f32 %v3491_v30, %v3471_v37  ;;  %v3590_v53 = vmul.f32 0.034166943, %v3586_v8 }
 0x346   : > { %v11357_v54 = vpop.permute.xlu0 %2523  ;;  %v3615_v1 = vmul.f32 0.018544022, %v3611_v7 }
 0x347   : > { %16046 = vst [vmem:[#allocation19_spill] sm:$0xff] %v11357_v54  ;;  %v3519_v47 = vadd.f32 %v3515_v2, %v3494_v3  ;;  %v3520_v31 = vadd.f32 %v3516_v49, %v3495_v19  ;;  %v3591_v54 = vmul.f32 0.034166943, %v3587_v23  ;;  %v3616_v3 = vmul.f32 0.018544022, %v3612_v10 }
 0x348   : > { %v3456_v10 = vmul.f32 %v11251_v29, %v10874_v63 }
 0x349   : > { %v3544_v38 = vadd.f32 %v3540_v42, %v3519_v47  ;;  %v3545_v27 = vadd.f32 %v3541_v40, %v3520_v31 }
 0x34a   : > { %v3259_v30 = vpop.permute.xlu0 %3258 }
 0x34b   : > { %v3569_v22 = vadd.f32 %v3565_v48, %v3544_v38  ;;  %v3570_v37 = vadd.f32 %v3566_v14, %v3545_v27  ;;  %v3264_v55 = vsel %vm15860_vm11, %v3259_v30, %v11141_v59  ;;  %v3262_v42 = vsel %vm15860_vm11, %v11141_v59, %v3259_v30 }
 0x34c   : > { %v3280_v19 = vmul.f32 %v11173_v44, %v3264_v55  ;;  %v3281_v47 = vmul.f32 %v11176_v28, %v3262_v42  ;;  %vm15876_vm11 = vcmp.lt.s32.totalorder %v10142_v12, 3 }
 0x34d   : > { %v3594_v13 = vadd.f32 %v3590_v53, %v3569_v22  ;;  %v3595_v17 = vadd.f32 %v3591_v54, %v3570_v37 }
 0x34e   : > { %v3297_v2 = vpop.permute.xlu0 %3296  ;;  %v3284_v23 = vmul.f32 0.018544022, %v3280_v19  ;;  %v3285_v28 = vmul.f32 0.018544022, %v3281_v47  ;;  %v3460_v19 = vmul.f32 0.12961803, %v3456_v10 }
 0x34f   : > { %v11369_v49 = vadd.f32 %v3615_v1, %v3594_v13  ;;  %v11377_v39 = vsel %vm15859_vm10, %v11146_v57, %v3297_v2  ;;  %v11385_v15 = vsel %vm15859_vm10, %v3297_v2, %v11146_v57  ;;  %v11394_v59 = vadd.f32 %v3616_v3, %v3595_v17 }
 0x350   : > { %v3318_v54 = vmul.f32 %v11166_v41, %v11385_v15  ;;  %v3319_v40 = vmul.f32 %v11169_v61, %v11377_v39  ;;  %vm3707_vm10 = vcmp.lt.s32.totalorder %v10142_v12, 4 }
 0x351   : > { %3623 = vrot.lane.b32.xlu1 %v11369_v49, %s15836_s8 }
 0x352   : > { %v3335_v8 = vpop.permute.xlu0 %3334  ;;  %v3322_v61 = vmul.f32 0.034166943, %v3318_v54  ;;  %v3323_v48 = vmul.f32 0.034166943, %v3319_v40  ;;  %v3488_v54 = vmul.f32 %v11273_v6, %v10981_v32 }
 0x353   : > { %v3338_v57 = vsel %vm15869_vm12, %v11153_v36, %v3335_v8  ;;  %v3340_v31 = vsel %vm15869_vm12, %v3335_v8, %v11153_v36  ;;  %vm15930_vm12 = vcmp.lt.s32.totalorder %v10142_v12, 123 }
 0x354   : > { %v3356_v44 = vmul.f32 %v11196_v52, %v3340_v31  ;;  %v3357_v41 = vmul.f32 %v11199_v51, %v3338_v57  ;;  %v3326_v30 = vadd.f32 %v3322_v61, %v3284_v23  ;;  %v3327_v53 = vadd.f32 %v3323_v48, %v3285_v28 }
 0x355   : > { %3627 = vrot.lane.b32.xlu1 %v11394_v59, %s15836_s8  ;;  %v3514_v61 = vmul.f32 %v11303_v60, %v3264_v55  ;;  %v3492_v6 = vmul.f32 0.12961803, %v3488_v54  ;;  %v3563_v28 = vmul.f32 %v11324_v58, %v3338_v57 }
 0x356   : > { %v3373_v14 = vpop.permute.xlu0 %3372  ;;  %v3360_v27 = vmul.f32 0.056331765, %v3356_v44  ;;  %v3361_v52 = vmul.f32 0.056331765, %v3357_v41  ;;  %v3513_v41 = vmul.f32 %v11300_v11, %v3262_v42 }
 0x357   : > { %v3376_v38 = vsel %vm15858_vm13, %v11208_v4, %v3373_v14  ;;  %v3378_v36 = vsel %vm15858_vm13, %v3373_v14, %v11208_v4  ;;  %v3457_v4 = vmul.f32 %v11261_v26, %v10868_v33  ;;  %v3518_v60 = vmul.f32 0.10971929, %v3514_v61 }
 0x358   : > { %v3394_v51 = vmul.f32 %v11226_v9, %v3378_v36  ;;  %v3395_v7 = vmul.f32 %v11229_v35, %v3376_v38  ;;  %v3364_v1 = vadd.f32 %v3360_v27, %v3326_v30  ;;  %v3365_v2 = vadd.f32 %v3361_v52, %v3327_v53 }
 0x359   : > { %3661 = vrot.lane.b32.xlu1 %v11369_v49, %s15838_s28  ;;  %v3461_v40 = vmul.f32 0.12961803, %v3457_v4  ;;  %v3564_v27 = vmul.f32 %v11327_v21, %v3340_v31  ;;  %v3517_v11 = vmul.f32 0.10971929, %v3513_v41  ;;  %v3589_v58 = vmul.f32 %v11352_v34, %v3378_v36 }
 0x35a   : > { %v3398_v22 = vmul.f32 0.08310854, %v3394_v51  ;;  %v3399_v37 = vmul.f32 0.08310854, %v3395_v7  ;;  %v3411_v13 = vpop.permute.xlu0 %3410  ;;  %vm15936_vm13 = vcmp.lt.s32.totalorder %v10142_v12, 6 }
 0x35b   : > { %v3414_v9 = vsel %vm15861_vm14, %v11263_v56, %v3411_v13  ;;  %v3416_v35 = vsel %vm15861_vm14, %v3411_v13, %v11263_v56  ;;  %v3489_v56 = vmul.f32 %v11276_v5, %v10991_v0  ;;  %v3538_v0 = vmul.f32 %v11311_v62, %v11377_v39 }
 0x35c   : > { %v3432_v17 = vmul.f32 %v11267_v18, %v3416_v35  ;;  %v3433_v3 = vmul.f32 %v11270_v20, %v3414_v9  ;;  %v3402_v63 = vadd.f32 %v3398_v22, %v3364_v1  ;;  %v3403_v29 = vadd.f32 %v3399_v37, %v3365_v2  ;;  %v16047_v20 = vld [vmem:[#allocation15_spill] sm:$0xff] }
 0x35d   : > { %3665 = vrot.lane.b32.xlu1 %v11394_v59, %s15838_s28  ;;  %v3468_v18 = vmul.f32 0.13702282, %v10585_v50  ;;  %v3469_v44 = vmul.f32 0.13702282, %v16047_v20  ;;  %v3493_v5 = vmul.f32 0.12961803, %v3489_v56  ;;  %v3539_v50 = vmul.f32 %v11314_v25, %v11385_v15 }
 0x35e   : > { %v3436_v33 = vmul.f32 0.10971929, %v3432_v17  ;;  %v3437_v26 = vmul.f32 0.10971929, %v3433_v3  ;;  %v3542_v52 = vmul.f32 0.08310854, %v3538_v0  ;;  %v3588_v62 = vmul.f32 %v11341_v46, %v3376_v38 }
 0x35f   : > { %v3543_v51 = vmul.f32 0.08310854, %v3539_v50  ;;  %v3567_v25 = vmul.f32 0.056331765, %v3563_v28  ;;  %v3568_v15 = vmul.f32 0.056331765, %v3564_v27  ;;  %v3613_v31 = vmul.f32 %v11355_v16, %v3414_v9 }
 0x360   : > { %v3440_v8 = vadd.f32 %v3436_v33, %v3402_v63  ;;  %v3441_v47 = vadd.f32 %v3437_v26, %v3403_v29  ;;  %v3592_v30 = vmul.f32 0.034166943, %v3588_v62  ;;  %v3593_v46 = vmul.f32 0.034166943, %v3589_v58 }
 0x361   : > { %3699 = vrot.lane.b32.xlu1 %v11369_v49, %s15877_s7  ;;  %v3614_v37 = vmul.f32 %v11362_v43, %v3416_v35  ;;  %v3617_v13 = vmul.f32 0.018544022, %v3613_v31  ;;  %v11521_v43 = vpop.permute.xlu1 %2476  ;;  %v8785_v28 = vld [vmem:[%s15777_s23 + $0x64] ss:$8 sm:$0x3]  ;;  %vm3783_vm14 = vcmp.lt.s32.totalorder %v10142_v12, 2 }
 0x362   : > { %v3464_v48 = vadd.f32 %v3460_v19, %v3440_v8  ;;  %v3465_v32 = vadd.f32 %v3461_v40, %v3441_v47  ;;  %v8788_v58 = vld [vmem:[%s15777_s23 + $0x24] ss:$8 sm:$0x3]  ;;  %v11639_v31 = vrot.slane %v8785_v28, %v16040_v24 }
 0x363   : > { %v3618_v34 = vmul.f32 0.018544022, %v3614_v37 }
 0x364   : > { %v3472_v14 = vadd.f32 %v3468_v18, %v3464_v48  ;;  %v3473_v23 = vadd.f32 %v3469_v44, %v3465_v32 }
 0x365   : > { %3703 = vrot.lane.b32.xlu1 %v11394_v59, %s15877_s7  ;;  %v11529_v36 = vpop.permute.xlu1 %2508 }
 0x366   : > { %v3496_v55 = vadd.f32 %v3492_v6, %v3472_v14  ;;  %v3497_v42 = vadd.f32 %v3493_v5, %v3473_v23 }
 0x368   : > { %v3521_v39 = vadd.f32 %v3517_v11, %v3496_v55  ;;  %v3522_v7 = vadd.f32 %v3518_v60, %v3497_v42  ;;  %v8784_v60 = vld [vmem:[%s15777_s23 + $0x62] ss:$8 sm:$0x3]  ;;  %v8786_v55 = vld [vmem:[%s15777_s23 + $0x44] ss:$8 sm:$0x3] }
 0x369   : > { %3737 = vrot.lane.b32.xlu1 %v11369_v49, %s15842_s9  ;;  %v11533_v9 = vpop.permute.xlu1 %2486  ;;  %v11653_v37 = vrot.slane %v8784_v60, %v16040_v24 }
 0x36a   : > { %v3546_v21 = vadd.f32 %v3542_v52, %v3521_v39  ;;  %v3547_v57 = vadd.f32 %v3543_v51, %v3522_v7  ;;  %16052 = vst [vmem:[#allocation21_spill] sm:$0xff] %v11533_v9  ;;  %v11611_v52 = vrot.slane %v8785_v28, %v16039_v45  ;;  %v8787_v39 = vld [vmem:[%s15777_s23 + $0x66] ss:$8 sm:$0x3] }
 0x36c   : > { %v3571_v53 = vadd.f32 %v3567_v25, %v3546_v21  ;;  %v3572_v22 = vadd.f32 %v3568_v15, %v3547_v57  ;;  %v11624_v25 = vrot.slane %v8784_v60, %v16039_v45  ;;  %v11627_v15 = vrot.slane %v8786_v55, %v16039_v45 }
 0x36d   : > { %3741 = vrot.lane.b32.xlu1 %v11394_v59, %s15842_s9  ;;  %v11539_v35 = vpop.permute.xlu1 %2518 }
 0x36e   : > { %v3596_v38 = vadd.f32 %v3592_v30, %v3571_v53  ;;  %v3597_v10 = vadd.f32 %v3593_v46, %v3572_v22  ;;  %16053 = vst [vmem:[#allocation22_spill] sm:$0xff] %v11539_v35 }
 0x370   : > { %v11457_v4 = vadd.f32 %v3617_v13, %v3596_v38  ;;  %v11463_v16 = vadd.f32 %v3618_v34, %v3597_v10  ;;  %v11649_v38 = vrot.slane %v8787_v39, %v16039_v45  ;;  %v11656_v13 = vrot.slane %v8786_v55, %v16040_v24 }
 0x371   : > { %3775 = vrot.lane.b32.xlu1 %v11369_v49, %s15844_s0  ;;  %v11663_v34 = vrot.slane %v8788_v58, %v16039_v45 }
 0x372   : > { %16048 = vst [vmem:[#allocation15_spill] sm:$0xff] %v11457_v4  ;;  %3625 = vrot.lane.b32.xlu0 %v11457_v4, %s15836_s8  ;;  %16049 = vst [vmem:[#allocation20_spill] sm:$0xff] %v11463_v16 }
 0x375   : > { %3779 = vrot.lane.b32.xlu1 %v11394_v59, %s15844_s0 }
 0x376   : > { %3629 = vrot.lane.b32.xlu0 %v11463_v16, %s15836_s8  ;;  %s15852_s8 = smov 126  }
 0x379   : > { %3813 = vrot.lane.b32.xlu1 %v11369_v49, %s16050_s10 }
 0x37a   : > { %3663 = vrot.lane.b32.xlu0 %v11457_v4, %s15838_s28 }
 0x37d   : > { %3817 = vrot.lane.b32.xlu1 %v11394_v59, %s16050_s10 }
 0x37e   : > { %3667 = vrot.lane.b32.xlu0 %v11463_v16, %s15838_s28  ;;  %s15850_s28 = smov 125  }
 0x381   : > { %3857 = vrot.lane.b32.xlu1 %v11369_v49, %s16051_s3 }
 0x382   : > { %3701 = vrot.lane.b32.xlu0 %v11457_v4, %s15877_s7 }
 0x385   : > { %3861 = vrot.lane.b32.xlu1 %v11394_v59, %s16051_s3 }
 0x386   : > { %3705 = vrot.lane.b32.xlu0 %v11463_v16, %s15877_s7  ;;  %s16085_s7 = smov 112  }
 0x389   : > { %3893 = vrot.lane.b32.xlu1 %v11369_v49, %s15852_s8 }
 0x38a   : > { %3739 = vrot.lane.b32.xlu0 %v11457_v4, %s15842_s9 }
 0x38d   : > { %3897 = vrot.lane.b32.xlu1 %v11394_v59, %s15852_s8 }
 0x38e   : > { %3743 = vrot.lane.b32.xlu0 %v11463_v16, %s15842_s9  ;;  %s15848_s9 = smov 123  }
 0x391   : > { %3931 = vrot.lane.b32.xlu1 %v11369_v49, %s15850_s28 }
 0x392   : > { %3777 = vrot.lane.b32.xlu0 %v11457_v4, %s15844_s0 }
 0x395   : > { %3935 = vrot.lane.b32.xlu1 %v11394_v59, %s15850_s28 }
 0x396   : > { %3781 = vrot.lane.b32.xlu0 %v11463_v16, %s15844_s0  ;;  %s15846_s0 = smov 122  }
 0x399   : > { %3969 = vrot.lane.b32.xlu1 %v11369_v49, %s15856_s11 }
 0x39a   : > { %3815 = vrot.lane.b32.xlu0 %v11457_v4, %s16050_s10 }
 0x39d   : > { %3973 = vrot.lane.b32.xlu1 %v11394_v59, %s15856_s11 }
 0x39e   : > { %3819 = vrot.lane.b32.xlu0 %v11463_v16, %s16050_s10 }
 0x3a1   : > { %4007 = vrot.lane.b32.xlu1 %v11369_v49, %s15848_s9 }
 0x3a2   : > { %3859 = vrot.lane.b32.xlu0 %v11457_v4, %s16051_s3 }
 0x3a5   : > { %4011 = vrot.lane.b32.xlu1 %v11394_v59, %s15848_s9 }
 0x3a6   : > { %3863 = vrot.lane.b32.xlu0 %v11463_v16, %s16051_s3 }
 0x3a9   : > { %4045 = vrot.lane.b32.xlu1 %v11369_v49, %s15846_s0 }
 0x3aa   : > { %3895 = vrot.lane.b32.xlu0 %v11457_v4, %s15852_s8 }
 0x3ad   : > { %4049 = vrot.lane.b32.xlu1 %v11394_v59, %s15846_s0 }
 0x3ae   : > { %3899 = vrot.lane.b32.xlu0 %v11463_v16, %s15852_s8  ;;  %s9755_s8 = smov 76  }
 0x3b2   : > { %3933 = vrot.lane.b32.xlu0 %v11457_v4, %s15850_s28 }
 0x3b6   : > { %3937 = vrot.lane.b32.xlu0 %v11463_v16, %s15850_s28  ;;  %s9756_s28 = smov 72  }
 0x3ba   : > { %3971 = vrot.lane.b32.xlu0 %v11457_v4, %s15856_s11 }
 0x3be   : > { %3975 = vrot.lane.b32.xlu0 %v11463_v16, %s15856_s11  ;;  %s16070_s11 = smov 17  }
 0x3c2   : > { %4009 = vrot.lane.b32.xlu0 %v11457_v4, %s15848_s9 }
 0x3c3   : > { %v11543_v1 = vpop.permute.xlu1 %3623 }
 0x3c6   : > { %4013 = vrot.lane.b32.xlu0 %v11463_v16, %s15848_s9  ;;  %s16077_s9 = smov 15  }
 0x3c7   : > { %v3628_v2 = vpop.permute.xlu1 %3627 }
 0x3c8   : > { %v3634_v57 = vsel %vm15936_vm13, %v3628_v2, %v11543_v1 }
 0x3c9   : > { %v3649_v28 = vmul.f32 %v11624_v25, %v3634_v57 }
 0x3ca   : > { %4047 = vrot.lane.b32.xlu0 %v11457_v4, %s15846_s0 }
 0x3cb   : > { %v3662_v17 = vpop.permute.xlu1 %3661 }
 0x3ce   : > { %4051 = vrot.lane.b32.xlu0 %v11463_v16, %s15846_s0  ;;  %s16083_s0 = smov 113  }
 0x3cf   : > { %v3666_v3 = vpop.permute.xlu1 %3665 }
 0x3d0   : > { %v3672_v62 = vsel %vm15990_vm15, %v3666_v3, %v3662_v17  ;;  %v3670_v22 = vsel %vm15990_vm15, %v3662_v17, %v3666_v3  ;;  %v8789_v17 = vld [vmem:[%s15777_s23 + $0x3] ss:$8 sm:$0x3]  ;;  %v3632_v3 = vsel %vm15936_vm13, %v11543_v1, %v3628_v2  ;;  %v11686_v1 = vmul.f32 0.13702282, %v11369_v49 }
 0x3d1   : > { %v3687_v46 = vmul.f32 %v11611_v52, %v3672_v62  ;;  %v3650_v49 = vmul.f32 %v11653_v37, %v3632_v3  ;;  %v11719_v9 = vrot.slane %v8789_v17, %v16040_v24 }
 0x3d3   : > { %v3700_v63 = vpop.permute.xlu1 %3699 }
 0x3d7   : > { %v3704_v29 = vpop.permute.xlu1 %3703 }
 0x3d8   : > { %v3710_v30 = vsel %vm3707_vm10, %v3704_v29, %v3700_v63  ;;  %v3708_v60 = vsel %vm3707_vm10, %v3700_v63, %v3704_v29  ;;  %v3691_v63 = vmul.f32 0.034166943, %v3687_v46  ;;  %v11704_v46 = vrot.slane %v8788_v58, %v16040_v24 }
 0x3d9   : > { %v3725_v55 = vmul.f32 %v11627_v15, %v3710_v30  ;;  %v8790_v30 = vld [vmem:[%s15777_s23 + $0x5] ss:$8 sm:$0x3] }
 0x3db   : > { %v11551_v33 = vpop.permute.xlu1 %3737 }
 0x3df   : > { %v11553_v26 = vpop.permute.xlu1 %3741 }
 0x3e0   : > { %v3748_v10 = vsel %vm15876_vm11, %v11553_v26, %v11551_v33  ;;  %v3746_v29 = vsel %vm15876_vm11, %v11551_v33, %v11553_v26  ;;  %v3653_v26 = vmul.f32 0.018544022, %v3649_v28  ;;  %v8791_v28 = vld [vmem:[%s15777_s23 + $0x25] ss:$8 sm:$0x3] }
 0x3e1   : > { %v3763_v57 = vmul.f32 %v11649_v38, %v3748_v10  ;;  %v3729_v10 = vmul.f32 0.056331765, %v3725_v55 }
 0x3e3   : > { %v11555_v19 = vpop.permute.xlu1 %3775 }
 0x3e4   : > { %v11557_v54 = vpop.permute.xlu0 %3625 }
 0x3e7   : > { %v11559_v40 = vpop.permute.xlu1 %3779 }
 0x3e8   : > { %v11561_v56 = vpop.permute.xlu0 %3629 }
 0x3eb   : > { %v11563_v8 = vpop.permute.xlu1 %3813 }
 0x3ec   : > { %v11565_v47 = vpop.permute.xlu0 %3663 }
 0x3ef   : > { %v11567_v18 = vpop.permute.xlu1 %3817 }
 0x3f0   : > { %v11569_v20 = vpop.permute.xlu0 %3667  ;;  %v3823_v33 = vsel %vm1086_vm4, %v11567_v18, %v11563_v8 }
 0x3f3   : > { %v11571_v44 = vpop.permute.xlu1 %3857 }
 0x3f4   : > { %v11573_v41 = vpop.permute.xlu0 %3701  ;;  %v11575_v61 = vpop.f32.mrb[4].mxu0 }
 0x3f5   : > { %v11577_v48 = vpop.f32.mrb[5].mxu0 }
 0x3f6   : > { %16054 = vst [vmem:[#allocation23_spill] sm:$0xff] %v11577_v48  ;;  %v11736_v48 = vrot.slane %v8790_v30, %v16040_v24 }
 0x3f7   : > { %v11579_v32 = vpop.permute.xlu1 %3861 }
 0x3f8   : > { %v11581_v6 = vpop.permute.xlu0 %3705  ;;  %v11583_v0 = vpop.f32.mrb[6].mxu0 }
 0x3f9   : > { %16055 = vst [vmem:[#allocation24_spill] sm:$0xff] %v11583_v0  ;;  %v11585_v5 = vpop.f32.mrb[7].mxu0 }
 0x3fa   : > { %16056 = vst [vmem:[#allocation25_spill] sm:$0xff] %v11585_v5  ;;  %v3784_v5 = vsel %vm3783_vm14, %v11555_v19, %v11559_v40 }
 0x3fb   : > { %v11587_v50 = vpop.permute.xlu1 %3893  ;;  %v3802_v0 = vmul.f32 %v11704_v46, %v3784_v5  ;;  %v3865_v5 = vsel %vm1158_vm5, %v11571_v44, %v11579_v32 }
 0x3fc   : > { %v11589_v14 = vpop.permute.xlu0 %3739  ;;  %v11591_v23 = vpop.f32.mrb[8].mxu0 }
 0x3fd   : > { %16057 = vst [vmem:[#allocation26_spill] sm:$0xff] %v11591_v23  ;;  %v11596_v27 = vpop.f32.mrb[9].mxu0  ;;  %v11722_v23 = vrot.slane %v8790_v30, %v16039_v45 }
 0x3fe   : > { %16058 = vst [vmem:[#allocation27_spill] sm:$0xff] %v11596_v27  ;;  %v3786_v27 = vsel %vm3783_vm14, %v11559_v40, %v11555_v19  ;;  %v3695_v19 = vadd.f32 %v3691_v63, %v3653_v26  ;;  %v3767_v40 = vmul.f32 0.08310854, %v3763_v57  ;;  %v11740_v63 = vrot.slane %v8791_v28, %v16039_v45 }
 0x3ff   : > { %v11599_v11 = vpop.permute.xlu1 %3897  ;;  %v3801_v35 = vmul.f32 %v11663_v34, %v3786_v27  ;;  %16061 = vst [vmem:[#allocation30_spill] sm:$0xff] %v11722_v23  ;;  %v3821_v27 = vsel %vm1086_vm4, %v11563_v8, %v11567_v18  ;;  %v8792_v8 = vld [vmem:[%s15777_s23 + $0x80] ss:$8 sm:$0x3]  ;;  %v11753_v26 = vrot.slane %v8791_v28, %v16040_v24  ;;  %v3867_v28 = vsel %vm1158_vm5, %v11579_v32, %v11571_v44 }
 0x400   : > { %v11607_v42 = vpop.permute.xlu0 %3743  ;;  %v11614_v51 = vpop.f32.mrb[10].mxu0  ;;  %v3733_v16 = vadd.f32 %v3729_v10, %v3695_v19  ;;  %v8793_v10 = vld [vmem:[%s15777_s23 + $0x45] ss:$8 sm:$0x3]  ;;  %v3902_v19 = vsel %vm3901_vm0, %v11587_v50, %v11599_v11 }
 0x401   : > { %16059 = vst [vmem:[#allocation28_spill] sm:$0xff] %v11614_v51  ;;  %v11621_v7 = vpop.f32.mrb[11].mxu0  ;;  %v11679_v51 = vrot.slane %v8787_v39, %v16040_v24  ;;  %v11696_v39 = vrot.slane %v8789_v17, %v16039_v45  ;;  %v3654_v17 = vmul.f32 0.018544022, %v3650_v49  ;;  %v3805_v4 = vmul.f32 0.10971929, %v3801_v35 }
 0x402   : > { %16060 = vst [vmem:[#allocation29_spill] sm:$0xff] %v11621_v7  ;;  %v3688_v7 = vmul.f32 %v11639_v31, %v3670_v22  ;;  %v3726_v22 = vmul.f32 %v11656_v13, %v3708_v60  ;;  %v3771_v30 = vadd.f32 %v3767_v40, %v3733_v16  ;;  %16062 = vst [vmem:[#allocation31_spill] sm:$0xff] %v11753_v26  ;;  %v8794_v44 = vld [vmem:[%s15777_s23 + $0x82] ss:$8 sm:$0x3] }
 0x403   : > { %v11633_v21 = vpop.permute.xlu1 %3931  ;;  %v3764_v58 = vmul.f32 %v11679_v51, %v3746_v29  ;;  %v3881_v40 = vmul.f32 %v11722_v23, %v3865_v5 }
 0x404   : > { %v11643_v53 = vpop.permute.xlu0 %3777  ;;  %v3692_v60 = vmul.f32 0.034166943, %v3688_v7  ;;  %v3837_v7 = vmul.f32 %v11696_v39, %v3823_v33  ;;  %v3730_v29 = vmul.f32 0.056331765, %v3726_v22  ;;  %v3838_v22 = vmul.f32 %v11719_v9, %v3821_v27 }
 0x405   : > { %v3768_v49 = vmul.f32 0.08310854, %v3764_v58  ;;  %v3806_v58 = vmul.f32 0.10971929, %v3802_v0  ;;  %v11764_v27 = vrot.slane %v8792_v8, %v16039_v45  ;;  %v3809_v16 = vadd.f32 %v3805_v4, %v3771_v30 }
 0x406   : > { %v3696_v57 = vadd.f32 %v3692_v60, %v3654_v17  ;;  %v3841_v33 = vmul.f32 0.12961803, %v3837_v7  ;;  %v3842_v17 = vmul.f32 0.12961803, %v3838_v22  ;;  %v3919_v22 = vmul.f32 %v11740_v63, %v3902_v19 }
 0x407   : > { %v11675_v62 = vpop.permute.xlu1 %3935  ;;  %16063 = vst [vmem:[#allocation32_spill] sm:$0xff] %v11764_v27  ;;  %v3850_v30 = vmul.f32 0.13702282, %v11394_v59 }
 0x408   : > { %v11688_v2 = vpop.permute.xlu0 %3781  ;;  %v3734_v60 = vadd.f32 %v3730_v29, %v3696_v57  ;;  %v3940_v29 = vsel %vm15931_vm9, %v11633_v21, %v11675_v62  ;;  %v11777_v57 = vrot.slane %v8793_v10, %v16039_v45  ;;  %v3845_v32 = vadd.f32 %v3841_v33, %v3809_v16 }
 0x409   : > { %v11796_v33 = vrot.slane %v8792_v8, %v16040_v24  ;;  %v3957_v16 = vmul.f32 %v11764_v27, %v3940_v29  ;;  %v3942_v59 = vsel %vm15931_vm9, %v11675_v62, %v11633_v21  ;;  %v11813_v29 = vrot.slane %v8793_v10, %v16040_v24 }
 0x40a   : > { %v3772_v0 = vadd.f32 %v3768_v49, %v3734_v60  ;;  %16064 = vst [vmem:[#allocation33_spill] sm:$0xff] %v11777_v57  ;;  %v3904_v49 = vsel %vm3901_vm0, %v11599_v11, %v11587_v50  ;;  %v3882_v60 = vmul.f32 %v11736_v48, %v3867_v28  ;;  %v11800_v50 = vrot.slane %v8794_v44, %v16039_v45 }
 0x40b   : > { %v11715_v3 = vpop.permute.xlu1 %3969  ;;  %v3853_v8 = vadd.f32 %v11686_v1, %v3845_v32  ;;  %v11823_v62 = vrot.slane %v8794_v44, %v16040_v24  ;;  %v3958_v10 = vmul.f32 %v11796_v33, %v3942_v59  ;;  %v3961_v32 = vmul.f32 0.08310854, %v3957_v16 }
 0x40c   : > { %v11727_v55 = vpop.permute.xlu0 %3815  ;;  %v3810_v5 = vadd.f32 %v3806_v58, %v3772_v0  ;;  %v3920_v58 = vmul.f32 %v11753_v26, %v3904_v49  ;;  %v3923_v0 = vmul.f32 0.10971929, %v3919_v22  ;;  %v8795_v49 = vld [vmem:[%s15777_s23 + $0x84] ss:$8 sm:$0x3] }
 0x40d   : > { %v11837_v59 = vrot.slane %v8795_v49, %v16040_v24 }
 0x40e   : > { %v3846_v19 = vadd.f32 %v3842_v17, %v3810_v5  ;;  %v3886_v5 = vmul.f32 0.12961803, %v3882_v60  ;;  %v3924_v26 = vmul.f32 0.10971929, %v3920_v58 }
 0x40f   : > { %v3974_v18 = vpop.permute.xlu1 %3973 }
 0x410   : > { %v11750_v35 = vpop.permute.xlu0 %3819  ;;  %v3978_v23 = vsel %vm3977_vm8, %v11715_v3, %v3974_v18  ;;  %v3980_v21 = vsel %vm3977_vm8, %v3974_v18, %v11715_v3  ;;  %v11833_v3 = vrot.slane %v8795_v49, %v16039_v45 }
 0x411   : > { %v3995_v17 = vmul.f32 %v11777_v57, %v3978_v23  ;;  %v3854_v57 = vadd.f32 %v3850_v30, %v3846_v19  ;;  %v3996_v44 = vmul.f32 %v11813_v29, %v3980_v21 }
 0x413   : > { %v4008_v7 = vpop.permute.xlu1 %4007  ;;  %v3890_v16 = vadd.f32 %v3886_v5, %v3854_v57  ;;  %v4000_v57 = vmul.f32 0.056331765, %v3996_v44  ;;  %v3711_v44 = vsel %vm3707_vm10, %v11581_v6, %v11573_v41 }
 0x414   : > { %v11779_v4 = vpop.permute.xlu0 %3859 }
 0x415   : > { %16065 = vst [vmem:[#allocation34_spill] sm:$0xff] %v11779_v4  ;;  %v3885_v4 = vmul.f32 0.12961803, %v3881_v40 }
 0x417   : > { %v4012_v11 = vpop.permute.xlu1 %4011  ;;  %v3889_v1 = vadd.f32 %v3885_v4, %v3853_v8  ;;  %v3999_v4 = vmul.f32 0.056331765, %v3995_v17 }
 0x418   : > { %v4016_v28 = vsel %vm15930_vm12, %v4008_v7, %v4012_v11  ;;  %v11809_v40 = vpop.permute.xlu0 %3863  ;;  %v4018_v60 = vsel %vm15930_vm12, %v4012_v11, %v4008_v7  ;;  %v3673_v7 = vsel %vm15990_vm15, %v11569_v20, %v11565_v47  ;;  %v3928_v11 = vadd.f32 %v3924_v26, %v3890_v16 }
 0x419   : > { %v4033_v23 = vmul.f32 %v11800_v50, %v4016_v28  ;;  %v3927_v18 = vadd.f32 %v3923_v0, %v3889_v1  ;;  %v3962_v28 = vmul.f32 0.08310854, %v3958_v10  ;;  %v4034_v30 = vmul.f32 %v11823_v62, %v4018_v60 }
 0x41a   : > { %v3635_v26 = vsel %vm15936_vm13, %v11561_v56, %v11557_v54 }
 0x41b   : > { %v4046_v22 = vpop.permute.xlu1 %4045  ;;  %v3965_v8 = vadd.f32 %v3961_v32, %v3927_v18  ;;  %v4037_v19 = vmul.f32 0.034166943, %v4033_v23  ;;  %v3966_v10 = vadd.f32 %v3962_v28, %v3928_v11  ;;  %v4038_v32 = vmul.f32 0.034166943, %v4034_v30 }
 0x41c   : > { %v11830_v27 = vpop.permute.xlu0 %3895  ;;  %v3689_v18 = vmul.f32 %v11611_v52, %v3673_v7  ;;  %v3651_v30 = vmul.f32 %v11624_v25, %v3635_v26  ;;  %v3749_v52 = vsel %vm15876_vm11, %v11607_v42, %v11589_v14 }
 0x41d   : > { %v4003_v5 = vadd.f32 %v3999_v4, %v3965_v8  ;;  %v4004_v4 = vadd.f32 %v4000_v57, %v3966_v10  ;;  %v3671_v8 = vsel %vm15990_vm15, %v11565_v47, %v11569_v20  ;;  %v3709_v47 = vsel %vm3707_vm10, %v11573_v41, %v11581_v6 }
 0x41e   : > { %v3727_v20 = vmul.f32 %v11627_v15, %v3711_v44  ;;  %v3690_v7 = vmul.f32 %v11639_v31, %v3671_v8  ;;  %v3693_v11 = vmul.f32 0.034166943, %v3689_v18  ;;  %v3765_v41 = vmul.f32 %v11649_v38, %v3749_v52 }
 0x41f   : > { %v4050_v58 = vpop.permute.xlu1 %4049  ;;  %v4041_v23 = vadd.f32 %v4037_v19, %v4003_v5  ;;  %v4042_v19 = vadd.f32 %v4038_v32, %v4004_v4  ;;  %v3655_v15 = vmul.f32 0.018544022, %v3651_v30  ;;  %v3728_v31 = vmul.f32 %v11656_v13, %v3709_v47  ;;  %v16068_v4 = vld [vmem:[#allocation34_spill] sm:$0xff] }
 0x420   : > { %v4054_v0 = vsel %vm15879_vm7, %v4046_v22, %v4050_v58  ;;  %v4056_v17 = vsel %vm15879_vm7, %v4050_v58, %v4046_v22  ;;  %v11848_v49 = vpop.permute.xlu0 %3899  ;;  %v3633_v58 = vsel %vm15936_vm13, %v11557_v54, %v11561_v56  ;;  %v2494_v54 = vmul.f32 %v11521_v43, %v11575_v61 }
 0x421   : > { %v4071_v21 = vmul.f32 %v11833_v3, %v4054_v0  ;;  %v4072_v1 = vmul.f32 %v11837_v59, %v4056_v17  ;;  %v3787_v0 = vsel %vm3783_vm14, %v11688_v2, %v11643_v53  ;;  %v3747_v56 = vsel %vm15876_vm11, %v11589_v14, %v11607_v42 }
 0x422   : > { %v3652_v6 = vmul.f32 %v11653_v37, %v3633_v58  ;;  %v3824_v57 = vsel %vm1086_vm4, %v11750_v35, %v11727_v55  ;;  %v3731_v61 = vmul.f32 0.056331765, %v3727_v20  ;;  %v3785_v14 = vsel %vm3783_vm14, %v11643_v53, %v11688_v2 }
 0x423   : > { %v4075_v60 = vmul.f32 0.018544022, %v4071_v21  ;;  %v4076_v16 = vmul.f32 0.018544022, %v4072_v1  ;;  %v3803_v42 = vmul.f32 %v11663_v34, %v3787_v0  ;;  %v3694_v37 = vmul.f32 0.034166943, %v3690_v7 }
 0x424   : > { %v11857_v22 = vpop.permute.xlu0 %3933  ;;  %v3697_v5 = vadd.f32 %v3693_v11, %v3655_v15  ;;  %v3766_v13 = vmul.f32 %v11679_v51, %v3747_v56  ;;  %v2526_v21 = vadd.f32 %v11529_v36, %v2494_v54  ;;  %v3769_v1 = vmul.f32 0.08310854, %v3765_v41 }
 0x425   : > { %v11863_v28 = vadd.f32 %v4075_v60, %v4041_v23  ;;  %v11892_v17 = vadd.f32 %v4076_v16, %v4042_v19  ;;  %v3822_v10 = vsel %vm1086_vm4, %v11727_v55, %v11750_v35  ;;  %v3839_v32 = vmul.f32 %v11696_v39, %v3824_v57  ;;  %v16069_v19 = vld [vmem:[#allocation30_spill] sm:$0xff] }
 0x426   : > { %v3656_v23 = vmul.f32 0.018544022, %v3652_v6  ;;  %v3732_v60 = vmul.f32 0.056331765, %v3728_v31  ;;  %v3804_v53 = vmul.f32 %v11704_v46, %v3785_v14  ;;  %v3735_v34 = vadd.f32 %v3731_v61, %v3697_v5  ;;  %v16071_v31 = vld [vmem:[#allocation15_spill] sm:$0xff]  ;;  %v16072_v14 = vld [vmem:[#allocation32_spill] sm:$0xff] }
 0x427   : > { %16066 = vst [vmem:[#allocation35_spill] sm:$0xff] %v11863_v28  ;;  %4103 = vrot.lane.b32.xlu1 %v11863_v28, %s9755_s8  ;;  %16067 = vst [vmem:[#allocation36_spill] sm:$0xff] %v11892_v17  ;;  %v3807_v51 = vmul.f32 0.10971929, %v3803_v42  ;;  %v3770_v18 = vmul.f32 0.08310854, %v3766_v13  ;;  %v3840_v44 = vmul.f32 %v11719_v9, %v3822_v10  ;;  %v3866_v39 = vsel %vm1158_vm5, %v16068_v4, %v11809_v40 }
 0x428   : > { %v11885_v25 = vpop.permute.xlu0 %3937  ;;  %v3698_v26 = vadd.f32 %v3694_v37, %v3656_v23  ;;  %v2542_v55 = vmul.f32 0.1, %v2526_v21  ;;  %v3773_v35 = vadd.f32 %v3769_v1, %v3735_v34  ;;  %v3843_v16 = vmul.f32 0.12961803, %v3839_v32  ;;  %v16073_v13 = vld [vmem:[#allocation31_spill] sm:$0xff]  ;;  %v16074_v1 = vld [vmem:[#allocation33_spill] sm:$0xff] }
 0x429   : > { %vm2534_vm11 = vcmp.ge.f32.partialorder %v2526_v21, 0.0  ;;  %v3808_v8 = vmul.f32 0.10971929, %v3804_v53  ;;  %v3903_v30 = vsel %vm3901_vm0, %v11830_v27, %v11848_v49  ;;  %v3868_v52 = vsel %vm1158_vm5, %v11809_v40, %v16068_v4  ;;  %v16075_v32 = vld [vmem:[#allocation20_spill] sm:$0xff] }
 0x42a   : > { %v3736_v46 = vadd.f32 %v3732_v60, %v3698_v26  ;;  %v3811_v9 = vadd.f32 %v3807_v51, %v3773_v35  ;;  %v3883_v58 = vmul.f32 %v16069_v19, %v3866_v39  ;;  %v3844_v7 = vmul.f32 0.12961803, %v3840_v44 }
 0x42b   : > { %4107 = vrot.lane.b32.xlu1 %v11892_v17, %s9755_s8  ;;  %v3941_v11 = vsel %vm15931_vm9, %v11857_v22, %v11885_v25  ;;  %v11944_v0 = vsel %vm2534_vm11, %v2526_v21, %v2542_v55  ;;  %v3905_v56 = vsel %vm3901_vm0, %v11848_v49, %v11830_v27  ;;  %v3921_v40 = vmul.f32 %v11740_v63, %v3903_v30 }
 0x42c   : > { %v3972_v38 = vpop.permute.xlu0 %3971  ;;  %v3774_v20 = vadd.f32 %v3770_v18, %v3736_v46  ;;  %v3847_v54 = vadd.f32 %v3843_v16, %v3811_v9  ;;  %v3884_v6 = vmul.f32 %v11736_v48, %v3868_v52  ;;  %v3851_v57 = vmul.f32 0.13702282, %v16071_v31  ;;  %v16082_v31 = vld [vmem:[#allocation12_spill] sm:$0xff] }
 0x42d   : > { %v3887_v61 = vmul.f32 0.12961803, %v3883_v58  ;;  %v3959_v42 = vmul.f32 %v16072_v14, %v3941_v11  ;;  %v3922_v27 = vmul.f32 %v16073_v13, %v3905_v56  ;;  %v3943_v48 = vsel %vm15931_vm9, %v11885_v25, %v11857_v22  ;;  %v16078_v11 = vld [vmem:[#allocation23_spill] sm:$0xff]  ;;  %v16087_v13 = vld [vmem:[#allocation21_spill] sm:$0xff] }
 0x42e   : > { %v3812_v41 = vadd.f32 %v3808_v8, %v3774_v20  ;;  %v3855_v49 = vadd.f32 %v3851_v57, %v3847_v54  ;;  %v3925_v21 = vmul.f32 0.10971929, %v3921_v40  ;;  %v3852_v23 = vmul.f32 0.13702282, %v16075_v32 }
 0x42f   : > { %4128 = vrot.lane.b32.xlu1 %v11863_v28, %s9756_s28  ;;  %v3888_v60 = vmul.f32 0.12961803, %v3884_v6  ;;  %v3960_v51 = vmul.f32 %v11796_v33, %v3943_v48  ;;  %v3963_v22 = vmul.f32 0.08310854, %v3959_v42  ;;  %v3926_v44 = vmul.f32 0.10971929, %v3922_v27 }
 0x430   : > { %v3976_v2 = vpop.permute.xlu0 %3975  ;;  %v3848_v5 = vadd.f32 %v3844_v7, %v3812_v41  ;;  %v3891_v34 = vadd.f32 %v3887_v61, %v3855_v49  ;;  %v2495_v54 = vmul.f32 %v11521_v43, %v16078_v11  ;;  %v16084_v61 = vld [vmem:[#allocation11_spill] sm:$0xff]  ;;  %v16088_v48 = vld [vmem:[#allocation22_spill] sm:$0xff]  ;;  %v16089_v49 = vld [vmem:[#allocation25_spill] sm:$0xff]  ;;  %vm4285_vm13 = vcmp.lt.s32.totalorder %v10142_v12, 12 }
 0x431   : > { %v3979_v15 = vsel %vm3977_vm8, %v3972_v38, %v3976_v2  ;;  %v3981_v53 = vsel %vm3977_vm8, %v3976_v2, %v3972_v38  ;;  %v3964_v2 = vmul.f32 0.08310854, %v3960_v51 }
 0x432   : > { %v3997_v10 = vmul.f32 %v16074_v1, %v3979_v15  ;;  %v3856_v18 = vadd.f32 %v3852_v23, %v3848_v5  ;;  %v3929_v39 = vadd.f32 %v3925_v21, %v3891_v34  ;;  %v3998_v55 = vmul.f32 %v11813_v29, %v3981_v53  ;;  %v16081_v15 = vld [vmem:[#allocation24_spill] sm:$0xff]  ;;  %v16086_v5 = vld [vmem:[#allocation26_spill] sm:$0xff]  ;;  %v16090_v53 = vld [vmem:[#allocation27_spill] sm:$0xff] }
 0x433   : > { %4132 = vrot.lane.b32.xlu1 %v11892_v17, %s9756_s28  ;;  %v2496_v57 = vmul.f32 %v16082_v31, %v16081_v15  ;;  %v2498_v27 = vmul.f32 %v16087_v13, %v16086_v5  ;;  %v2497_v21 = vmul.f32 %v16082_v31, %v16089_v49  ;;  %v2499_v34 = vmul.f32 %v16087_v13, %v16090_v53 }
 0x434   : > { %v4010_v47 = vpop.permute.xlu0 %4009  ;;  %v4001_v35 = vmul.f32 0.056331765, %v3997_v10  ;;  %v3892_v38 = vadd.f32 %v3888_v60, %v3856_v18  ;;  %v3967_v16 = vadd.f32 %v3963_v22, %v3929_v39  ;;  %v4002_v52 = vmul.f32 0.056331765, %v3998_v55  ;;  %v16091_v22 = vld [vmem:[#allocation28_spill] sm:$0xff] }
 0x435   : > { %v2528_v14 = vadd.f32 %v16084_v61, %v2496_v57  ;;  %v2529_v10 = vadd.f32 %v16084_v61, %v2497_v21  ;;  %v2531_v51 = vadd.f32 %v16088_v48, %v2499_v34 }
 0x436   : > { %v3930_v8 = vadd.f32 %v3926_v44, %v3892_v38  ;;  %v4005_v29 = vadd.f32 %v4001_v35, %v3967_v16  ;;  %v16093_v44 = vld [vmem:[#allocation19_spill] sm:$0xff]  ;;  %v16096_v16 = vld [vmem:[#allocation29_spill] sm:$0xff] }
 0x437   : > { %2558 = vrot.lane.b32.xlu1 %v11944_v0, %s16070_s11  ;;  %v2544_v42 = vmul.f32 0.1, %v2528_v14  ;;  %v2545_v23 = vmul.f32 0.1, %v2529_v10  ;;  %v2547_v18 = vmul.f32 0.1, %v2531_v51 }
 0x438   : > { %v4014_v37 = vpop.permute.xlu0 %4013 }
 0x439   : > { %v4017_v63 = vsel %vm15930_vm12, %v4010_v47, %v4014_v37  ;;  %v4019_v4 = vsel %vm15930_vm12, %v4014_v37, %v4010_v47  ;;  %v3968_v47 = vadd.f32 %v3964_v2, %v3930_v8 }
 0x43a   : > { %v4035_v25 = vmul.f32 %v11800_v50, %v4017_v63  ;;  %v4036_v33 = vmul.f32 %v11823_v62, %v4019_v4  ;;  %v2530_v63 = vadd.f32 %v16088_v48, %v2498_v27  ;;  %v2582_v48 = vld [vmem:[%s15777_s23] ss:$8 sm:$0x3] }
 0x43b   : > { %2610 = vrot.lane.b32.xlu1 %v11944_v0, %s16076_s29  ;;  %v4006_v56 = vadd.f32 %v4002_v52, %v3968_v47  ;;  %v12244_v21 = vrot.slane %v2582_v48, %v16039_v45 }
 0x43c   : > { %v4048_v26 = vpop.permute.xlu0 %4047  ;;  %v4039_v46 = vmul.f32 0.034166943, %v4035_v25  ;;  %v4040_v62 = vmul.f32 0.034166943, %v4036_v33  ;;  %v2546_v1 = vmul.f32 0.1, %v2530_v63 }
 0x43d   : > { %v16092_v25 = vld [vmem:[#allocation18_spill] sm:$0xff] }
 0x43e   : > { %v4043_v20 = vadd.f32 %v4039_v46, %v4005_v29  ;;  %v2501_v33 = vmul.f32 %v16092_v25, %v16096_v16 }
 0x43f   : > { %2662 = vrot.lane.b32.xlu1 %v11944_v0, %s16077_s9 }
 0x440   : > { %v4052_v50 = vpop.permute.xlu0 %4051 }
 0x441   : > { %v4055_v30 = vsel %vm15879_vm7, %v4048_v26, %v4052_v50  ;;  %v4057_v9 = vsel %vm15879_vm7, %v4052_v50, %v4048_v26  ;;  %vm2536_vm7 = vcmp.ge.f32.partialorder %v2528_v14, 0.0  ;;  %v2500_v26 = vmul.f32 %v16092_v25, %v16091_v22 }
 0x442   : > { %v4073_v19 = vmul.f32 %v11833_v3, %v4055_v30  ;;  %v4074_v58 = vmul.f32 %v11837_v59, %v4057_v9  ;;  %v4044_v3 = vadd.f32 %v4040_v62, %v4006_v56  ;;  %v2527_v59 = vadd.f32 %v11529_v36, %v2495_v54 }
 0x443   : > { %2714 = vrot.lane.b32.xlu1 %v11944_v0, %s16050_s10  ;;  %v12015_v37 = vsel %vm2536_vm7, %v2528_v14, %v2544_v42  ;;  %vm2538_vm7 = vcmp.ge.f32.partialorder %v2530_v63, 0.0  ;;  %v2532_v4 = vadd.f32 %v16093_v44, %v2500_v26  ;;  %v2533_v50 = vadd.f32 %v16093_v44, %v2501_v33 }
 0x444   : > { %v4077_v7 = vmul.f32 0.018544022, %v4073_v19  ;;  %v4078_v40 = vmul.f32 0.018544022, %v4074_v58  ;;  %v2543_v43 = vmul.f32 0.1, %v2527_v59  ;;  %v12047_v32 = vsel %vm2538_vm7, %v2530_v63, %v2546_v1 }
 0x445   : > { %vm2535_vm11 = vcmp.ge.f32.partialorder %v2527_v59, 0.0  ;;  %vm2539_vm7 = vcmp.ge.f32.partialorder %v2531_v51, 0.0  ;;  %v2548_v55 = vmul.f32 0.1, %v2532_v4  ;;  %v2549_v30 = vmul.f32 0.1, %v2533_v50 }
 0x446   : > { %v11989_v41 = vadd.f32 %v4077_v7, %v4043_v20  ;;  %v11996_v6 = vadd.f32 %v4078_v40, %v4044_v3  ;;  %v12009_v36 = vsel %vm2535_vm11, %v2527_v59, %v2543_v43  ;;  %vm2537_vm11 = vcmp.ge.f32.partialorder %v2529_v10, 0.0 }
 0x447   : > { %2774 = vrot.lane.b32.xlu1 %v11944_v0, %s16051_s3  ;;  %v12053_v60 = vsel %vm2537_vm11, %v2529_v10, %v2545_v23  ;;  %v12085_v39 = vsel %vm2539_vm7, %v2531_v51, %v2547_v18  ;;  %vm2540_vm11 = vcmp.ge.f32.partialorder %v2532_v4, 0.0  ;;  %vm2541_vm7 = vcmp.ge.f32.partialorder %v2533_v50, 0.0 }
 0x448   : > { %16079 = vst [vmem:[#allocation34_spill] sm:$0xff] %v11989_v41  ;;  %4105 = vrot.lane.b32.xlu0 %v11989_v41, %s9755_s8  ;;  %16080 = vst [vmem:[#allocation30_spill] sm:$0xff] %v11996_v6  ;;  %v12091_v35 = vsel %vm2540_vm11, %v2532_v4, %v2548_v55  ;;  %v12134_v52 = vsel %vm2541_vm7, %v2533_v50, %v2549_v30  ;;  %v12247_v1 = vrot.slane %v2582_v48, %v16040_v24 }
 0x449   : > { %vm16128_vm11 = vcmp.lt.s32.totalorder %v10142_v12, 112  ;;  %vm4111_vm7 = vcmp.lt.s32.totalorder %v10142_v12, 76 }
 0x44a   : > { %vm16132_vm12 = vmmov %vm16128_vm11 }
 0x44b   : > { %2826 = vrot.lane.b32.xlu1 %v11944_v0, %s16083_s0  ;;  %vm16140_vm9 = vmmov %vm16132_vm12 }
 0x44c   : > { %4109 = vrot.lane.b32.xlu0 %v11996_v6, %s9755_s8  ;;  %s15881_s8 = smov 68  }
 0x44f   : > { %2878 = vrot.lane.b32.xlu1 %v11944_v0, %s16085_s7 }
 0x450   : > { %4130 = vrot.lane.b32.xlu0 %v11989_v41, %s9756_s28 }
 0x453   : > { %2566 = vrot.lane.b32.xlu1 %v12009_v36, %s16070_s11 }
 0x454   : > { %4134 = vrot.lane.b32.xlu0 %v11996_v6, %s9756_s28  ;;  %s15888_s28 = smov 60  }
 0x457   : > { %2618 = vrot.lane.b32.xlu1 %v12009_v36, %s16076_s29 }
 0x458   : > { %2560 = vrot.lane.b32.xlu0 %v12015_v37, %s16070_s11 }
 0x45b   : > { %2670 = vrot.lane.b32.xlu1 %v12009_v36, %s16077_s9 }
 0x45c   : > { %2612 = vrot.lane.b32.xlu0 %v12015_v37, %s16076_s29 }
 0x45f   : > { %2722 = vrot.lane.b32.xlu1 %v12009_v36, %s16050_s10 }
 0x460   : > { %2664 = vrot.lane.b32.xlu0 %v12015_v37, %s16077_s9 }
 0x463   : > { %2782 = vrot.lane.b32.xlu1 %v12009_v36, %s16051_s3 }
 0x464   : > { %2716 = vrot.lane.b32.xlu0 %v12015_v37, %s16050_s10 }
 0x467   : > { %2834 = vrot.lane.b32.xlu1 %v12009_v36, %s16083_s0 }
 0x468   : > { %2776 = vrot.lane.b32.xlu0 %v12015_v37, %s16051_s3 }
 0x46b   : > { %2886 = vrot.lane.b32.xlu1 %v12009_v36, %s16085_s7 }
 0x46c   : > { %2828 = vrot.lane.b32.xlu0 %v12015_v37, %s16083_s0 }
 0x46f   : > { %2562 = vrot.lane.b32.xlu1 %v12047_v32, %s16070_s11 }
 0x470   : > { %2880 = vrot.lane.b32.xlu0 %v12015_v37, %s16085_s7 }
 0x473   : > { %2614 = vrot.lane.b32.xlu1 %v12047_v32, %s16076_s29 }
 0x474   : > { %2568 = vrot.lane.b32.xlu0 %v12053_v60, %s16070_s11 }
 0x477   : > { %2666 = vrot.lane.b32.xlu1 %v12047_v32, %s16077_s9 }
 0x478   : > { %2620 = vrot.lane.b32.xlu0 %v12053_v60, %s16076_s29 }
 0x47b   : > { %2718 = vrot.lane.b32.xlu1 %v12047_v32, %s16050_s10 }
 0x47c   : > { %2672 = vrot.lane.b32.xlu0 %v12053_v60, %s16077_s9 }
 0x47f   : > { %2778 = vrot.lane.b32.xlu1 %v12047_v32, %s16051_s3 }
 0x480   : > { %2724 = vrot.lane.b32.xlu0 %v12053_v60, %s16050_s10 }
 0x483   : > { %2830 = vrot.lane.b32.xlu1 %v12047_v32, %s16083_s0 }
 0x484   : > { %2784 = vrot.lane.b32.xlu0 %v12053_v60, %s16051_s3 }
 0x487   : > { %2882 = vrot.lane.b32.xlu1 %v12047_v32, %s16085_s7 }
 0x488   : > { %2836 = vrot.lane.b32.xlu0 %v12053_v60, %s16083_s0 }
 0x48b   : > { %2570 = vrot.lane.b32.xlu1 %v12085_v39, %s16070_s11 }
 0x48c   : > { %2888 = vrot.lane.b32.xlu0 %v12053_v60, %s16085_s7 }
 0x48f   : > { %4153 = vrot.lane.b32.xlu1 %v11863_v28, %s15881_s8 }
 0x490   : > { %2564 = vrot.lane.b32.xlu0 %v12091_v35, %s16070_s11 }
 0x493   : > { %2622 = vrot.lane.b32.xlu1 %v12085_v39, %s16076_s29 }
 0x494   : > { %2616 = vrot.lane.b32.xlu0 %v12091_v35, %s16076_s29 }
 0x497   : > { %2674 = vrot.lane.b32.xlu1 %v12085_v39, %s16077_s9 }
 0x498   : > { %2668 = vrot.lane.b32.xlu0 %v12091_v35, %s16077_s9 }
 0x499   : > { %v12105_v38 = vpop.permute.xlu1 %4103 }
 0x49a   : > { %16094 = vst [vmem:[#allocation15_spill] sm:$0xff] %v12105_v38 }
 0x49b   : > { %2726 = vrot.lane.b32.xlu1 %v12085_v39, %s16050_s10 }
 0x49c   : > { %2720 = vrot.lane.b32.xlu0 %v12091_v35, %s16050_s10 }
 0x49d   : > { %v12111_v2 = vpop.permute.xlu1 %4107 }
 0x49e   : > { %16095 = vst [vmem:[#allocation32_spill] sm:$0xff] %v12111_v2  ;;  %v8763_v2 = vld [vmem:[%s15777_s23 + $0x1] ss:$8 sm:$0x3] }
 0x49f   : > { %2786 = vrot.lane.b32.xlu1 %v12085_v39, %s16051_s3 }
 0x4a0   : > { %2780 = vrot.lane.b32.xlu0 %v12091_v35, %s16051_s3 }
 0x4a1   : > { %v12119_v46 = vpop.permute.xlu1 %4128 }
 0x4a2   : > { %16097 = vst [vmem:[#allocation31_spill] sm:$0xff] %v12119_v46 }
 0x4a3   : > { %2838 = vrot.lane.b32.xlu1 %v12085_v39, %s16083_s0 }
 0x4a4   : > { %2832 = vrot.lane.b32.xlu0 %v12091_v35, %s16083_s0 }
 0x4a5   : > { %v12126_v8 = vpop.permute.xlu1 %4132 }
 0x4a6   : > { %16098 = vst [vmem:[#allocation33_spill] sm:$0xff] %v12126_v8 }
 0x4a7   : > { %2890 = vrot.lane.b32.xlu1 %v12085_v39, %s16085_s7 }
 0x4a8   : > { %2884 = vrot.lane.b32.xlu0 %v12091_v35, %s16085_s7 }
 0x4a9   : > { %v12132_v9 = vpop.permute.xlu1 %2558 }
 0x4ab   : > { %4157 = vrot.lane.b32.xlu1 %v11892_v17, %s15881_s8 }
 0x4ac   : > { %2572 = vrot.lane.b32.xlu0 %v12134_v52, %s16070_s11 }
 0x4ad   : > { %v12140_v29 = vpop.permute.xlu1 %2610 }
 0x4af   : > { %4178 = vrot.lane.b32.xlu1 %v11863_v28, %s16041_s26 }
 0x4b0   : > { %4155 = vrot.lane.b32.xlu0 %v11989_v41, %s15881_s8 }
 0x4b1   : > { %v12146_v19 = vpop.permute.xlu1 %2662 }
 0x4b3   : > { %4182 = vrot.lane.b32.xlu1 %v11892_v17, %s16041_s26 }
 0x4b4   : > { %2624 = vrot.lane.b32.xlu0 %v12134_v52, %s16076_s29 }
 0x4b5   : > { %v12152_v58 = vpop.permute.xlu1 %2714 }
 0x4b7   : > { %4202 = vrot.lane.b32.xlu1 %v11863_v28, %s15888_s28 }
 0x4b8   : > { %4159 = vrot.lane.b32.xlu0 %v11996_v6, %s15881_s8  ;;  %s15885_s8 = smov 52  }
 0x4b9   : > { %v12158_v47 = vpop.permute.xlu1 %2774 }
 0x4ba   : > { %v12160_v62 = vpop.permute.xlu0 %4105 }
 0x4bb   : > { %16099 = vst [vmem:[#allocation20_spill] sm:$0xff] %v12160_v62  ;;  %4206 = vrot.lane.b32.xlu1 %v11892_v17, %s15888_s28 }
 0x4bc   : > { %2676 = vrot.lane.b32.xlu0 %v12134_v52, %s16077_s9 }
 0x4bd   : > { %v12166_v20 = vpop.permute.xlu1 %2826 }
 0x4be   : > { %v12168_v7 = vpop.permute.xlu0 %4109 }
 0x4bf   : > { %16100 = vst [vmem:[#allocation23_spill] sm:$0xff] %v12168_v7  ;;  %4227 = vrot.lane.b32.xlu1 %v11863_v28, %s15883_s1 }
 0x4c0   : > { %4180 = vrot.lane.b32.xlu0 %v11989_v41, %s16041_s26 }
 0x4c1   : > { %v12174_v11 = vpop.permute.xlu1 %2878 }
 0x4c2   : > { %16101 = vst [vmem:[#allocation24_spill] sm:$0xff] %v12174_v11  ;;  %v12176_v54 = vpop.permute.xlu0 %4130 }
 0x4c3   : > { %16102 = vst [vmem:[#allocation12_spill] sm:$0xff] %v12176_v54  ;;  %4231 = vrot.lane.b32.xlu1 %v11892_v17, %s15883_s1  ;;  %s15890_s1 = smov 12  }
 0x4c4   : > { %2728 = vrot.lane.b32.xlu0 %v12134_v52, %s16050_s10 }
 0x4c5   : > { %v2567_v56 = vpop.permute.xlu1 %2566 }
 0x4c6   : > { %v12182_v40 = vpop.permute.xlu0 %4134  ;;  %v2574_v10 = vsel %vm895_vm1, %v12132_v9, %v2567_v56  ;;  %v2578_v23 = vsel %vm895_vm1, %v2567_v56, %v12132_v9 }
 0x4c7   : > { %16103 = vst [vmem:[#allocation11_spill] sm:$0xff] %v12182_v40  ;;  %4252 = vrot.lane.b32.xlu1 %v11863_v28, %s15885_s8  ;;  %v2594_v26 = vmul.f32 %v12244_v21, %v2578_v23  ;;  %v2595_v18 = vmul.f32 %v12247_v1, %v2574_v10 }
 0x4c8   : > { %4184 = vrot.lane.b32.xlu0 %v11996_v6, %s16041_s26 }
 0x4c9   : > { %v12188_v3 = vpop.permute.xlu1 %2618 }
 0x4ca   : > { %v2561_v59 = vpop.permute.xlu0 %2560  ;;  %v2626_v62 = vsel %vm958_vm2, %v12140_v29, %v12188_v3 }
 0x4cb   : > { %4256 = vrot.lane.b32.xlu1 %v11892_v17, %s15885_s8  ;;  %s15893_s8 = smov 8  }
 0x4cc   : > { %4204 = vrot.lane.b32.xlu0 %v11989_v41, %s15888_s28 }
 0x4cd   : > { %v12194_v15 = vpop.permute.xlu1 %2670 }
 0x4ce   : > { %v12196_v31 = vpop.permute.xlu0 %2612 }
 0x4cf   : > { %4277 = vrot.lane.b32.xlu1 %v11863_v28, %s15890_s1 }
 0x4d0   : > { %4208 = vrot.lane.b32.xlu0 %v11996_v6, %s15888_s28  ;;  %s16106_s28 = smov 4  }
 0x4d1   : > { %v12202_v57 = vpop.permute.xlu1 %2722 }
 0x4d2   : > { %v12204_v43 = vpop.permute.xlu0 %2664 }
 0x4d3   : > { %4281 = vrot.lane.b32.xlu1 %v11892_v17, %s15890_s1  ;;  %s16110_s1 = smov 52  }
 0x4d4   : > { %2788 = vrot.lane.b32.xlu0 %v12134_v52, %s16051_s3 }
 0x4d5   : > { %v12210_v61 = vpop.permute.xlu1 %2782 }
 0x4d6   : > { %v12212_v14 = vpop.permute.xlu0 %2716 }
 0x4d7   : > { %4302 = vrot.lane.b32.xlu1 %v11863_v28, %s15893_s8 }
 0x4d8   : > { %4229 = vrot.lane.b32.xlu0 %v11989_v41, %s16104_s2 }
 0x4d9   : > { %v12218_v42 = vpop.permute.xlu1 %2834 }
 0x4da   : > { %v12220_v5 = vpop.permute.xlu0 %2776 }
 0x4db   : > { %4306 = vrot.lane.b32.xlu1 %v11892_v17, %s15893_s8  ;;  %s16109_s8 = smov 124  }
 0x4dc   : > { %2840 = vrot.lane.b32.xlu0 %v12134_v52, %s16083_s0 }
 0x4dd   : > { %v12226_v13 = vpop.permute.xlu1 %2886 }
 0x4de   : > { %16105 = vst [vmem:[#allocation26_spill] sm:$0xff] %v12226_v13  ;;  %v12228_v27 = vpop.permute.xlu0 %2828 }
 0x4df   : > { %4327 = vrot.lane.b32.xlu1 %v11863_v28, %s16106_s28 }
 0x4e0   : > { %4233 = vrot.lane.b32.xlu0 %v11996_v6, %s16104_s2  ;;  %s16108_s2 = sld [smem:[#allocation64_spill]] }
 0x4e1   : > { %v12237_v63 = vpop.permute.xlu1 %2562 }
 0x4e2   : > { %v12239_v49 = vpop.permute.xlu0 %2880 }
 0x4e3   : > { %16107 = vst [vmem:[#allocation21_spill] sm:$0xff] %v12239_v49  ;;  %4331 = vrot.lane.b32.xlu1 %v11892_v17, %s16106_s28  ;;  %v2639_v49 = vrot.slane %v8763_v2, %v16039_v45 }
 0x4e4   : > { %2892 = vrot.lane.b32.xlu0 %v12134_v52, %s16085_s7 }
 0x4e5   : > { %v12257_v53 = vpop.permute.xlu1 %2614 }
 0x4e6   : > { %v2569_v34 = vpop.permute.xlu0 %2568  ;;  %v2983_v51 = vld [vmem:[%s16108_s2 + $0x8] sm:$0xff] }
 0x4e7   : > { %v2575_v22 = vsel %vm895_vm1, %v2561_v59, %v2569_v34  ;;  %v2579_v25 = vsel %vm895_vm1, %v2569_v34, %v2561_v59  ;;  %4363 = vrot.lane.b32.xlu1 %v11863_v28, %s16109_s8  ;;  %3130 = vmatprep.mubr.f32.mxu1 %v2983_v51 }
 0x4e8   : > { %v2596_v44 = vmul.f32 %v12244_v21, %v2579_v25  ;;  %v2597_v4 = vmul.f32 %v12247_v1, %v2575_v22  ;;  %4254 = vrot.lane.b32.xlu0 %v11989_v41, %s16110_s1 }
 0x4e9   : > { %v12274_v55 = vpop.permute.xlu1 %2666 }
 0x4ea   : > { %v9046_v16 = vpack.c.bf16 %v2596_v44, %v2594_v26  ;;  %v12276_v33 = vpop.permute.xlu0 %2620  ;;  %v9044_v50 = vpack.c.bf16 %v2597_v4, %v2595_v18 }
 0x4eb   : > { %4367 = vrot.lane.b32.xlu1 %v11892_v17, %s16109_s8  ;;  %v2627_v38 = vsel %vm958_vm2, %v12196_v31, %v12276_v33  ;;  %v2631_v13 = vsel %vm958_vm2, %v12276_v33, %v12196_v31  ;;  %v2630_v31 = vsel %vm958_vm2, %v12188_v3, %v12140_v29 }
 0x4ec   : > { %9045 = vmatprep.subr.bf16.mxu1 %v9044_v50  ;;  %4258 = vrot.lane.b32.xlu0 %v11996_v6, %s16110_s1  ;;  %s15897_s1 = smov 116  }
 0x4ed   : > { %9047 = vmatpush1.bf16.msra.mxu1 %v9046_v16  ;;  %v12282_v30 = vpop.permute.xlu1 %2718 }
 0x4ee   : > { %v12284_v9 = vpop.permute.xlu0 %2672 }
 0x4ef   : > { %4387 = vrot.lane.b32.xlu1 %v11863_v28, %s15899_s4  ;;  %v2679_v29 = vsel %vm1022_vm3, %v12204_v43, %v12284_v9 }
 0x4f0   : > { %4279 = vrot.lane.b32.xlu0 %v11989_v41, %s16111_s5 }
 0x4f1   : > { %v12290_v56 = vpop.permute.xlu1 %2778 }
 0x4f2   : > { %v12292_v59 = vpop.permute.xlu0 %2724 }
 0x4f3   : > { %4391 = vrot.lane.b32.xlu1 %v11892_v17, %s15899_s4  ;;  %s16117_s4 = sld [smem:[#allocation65_spill]] }
 0x4f4   : > { %4283 = vrot.lane.b32.xlu0 %v11996_v6, %s16111_s5  ;;  %s16115_s5 = smov 111  }
 0x4f5   : > { %v12298_v48 = vpop.permute.xlu1 %2830 }
 0x4f6   : > { %v12300_v10 = vpop.permute.xlu0 %2784 }
 0x4f7   : > { %4412 = vrot.lane.b32.xlu1 %v11863_v28, %s15897_s1 }
 0x4f8   : > { %4304 = vrot.lane.b32.xlu0 %v11989_v41, %s16112_s20 }
 0x4f9   : > { %v12306_v23 = vpop.permute.xlu1 %2882  ;;  %v3220_v50 = vld [vmem:[%s16117_s4] sm:$0xff] }
 0x4fa   : > { %16113 = vst [vmem:[#allocation22_spill] sm:$0xff] %v12306_v23  ;;  %v12308_v34 = vpop.permute.xlu0 %2836 }
 0x4fb   : > { %4416 = vrot.lane.b32.xlu1 %v11892_v17, %s15897_s1  ;;  %s16121_s1 = smov 116  }
 0x4fc   : > { %4308 = vrot.lane.b32.xlu0 %v11996_v6, %s16112_s20  ;;  %s16322_s20 = smov 126  }
 0x4fd   : > { %v2571_v51 = vpop.permute.xlu1 %2570 }
 0x4fe   : > { %v12314_v22 = vpop.permute.xlu0 %2888 }
 0x4ff   : > { %16114 = vst [vmem:[#allocation25_spill] sm:$0xff] %v12314_v22  ;;  %2930 = vrot.lane.b32.xlu1 %v11944_v0, %s16115_s5 }
 0x500   : > { %4329 = vrot.lane.b32.xlu0 %v11989_v41, %s16106_s28 }
 0x501   : > { %v12320_v25 = vpop.permute.xlu1 %4153 }
 0x502   : > { %16116 = vst [vmem:[#allocation27_spill] sm:$0xff] %v12320_v25  ;;  %v2565_v26 = vpop.permute.xlu0 %2564  ;;  %v3236_v25 = vld [vmem:[%s16119_s22] sm:$0xff] }
 0x503   : > { %2938 = vrot.lane.b32.xlu1 %v12009_v36, %s16115_s5 }
 0x504   : > { %4333 = vrot.lane.b32.xlu0 %v11996_v6, %s16106_s28 }
 0x505   : > { %v2623_v18 = vpop.permute.xlu1 %2622 }
 0x506   : > { %v2617_v44 = vpop.permute.xlu0 %2616 }
 0x507   : > { %2934 = vrot.lane.b32.xlu1 %v12047_v32, %s16115_s5 }
 0x508   : > { %4365 = vrot.lane.b32.xlu0 %v11989_v41, %s16109_s8 }
 0x509   : > { %v12330_v4 = vpop.permute.xlu1 %2674 }
 0x50a   : > { %v12332_v16 = vpop.permute.xlu0 %2668 }
 0x50b   : > { %2942 = vrot.lane.b32.xlu1 %v12085_v39, %s16115_s5 }
 0x50c   : > { %4369 = vrot.lane.b32.xlu0 %v11996_v6, %s16109_s8 }
 0x50d   : > { %v12341_v17 = vpop.permute.xlu1 %2726 }
 0x50e   : > { %v12343_v28 = vpop.permute.xlu0 %2720 }
 0x50f   : > { %3224 = vperm.xlu1 %9651, %v3220_v50  }
 0x510   : > { %4389 = vrot.lane.b32.xlu0 %v11989_v41, %s16118_s27 }
 0x511   : > { %v12350_v40 = vpop.permute.xlu1 %2786 }
 0x512   : > { %v12352_v54 = vpop.permute.xlu0 %2780 }
 0x513   : > { %3240 = vperm.xlu1 %9651, %v3236_v25  }
 0x514   : > { %4393 = vrot.lane.b32.xlu0 %v11996_v6, %s16118_s27  ;;  %s16320_s27 = smov 32  }
 0x515   : > { %v12356_v8 = vpop.permute.xlu1 %2838 }
 0x516   : > { %v12358_v46 = vpop.permute.xlu0 %2832 }
 0x517   : > { %16120 = vst [vmem:[#allocation28_spill] sm:$0xff] %v12358_v46 }
 0x518   : > { %4414 = vrot.lane.b32.xlu0 %v11989_v41, %s16121_s1  ;;  %v2643_v41 = vrot.slane %v8763_v2, %v16040_v24 }
 0x519   : > { %v12362_v50 = vpop.permute.xlu1 %2890 }
 0x51a   : > { %16122 = vst [vmem:[#allocation18_spill] sm:$0xff] %v12362_v50  ;;  %v12364_v23 = vpop.permute.xlu0 %2884  ;;  %v2580_v50 = vsel %vm895_vm1, %v2571_v51, %v12237_v63 }
 0x51b   : > { %16123 = vst [vmem:[#allocation19_spill] sm:$0xff] %v12364_v23  ;;  %v2576_v23 = vsel %vm895_vm1, %v12237_v63, %v2571_v51  ;;  %v2649_v63 = vmul.f32 %v2643_v41, %v2627_v38  ;;  %v2598_v11 = vmul.f32 %v12244_v21, %v2580_v50  ;;  %v2647_v38 = vmul.f32 %v2643_v41, %v2626_v62 }
 0x51c   : > { %4418 = vrot.lane.b32.xlu0 %v11996_v6, %s16121_s1  ;;  %v2628_v62 = vsel %vm958_vm2, %v12257_v53, %v2623_v18  ;;  %s9767_s1 = smov 98  }
 0x51d   : > { %v12371_v25 = vpop.permute.xlu1 %4157  ;;  %v9052_v2 = vpack.c.bf16 %v2649_v63, %v2647_v38 }
 0x51e   : > { %16124 = vst [vmem:[#allocation29_spill] sm:$0xff] %v12371_v25  ;;  %v2573_v7 = vpop.permute.xlu0 %2572 }
 0x51f   : > { %v2577_v6 = vsel %vm895_vm1, %v2565_v26, %v2573_v7  ;;  %v2581_v25 = vsel %vm895_vm1, %v2573_v7, %v2565_v26  ;;  %v2599_v7 = vmul.f32 %v12247_v1, %v2576_v23  ;;  %v2648_v23 = vmul.f32 %v2639_v49, %v2631_v13 }
 0x520   : > { %2932 = vrot.lane.b32.xlu0 %v12015_v37, %s16115_s5  ;;  %v2600_v26 = vmul.f32 %v12244_v21, %v2581_v25  ;;  %v2601_v46 = vmul.f32 %v12247_v1, %v2577_v6  ;;  %v8764_v6 = vld [vmem:[%s15777_s23 + $0x2] ss:$8 sm:$0x3]  ;;  %v2646_v1 = vmul.f32 %v2639_v49, %v2630_v31  ;;  %v2678_v25 = vsel %vm1022_vm3, %v12146_v19, %v12194_v15 }
 0x521   : > { %v12398_v51 = vpop.permute.xlu1 %4178  ;;  %v2695_v13 = vrot.slane %v8764_v6, %v16040_v24  ;;  %v2691_v38 = vrot.slane %v8764_v6, %v16039_v45 }
 0x522   : > { %16125 = vst [vmem:[#allocation37_spill] sm:$0xff] %v12398_v51  ;;  %v12404_v22 = vpop.permute.xlu0 %4155  ;;  %v9050_v33 = vpack.c.bf16 %v2600_v26, %v2598_v11  ;;  %v9048_v50 = vpack.c.bf16 %v2601_v46, %v2599_v7  ;;  %v2632_v46 = vsel %vm958_vm2, %v2623_v18, %v12257_v53  ;;  %v9054_v63 = vpack.c.bf16 %v2648_v23, %v2646_v1 }
 0x523   : > { %v2683_v53 = vsel %vm1022_vm3, %v12284_v9, %v12204_v43  ;;  %v2650_v18 = vmul.f32 %v2639_v49, %v2632_v46  ;;  %v2682_v23 = vsel %vm1022_vm3, %v12194_v15, %v12146_v19  ;;  %v2699_v43 = vmul.f32 %v2695_v13, %v2678_v25  ;;  %v3221_v46 = vld [vmem:[%s16117_s4 + $0x8] sm:$0xff]  ;;  %s9765_s4 = smov 34  }
 0x524   : > { %2940 = vrot.lane.b32.xlu0 %v12053_v60, %s16115_s5  ;;  %9049 = vmatprep.subr.bf16.mxu1 %v9048_v50  ;;  %v2651_v50 = vmul.f32 %v2643_v41, %v2628_v62  ;;  %v2700_v9 = vmul.f32 %v2691_v38, %v2683_v53  ;;  %v2698_v1 = vmul.f32 %v2691_v38, %v2682_v23 }
 0x525   : > { %v12413_v51 = vpop.permute.xlu1 %4182  ;;  %9051 = vmatpush1.bf16.msra.mxu1 %v9050_v33  ;;  %v2701_v33 = vmul.f32 %v2695_v13, %v2679_v29  ;;  %v2680_v19 = vsel %vm1022_vm3, %v12274_v55, %v12330_v4  ;;  %v2684_v15 = vsel %vm1022_vm3, %v12330_v4, %v12274_v55 }
 0x526   : > { %v2625_v21 = vpop.permute.xlu0 %2624  ;;  %9053 = vmatprep.subr.bf16.mxu1 %v9052_v2  ;;  %v9062_v55 = vpack.c.bf16 %v2700_v9, %v2698_v1  ;;  %v2702_v53 = vmul.f32 %v2691_v38, %v2684_v15 }
 0x527   : > { %v2629_v11 = vsel %vm958_vm2, %v2617_v44, %v2625_v21  ;;  %v2633_v3 = vsel %vm958_vm2, %v2625_v21, %v2617_v44  ;;  %v9060_v29 = vpack.c.bf16 %v2701_v33, %v2699_v43 }
 0x528   : > { %2936 = vrot.lane.b32.xlu0 %v12091_v35, %s16115_s5  ;;  %v2652_v44 = vmul.f32 %v2639_v49, %v2633_v3  ;;  %v2653_v26 = vmul.f32 %v2643_v41, %v2629_v11  ;;  %v8765_v49 = vld [vmem:[%s15777_s23 + $0x3] ss:$8 sm:$0x3]  ;;  %v2731_v11 = vsel %vm1086_vm4, %v12212_v14, %v12292_v59  ;;  %v2730_v3 = vsel %vm1086_vm4, %v12152_v58, %v12202_v57 }
 0x529   : > { %v12439_v7 = vpop.permute.xlu1 %4202  ;;  %9055 = vmatpush1.bf16.msra.mxu1 %v9054_v63  ;;  %v2747_v62 = vrot.slane %v8765_v49, %v16040_v24 }
 0x52a   : > { %v12445_v31 = vpop.permute.xlu0 %4159  ;;  %v9058_v2 = vpack.c.bf16 %v2652_v44, %v2650_v18  ;;  %v9056_v21 = vpack.c.bf16 %v2653_v26, %v2651_v50  ;;  %v2703_v18 = vmul.f32 %v2695_v13, %v2680_v19  ;;  %v2735_v50 = vsel %vm1086_vm4, %v12292_v59, %v12212_v14 }
 0x52b   : > { %v2753_v23 = vmul.f32 %v2747_v62, %v2731_v11  ;;  %v2736_v59 = vsel %vm1086_vm4, %v12341_v17, %v12282_v30  ;;  %v2732_v19 = vsel %vm1086_vm4, %v12282_v30, %v12341_v17 }
 0x52c   : > { %2944 = vrot.lane.b32.xlu0 %v12134_v52, %s16115_s5  ;;  %9057 = vmatprep.subr.bf16.mxu1 %v9056_v21 }
 0x52d   : > { %v12457_v6 = vpop.permute.xlu1 %4206  ;;  %9059 = vmatpush1.bf16.msra.mxu1 %v9058_v2  ;;  %v3237_v2 = vld [vmem:[%s16119_s22 + $0x8] sm:$0xff]  ;;  %s9768_s22 = smov 94  }
 0x52e   : > { %v2677_v41 = vpop.permute.xlu0 %2676  ;;  %9061 = vmatprep.subr.bf16.mxu1 %v9060_v29 }
 0x52f   : > { %v2681_v4 = vsel %vm1022_vm3, %v12332_v16, %v2677_v41  ;;  %v2685_v25 = vsel %vm1022_vm3, %v2677_v41, %v12332_v16  ;;  %v2743_v16 = vrot.slane %v8765_v49, %v16039_v45 }
 0x530   : > { %v2704_v44 = vmul.f32 %v2691_v38, %v2685_v25  ;;  %v2705_v26 = vmul.f32 %v2695_v13, %v2681_v4  ;;  %3229 = vperm.xlu0 %9650, %v3221_v46   ;;  %v2734_v13 = vsel %vm1086_vm4, %v12202_v57, %v12152_v58  ;;  %v2751_v38 = vmul.f32 %v2747_v62, %v2730_v3 }
 0x531   : > { %v12485_v63 = vpop.permute.xlu1 %4227  ;;  %9063 = vmatpush1.bf16.msra.mxu1 %v9062_v55  ;;  %v2752_v41 = vmul.f32 %v2743_v16, %v2735_v50  ;;  %v2750_v1 = vmul.f32 %v2743_v16, %v2734_v13  ;;  %v2754_v46 = vmul.f32 %v2743_v16, %v2736_v59  ;;  %v2755_v4 = vmul.f32 %v2747_v62, %v2732_v19 }
 0x532   : > { %v12487_v33 = vpop.permute.xlu0 %4180  ;;  %v9066_v43 = vpack.c.bf16 %v2704_v44, %v2702_v53  ;;  %v9064_v9 = vpack.c.bf16 %v2705_v26, %v2703_v18  ;;  %v9068_v49 = vpack.c.bf16 %v2753_v23, %v2751_v38  ;;  %v8766_v53 = vld [vmem:[%s15777_s23 + $0x5] ss:$8 sm:$0x3]  ;;  %v9076_v18 = vpack.c.bf16 %v12053_v60, %v12009_v36 }
 0x533   : > { %v9070_v29 = vpack.c.bf16 %v2752_v41, %v2750_v1  ;;  %v2807_v44 = vrot.slane %v8766_v53, %v16040_v24  ;;  %v2794_v50 = vsel %vm1158_vm5, %v12210_v61, %v12158_v47  ;;  %v9078_v23 = vpack.c.bf16 %v12015_v37, %v11944_v0  ;;  %v8767_v37 = vld [vmem:[%s15777_s23 + $0x6] ss:$8 sm:$0x3] }
 0x534   : > { %3245 = vperm.xlu0 %9650, %v3237_v2   ;;  %9065 = vmatprep.subr.bf16.mxu1 %v9064_v9  ;;  %v2791_v60 = vsel %vm1158_vm5, %v12220_v5, %v12300_v10  ;;  %v2790_v9 = vsel %vm1158_vm5, %v12158_v47, %v12210_v61  ;;  %v2792_v47 = vsel %vm1158_vm5, %v12290_v56, %v12350_v40 }
 0x535   : > { %v12501_v21 = vpop.permute.xlu1 %4231  ;;  %9067 = vmatpush1.bf16.msra.mxu1 %v9066_v43  ;;  %v2803_v43 = vrot.slane %v8766_v53, %v16039_v45  ;;  %v2811_v0 = vmul.f32 %v2807_v44, %v2794_v50  ;;  %v2843_v1 = vsel %vm1222_vm6, %v12228_v27, %v12308_v34  ;;  %v2848_v50 = vsel %vm1222_vm6, %v12356_v8, %v12298_v48 }
 0x536   : > { %v2729_v14 = vpop.permute.xlu0 %2728  ;;  %9069 = vmatprep.subr.bf16.mxu1 %v9068_v49  ;;  %v2846_v49 = vsel %vm1222_vm6, %v12218_v42, %v12166_v20 }
 0x537   : > { %v2733_v58 = vsel %vm1086_vm4, %v12343_v28, %v2729_v14  ;;  %v2737_v57 = vsel %vm1086_vm4, %v2729_v14, %v12343_v28  ;;  %v2812_v13 = vmul.f32 %v2803_v43, %v2791_v60  ;;  %v2810_v14 = vmul.f32 %v2803_v43, %v2790_v9  ;;  %v16131_v9 = vld [vmem:[#allocation26_spill] sm:$0xff] }
 0x538   : > { %v2756_v11 = vmul.f32 %v2743_v16, %v2737_v57  ;;  %v2757_v3 = vmul.f32 %v2747_v62, %v2733_v58  ;;  %v2795_v62 = vsel %vm1158_vm5, %v12300_v10, %v12220_v5  ;;  %v9080_v16 = vpack.c.bf16 %v12134_v52, %v12085_v39 }
 0x539   : > { %v12517_v15 = vpop.permute.xlu1 %4252  ;;  %9071 = vmatpush1.bf16.msra.mxu1 %v9070_v29  ;;  %v2813_v2 = vmul.f32 %v2807_v44, %v2795_v62  ;;  %v2796_v39 = vsel %vm1158_vm5, %v12350_v40, %v12290_v56  ;;  %v9082_v5 = vpack.c.bf16 %v12091_v35, %v12047_v32  ;;  %v2847_v32 = vsel %vm1222_vm6, %v12308_v34, %v12228_v27  ;;  %v8768_v27 = vld [vmem:[%s15777_s23 + $0x7] ss:$8 sm:$0x3] }
 0x53a   : > { %v12519_v55 = vpop.permute.xlu0 %4184  ;;  %v9074_v17 = vpack.c.bf16 %v2756_v11, %v2754_v46  ;;  %v9072_v30 = vpack.c.bf16 %v2757_v3, %v2755_v4  ;;  %v2859_v35 = vrot.slane %v8767_v37, %v16040_v24  ;;  %v2815_v59 = vmul.f32 %v2807_v44, %v2796_v39 }
 0x53b   : > { %v9084_v41 = vpack.c.bf16 %v2813_v2, %v2811_v0  ;;  %v2814_v19 = vmul.f32 %v2803_v43, %v2792_v47  ;;  %v2855_v57 = vrot.slane %v8767_v37, %v16039_v45  ;;  %v2842_v11 = vsel %vm1222_vm6, %v12166_v20, %v12218_v42  ;;  %v16126_v20 = vld [vmem:[#allocation21_spill] sm:$0xff]  ;;  %v16133_v47 = vld [vmem:[#allocation20_spill] sm:$0xff] }
 0x53c   : > { %9073 = vmatprep.subr.bf16.mxu1 %v9072_v30  ;;  %v2865_v29 = vmul.f32 %v2859_v35, %v2847_v32  ;;  %v16127_v42 = vld [vmem:[#allocation25_spill] sm:$0xff]  ;;  %v2867_v32 = vmul.f32 %v2859_v35, %v2848_v50 }
 0x53d   : > { %v12521_v25 = vpop.permute.xlu1 %4256  ;;  %9075 = vmatpush1.bf16.msra.mxu1 %v9074_v17  ;;  %v2863_v17 = vmul.f32 %v2859_v35, %v2846_v49  ;;  %v2864_v30 = vmul.f32 %v2855_v57, %v2843_v1  ;;  %v2862_v53 = vmul.f32 %v2855_v57, %v2842_v11  ;;  %v16136_v49 = vld [vmem:[#allocation32_spill] sm:$0xff] }
 0x53e   : > { %v12526_v28 = vpop.permute.xlu0 %4204  ;;  %9077 = vmatprep.subr.bf16.mxu1 %v9076_v18  ;;  %v2844_v18 = vsel %vm1222_vm6, %v12298_v48, %v12356_v8  ;;  %v2895_v8 = vsel %vm16132_vm12, %v16126_v20, %v16127_v42 }
 0x53f   : > { %v9092_v62 = vpack.c.bf16 %v2865_v29, %v2863_v17  ;;  %v9094_v37 = vpack.c.bf16 %v2864_v30, %v2862_v53  ;;  %v2866_v48 = vmul.f32 %v2855_v57, %v2844_v18  ;;  %v16137_v29 = vld [vmem:[#allocation17_spill] sm:$0xff]  ;;  %v16138_v17 = vld [vmem:[#allocation18_spill] sm:$0xff] }
 0x540   : > { %v16139_v30 = vld [vmem:[#allocation22_spill] sm:$0xff] }
 0x541   : > { %v12535_v26 = vpop.permute.xlu1 %4277  ;;  %9079 = vmatpush1.bf16.msra.mxu1 %v9078_v23  ;;  %v16129_v23 = vld [vmem:[#allocation28_spill] sm:$0xff] }
 0x542   : > { %v12543_v36 = vpop.permute.xlu0 %4208  ;;  %9081 = vmatprep.subr.bf16.mxu1 %v9080_v16  ;;  %v2911_v16 = vrot.slane %v8768_v27, %v16040_v24 }
 0x545   : > { %v12563_v52 = vpop.permute.xlu1 %4281  ;;  %9083 = vmatpush1.bf16.msra.mxu1 %v9082_v5 }
 0x546   : > { %v2789_v10 = vpop.permute.xlu0 %2788  ;;  %9085 = vmatprep.subr.bf16.mxu1 %v9084_v41  ;;  %v2907_v41 = vrot.slane %v8768_v27, %v16039_v45  ;;  %v2896_v27 = vsel %vm16132_vm12, %v16139_v30, %v16138_v17 }
 0x547   : > { %v2793_v61 = vsel %vm1158_vm5, %v12352_v54, %v2789_v10  ;;  %v2797_v38 = vsel %vm1158_vm5, %v2789_v10, %v12352_v54  ;;  %v9086_v54 = vpack.c.bf16 %v2812_v13, %v2810_v14 }
 0x548   : > { %v2816_v40 = vmul.f32 %v2803_v43, %v2793_v61  ;;  %v2817_v56 = vmul.f32 %v2807_v44, %v2797_v38  ;;  %v2899_v44 = vsel %vm16128_vm11, %v16127_v42, %v16126_v20  ;;  %v16130_v43 = vld [vmem:[#allocation24_spill] sm:$0xff]  ;;  %v16134_v61 = vld [vmem:[#allocation23_spill] sm:$0xff] }
 0x549   : > { %v12597_v4 = vpop.permute.xlu1 %4302  ;;  %9087 = vmatpush1.bf16.msra.mxu1 %v9086_v54  ;;  %v2898_v0 = vsel %vm16128_vm11, %v16131_v9, %v16130_v43  ;;  %v12638_v38 = vsel %vm4111_vm7, %v16134_v61, %v16133_v47  ;;  %v2917_v14 = vmul.f32 %v2911_v16, %v2899_v44  ;;  %vm4136_vm11 = vcmp.lt.s32.totalorder %v10142_v12, 72  ;;  %v16142_v42 = vld [vmem:[#allocation31_spill] sm:$0xff]  ;;  %v16143_v44 = vld [vmem:[#allocation33_spill] sm:$0xff] }
 0x54a   : > { %v12590_v58 = vpop.permute.xlu0 %4229  ;;  %v9088_v46 = vpack.c.bf16 %v2817_v56, %v2815_v59  ;;  %v9090_v3 = vpack.c.bf16 %v2816_v40, %v2814_v19  ;;  %v2894_v59 = vsel %vm16132_vm12, %v16130_v43, %v16131_v9  ;;  %v16135_v56 = vld [vmem:[#allocation15_spill] sm:$0xff]  ;;  %v2915_v1 = vmul.f32 %v2911_v16, %v2898_v0  ;;  %v16146_v9 = vld [vmem:[#allocation14_spill] sm:$0xff] }
 0x54b   : > { %v12650_v54 = vsel %vm4111_vm7, %v16136_v49, %v16135_v56  ;;  %v2916_v19 = vmul.f32 %v2907_v41, %v2895_v8  ;;  %v12672_v18 = vsel %vm4111_vm7, %v16135_v56, %v16136_v49  ;;  %v12680_v50 = vsel %vm4136_vm11, %v16143_v44, %v16142_v42  ;;  %v16147_v8 = vld [vmem:[#allocation19_spill] sm:$0xff]  ;;  %v16149_v49 = vld [vmem:[#allocation13_spill] sm:$0xff] }
 0x54c   : > { %9089 = vmatprep.subr.bf16.mxu1 %v9088_v46  ;;  %v4119_v46 = vsub.f32 %v16137_v29, %v12638_v38  ;;  %v9100_v53 = vpack.c.bf16 %v2917_v14, %v2915_v1  ;;  %vm4161_vm12 = vcmp.lt.s32.totalorder %v10142_v12, 68  ;;  %v4116_v1 = vsub.f32 %v16149_v49, %v12672_v18 }
 0x54d   : > { %9091 = vmatpush1.bf16.msra.mxu1 %v9090_v3  ;;  %v12630_v13 = vpop.permute.xlu1 %4306  ;;  %v2914_v3 = vmul.f32 %v2907_v41, %v2894_v59 }
 0x54e   : > { %v2841_v34 = vpop.permute.xlu0 %2840  ;;  %9093 = vmatprep.subr.bf16.mxu1 %v9092_v62  ;;  %v16141_v62 = vld [vmem:[#allocation16_spill] sm:$0xff]  ;;  %v4123_v59 = vmul.f32 %v4119_v46, %v4119_v46  ;;  %v12721_v46 = vsel %vm4136_vm11, %v16142_v42, %v16143_v44  ;;  %v12741_v44 = vsel %vm4161_vm12, %v12404_v22, %v12445_v31 }
 0x54f   : > { %v2845_v60 = vsel %vm1222_vm6, %v16129_v23, %v2841_v34  ;;  %v2849_v2 = vsel %vm1222_vm6, %v2841_v34, %v16129_v23  ;;  %v2900_v34 = vsel %vm16140_vm9, %v16138_v17, %v16139_v30  ;;  %v4117_v20 = vsub.f32 %v16141_v62, %v12650_v54  ;;  %v16144_v23 = vld [vmem:[#allocation12_spill] sm:$0xff]  ;;  %v16150_v30 = vld [vmem:[#allocation27_spill] sm:$0xff] }
 0x550   : > { %v2868_v39 = vmul.f32 %v2855_v57, %v2845_v60  ;;  %v2869_v5 = vmul.f32 %v2859_v35, %v2849_v2  ;;  %v12656_v35 = vsel %vm4111_vm7, %v16133_v47, %v16134_v61  ;;  %v16145_v60 = vld [vmem:[#allocation11_spill] sm:$0xff]  ;;  %vm16148_vm7 = vmmov %vm16140_vm9  ;;  %v2919_v47 = vmul.f32 %v2911_v16, %v2900_v34 }
 0x551   : > { %9095 = vmatpush1.bf16.msra.mxu1 %v9094_v37  ;;  %v12686_v2 = vsel %vm4136_vm11, %v16145_v60, %v16144_v23  ;;  %v12688_v43 = vpop.permute.xlu1 %4327  ;;  %v4118_v0 = vsub.f32 %v16146_v9, %v12656_v35  ;;  %v9102_v37 = vpack.c.bf16 %v2916_v19, %v2914_v3 }
 0x552   : > { %v12632_v10 = vpop.permute.xlu0 %4233  ;;  %v9098_v40 = vpack.c.bf16 %v2868_v39, %v2866_v48  ;;  %v9096_v57 = vpack.c.bf16 %v2869_v5, %v2867_v32  ;;  %v2918_v5 = vmul.f32 %v2907_v41, %v2896_v27  ;;  %v4144_v56 = vsub.f32 %v16137_v29, %v12686_v2  ;;  %v16151_v27 = vld [vmem:[#allocation29_spill] sm:$0xff] }
 0x553   : > { %v4122_v3 = vmul.f32 %v4118_v0, %v4118_v0  ;;  %v12731_v34 = vsel %vm4161_vm12, %v16151_v27, %v16150_v30  ;;  %v4120_v0 = vmul.f32 %v4116_v1, %v4116_v1  ;;  %v2986_v1 = vld [vmem:[%s16108_s2 + $0x20] sm:$0xff] }
 0x554   : > { %9097 = vmatprep.subr.bf16.mxu1 %v9096_v57  ;;  %v4121_v57 = vmul.f32 %v4117_v20, %v4117_v20  ;;  %v4148_v42 = vmul.f32 %v4144_v56, %v4144_v56 }
 0x555   : > { %9099 = vmatpush1.bf16.msra.mxu1 %v9098_v40  ;;  %v12704_v40 = vsel %vm4136_vm11, %v16144_v23, %v16145_v60  ;;  %vm16153_vm11 = vcmp.lt.s32.totalorder %v10142_v12, 64 }
 0x556   : > { %v2893_v11 = vpop.permute.xlu0 %2892  ;;  %9101 = vmatprep.subr.bf16.mxu1 %v9100_v53  ;;  %v4143_v17 = vsub.f32 %v16146_v9, %v12704_v40  ;;  %v12733_v53 = vpop.permute.xlu1 %4331  ;;  %v12745_v60 = vpack.c.bf16 %v4123_v59, %v4121_v57  ;;  %v4168_v59 = vsub.f32 %v16146_v9, %v12741_v44 }
 0x557   : > { %v2897_v48 = vsel %vm16140_vm9, %v16147_v8, %v2893_v11  ;;  %v2901_v39 = vsel %vm16148_vm7, %v2893_v11, %v16147_v8  ;;  %v4142_v11 = vsub.f32 %v16141_v62, %v12680_v50  ;;  %v12753_v8 = vsel %vm16153_vm11, %v12519_v55, %v12487_v33  ;;  %vm16156_vm7 = vmmov %vm16153_vm11 }
 0x558   : > { %v2920_v61 = vmul.f32 %v2907_v41, %v2897_v48  ;;  %v2921_v14 = vmul.f32 %v2911_v16, %v2901_v39  ;;  %v12715_v16 = vsel %vm4161_vm12, %v12445_v31, %v12404_v22  ;;  %16152 = vst [vmem:[#allocation21_spill] sm:$0xff] %v12745_v60  ;;  %v2982_v22 = vld [vmem:[%s16108_s2] sm:$0xff]  ;;  %v12762_v48 = vsel %vm4161_vm12, %v16150_v30, %v16151_v27  ;;  %vm16157_vm11 = vmmov %vm16156_vm7 }
 0x559   : > { %9103 = vmatpush1.bf16.msra.mxu1 %v9102_v37  ;;  %v4169_v23 = vsub.f32 %v16137_v29, %v12715_v16  ;;  %v4141_v37 = vsub.f32 %v16149_v49, %v12721_v46  ;;  %v4146_v31 = vmul.f32 %v4142_v11, %v4142_v11  ;;  %v4167_v39 = vsub.f32 %v16141_v62, %v12731_v34 }
 0x55a   : > { %v12698_v32 = vpop.permute.xlu0 %4254  ;;  %v9106_v41 = vpack.c.bf16 %v2920_v61, %v2918_v5  ;;  %v9104_v19 = vpack.c.bf16 %v2921_v14, %v2919_v47  ;;  %vm4210_vm9 = vcmp.lt.s32.totalorder %v10142_v12, 60  ;;  %v12768_v5 = vpack.c.bf16 %v4122_v3, %v4120_v0  ;;  %v16155_v61 = vld [vmem:[#allocation37_spill] sm:$0xff]  ;;  %v12801_v27 = vpop.permute.xlu1 %4363  ;;  %v4690_v0 = vld [vmem:[%s16159_s25 + $0x8] sm:$0xff] }
 0x55b   : > { %v4147_v47 = vmul.f32 %v4143_v17, %v4143_v17  ;;  %v12774_v14 = vsel %vm16156_vm7, %v12413_v51, %v16155_v61  ;;  %v4193_v57 = vsub.f32 %v16137_v29, %v12753_v8  ;;  %v12791_v11 = vpack.c.bf16 %v4148_v42, %v4146_v31 }
 0x55c   : > { %9105 = vmatprep.subr.bf16.mxu1 %v9104_v19  ;;  %16154 = vst [vmem:[#allocation25_spill] sm:$0xff] %v12768_v5  ;;  %v12787_v19 = vsel %vm16157_vm11, %v12487_v33, %v12519_v55  ;;  %v4145_v3 = vmul.f32 %v4141_v37, %v4141_v37  ;;  %v4166_v17 = vsub.f32 %v16149_v49, %v12762_v48  ;;  %v2985_v33 = vld [vmem:[%s16108_s2 + $0x18] sm:$0xff]  ;;  %vm4235_vm11 = vcmp.lt.s32.totalorder %v10142_v12, 56 }
 0x55d   : > { %9107 = vmatpush1.bf16.msra.mxu1 %v9106_v41  ;;  %v4173_v41 = vmul.f32 %v4169_v23, %v4169_v23  ;;  %16158 = vst [vmem:[#allocation28_spill] sm:$0xff] %v12791_v11  ;;  %v12799_v30 = vsel %vm4210_vm9, %v12543_v36, %v12526_v28  ;;  %v4171_v55 = vmul.f32 %v4167_v39, %v4167_v39 }
 0x55e   : > { %v12735_v20 = vpop.permute.xlu0 %4258  ;;  %9117 = vmatprep.subr.bf16.mxu1 %v12745_v60  ;;  %v12811_v42 = vsel %vm16156_vm7, %v16155_v61, %v12413_v51  ;;  %v4191_v23 = vsub.f32 %v16141_v62, %v12774_v14  ;;  %v12820_v37 = vpack.c.bf16 %v4147_v47, %v4145_v3  ;;  %v12826_v51 = vsel %vm4210_vm9, %v12457_v6, %v12439_v7 }
 0x55f   : > { %v4192_v31 = vsub.f32 %v16146_v9, %v12787_v19  ;;  %v4197_v61 = vmul.f32 %v4193_v57, %v4193_v57  ;;  %v4218_v47 = vsub.f32 %v16137_v29, %v12799_v30  ;;  %v4170_v3 = vmul.f32 %v4166_v17, %v4166_v17 }
 0x560   : > { %3131 = vmatmul.mubr.f32.vlgmr.msra.gmra.mrb[4].mxu1 %v2982_v22  ;;  %16160 = vst [vmem:[#allocation24_spill] sm:$0xff] %v12820_v37  ;;  %v4172_v22 = vmul.f32 %v4168_v59, %v4168_v59  ;;  %v12838_v59 = vpack.c.bf16 %v4173_v41, %v4171_v55  ;;  %v12846_v57 = vsel %vm4235_vm11, %v12632_v10, %v12590_v58  ;;  %vm4260_vm7 = vcmp.lt.s32.totalorder %v10142_v12, 52 }
 0x561   : > { %9119 = vmatpush1.bf16.msra.mxu1 %v12768_v5  ;;  %3136 = vmatprep.mubr.f32.mxu1 %v2986_v1  ;;  %v12834_v1 = vsel %vm4210_vm9, %v12526_v28, %v12543_v36  ;;  %v4195_v28 = vmul.f32 %v4191_v23, %v4191_v23  ;;  %v12853_v36 = vsel %vm4210_vm9, %v12439_v7, %v12457_v6  ;;  %v12869_v6 = vpop.permute.xlu1 %4367 }
 0x562   : > { %v12778_v56 = vpop.permute.xlu0 %4279  ;;  %9121 = vmatprep.subr.bf16.mxu1 %v12791_v11  ;;  %16161 = vst [vmem:[#allocation26_spill] sm:$0xff] %v12838_v59  ;;  %v4190_v11 = vsub.f32 %v16149_v49, %v12811_v42  ;;  %v4216_v41 = vsub.f32 %v16141_v62, %v12826_v51  ;;  %v12859_v17 = vpack.c.bf16 %v4172_v22, %v4170_v3 }
 0x563   : > { %v4196_v55 = vmul.f32 %v4192_v31, %v4192_v31  ;;  %v4217_v7 = vsub.f32 %v16146_v9, %v12834_v1  ;;  %v12875_v22 = vsel %vm4235_vm11, %v12590_v58, %v12632_v10  ;;  %v4243_v3 = vsub.f32 %v16137_v29, %v12846_v57 }
 0x564   : > { %3137 = vmatmul.mubr.f32.gmra.mrb[6].mxu1 %v2985_v33  ;;  %16162 = vst [vmem:[#allocation20_spill] sm:$0xff] %v12859_v17  ;;  %v12865_v33 = vsel %vm4235_vm11, %v12501_v21, %v12485_v63  ;;  %v4215_v31 = vsub.f32 %v16149_v49, %v12853_v36  ;;  %v4220_v5 = vmul.f32 %v4216_v41, %v4216_v41 }
 0x565   : > { %9123 = vmatpush1.bf16.msra.mxu1 %v12820_v37  ;;  %5019 = vmatprep.mubr.f32.mxu1 %v4690_v0  ;;  %v4222_v0 = vmul.f32 %v4218_v47, %v4218_v47  ;;  %v4194_v37 = vmul.f32 %v4190_v11, %v4190_v11  ;;  %v12887_v47 = vsel %vm4260_vm7, %v12735_v20, %v12698_v32  ;;  %v12922_v60 = vpop.permute.xlu1 %4387 }
 0x566   : > { %v4284_v39 = vpop.permute.xlu0 %4283  ;;  %9125 = vmatprep.subr.bf16.mxu1 %v12838_v59  ;;  %v12879_v59 = vpack.c.bf16 %v4197_v61, %v4195_v28  ;;  %16164 = vst [vmem:[#allocation15_spill] sm:$0xff] %v12887_v47  ;;  %v12894_v58 = vsel %vm4235_vm11, %v12485_v63, %v12501_v21  ;;  %v4241_v10 = vsub.f32 %v16141_v62, %v12865_v33  ;;  %vm4310_vm11 = vcmp.lt.s32.totalorder %v10142_v12, 8 }
 0x567   : > { %v12900_v11 = vpack.c.bf16 %v4196_v55, %v4194_v37  ;;  %v12906_v61 = vsel %vm4260_vm7, %v12521_v25, %v12517_v15  ;;  %v4221_v28 = vmul.f32 %v4217_v7, %v4217_v7  ;;  %v4242_v63 = vsub.f32 %v16146_v9, %v12875_v22 }
 0x568   : > { %16163 = vst [vmem:[#allocation23_spill] sm:$0xff] %v12879_v59  ;;  %16166 = vst [vmem:[#allocation17_spill] sm:$0xff] %v12906_v61  ;;  %v4247_v41 = vmul.f32 %v4243_v3, %v4243_v3  ;;  %v4268_v37 = vsub.f32 %v16137_v29, %v12887_v47  ;;  %v12918_v55 = vpack.c.bf16 %v4222_v0, %v4220_v5 }
 0x569   : > { %9127 = vmatpush1.bf16.msra.mxu1 %v12859_v17  ;;  %16165 = vst [vmem:[#allocation32_spill] sm:$0xff] %v12900_v11  ;;  %v12914_v17 = vsel %vm4260_vm7, %v12698_v32, %v12735_v20  ;;  %v4240_v7 = vsub.f32 %v16149_v49, %v12894_v58  ;;  %v12927_v3 = vsel %vm4285_vm13, %v4284_v39, %v12778_v56 }
 0x56a   : > { %v4305_v23 = vpop.permute.xlu0 %4304  ;;  %9129 = vmatprep.subr.bf16.mxu1 %v12879_v59  ;;  %16167 = vst [vmem:[#allocation18_spill] sm:$0xff] %v12918_v55  ;;  %v4219_v59 = vmul.f32 %v4215_v31, %v4215_v31  ;;  %16168 = vst [vmem:[#allocation22_spill] sm:$0xff] %v12927_v3  ;;  %v4245_v32 = vmul.f32 %v4241_v10, %v4241_v10  ;;  %v12934_v20 = vsel %vm4260_vm7, %v12517_v15, %v12521_v25 }
 0x56b   : > { %16169 = vst [vmem:[#allocation16_spill] sm:$0xff] %v12934_v20  ;;  %v4266_v5 = vsub.f32 %v16141_v62, %v12906_v61  ;;  %v12946_v31 = vsel %vm4285_vm13, %v12563_v52, %v12535_v26  ;;  %v4246_v10 = vmul.f32 %v4242_v63, %v4242_v63  ;;  %v4267_v15 = vsub.f32 %v16146_v9, %v12914_v17 }
 0x56c   : > { %v12940_v0 = vpack.c.bf16 %v4221_v28, %v4219_v59  ;;  %16171 = vst [vmem:[#allocation33_spill] sm:$0xff] %v12946_v31  ;;  %v12953_v61 = vsel %vm4285_vm13, %v12778_v56, %v4284_v39  ;;  %v4293_v59 = vsub.f32 %v16137_v29, %v12927_v3  ;;  %v12957_v28 = vpack.c.bf16 %v4247_v41, %v4245_v32 }
 0x56d   : > { %9131 = vmatpush1.bf16.msra.mxu1 %v12900_v11  ;;  %v4272_v11 = vmul.f32 %v4268_v37, %v4268_v37  ;;  %v4265_v47 = vsub.f32 %v16149_v49, %v12934_v20  ;;  %v4270_v37 = vmul.f32 %v4266_v5, %v4266_v5  ;;  %v12970_v56 = vsel %vm4285_vm13, %v12535_v26, %v12563_v52  ;;  %v12983_v5 = vpop.permute.xlu1 %4391 }
 0x56e   : > { %v4309_v21 = vpop.permute.xlu0 %4308  ;;  %9133 = vmatprep.subr.bf16.mxu1 %v12918_v55  ;;  %16170 = vst [vmem:[#allocation31_spill] sm:$0xff] %v12940_v0  ;;  %16172 = vst [vmem:[#allocation12_spill] sm:$0xff] %v12957_v28  ;;  %v4244_v55 = vmul.f32 %v4240_v7, %v4240_v7  ;;  %v4291_v39 = vsub.f32 %v16141_v62, %v12946_v31  ;;  %v12979_v41 = vsel %vm4310_vm11, %v12630_v13, %v12597_v4 }
 0x56f   : > { %v12963_v63 = vsel %vm4310_vm11, %v4309_v21, %v4305_v23  ;;  %16174 = vst [vmem:[#allocation14_spill] sm:$0xff] %v12979_v41  ;;  %v4271_v32 = vmul.f32 %v4267_v15, %v4267_v15  ;;  %v4292_v26 = vsub.f32 %v16146_v9, %v12953_v61  ;;  %v12989_v31 = vsel %vm4310_vm11, %v4305_v23, %v4309_v21 }
 0x570   : > { %16173 = vst [vmem:[#allocation11_spill] sm:$0xff] %v12963_v63  ;;  %v12981_v7 = vpack.c.bf16 %v4246_v10, %v4244_v55  ;;  %v12993_v3 = vpack.c.bf16 %v4272_v11, %v4270_v37  ;;  %v4269_v20 = vmul.f32 %v4265_v47, %v4265_v47  ;;  %v4290_v55 = vsub.f32 %v16149_v49, %v12970_v56 }
 0x571   : > { %9135 = vmatpush1.bf16.msra.mxu1 %v12940_v0  ;;  %v4297_v0 = vmul.f32 %v4293_v59, %v4293_v59  ;;  %v4295_v15 = vmul.f32 %v4291_v39, %v4291_v39  ;;  %v13006_v23 = vsel %vm4310_vm11, %v12597_v4, %v12630_v13  ;;  %v4316_v11 = vsub.f32 %v16141_v62, %v12979_v41 }
 0x572   : > { %v4330_v25 = vpop.permute.xlu0 %4329  ;;  %9137 = vmatprep.subr.bf16.mxu1 %v12957_v28  ;;  %16175 = vst [vmem:[#allocation19_spill] sm:$0xff] %v12981_v7  ;;  %v4318_v28 = vsub.f32 %v16137_v29, %v12963_v63  ;;  %16176 = vst [vmem:[#allocation13_spill] sm:$0xff] %v12993_v3  ;;  %v13015_v47 = vsel %vm3707_vm10, %v12733_v53, %v12688_v43  ;;  %v13017_v21 = vpack.c.bf16 %v4271_v32, %v4269_v20  ;;  %v13031_v32 = vpop.permute.xlu1 %4412 }
 0x573   : > { %16178 = vst [vmem:[#allocation29_spill] sm:$0xff] %v13006_v23  ;;  %16179 = vst [vmem:[#allocation37_spill] sm:$0xff] %v13015_v47  ;;  %v4296_v59 = vmul.f32 %v4292_v26, %v4292_v26  ;;  %v4317_v37 = vsub.f32 %v16146_v9, %v12989_v31  ;;  %v4294_v41 = vmul.f32 %v4290_v55, %v4290_v55  ;;  %vm4395_vm13 = vcmp.lt.s32.totalorder %v10142_v12, 120 }
 0x574   : > { %16180 = vst [vmem:[#allocation38_spill] sm:$0xff] %v13017_v21  ;;  %v4322_v4 = vmul.f32 %v4318_v28, %v4318_v28  ;;  %v4315_v20 = vsub.f32 %v16149_v49, %v13006_v23  ;;  %v4320_v26 = vmul.f32 %v4316_v11, %v4316_v11  ;;  %v4340_v28 = vsub.f32 %v16141_v62, %v13015_v47 }
 0x575   : > { %9139 = vmatpush1.bf16.msra.mxu1 %v12981_v7  ;;  %v13027_v7 = vpack.c.bf16 %v4297_v0, %v4295_v15  ;;  %v13043_v0 = vpack.c.bf16 %v4296_v59, %v4294_v41  ;;  %v16187_v59 = vld [vmem:[#allocation35_spill] sm:$0xff]  ;;  %v13086_v23 = vsel %vm4395_vm13, %v12922_v60, %v12983_v5  ;;  %vm4420_vm7 = vcmp.lt.s32.totalorder %v10142_v12, 116 }
 0x576   : > { %v4334_v52 = vpop.permute.xlu0 %4333  ;;  %9141 = vmatprep.subr.bf16.mxu1 %v12993_v3  ;;  %v13049_v63 = vpack.c.bf16 %v4322_v4, %v4320_v26  ;;  %16192 = vst [vmem:[#allocation46_spill] sm:$0xff] %v13086_v23  ;;  %vm16202_vm11 = vcmp.lt.s32.totalorder %v10142_v12, 111 }
 0x577   : > { %v13000_v10 = vsel %vm3707_vm10, %v4334_v52, %v4330_v25  ;;  %v13023_v13 = vsel %vm3707_vm10, %v4330_v25, %v4334_v52  ;;  %16182 = vst [vmem:[#allocation40_spill] sm:$0xff] %v13027_v7  ;;  %v13038_v25 = vsel %vm3707_vm10, %v12688_v43, %v12733_v53  ;;  %16184 = vst [vmem:[#allocation42_spill] sm:$0xff] %v13043_v0 }
 0x578   : > { %16177 = vst [vmem:[#allocation27_spill] sm:$0xff] %v13000_v10  ;;  %16181 = vst [vmem:[#allocation39_spill] sm:$0xff] %v13023_v13  ;;  %v4342_v3 = vsub.f32 %v16137_v29, %v13000_v10  ;;  %v4321_v52 = vmul.f32 %v4317_v37, %v4317_v37  ;;  %v4341_v55 = vsub.f32 %v16146_v9, %v13023_v13 }
 0x579   : > { %9143 = vmatpush1.bf16.msra.mxu1 %v13017_v21  ;;  %16183 = vst [vmem:[#allocation41_spill] sm:$0xff] %v13038_v25  ;;  %v16185_v21 = vld [vmem:[#allocation34_spill] sm:$0xff]  ;;  %16186 = vst [vmem:[#allocation43_spill] sm:$0xff] %v13049_v63  ;;  %v4319_v43 = vmul.f32 %v4315_v20, %v4315_v20  ;;  %v4339_v53 = vsub.f32 %v16149_v49, %v13038_v25  ;;  %v4352_v37 = vsub.f32 %v16141_v62, %v16187_v59 }
 0x57a   : > { %v4366_v39 = vpop.permute.xlu0 %4365  ;;  %9145 = vmatprep.subr.bf16.mxu1 %v13027_v7  ;;  %v4354_v11 = vsub.f32 %v16137_v29, %v16185_v21  ;;  %v4346_v10 = vmul.f32 %v4342_v3, %v4342_v3  ;;  %v4344_v7 = vmul.f32 %v4340_v28, %v4340_v28  ;;  %v16188_v3 = vld [vmem:[#allocation36_spill] sm:$0xff]  ;;  %v16189_v20 = vld [vmem:[#allocation30_spill] sm:$0xff]  ;;  %v4417_v21 = vpop.permute.xlu1 %4416  ;;  %v4345_v28 = vmul.f32 %v4341_v55, %v4341_v55 }
 0x57b   : > { %v4351_v4 = vsub.f32 %v16149_v49, %v16188_v3  ;;  %v4353_v26 = vsub.f32 %v16146_v9, %v16189_v20  ;;  %v13072_v47 = vpack.c.bf16 %v4321_v52, %v4319_v43  ;;  %v4343_v13 = vmul.f32 %v4339_v53, %v4339_v53 }
 0x57c   : > { %v4358_v25 = vmul.f32 %v4354_v11, %v4354_v11  ;;  %v13080_v20 = vpack.c.bf16 %v4346_v10, %v4344_v7  ;;  %v4356_v52 = vmul.f32 %v4352_v37, %v4352_v37 }
 0x57d   : > { %9147 = vmatpush1.bf16.msra.mxu1 %v13043_v0  ;;  %v13070_v0 = vsel %vm3977_vm8, %v12801_v27, %v12869_v6  ;;  %16190 = vst [vmem:[#allocation44_spill] sm:$0xff] %v13072_v47  ;;  %v4355_v10 = vmul.f32 %v4351_v4, %v4351_v4  ;;  %v4357_v55 = vmul.f32 %v4353_v26, %v4353_v26 }
 0x57e   : > { %v4370_v15 = vpop.permute.xlu0 %4369  ;;  %9149 = vmatprep.subr.bf16.mxu1 %v13049_v63  ;;  %16191 = vst [vmem:[#allocation45_spill] sm:$0xff] %v13080_v20  ;;  %v4376_v7 = vsub.f32 %v16141_v62, %v13070_v0  ;;  %v13103_v53 = vpack.c.bf16 %v4358_v25, %v4356_v52  ;;  %v2931_v26 = vpop.permute.xlu1 %2930  ;;  %v13132_v52 = vsel %vm4420_vm7, %v4417_v21, %v13031_v32 }
 0x57f   : > { %v13056_v41 = vsel %vm3977_vm8, %v4366_v39, %v4370_v15  ;;  %v13076_v63 = vsel %vm3977_vm8, %v4370_v15, %v4366_v39  ;;  %v13093_v39 = vsel %vm3977_vm8, %v12869_v6, %v12801_v27  ;;  %v13099_v15 = vpack.c.bf16 %v4345_v28, %v4343_v13  ;;  %16196 = vst [vmem:[#allocation50_spill] sm:$0xff] %v13132_v52 }
 0x580   : > { %v4378_v3 = vsub.f32 %v16137_v29, %v13056_v41  ;;  %v4377_v11 = vsub.f32 %v16146_v9, %v13076_v63  ;;  %16194 = vst [vmem:[#allocation48_spill] sm:$0xff] %v13103_v53  ;;  %v4401_v27 = vsub.f32 %v16141_v62, %v13086_v23  ;;  %v4375_v13 = vsub.f32 %v16149_v49, %v13093_v39 }
 0x581   : > { %9151 = vmatpush1.bf16.msra.mxu1 %v13072_v47  ;;  %16193 = vst [vmem:[#allocation47_spill] sm:$0xff] %v13099_v15  ;;  %v4380_v28 = vmul.f32 %v4376_v7, %v4376_v7 }
 0x582   : > { %v4390_v59 = vpop.permute.xlu0 %4389  ;;  %9153 = vmatprep.subr.bf16.mxu1 %v13080_v20  ;;  %v4382_v6 = vmul.f32 %v4378_v3, %v4378_v3  ;;  %v13124_v3 = vsel %vm4395_vm13, %v12983_v5, %v12922_v60  ;;  %v4405_v47 = vmul.f32 %v4401_v27, %v4401_v27  ;;  %v13139_v60 = vsel %vm4420_vm7, %v13031_v32, %v4417_v21  ;;  %v2939_v32 = vpop.permute.xlu1 %2938 }
 0x583   : > { %16197 = vst [vmem:[#allocation51_spill] sm:$0xff] %v13139_v60  ;;  %v4426_v21 = vsub.f32 %v16141_v62, %v13139_v60 }
 0x584   : > { %v13141_v5 = vpack.c.bf16 %v4382_v6, %v4380_v28 }
 0x585   : > { %9155 = vmatpush1.bf16.msra.mxu1 %v13099_v15 }
 0x586   : > { %v4394_v43 = vpop.permute.xlu0 %4393  ;;  %9157 = vmatprep.subr.bf16.mxu1 %v13103_v53  ;;  %16198 = vst [vmem:[#allocation52_spill] sm:$0xff] %v13141_v5  ;;  %v2935_v23 = vpop.permute.xlu1 %2934 }
 0x587   : > { %v13109_v37 = vsel %vm4395_vm13, %v4390_v59, %v4394_v43  ;;  %v13113_v4 = vsel %vm4395_vm13, %v4394_v43, %v4390_v59  ;;  %v13127_v59 = vpack.c.bf16 %v4357_v55, %v4355_v10  ;;  %v4381_v43 = vmul.f32 %v4377_v11, %v4377_v11  ;;  %vm16203_vm13 = vmmov %vm16202_vm11 }
 0x588   : > { %v4403_v25 = vsub.f32 %v16137_v29, %v13109_v37  ;;  %v4402_v15 = vsub.f32 %v16146_v9, %v13113_v4  ;;  %v4379_v10 = vmul.f32 %v4375_v13, %v4375_v13  ;;  %v4400_v55 = vsub.f32 %v16149_v49, %v13124_v3 }
 0x589   : > { %16195 = vst [vmem:[#allocation49_spill] sm:$0xff] %v13127_v59  ;;  %9159 = vmatpush1.bf16.msra.mxu1 %v13127_v59  ;;  %v4440_v11 = vsub.f32 %v16137_v29, %v12656_v35  ;;  %v4438_v59 = vsub.f32 %v16141_v62, %v12672_v18 }
 0x58a   : > { %v4407_v7 = vmul.f32 %v4403_v25, %v4403_v25  ;;  %v4415_v20 = vpop.permute.xlu0 %4414  ;;  %v4425_v25 = vsub.f32 %v16149_v49, %v13132_v52  ;;  %9161 = vmatprep.subr.bf16.mxu1 %v13141_v5  ;;  %v13155_v6 = vpack.c.bf16 %v4381_v43, %v4379_v10  ;;  %v4406_v13 = vmul.f32 %v4402_v15, %v4402_v15 }
 0x58b   : > { %v4439_v43 = vsub.f32 %v16146_v9, %v12638_v38  ;;  %v4444_v10 = vmul.f32 %v4440_v11, %v4440_v11  ;;  %v4442_v52 = vmul.f32 %v4438_v59, %v4438_v59  ;;  %v4449_v38 = vsub.f32 %v16149_v49, %v12680_v50 }
 0x58c   : > { %v13151_v27 = vpack.c.bf16 %v4407_v7, %v4405_v47  ;;  %16199 = vst [vmem:[#allocation53_spill] sm:$0xff] %v13155_v6  ;;  %v4437_v47 = vsub.f32 %v16149_v49, %v12650_v54  ;;  %v4404_v7 = vmul.f32 %v4400_v55, %v4400_v55  ;;  %v8769_v54 = vld [vmem:[%s15777_s23 + $0x20] ss:$8 sm:$0x3]  ;;  %v4430_v55 = vmul.f32 %v4426_v21, %v4426_v21 }
 0x58d   : > { %9163 = vmatpush1.bf16.msra.mxu1 %v13155_v6  ;;  %v2959_v11 = vrot.slane %v8769_v54, %v16039_v45  ;;  %v4450_v59 = vsub.f32 %v16141_v62, %v12721_v46  ;;  %v2946_v50 = vsel %vm16202_vm11, %v2931_v26, %v2939_v32  ;;  %v4462_v46 = vsub.f32 %v16141_v62, %v12762_v48 }
 0x58e   : > { %v4419_v28 = vpop.permute.xlu0 %4418  ;;  %9165 = vmatprep.subr.bf16.mxu1 %v13151_v27  ;;  %v13182_v6 = vpack.c.bf16 %v4406_v13, %v4404_v7  ;;  %v4443_v13 = vmul.f32 %v4439_v43, %v4439_v43  ;;  %v4441_v7 = vmul.f32 %v4437_v47, %v4437_v47  ;;  %v4461_v48 = vsub.f32 %v16149_v49, %v12731_v34 }
 0x58f   : > { %v13161_v35 = vsel %vm4420_vm7, %v4415_v20, %v4419_v28  ;;  %v13165_v5 = vsel %vm4420_vm7, %v4419_v28, %v4415_v20  ;;  %v4451_v20 = vsub.f32 %v16146_v9, %v12686_v2  ;;  %v4429_v28 = vmul.f32 %v4425_v25, %v4425_v25  ;;  %vm16204_vm7 = vmmov %vm16202_vm11 }
 0x590   : > { %16200 = vst [vmem:[#allocation54_spill] sm:$0xff] %v13161_v35  ;;  %16201 = vst [vmem:[#allocation55_spill] sm:$0xff] %v13165_v5  ;;  %v4427_v15 = vsub.f32 %v16146_v9, %v13165_v5  ;;  %v4428_v18 = vsub.f32 %v16137_v29, %v13161_v35  ;;  %v4452_v2 = vsub.f32 %v16137_v29, %v12704_v40 }
 0x591   : > { %v2963_v25 = vrot.slane %v8769_v54, %v16040_v24  ;;  %9167 = vmatpush1.bf16.msra.mxu1 %v13182_v6  ;;  %v2950_v40 = vsel %vm16203_vm13, %v2939_v32, %v2931_v26  ;;  %vm16205_vm11 = vmmov %vm16204_vm7  ;;  %v2966_v32 = vmul.f32 %v2959_v11, %v2946_v50 }
 0x592   : > { %v4431_v53 = vmul.f32 %v4427_v15, %v4427_v15  ;;  %v4432_v60 = vmul.f32 %v4428_v18, %v4428_v18  ;;  %v2933_v35 = vpop.permute.xlu0 %2932  ;;  %v4455_v15 = vmul.f32 %v4451_v20, %v4451_v20  ;;  %vm16206_vm13 = vmmov %vm16204_vm7 }
 0x593   : > { %v2967_v47 = vmul.f32 %v2963_v25, %v2950_v40 }
 0x594   : > { %v13190_v5 = vpack.c.bf16 %v4431_v53, %v4429_v28  ;;  %v13193_v21 = vpack.c.bf16 %v4432_v60, %v4430_v55  ;;  %v4464_v53 = vsub.f32 %v16137_v29, %v12741_v44  ;;  %v13204_v60 = vpack.c.bf16 %v4444_v10, %v4442_v52 }
 0x595   : > { %v4456_v28 = vmul.f32 %v4452_v2, %v4452_v2  ;;  %v4453_v44 = vmul.f32 %v4449_v38, %v4449_v38  ;;  %v4454_v55 = vmul.f32 %v4450_v59, %v4450_v59  ;;  %v13213_v52 = vpack.c.bf16 %v4443_v13, %v4441_v7 }
 0x596   : > { %v2941_v18 = vpop.permute.xlu0 %2940  ;;  %9169 = vmatprep.subr.bf16.mxu1 %v13193_v21  ;;  %v4463_v10 = vsub.f32 %v16146_v9, %v12715_v16  ;;  %v4468_v2 = vmul.f32 %v4464_v53, %v4464_v53  ;;  %v4466_v13 = vmul.f32 %v4462_v46, %v4462_v46  ;;  %v4474_v16 = vsub.f32 %v16141_v62, %v12811_v42 }
 0x597   : > { %v2947_v43 = vsel %vm16204_vm7, %v2933_v35, %v2941_v18  ;;  %v2951_v26 = vsel %vm16205_vm11, %v2941_v18, %v2933_v35  ;;  %9171 = vmatpush1.bf16.msra.mxu1 %v13190_v5  ;;  %v2943_v35 = vpop.permute.xlu1 %2942  ;;  %v13222_v38 = vpack.c.bf16 %v4456_v28, %v4454_v55  ;;  %v13224_v59 = vpack.c.bf16 %v4455_v15, %v4453_v44  ;;  %vm16207_vm11 = vmmov %vm16204_vm7 }
 0x598   : > { %v2968_v20 = vmul.f32 %v2959_v11, %v2947_v43  ;;  %v2969_v54 = vmul.f32 %v2963_v25, %v2951_v26  ;;  %9173 = vmatprep.subr.bf16.mxu1 %v13204_v60  ;;  %v4476_v43 = vsub.f32 %v16137_v29, %v12787_v19  ;;  %v4467_v34 = vmul.f32 %v4463_v10, %v4463_v10 }
 0x599   : > { %v2948_v7 = vsel %vm16206_vm13, %v2935_v23, %v2943_v35  ;;  %v2952_v53 = vsel %vm16204_vm7, %v2943_v35, %v2935_v23  ;;  %v4465_v19 = vmul.f32 %v4461_v48, %v4461_v48  ;;  %v4473_v15 = vsub.f32 %v16149_v49, %v12774_v14  ;;  %vm16208_vm13 = vmmov %vm16204_vm7 }
 0x59a   : > { %v9110_v50 = vpack.c.bf16 %v2968_v20, %v2966_v32  ;;  %v2937_v40 = vpop.permute.xlu0 %2936  ;;  %v9108_v18 = vpack.c.bf16 %v2969_v54, %v2967_v47  ;;  %v4475_v42 = vsub.f32 %v16146_v9, %v12753_v8  ;;  %v13238_v46 = vpack.c.bf16 %v4468_v2, %v4466_v13  ;;  %v4689_v8 = vld [vmem:[%s16159_s25] sm:$0xff] }
 0x59b   : > { %9175 = vmatpush1.bf16.msra.mxu1 %v13213_v52  ;;  %v4480_v26 = vmul.f32 %v4476_v43, %v4476_v43  ;;  %v4488_v32 = vsub.f32 %v16137_v29, %v12834_v1  ;;  %v2970_v20 = vmul.f32 %v2959_v11, %v2948_v7  ;;  %v2971_v54 = vmul.f32 %v2963_v25, %v2952_v53 }
 0x59c   : > { %9109 = vmatprep.subr.bf16.mxu0 %v9108_v18  ;;  %9177 = vmatprep.subr.bf16.mxu1 %v13222_v38  ;;  %v4478_v55 = vmul.f32 %v4474_v16, %v4474_v16  ;;  %v13250_v10 = vpack.c.bf16 %v4467_v34, %v4465_v19  ;;  %v4486_v1 = vsub.f32 %v16141_v62, %v12853_v36  ;;  %v4697_v18 = vld [vmem:[%s16159_s25 + $0x40] sm:$0xff]  ;;  %v2984_v16 = vld [vmem:[%s16108_s2 + $0x10] sm:$0xff]  ;;  %vm16209_vm7 = vcmask 261120  }
 0x59d   : > { %9111 = vmatpush1.bf16.msra.mxu0 %v9110_v50  ;;  %v4479_v48 = vmul.f32 %v4475_v42, %v4475_v42  ;;  %v4487_v2 = vsub.f32 %v16146_v9, %v12799_v30  ;;  %v4492_v35 = vmul.f32 %v4488_v32, %v4488_v32  ;;  %v4500_v50 = vsub.f32 %v16137_v29, %v12875_v22  ;;  %v4696_v30 = vld [vmem:[%s16159_s25 + $0x38] sm:$0xff] }
 0x59e   : > { %v2945_v28 = vpop.permute.xlu0 %2944  ;;  %v4477_v36 = vmul.f32 %v4473_v15, %v4473_v15  ;;  %v4485_v43 = vsub.f32 %v16149_v49, %v12826_v51  ;;  %v4490_v13 = vmul.f32 %v4486_v1, %v4486_v1  ;;  %v4498_v22 = vsub.f32 %v16141_v62, %v12894_v58  ;;  %v4704_v58 = vld [vmem:[%s16159_s25 + $0x78] sm:$0xff] }
 0x59f   : > { %v2949_v23 = vsel %vm16207_vm11, %v2937_v40, %v2945_v28  ;;  %v2953_v47 = vsel %vm16208_vm13, %v2945_v28, %v2937_v40  ;;  %9179 = vmatpush1.bf16.msra.mxu1 %v13224_v59  ;;  %v13259_v40 = vpack.c.bf16 %v4480_v26, %v4478_v55  ;;  %v4491_v51 = vmul.f32 %v4487_v2, %v4487_v2  ;;  %v16210_v26 = vld [vmem:[#allocation16_spill] sm:$0xff]  ;;  %v16213_v2 = vld [vmem:[#allocation17_spill] sm:$0xff]  ;;  %vm16214_vm11 = vmmov %vm16209_vm7 }
 0x5a0   : > { %v2972_v44 = vmul.f32 %v2959_v11, %v2949_v23  ;;  %v2973_v14 = vmul.f32 %v2963_v25, %v2953_v47  ;;  %9181 = vmatprep.subr.bf16.mxu1 %v13238_v46  ;;  %v13276_v34 = vpack.c.bf16 %v4479_v48, %v4477_v36  ;;  %v4499_v7 = vsub.f32 %v16146_v9, %v12846_v57  ;;  %v4703_v57 = vld [vmem:[%s16159_s25 + $0x70] sm:$0xff] }
 0x5a1   : > { %v4504_v53 = vmul.f32 %v4500_v50, %v4500_v50  ;;  %v4512_v19 = vsub.f32 %v16137_v29, %v12914_v17  ;;  %v13282_v15 = vpack.c.bf16 %v4492_v35, %v4490_v13  ;;  %v4489_v42 = vmul.f32 %v4485_v43, %v4485_v43  ;;  %v16215_v43 = vld [vmem:[#allocation22_spill] sm:$0xff] }
 0x5a2   : > { %v9114_v11 = vpack.c.bf16 %v2972_v44, %v2970_v20  ;;  %v9112_v25 = vpack.c.bf16 %v2973_v14, %v2971_v54  ;;  %5020 = vmatmul.mubr.f32.vlgmr.msra.gmra.mrb[8].mxu1 %v4689_v8  ;;  %v4497_v28 = vsub.f32 %v16149_v49, %v12865_v33  ;;  %v4502_v17 = vmul.f32 %v4498_v22, %v4498_v22  ;;  %v2987_v33 = vld [vmem:[%s16108_s2 + $0x28] sm:$0xff]  ;;  %v16212_v54 = vld [vmem:[#allocation15_spill] sm:$0xff]  ;;  %v4711_v14 = vld [vmem:[%s16159_s25 + $0xb0] sm:$0xff]  ;;  %s16328_s2 = smov 68  }
 0x5a3   : > { %9183 = vmatpush1.bf16.msra.mxu1 %v13250_v10  ;;  %5025 = vmatprep.mubr.f32.mxu1 %v4697_v18  ;;  %v4510_v32 = vsub.f32 %v16141_v62, %v16210_v26  ;;  %v16211_v23 = vmov 0.0   ;;  %v13301_v47 = vpack.c.bf16 %v4491_v51, %v4489_v42  ;;  %v4503_v20 = vmul.f32 %v4499_v7, %v4499_v7  ;;  %v16216_v51 = vld [vmem:[#allocation33_spill] sm:$0xff] }
 0x5a4   : > { %9113 = vmatprep.subr.bf16.mxu0 %v9112_v25  ;;  %9185 = vmatprep.subr.bf16.mxu1 %v13259_v40  ;;  %v4511_v44 = vsub.f32 %v16146_v9, %v16212_v54  ;;  %v4516_v8 = vmul.f32 %v4512_v19, %v4512_v19  ;;  %v4524_v55 = vsub.f32 %v16137_v29, %v12953_v61  ;;  %v4710_v25 = vld [vmem:[%s16159_s25 + $0xa8] sm:$0xff]  ;;  %vm16257_vm13 = vcmask 130048  }
 0x5a5   : > { %9115 = vmatpush1.bf16.msra.mxu0 %v9114_v11  ;;  %v13310_v1 = vpack.c.bf16 %v4504_v53, %v4502_v17  ;;  %v4501_v48 = vmul.f32 %v4497_v28, %v4497_v28  ;;  %v4509_v11 = vsub.f32 %v16149_v49, %v16213_v2  ;;  %v4514_v35 = vmul.f32 %v4510_v32, %v4510_v32  ;;  %v4718_v61 = vld [vmem:[%s16159_s25 + $0xe8] sm:$0xff]  ;;  %v4717_v53 = vld [vmem:[%s16159_s25 + $0xe0] sm:$0xff]  ;;  %v16221_v2 = vld [vmem:[#allocation41_spill] sm:$0xff] }
 0x5a6   : > { %5026 = vmatmul.mubr.f32.gmra.mrb[10].mxu1 %v4696_v30  ;;  %v4522_v50 = vsub.f32 %v16141_v62, %v12970_v56  ;;  %v4515_v36 = vmul.f32 %v4511_v44, %v4511_v44  ;;  %v4523_v30 = vsub.f32 %v16146_v9, %v16215_v43  ;;  %v4528_v13 = vmul.f32 %v4524_v55, %v4524_v55  ;;  %v16218_v17 = vld [vmem:[#allocation11_spill] sm:$0xff]  ;;  %v4724_v55 = vld [vmem:[%s16159_s25 + $0x118] sm:$0xff] }
 0x5a7   : > { %9187 = vmatpush1.bf16.msra.mxu1 %v13276_v34  ;;  %5031 = vmatprep.mubr.f32.mxu1 %v4704_v58  ;;  %v13325_v18 = vpack.c.bf16 %v4503_v20, %v4501_v48  ;;  %v4536_v22 = vsub.f32 %v16137_v29, %v12989_v31  ;;  %v4513_v56 = vmul.f32 %v4509_v11, %v4509_v11  ;;  %v16217_v58 = vld [vmem:[#allocation29_spill] sm:$0xff]  ;;  %v4725_v31 = vld [vmem:[%s16159_s25 + $0x120] sm:$0xff] }
 0x5a8   : > { %8770 = vmatmul.mubr.msk.f32.vlgmr.msra.gmra.mrb[12].mxu0 %vm16209_vm7, %v2984_v16  ;;  %9189 = vmatprep.subr.bf16.mxu1 %v13282_v15  ;;  %v13331_v16 = vpack.c.bf16 %v4516_v8, %v4514_v35  ;;  %v4521_v7 = vsub.f32 %v16149_v49, %v16216_v51  ;;  %v4526_v19 = vmul.f32 %v4522_v50, %v4522_v50  ;;  %v16224_v51 = vld [vmem:[#allocation37_spill] sm:$0xff]  ;;  %vm16258_vm7 = vmmov %vm16257_vm13 }
 0x5a9   : > { %3213 = vmatprep.mubr.f32.mxu0 %v16211_v23  ;;  %v4534_v42 = vsub.f32 %v16141_v62, %v16217_v58  ;;  %v13345_v28 = vpack.c.bf16 %v4515_v36, %v4513_v56  ;;  %v4535_v26 = vsub.f32 %v16146_v9, %v16218_v17  ;;  %v4540_v32 = vmul.f32 %v4536_v22, %v4536_v22  ;;  %v16225_v58 = vld [vmem:[#allocation36_spill] sm:$0xff] }
 0x5aa   : > { %5032 = vmatmul.mubr.f32.gmra.mrb[12].mxu1 %v4703_v57  ;;  %v4527_v57 = vmul.f32 %v4523_v30, %v4523_v30  ;;  %v9200_v54 = vpack.c.bf16 %v4528_v13, %v4526_v19  ;;  %v4525_v44 = vmul.f32 %v4521_v7, %v4521_v7  ;;  %v4546_v11 = vsub.f32 %v16141_v62, %v16221_v2  ;;  %v16223_v13 = vld [vmem:[#allocation30_spill] sm:$0xff] }
 0x5ab   : > { %9191 = vmatpush1.bf16.msra.mxu1 %v13301_v47  ;;  %5037 = vmatprep.mubr.f32.mxu1 %v4711_v14  ;;  %v16220_v14 = vld [vmem:[#allocation14_spill] sm:$0xff]  ;;  %v4538_v48 = vmul.f32 %v4534_v42, %v4534_v42  ;;  %v4539_v50 = vmul.f32 %v4535_v26, %v4535_v26  ;;  %v4560_v22 = vsub.f32 %v16137_v29, %v16223_v13 }
 0x5ac   : > { %8771 = vmatmul.mubr.msk.f32.gmra.mrb[14].mxu0 %vm16214_vm11, %v2987_v33  ;;  %9193 = vmatprep.subr.bf16.mxu1 %v13310_v1  ;;  %v16219_v33 = vld [vmem:[#allocation39_spill] sm:$0xff]  ;;  %v4533_v8 = vsub.f32 %v16149_v49, %v16220_v14  ;;  %v9202_v35 = vpack.c.bf16 %v4527_v57, %v4525_v44  ;;  %v4545_v7 = vsub.f32 %v16149_v49, %v16224_v51  ;;  %v16226_v26 = vld [vmem:[#allocation34_spill] sm:$0xff]  ;;  %vm16259_vm11 = vmmov %vm16258_vm7 }
 0x5ad   : > { %v4548_v20 = vsub.f32 %v16137_v29, %v16219_v33  ;;  %v9204_v30 = vpack.c.bf16 %v4540_v32, %v4538_v48  ;;  %v4550_v19 = vmul.f32 %v4546_v11, %v4546_v11  ;;  %v4558_v42 = vsub.f32 %v16141_v62, %v16225_v58  ;;  %v16227_v14 = vld [vmem:[#allocation35_spill] sm:$0xff]  ;;  %v16230_v58 = vld [vmem:[#allocation50_spill] sm:$0xff] }
 0x5ae   : > { %5038 = vmatmul.mubr.f32.gmra.mrb[14].mxu1 %v4710_v25  ;;  %v4732_v25 = vld [vmem:[%s16159_s25 + $0x158] sm:$0xff]  ;;  %v4537_v56 = vmul.f32 %v4533_v8, %v4533_v8  ;;  %v4559_v32 = vsub.f32 %v16146_v9, %v16226_v26  ;;  %v4572_v33 = vsub.f32 %v16137_v29, %v13076_v63  ;;  %v4549_v44 = vmul.f32 %v4545_v7, %v4545_v7 }
 0x5af   : > { %9195 = vmatpush1.bf16.msra.mxu1 %v13325_v18  ;;  %5043 = vmatprep.mubr.f32.mxu1 %v4718_v61  ;;  %v16222_v61 = vld [vmem:[#allocation27_spill] sm:$0xff]  ;;  %v4552_v43 = vmul.f32 %v4548_v20, %v4548_v20  ;;  %v4557_v8 = vsub.f32 %v16149_v49, %v16227_v14  ;;  %v4562_v48 = vmul.f32 %v4558_v42, %v4558_v42 }
 0x5b0   : > { %9197 = vmatprep.subr.bf16.mxu1 %v13331_v16  ;;  %v4547_v36 = vsub.f32 %v16146_v9, %v16222_v61  ;;  %v9206_v57 = vpack.c.bf16 %v4539_v50, %v4537_v56  ;;  %v4571_v11 = vsub.f32 %v16146_v9, %v13056_v41  ;;  %v4576_v63 = vmul.f32 %v4572_v33, %v4572_v33  ;;  %v16228_v56 = vld [vmem:[#allocation55_spill] sm:$0xff] }
 0x5b1   : > { %v9208_v20 = vpack.c.bf16 %v4552_v43, %v4550_v19  ;;  %v4569_v61 = vsub.f32 %v16149_v49, %v13070_v0  ;;  %v4583_v41 = vsub.f32 %v16146_v9, %v13109_v37  ;;  %v16232_v33 = vld [vmem:[#allocation51_spill] sm:$0xff] }
 0x5b2   : > { %5044 = vmatmul.mubr.f32.gmra.mrb[16].mxu1 %v4717_v53  ;;  %v4731_v53 = vld [vmem:[%s16159_s25 + $0x150] sm:$0xff]  ;;  %v4551_v17 = vmul.f32 %v4547_v36, %v4547_v36  ;;  %v4561_v36 = vmul.f32 %v4557_v8, %v4557_v8 }
 0x5b3   : > { %9199 = vmatpush1.bf16.msra.mxu1 %v13345_v28  ;;  %5049 = vmatprep.mubr.f32.mxu1 %v4725_v31  ;;  %v4692_v31 = vld [vmem:[%s16159_s25 + $0x18] sm:$0xff]  ;;  %v4573_v7 = vmul.f32 %v4569_v61, %v4569_v61  ;;  %v16239_v61 = vld [vmem:[#allocation23_spill] sm:$0xff] }
 0x5b4   : > { %9201 = vmatprep.subr.bf16.mxu1 %v9200_v54  ;;  %v4564_v54 = vmul.f32 %v4560_v22, %v4560_v22  ;;  %v9210_v2 = vpack.c.bf16 %v4551_v17, %v4549_v44 }
 0x5b6   : > { %5050 = vmatmul.mubr.f32.gmra.mrb[18].mxu1 %v4724_v55  ;;  %v4570_v55 = vsub.f32 %v16141_v62, %v13093_v39  ;;  %v9212_v50 = vpack.c.bf16 %v4564_v54, %v4562_v48  ;;  %v4582_v39 = vsub.f32 %v16141_v62, %v13124_v3  ;;  %v4594_v3 = vsub.f32 %v16141_v62, %v16230_v58  ;;  %v16247_v58 = vld [vmem:[#allocation40_spill] sm:$0xff] }
 0x5b7   : > { %9203 = vmatpush1.bf16.msra.mxu1 %v9202_v35  ;;  %5055 = vmatprep.mubr.f32.mxu1 %v4732_v25  ;;  %v4563_v25 = vmul.f32 %v4559_v32, %v4559_v32  ;;  %v4584_v35 = vsub.f32 %v16137_v29, %v13113_v4  ;;  %v4596_v4 = vsub.f32 %v16137_v29, %v16228_v56  ;;  %v4706_v56 = vld [vmem:[%s16159_s25 + $0x88] sm:$0xff] }
 0x5b8   : > { %9205 = vmatprep.subr.bf16.mxu1 %v9204_v30  ;;  %v4574_v43 = vmul.f32 %v4570_v55, %v4570_v55  ;;  %v4575_v30 = vmul.f32 %v4571_v11, %v4571_v11  ;;  %v4586_v19 = vmul.f32 %v4582_v39, %v4582_v39  ;;  %v4598_v54 = vmul.f32 %v4594_v3, %v4594_v3  ;;  %v16234_v11 = vld [vmem:[#allocation25_spill] sm:$0xff]  ;;  %v16241_v39 = vld [vmem:[#allocation18_spill] sm:$0xff] }
 0x5b9   : > { %v9214_v13 = vpack.c.bf16 %v4563_v25, %v4561_v36  ;;  %v4588_v22 = vmul.f32 %v4584_v35, %v4584_v35  ;;  %v4600_v17 = vmul.f32 %v4596_v4, %v4596_v4  ;;  %v16235_v25 = vld [vmem:[#allocation28_spill] sm:$0xff]  ;;  %v16237_v35 = vld [vmem:[#allocation26_spill] sm:$0xff]  ;;  %v16244_v4 = vld [vmem:[#allocation19_spill] sm:$0xff] }
 0x5ba   : > { %5056 = vmatmul.mubr.f32.gmra.mrb[20].mxu1 %v4731_v53  ;;  %v9216_v51 = vpack.c.bf16 %v4576_v63, %v4574_v43  ;;  %v16229_v53 = vld [vmem:[#allocation46_spill] sm:$0xff]  ;;  %v9218_v42 = vpack.c.bf16 %v4575_v30, %v4573_v7  ;;  %v16236_v63 = vld [vmem:[#allocation24_spill] sm:$0xff]  ;;  %v4691_v43 = vld [vmem:[%s16159_s25 + $0x10] sm:$0xff] }
 0x5bb   : > { %9207 = vmatpush1.bf16.msra.mxu1 %v9206_v57  ;;  %5126 = vmatprep.mubr.f32.mxu1 %v4692_v31  ;;  %v4581_v0 = vsub.f32 %v16149_v49, %v16229_v53  ;;  %v4587_v31 = vmul.f32 %v4583_v41, %v4583_v41  ;;  %v16231_v57 = vld [vmem:[#allocation54_spill] sm:$0xff]  ;;  %v9220_v26 = vpack.c.bf16 %v4588_v22, %v4586_v19  ;;  %v16240_v36 = vld [vmem:[#allocation32_spill] sm:$0xff]  ;;  %v4699_v30 = vld [vmem:[%s16159_s25 + $0x50] sm:$0xff] }
 0x5bc   : > { %9209 = vmatprep.subr.bf16.mxu1 %v9208_v20  ;;  %v4595_v37 = vsub.f32 %v16146_v9, %v16231_v57  ;;  %v4593_v20 = vsub.f32 %v16149_v49, %v16232_v33  ;;  %v9224_v8 = vpack.c.bf16 %v4600_v17, %v4598_v54  ;;  %v16242_v41 = vld [vmem:[#allocation31_spill] sm:$0xff]  ;;  %v16243_v22 = vld [vmem:[#allocation12_spill] sm:$0xff]  ;;  %v16245_v7 = vld [vmem:[#allocation13_spill] sm:$0xff] }
 0x5bd   : > { %v4585_v32 = vmul.f32 %v4581_v0, %v4581_v0  ;;  %v4713_v53 = vld [vmem:[%s16159_s25 + $0xc0] sm:$0xff]  ;;  %v16246_v0 = vld [vmem:[#allocation38_spill] sm:$0xff]  ;;  %v16250_v17 = vld [vmem:[#allocation44_spill] sm:$0xff] }
 0x5be   : > { %v4599_v14 = vmul.f32 %v4595_v37, %v4595_v37  ;;  %v4597_v55 = vmul.f32 %v4593_v20, %v4593_v20  ;;  %v4712_v19 = vld [vmem:[%s16159_s25 + $0xb8] sm:$0xff]  ;;  %v16249_v57 = vld [vmem:[#allocation43_spill] sm:$0xff]  ;;  %v4727_v37 = vld [vmem:[%s16159_s25 + $0x130] sm:$0xff] }
 0x5bf   : > { %9211 = vmatpush1.bf16.msra.mxu1 %v9210_v2  ;;  %v9222_v44 = vpack.c.bf16 %v4587_v31, %v4585_v32  ;;  %v16233_v2 = vld [vmem:[#allocation21_spill] sm:$0xff]  ;;  %v4720_v3 = vld [vmem:[%s16159_s25 + $0xf8] sm:$0xff]  ;;  %v4734_v33 = vld [vmem:[%s16159_s25 + $0x168] sm:$0xff] }
 0x5c0   : > { %9213 = vmatprep.subr.bf16.mxu1 %v9212_v50  ;;  %v9226_v48 = vpack.c.bf16 %v4599_v14, %v4597_v55  ;;  %v16238_v50 = vld [vmem:[#allocation20_spill] sm:$0xff]  ;;  %v4719_v31 = vld [vmem:[%s16159_s25 + $0xf0] sm:$0xff]  ;;  %v16252_v20 = vld [vmem:[#allocation47_spill] sm:$0xff] }
 0x5c1   : > { %v16251_v32 = vld [vmem:[#allocation45_spill] sm:$0xff]  ;;  %v4733_v54 = vld [vmem:[%s16159_s25 + $0x160] sm:$0xff]  ;;  %v4694_v14 = vld [vmem:[%s16159_s25 + $0x28] sm:$0xff] }
 0x5c2   : > { %v16255_v55 = vld [vmem:[#allocation52_spill] sm:$0xff] }
 0x5c3   : > { %9215 = vmatpush1.bf16.msra.mxu1 %v9214_v13  ;;  %v4698_v13 = vld [vmem:[%s16159_s25 + $0x48] sm:$0xff] }
 0x5c4   : > { %9217 = vmatprep.subr.bf16.mxu1 %v9216_v51  ;;  %v4705_v51 = vld [vmem:[%s16159_s25 + $0x80] sm:$0xff] }
 0x5c7   : > { %9219 = vmatpush1.bf16.msra.mxu1 %v9218_v42  ;;  %v16248_v42 = vld [vmem:[#allocation42_spill] sm:$0xff] }
 0x5c8   : > { %9221 = vmatprep.subr.bf16.mxu1 %v9220_v26  ;;  %v4726_v26 = vld [vmem:[%s16159_s25 + $0x128] sm:$0xff] }
 0x5cb   : > { %9223 = vmatpush1.bf16.msra.mxu1 %v9222_v44  ;;  %v16253_v44 = vld [vmem:[#allocation48_spill] sm:$0xff] }
 0x5cc   : > { %9225 = vmatprep.subr.bf16.mxu1 %v9224_v8  ;;  %v16254_v8 = vld [vmem:[#allocation49_spill] sm:$0xff] }
 0x5cf   : > { %9227 = vmatpush1.bf16.msra.mxu1 %v9226_v48  ;;  %v16256_v48 = vld [vmem:[#allocation53_spill] sm:$0xff] }
 0x5d0   : > { %9229 = vmatprep.subr.bf16.mxu1 %v16233_v2  ;;  %v4702_v2 = vld [vmem:[%s16159_s25 + $0x68] sm:$0xff] }
 0x5d3   : > { %9231 = vmatpush1.bf16.msra.mxu1 %v16234_v11  ;;  %v4709_v11 = vld [vmem:[%s16159_s25 + $0xa0] sm:$0xff] }
 0x5d4   : > { %9233 = vmatprep.subr.bf16.mxu1 %v16235_v25  ;;  %v4716_v25 = vld [vmem:[%s16159_s25 + $0xd8] sm:$0xff] }
 0x5d7   : > { %9235 = vmatpush1.bf16.msra.mxu1 %v16236_v63  ;;  %v4723_v63 = vld [vmem:[%s16159_s25 + $0x110] sm:$0xff] }
 0x5d8   : > { %9237 = vmatprep.subr.bf16.mxu1 %v16237_v35  ;;  %v4730_v35 = vld [vmem:[%s16159_s25 + $0x148] sm:$0xff] }
 0x5db   : > { %9239 = vmatpush1.bf16.msra.mxu1 %v16238_v50  ;;  %v4737_v50 = vld [vmem:[%s16159_s25 + $0x180] sm:$0xff] }
 0x5dc   : > { %9241 = vmatprep.subr.bf16.mxu1 %v16239_v61  ;;  %v3225_v61 = vpop.permute.xlu1 %3224 }
 0x5df   : > { %9243 = vmatpush1.bf16.msra.mxu1 %v16240_v36 }
 0x5e0   : > { %9245 = vmatprep.subr.bf16.mxu1 %v16241_v39 }
 0x5e2   : > { %5127 = vmatmul.mubr.f32.vlgmr.msra.gmra.mrb[8].mxu1 %v4691_v43 }
 0x5e3   : > { %9247 = vmatpush1.bf16.msra.mxu1 %v16242_v41  ;;  %5132 = vmatprep.mubr.f32.mxu1 %v4699_v30  ;;  %v3230_v30 = vpop.permute.xlu0 %3229 }
 0x5e4   : > { %9249 = vmatprep.subr.bf16.mxu1 %v16243_v22  ;;  %v3241_v22 = vpop.permute.xlu1 %3240 }
 0x5e6   : > { %5133 = vmatmul.mubr.f32.gmra.mrb[10].mxu1 %v4698_v13 }
 0x5e7   : > { %9251 = vmatpush1.bf16.msra.mxu1 %v16244_v4  ;;  %5138 = vmatprep.mubr.f32.mxu1 %v4706_v56 }
 0x5e8   : > { %9253 = vmatprep.subr.bf16.mxu1 %v16245_v7 }
 0x5ea   : > { %5139 = vmatmul.mubr.f32.gmra.mrb[12].mxu1 %v4705_v51 }
 0x5eb   : > { %9255 = vmatpush1.bf16.msra.mxu1 %v16246_v0  ;;  %5144 = vmatprep.mubr.f32.mxu1 %v4713_v53 }
 0x5ec   : > { %9257 = vmatprep.subr.bf16.mxu1 %v16247_v58  ;;  %v3246_v58 = vpop.permute.xlu0 %3245 }
 0x5ee   : > { %5145 = vmatmul.mubr.f32.gmra.mrb[14].mxu1 %v4712_v19 }
 0x5ef   : > { %9259 = vmatpush1.bf16.msra.mxu1 %v16248_v42  ;;  %5150 = vmatprep.mubr.f32.mxu1 %v4720_v3 }
 0x5f0   : > { %9261 = vmatprep.subr.bf16.mxu1 %v16249_v57 }
 0x5f2   : > { %5151 = vmatmul.mubr.f32.gmra.mrb[16].mxu1 %v4719_v31 }
 0x5f3   : > { %9263 = vmatpush1.bf16.msra.mxu1 %v16250_v17  ;;  %5156 = vmatprep.mubr.f32.mxu1 %v4727_v37 }
 0x5f4   : > { %9265 = vmatprep.subr.bf16.mxu1 %v16251_v32  ;;  %v4086_v32 = vmul.f32 %v16137_v29, %v16137_v29 }
 0x5f6   : > { %5157 = vmatmul.mubr.f32.gmra.mrb[18].mxu1 %v4726_v26  ;;  %v4085_v26 = vmul.f32 %v16146_v9, %v16146_v9 }
 0x5f7   : > { %9267 = vmatpush1.bf16.msra.mxu1 %v16252_v20  ;;  %5162 = vmatprep.mubr.f32.mxu1 %v4734_v33  ;;  %v4083_v33 = vmul.f32 %v16149_v49, %v16149_v49 }
 0x5f8   : > { %9269 = vmatprep.subr.bf16.mxu1 %v16253_v44 }
 0x5f9   : > { %v4087_v44 = vadd.f32 %v4085_v26, %v4083_v33  ;;  %v8803_v33 = vld [vmem:[%s15777_s23 + $0x1] ss:$8 sm:$0x3] }
 0x5fa   : > { %5163 = vmatmul.mubr.f32.gmra.mrb[20].mxu1 %v4733_v54  ;;  %v4084_v54 = vmul.f32 %v16141_v62, %v16141_v62 }
 0x5fb   : > { %9271 = vmatpush1.bf16.msra.mxu1 %v16254_v8  ;;  %5233 = vmatprep.mubr.f32.mxu1 %v4694_v14 }
 0x5fc   : > { %9273 = vmatprep.subr.bf16.mxu1 %v16255_v55  ;;  %v4094_v14 = vadd.f32 %v4086_v32, %v4084_v54 }
 0x5ff   : > { %9275 = vmatpush1.bf16.msra.mxu1 %v16256_v48  ;;  %v4088_v48 = vrot.slane %v4087_v44, 4 }
 0x600   : > { %9277 = vmatprep.subr.bf16.mxu1 %v13151_v27  ;;  %v4701_v27 = vld [vmem:[%s16159_s25 + $0x60] sm:$0xff] }
 0x603   : > { %9279 = vmatpush1.bf16.msra.mxu1 %v13182_v6  ;;  %v4700_v6 = vld [vmem:[%s16159_s25 + $0x58] sm:$0xff] }
 0x604   : > { %9281 = vmatprep.subr.bf16.mxu1 %v13193_v21  ;;  %v4708_v21 = vld [vmem:[%s16159_s25 + $0x98] sm:$0xff] }
 0x607   : > { %9283 = vmatpush1.bf16.msra.mxu1 %v13190_v5  ;;  %v4693_v5 = vld [vmem:[%s16159_s25 + $0x20] sm:$0xff] }
 0x608   : > { %9285 = vmatprep.subr.bf16.mxu1 %v13204_v60  ;;  %v4707_v60 = vld [vmem:[%s16159_s25 + $0x90] sm:$0xff] }
 0x60b   : > { %9287 = vmatpush1.bf16.msra.mxu1 %v13213_v52  ;;  %v4715_v52 = vld [vmem:[%s16159_s25 + $0xd0] sm:$0xff] }
 0x60c   : > { %9289 = vmatprep.subr.bf16.mxu1 %v13222_v38  ;;  %v4714_v38 = vld [vmem:[%s16159_s25 + $0xc8] sm:$0xff] }
 0x60f   : > { %9291 = vmatpush1.bf16.msra.mxu1 %v13224_v59  ;;  %v4722_v59 = vld [vmem:[%s16159_s25 + $0x108] sm:$0xff] }
 0x610   : > { %9293 = vmatprep.subr.bf16.mxu1 %v13238_v46  ;;  %v4721_v46 = vld [vmem:[%s16159_s25 + $0x100] sm:$0xff] }
 0x613   : > { %9295 = vmatpush1.bf16.msra.mxu1 %v13250_v10  ;;  %v4729_v10 = vld [vmem:[%s16159_s25 + $0x140] sm:$0xff] }
 0x614   : > { %9297 = vmatprep.subr.bf16.mxu1 %v13259_v40  ;;  %v4728_v40 = vld [vmem:[%s16159_s25 + $0x138] sm:$0xff] }
 0x617   : > { %9299 = vmatpush1.bf16.msra.mxu1 %v13276_v34  ;;  %v4736_v34 = vld [vmem:[%s16159_s25 + $0x178] sm:$0xff] }
 0x618   : > { %9301 = vmatprep.subr.bf16.mxu1 %v13282_v15 }
 0x61b   : > { %9303 = vmatpush1.bf16.msra.mxu1 %v13301_v47 }
 0x61c   : > { %9305 = vmatprep.subr.bf16.mxu1 %v13310_v1  ;;  %v4735_v1 = vld [vmem:[%s16159_s25 + $0x170] sm:$0xff] }
 0x61f   : > { %9307 = vmatpush1.bf16.msra.mxu1 %v13325_v18 }
 0x620   : > { %9309 = vmatprep.subr.bf16.mxu1 %v13331_v16 }
 0x622   : > { %5234 = vmatmul.mubr.f32.vlgmr.msra.gmra.mrb[8].mxu1 %v4693_v5  ;;  %v4095_v5 = vrot.slane %v4094_v14, 4 }
 0x623   : > { %9311 = vmatpush1.bf16.msra.mxu1 %v13345_v28  ;;  %5239 = vmatprep.mubr.f32.mxu1 %v4701_v27  ;;  %v4695_v28 = vld [vmem:[%s16159_s25 + $0x30] sm:$0xff]  ;;  %s16333_s25 = sld [smem:[#allocation72_spill]] }
 0x624   : > { %v4096_v29 = vadd.f32 %v4095_v5, %v4094_v14 }
 0x626   : > { %5240 = vmatmul.mubr.f32.gmra.mrb[10].mxu1 %v4700_v6  ;;  %v4089_v6 = vadd.f32 %v4088_v48, %v4087_v44 }
 0x627   : > { %5245 = vmatprep.mubr.f32.mxu1 %v4708_v21 }
 0x62a   : > { %5246 = vmatmul.mubr.f32.gmra.mrb[12].mxu1 %v4707_v60  ;;  %v4090_v60 = vrot.slane %v4089_v6, 2 }
 0x62b   : > { %5251 = vmatprep.mubr.f32.mxu1 %v4715_v52  ;;  %v4097_v52 = vrot.slane %v4096_v29, 2 }
 0x62e   : > { %5252 = vmatmul.mubr.f32.gmra.mrb[14].mxu1 %v4714_v38 }
 0x62f   : > { %5257 = vmatprep.mubr.f32.mxu1 %v4722_v59  ;;  %v4091_v59 = vadd.f32 %v4090_v60, %v4089_v6  ;;  %v8804_v6 = vld [vmem:[%s15777_s23 + $0x2] ss:$8 sm:$0x3] }
 0x632   : > { %5258 = vmatmul.mubr.f32.gmra.mrb[16].mxu1 %v4721_v46  ;;  %v4098_v46 = vadd.f32 %v4097_v52, %v4096_v29 }
 0x633   : > { %5263 = vmatprep.mubr.f32.mxu1 %v4729_v10  ;;  %v3132_v15 = vpop.f32.mrb[4].mxu1 }
 0x634   : > { %v3134_v47 = vpop.f32.mrb[5].mxu1 }
 0x636   : > { %5264 = vmatmul.mubr.f32.gmra.mrb[18].mxu1 %v4728_v40 }
 0x637   : > { %5269 = vmatprep.mubr.f32.mxu1 %v4736_v34  ;;  %v3138_v18 = vpop.f32.mrb[6].mxu1  ;;  %v4092_v34 = vrot.slane %v4091_v59, 1 }
 0x638   : > { %v3140_v16 = vpop.f32.mrb[7].mxu1 }
 0x63a   : > { %5270 = vmatmul.mubr.f32.gmra.mrb[20].mxu1 %v4735_v1 }
 0x63b   : > { %5340 = vmatprep.mubr.f32.mxu1 %v16211_v23 }
 0x63e   : > { %8796 = vmatmul.mubr.msk.f32.vlgmr.msra.gmra.mrb[8].mxu1 %vm16257_vm13, %v4695_v28  ;;  %vm16260_vm13 = vmmov %vm16258_vm7 }
 0x63f   : > { %5346 = vmatprep.mubr.f32.mxu1 %v16211_v23 }
 0x642   : > { %8797 = vmatmul.mubr.msk.f32.gmra.mrb[10].mxu1 %vm16258_vm7, %v4702_v2 }
 0x643   : > { %5352 = vmatprep.mubr.f32.mxu1 %v16211_v23 }
 0x646   : > { %8798 = vmatmul.mubr.msk.f32.gmra.mrb[12].mxu1 %vm16259_vm11, %v4709_v11  ;;  %vm16261_vm11 = vmmov %vm16258_vm7 }
 0x647   : > { %5358 = vmatprep.mubr.f32.mxu1 %v16211_v23 }
 0x64a   : > { %8799 = vmatmul.mubr.msk.f32.gmra.mrb[14].mxu1 %vm16260_vm13, %v4716_v25  ;;  %vm16262_vm13 = vmmov %vm16258_vm7 }
 0x64b   : > { %5364 = vmatprep.mubr.f32.mxu1 %v16211_v23 }
 0x64e   : > { %8800 = vmatmul.mubr.msk.f32.gmra.mrb[16].mxu1 %vm16258_vm7, %v4723_v63  ;;  %v5383_v63 = vld [vmem:[%s16263_s24] sm:$0xff]  ;;  %vm16270_vm7 = vcmp.lt.s32.totalorder %v10142_v12, 112 }
 0x64f   : > { %5370 = vmatprep.mubr.f32.mxu1 %v16211_v23 }
 0x652   : > { %8801 = vmatmul.mubr.msk.f32.gmra.mrb[18].mxu1 %vm16261_vm11, %v4730_v35  ;;  %vm16271_vm11 = vmmov %vm16270_vm7 }
 0x653   : > { %5376 = vmatprep.mubr.f32.mxu1 %v16211_v23 }
 0x656   : > { %8802 = vmatmul.mubr.msk.f32.gmra.mrb[20].mxu1 %vm16262_vm13, %v4737_v50  ;;  %vm16273_vm13 = vmmov %vm16270_vm7 }
 0x67b   : > { %v3209_v36 = vpop.f32.mrb[12].mxu0 }
 0x67c   : > { %v3210_v43 = vadd.f32 %v3209_v36, %v3132_v15  ;;  %v3211_v39 = vpop.f32.mrb[13].mxu0  ;;  %v4099_v15 = vrot.slane %v4098_v46, 1  ;;  %v5384_v36 = vld [vmem:[%s16263_s24 + $0x8] sm:$0xff] }
 0x67d   : > { %v3212_v41 = vadd.f32 %v3211_v39, %v3134_v47 }
 0x67e   : > { %v3232_v13 = vmul.f32 %v3225_v61, %v3210_v43 }
 0x67f   : > { %v3215_v56 = vpop.f32.mrb[14].mxu0  ;;  %v3233_v53 = vmul.f32 %v3225_v61, %v3212_v41 }
 0x680   : > { %v13562_v4 = vadd.f32 %v3241_v22, %v3232_v13  ;;  %v3216_v51 = vadd.f32 %v3215_v56, %v3138_v18  ;;  %v3217_v7 = vpop.f32.mrb[15].mxu0  ;;  %v4093_v18 = vadd.f32 %v4092_v34, %v4091_v59  ;;  %v5492_v34 = vrot.slane %v8803_v33, %v16040_v24 }
 0x681   : > { %v3218_v0 = vadd.f32 %v3217_v7, %v3140_v16  ;;  %v13568_v31 = vadd.f32 %v3241_v22, %v3233_v53  ;;  %v4100_v16 = vadd.f32 %v4099_v15, %v4098_v46  ;;  %v5451_v22 = vld [vmem:[%s15777_s23] ss:$8 sm:$0x3]  ;;  %v5488_v46 = vrot.slane %v8803_v33, %v16039_v45  ;;  %v5385_v15 = vld [vmem:[%s16263_s24 + $0x10] sm:$0xff] }
 0x682   : > { %v3234_v19 = vmul.f32 %v3230_v30, %v3216_v51  ;;  %5439 = vrot.lane.b32.xlu1 %v13562_v4, %s16070_s11  ;;  %v13672_v11 = vmul.f32 0.0625, %v4093_v18  ;;  %v5460_v26 = vrot.slane %v5451_v22, %v16040_v24 }
 0x683   : > { %v3235_v3 = vmul.f32 %v3230_v30, %v3218_v0  ;;  %v13677_v35 = vmul.f32 0.0625, %v4100_v16  ;;  %v5520_v16 = vrot.slane %v8804_v6, %v16039_v45 }
 0x684   : > { %v13566_v42 = vadd.f32 %v3246_v58, %v3234_v19 }
 0x685   : > { %v13570_v57 = vadd.f32 %v3246_v58, %v3235_v3  ;;  %v5456_v58 = vrot.slane %v5451_v22, %v16039_v45 }
 0x686   : > { %5471 = vrot.lane.b32.xlu1 %v13562_v4, %s16076_s29  ;;  %5441 = vrot.lane.b32.xlu0 %v13566_v42, %s16070_s11  ;;  %v9330_v37 = vpack.c.bf16 %v13566_v42, %v13562_v4 }
 0x687   : > { %v9328_v17 = vpack.c.bf16 %v13570_v57, %v13568_v31 }
 0x68a   : > { %5503 = vrot.lane.b32.xlu1 %v13562_v4, %s16077_s9  ;;  %5473 = vrot.lane.b32.xlu0 %v13566_v42, %s16076_s29 }
 0x68e   : > { %5535 = vrot.lane.b32.xlu1 %v13562_v4, %s16050_s10  ;;  %5505 = vrot.lane.b32.xlu0 %v13566_v42, %s16077_s9 }
 0x692   : > { %5571 = vrot.lane.b32.xlu1 %v13562_v4, %s16051_s3  ;;  %5537 = vrot.lane.b32.xlu0 %v13566_v42, %s16050_s10 }
 0x696   : > { %5603 = vrot.lane.b32.xlu1 %v13562_v4, %s16083_s0  ;;  %5573 = vrot.lane.b32.xlu0 %v13566_v42, %s16051_s3 }
 0x69a   : > { %5635 = vrot.lane.b32.xlu1 %v13562_v4, %s16085_s7  ;;  %5605 = vrot.lane.b32.xlu0 %v13566_v42, %s16083_s0 }
 0x69e   : > { %5667 = vrot.lane.b32.xlu1 %v13562_v4, %s16115_s5  ;;  %5637 = vrot.lane.b32.xlu0 %v13566_v42, %s16085_s7 }
 0x6a2   : > { %5443 = vrot.lane.b32.xlu1 %v13568_v31, %s16070_s11  ;;  %5669 = vrot.lane.b32.xlu0 %v13566_v42, %s16115_s5 }
 0x6a6   : > { %5475 = vrot.lane.b32.xlu1 %v13568_v31, %s16076_s29  ;;  %5445 = vrot.lane.b32.xlu0 %v13570_v57, %s16070_s11 }
 0x6aa   : > { %5507 = vrot.lane.b32.xlu1 %v13568_v31, %s16077_s9  ;;  %5477 = vrot.lane.b32.xlu0 %v13570_v57, %s16076_s29 }
 0x6ae   : > { %5539 = vrot.lane.b32.xlu1 %v13568_v31, %s16050_s10  ;;  %5509 = vrot.lane.b32.xlu0 %v13570_v57, %s16077_s9 }
 0x6b2   : > { %5575 = vrot.lane.b32.xlu1 %v13568_v31, %s16051_s3  ;;  %5541 = vrot.lane.b32.xlu0 %v13570_v57, %s16050_s10 }
 0x6b6   : > { %5607 = vrot.lane.b32.xlu1 %v13568_v31, %s16083_s0  ;;  %5577 = vrot.lane.b32.xlu0 %v13570_v57, %s16051_s3 }
 0x6ba   : > { %5639 = vrot.lane.b32.xlu1 %v13568_v31, %s16085_s7  ;;  %5609 = vrot.lane.b32.xlu0 %v13570_v57, %s16083_s0 }
 0x6be   : > { %5671 = vrot.lane.b32.xlu1 %v13568_v31, %s16115_s5  ;;  %5641 = vrot.lane.b32.xlu0 %v13570_v57, %s16085_s7 }
 0x6c2   : > { %5673 = vrot.lane.b32.xlu0 %v13570_v57, %s16115_s5 }
 0x6f4   : > { %v5440_v20 = vpop.permute.xlu1 %5439 }
 0x6f8   : > { %v13646_v8 = vpop.permute.xlu1 %5471  ;;  %v5442_v55 = vpop.permute.xlu0 %5441 }
 0x6fc   : > { %v13648_v27 = vpop.permute.xlu1 %5503  ;;  %v13650_v9 = vpop.permute.xlu0 %5473 }
 0x700   : > { %v13652_v21 = vpop.permute.xlu1 %5535  ;;  %v13654_v49 = vpop.permute.xlu0 %5505 }
 0x704   : > { %v13656_v62 = vpop.permute.xlu1 %5571  ;;  %v13658_v38 = vpop.permute.xlu0 %5537 }
 0x708   : > { %v13660_v10 = vpop.permute.xlu1 %5603  ;;  %v13662_v40 = vpop.permute.xlu0 %5573 }
 0x70c   : > { %v13664_v47 = vpop.permute.xlu1 %5635  ;;  %v13666_v1 = vpop.permute.xlu0 %5605 }
 0x710   : > { %v13668_v28 = vpop.permute.xlu1 %5667  ;;  %v13670_v2 = vpop.permute.xlu0 %5637 }
 0x711   : > { %v5342_v25 = vpop.f32.mrb[8].mxu1 }
 0x712   : > { %v5397_v50 = vsub.f32 %v5342_v25, %v13672_v11  ;;  %v5344_v61 = vpop.f32.mrb[9].mxu1 }
 0x713   : > { %v5398_v43 = vsub.f32 %v5344_v61, %v13677_v35 }
 0x714   : > { %v5444_v39 = vpop.permute.xlu1 %5443  ;;  %v13684_v30 = vpop.permute.xlu0 %5669  ;;  %v5411_v41 = vmul.f32 %v5397_v50, %v5383_v63  ;;  %v8805_v50 = vld [vmem:[%s15777_s23 + $0x3] ss:$8 sm:$0x3] }
 0x715   : > { %v5412_v13 = vmul.f32 %v5398_v43, %v5384_v36  ;;  %v5348_v56 = vpop.f32.mrb[10].mxu1  ;;  %v5449_v32 = vsel %vm895_vm1, %v5444_v39, %v5440_v20  ;;  %v5447_v14 = vsel %vm895_vm1, %v5440_v20, %v5444_v39  ;;  %v5524_v43 = vrot.slane %v8804_v6, %v16040_v24  ;;  %v5391_v6 = vld [vmem:[%s16263_s24 + $0x40] sm:$0xff] }
 0x716   : > { %v13690_v51 = vadd.f32 %v5411_v41, %v13672_v11  ;;  %v13692_v7 = vpop.f32.mrb[11].mxu1  ;;  %v5463_v59 = vmul.f32 %v5456_v58, %v5449_v32  ;;  %v5464_v20 = vmul.f32 %v5460_v26, %v5447_v14  ;;  %v5556_v14 = vrot.slane %v8805_v50, %v16040_v24 }
 0x717   : > { %v13695_v53 = vadd.f32 %v5412_v13, %v13677_v35  ;;  %v5400_v32 = vsub.f32 %v13692_v7, %v13677_v35 }
 0x718   : > { %v5476_v0 = vpop.permute.xlu1 %5475  ;;  %v5446_v19 = vpop.permute.xlu0 %5445  ;;  %5699 = vrot.lane.b32.xlu1 %v13690_v51, %s16070_s11 }
 0x719   : > { %v5448_v3 = vsel %vm895_vm1, %v5442_v55, %v5446_v19  ;;  %v5450_v54 = vsel %vm895_vm1, %v5446_v19, %v5442_v55  ;;  %v13710_v44 = vpop.f32.mrb[12].mxu1  ;;  %5795 = vrot.lane.b32.xlu0 %v13695_v53, %s16076_s29  ;;  %v5399_v55 = vsub.f32 %v5348_v56, %v13672_v11  ;;  %v5481_v18 = vsel %vm958_vm2, %v5476_v0, %v13646_v8 }
 0x71a   : > { %v5465_v48 = vmul.f32 %v5456_v58, %v5450_v54  ;;  %v13716_v5 = vpop.f32.mrb[13].mxu1  ;;  %v5466_v29 = vmul.f32 %v5460_v26, %v5448_v3  ;;  %v5479_v61 = vsel %vm958_vm2, %v13646_v8, %v5476_v0  ;;  %v5495_v8 = vmul.f32 %v5488_v46, %v5481_v18 }
 0x71b   : > { %v5413_v26 = vmul.f32 %v5399_v55, %v5385_v15  ;;  %v5552_v0 = vrot.slane %v8805_v50, %v16039_v45  ;;  %v5496_v33 = vmul.f32 %v5492_v34, %v5479_v61  ;;  %v5402_v4 = vsub.f32 %v13716_v5, %v13677_v35 }
 0x71c   : > { %v5508_v60 = vpop.permute.xlu1 %5507  ;;  %v5478_v52 = vpop.permute.xlu0 %5477  ;;  %5781 = vrot.lane.b32.xlu1 %v13690_v51, %s16076_s29  ;;  %v9314_v36 = vpack.c.bf16 %v5465_v48, %v5463_v59  ;;  %v9312_v19 = vpack.c.bf16 %v5466_v29, %v5464_v20 }
 0x71d   : > { %v5480_v25 = vsel %vm958_vm2, %v13650_v9, %v5478_v52  ;;  %v13736_v63 = vpop.f32.mrb[14].mxu1  ;;  %5959 = vrot.lane.b32.xlu0 %v13695_v53, %s16050_s10  ;;  %v5482_v39 = vsel %vm958_vm2, %v5478_v52, %v13650_v9  ;;  %v5513_v13 = vsel %vm1022_vm3, %v5508_v60, %v13648_v27  ;;  %v5511_v54 = vsel %vm1022_vm3, %v13648_v27, %v5508_v60  ;;  %v5392_v27 = vld [vmem:[%s16263_s24 + $0x48] sm:$0xff] }
 0x71e   : > { %v13750_v41 = vpop.f32.mrb[15].mxu1  ;;  %v5497_v22 = vmul.f32 %v5488_v46, %v5482_v39  ;;  %v5498_v56 = vmul.f32 %v5492_v34, %v5480_v25  ;;  %9313 = vmatprep.subr.bf16.mxu0 %v9312_v19  ;;  %v5527_v29 = vmul.f32 %v5520_v16, %v5513_v13  ;;  %v5528_v25 = vmul.f32 %v5524_v43, %v5511_v54 }
 0x71f   : > { %9315 = vmatpush1.bf16.msra.mxu0 %v9314_v36 }
 0x720   : > { %v5540_v58 = vpop.permute.xlu1 %5539  ;;  %v5510_v3 = vpop.permute.xlu0 %5509  ;;  %5863 = vrot.lane.b32.xlu1 %v13690_v51, %s16077_s9  ;;  %v9318_v52 = vpack.c.bf16 %v5497_v22, %v5495_v8  ;;  %v9316_v20 = vpack.c.bf16 %v5498_v56, %v5496_v33  ;;  %v5393_v22 = vld [vmem:[%s16263_s24 + $0x50] sm:$0xff]  ;;  %v5386_v56 = vld [vmem:[%s16263_s24 + $0x18] sm:$0xff] }
 0x721   : > { %v5512_v9 = vsel %vm1022_vm3, %v13654_v49, %v5510_v3  ;;  %v5366_v48 = vpop.f32.mrb[16].mxu1  ;;  %v5514_v7 = vsel %vm1022_vm3, %v5510_v3, %v13654_v49  ;;  %6055 = vrot.lane.b32.xlu0 %v13695_v53, %s16051_s3  ;;  %v13783_v49 = vadd.f32 %v5413_v26, %v13672_v11  ;;  %v5543_v61 = vsel %vm1086_vm4, %v13652_v21, %v5540_v58  ;;  %v5394_v8 = vld [vmem:[%s16263_s24 + $0x58] sm:$0xff] }
 0x722   : > { %v5405_v59 = vsub.f32 %v5366_v48, %v13672_v11  ;;  %v5368_v55 = vpop.f32.mrb[17].mxu1  ;;  %v5529_v60 = vmul.f32 %v5520_v16, %v5514_v7  ;;  %v5530_v46 = vmul.f32 %v5524_v43, %v5512_v9  ;;  %v5545_v36 = vsel %vm1086_vm4, %v5540_v58, %v13652_v21  ;;  %9317 = vmatprep.subr.bf16.mxu0 %v9316_v20 }
 0x723   : > { %v5406_v34 = vsub.f32 %v5368_v55, %v13677_v35  ;;  %9319 = vmatpush1.bf16.msra.mxu0 %v9318_v52  ;;  %v5414_v7 = vmul.f32 %v5400_v32, %v5386_v56 }
 0x724   : > { %v13780_v15 = vpop.permute.xlu1 %5575  ;;  %v5542_v18 = vpop.permute.xlu0 %5541  ;;  %v5419_v50 = vmul.f32 %v5405_v59, %v5391_v6  ;;  %5945 = vrot.lane.b32.xlu1 %v13690_v51, %s16050_s10  ;;  %v9322_v39 = vpack.c.bf16 %v5529_v60, %v5527_v29  ;;  %v9320_v48 = vpack.c.bf16 %v5530_v46, %v5528_v25  ;;  %v8806_v29 = vld [vmem:[%s15777_s23 + $0x5] ss:$8 sm:$0x3]  ;;  %v5560_v59 = vmul.f32 %v5556_v14, %v5543_v61 }
 0x725   : > { %v5544_v16 = vsel %vm1086_vm4, %v13658_v38, %v5542_v18  ;;  %v5420_v13 = vmul.f32 %v5406_v34, %v5392_v27  ;;  %v5372_v43 = vpop.f32.mrb[18].mxu1  ;;  %v5546_v21 = vsel %vm1086_vm4, %v5542_v18, %v13658_v38  ;;  %5701 = vrot.lane.b32.xlu0 %v13783_v49, %s16070_s11  ;;  %v5559_v38 = vmul.f32 %v5552_v0, %v5545_v36  ;;  %v5395_v46 = vld [vmem:[%s16263_s24 + $0x60] sm:$0xff]  ;;  %v5396_v18 = vld [vmem:[%s16263_s24 + $0x68] sm:$0xff] }
 0x726   : > { %v13803_v19 = vadd.f32 %v5419_v50, %v13672_v11  ;;  %v5562_v58 = vmul.f32 %v5556_v14, %v5544_v16  ;;  %v5407_v3 = vsub.f32 %v5372_v43, %v13672_v11  ;;  %v5374_v26 = vpop.f32.mrb[19].mxu1  ;;  %v5561_v33 = vmul.f32 %v5552_v0, %v5546_v21  ;;  %9321 = vmatprep.subr.bf16.mxu0 %v9320_v48  ;;  %v8807_v16 = vld [vmem:[%s15777_s23 + $0x6] ss:$8 sm:$0x3] }
 0x727   : > { %v13813_v9 = vadd.f32 %v5420_v13, %v13677_v35  ;;  %v5408_v54 = vsub.f32 %v5374_v26, %v13677_v35  ;;  %9323 = vmatpush1.bf16.msra.mxu0 %v9322_v39  ;;  %v5592_v25 = vrot.slane %v8806_v29, %v16040_v24  ;;  %v5401_v13 = vsub.f32 %v13710_v44, %v13672_v11  ;;  %v5387_v44 = vld [vmem:[%s16263_s24 + $0x20] sm:$0xff] }
 0x728   : > { %16264 = vst [vmem:[#allocation16_spill] sm:$0xff] %v13803_v19  ;;  %v5578_v6 = vpop.permute.xlu0 %5577  ;;  %v5421_v52 = vmul.f32 %v5407_v3, %v5393_v22  ;;  %6041 = vrot.lane.b32.xlu1 %v13690_v51, %s16051_s3  ;;  %v5608_v27 = vpop.permute.xlu1 %5607  ;;  %v9326_v34 = vpack.c.bf16 %v5561_v33, %v5559_v38  ;;  %v9324_v36 = vpack.c.bf16 %v5562_v58, %v5560_v59 }
 0x729   : > { %16265 = vst [vmem:[#allocation15_spill] sm:$0xff] %v13813_v9  ;;  %v5422_v55 = vmul.f32 %v5408_v54, %v5394_v8  ;;  %v5378_v60 = vpop.f32.mrb[20].mxu1  ;;  %v5582_v20 = vsel %vm1158_vm5, %v5578_v6, %v13662_v40  ;;  %5865 = vrot.lane.b32.xlu0 %v13783_v49, %s16077_s9  ;;  %v5581_v43 = vsel %vm1158_vm5, %v13780_v15, %v13656_v62 }
 0x72a   : > { %v13827_v0 = vadd.f32 %v5421_v52, %v13672_v11  ;;  %v5409_v32 = vsub.f32 %v5378_v60, %v13672_v11  ;;  %v5380_v14 = vpop.f32.mrb[21].mxu1  ;;  %v13855_v56 = vadd.f32 %v5414_v7, %v13677_v35  ;;  %v5580_v21 = vsel %vm1158_vm5, %v13662_v40, %v5578_v6  ;;  %9325 = vmatprep.subr.bf16.mxu0 %v9324_v36 }
 0x72b   : > { %v13838_v50 = vadd.f32 %v5422_v55, %v13677_v35  ;;  %v5410_v61 = vsub.f32 %v5380_v14, %v13677_v35  ;;  %v5598_v58 = vmul.f32 %v5592_v25, %v5582_v20  ;;  %v5588_v26 = vrot.slane %v8806_v29, %v16039_v45  ;;  %9327 = vmatpush1.bf16.msra.mxu0 %v9326_v34 }
 0x72c   : > { %16266 = vst [vmem:[#allocation17_spill] sm:$0xff] %v13827_v0  ;;  %v5610_v39 = vpop.permute.xlu0 %5609  ;;  %v5423_v22 = vmul.f32 %v5409_v32, %v5395_v46  ;;  %5713 = vrot.lane.b32.xlu1 %v13695_v53, %s16070_s11  ;;  %v5624_v8 = vrot.slane %v8807_v16, %v16040_v24  ;;  %v5579_v40 = vsel %vm1158_vm5, %v13656_v62, %v13780_v15  ;;  %v5640_v38 = vpop.permute.xlu1 %5639  ;;  %v8808_v62 = vld [vmem:[%s15777_s23 + $0x7] ss:$8 sm:$0x3] }
 0x72d   : > { %16267 = vst [vmem:[#allocation22_spill] sm:$0xff] %v13838_v50  ;;  %v5424_v3 = vmul.f32 %v5410_v61, %v5396_v18  ;;  %v5614_v54 = vsel %vm1222_vm6, %v5610_v39, %v13666_v1  ;;  %v5596_v48 = vmul.f32 %v5592_v25, %v5581_v43  ;;  %9329 = vmatprep.subr.bf16.mxu0 %v9328_v17 }
 0x72e   : > { %v13866_v33 = vadd.f32 %v5423_v22, %v13672_v11  ;;  %5715 = vrot.lane.b32.xlu0 %v13855_v56, %s16070_s11  ;;  %v5613_v52 = vsel %vm1222_vm6, %v5608_v27, %v13660_v10  ;;  %v5597_v7 = vmul.f32 %v5588_v26, %v5580_v21  ;;  %v5415_v15 = vmul.f32 %v5401_v13, %v5387_v44 }
 0x72f   : > { %v13876_v6 = vadd.f32 %v5424_v3, %v13677_v35  ;;  %v5612_v31 = vsel %vm1222_vm6, %v13666_v1, %v5610_v39  ;;  %v5630_v57 = vmul.f32 %v5624_v8, %v5614_v54  ;;  %v9332_v17 = vpack.c.bf16 %v5598_v58, %v5596_v48  ;;  %9331 = vmatpush1.bf16.msra.mxu0 %v9330_v37 }
 0x730   : > { %16268 = vst [vmem:[#allocation33_spill] sm:$0xff] %v13866_v33  ;;  %v5642_v29 = vpop.permute.xlu0 %5641  ;;  %5877 = vrot.lane.b32.xlu1 %v13695_v53, %s16077_s9  ;;  %v5595_v59 = vmul.f32 %v5588_v26, %v5579_v40  ;;  %v5620_v55 = vrot.slane %v8807_v16, %v16039_v45  ;;  %v5611_v46 = vsel %vm1222_vm6, %v13660_v10, %v5608_v27  ;;  %v8809_v10 = vld [vmem:[%s15777_s23 + $0x20] ss:$8 sm:$0x3]  ;;  %v5672_v14 = vpop.permute.xlu1 %5671 }
 0x731   : > { %16269 = vst [vmem:[#allocation29_spill] sm:$0xff] %v13876_v6  ;;  %v5646_v60 = vsel %vm16270_vm7, %v5642_v29, %v13670_v2  ;;  %v5628_v34 = vmul.f32 %v5624_v8, %v5613_v52  ;;  %v5656_v1 = vrot.slane %v8808_v62, %v16040_v24  ;;  %9333 = vmatprep.subr.bf16.mxu0 %v9332_v17  ;;  %v5388_v16 = vld [vmem:[%s16263_s24 + $0x28] sm:$0xff]  ;;  %vm16274_vm7 = vcmp.lt.s32.totalorder %v10142_v12, 111  ;;  %v5390_v17 = vld [vmem:[%s16263_s24 + $0x38] sm:$0xff] }
 0x732   : > { %5879 = vrot.lane.b32.xlu0 %v13855_v56, %s16077_s9  ;;  %v9334_v42 = vpack.c.bf16 %v5597_v7, %v5595_v59  ;;  %v5645_v37 = vsel %vm16271_vm11, %v5640_v38, %v13664_v47  ;;  %v5629_v32 = vmul.f32 %v5620_v55, %v5612_v31  ;;  %v13918_v27 = vadd.f32 %v5415_v15, %v13672_v11 }
 0x733   : > { %v5644_v5 = vsel %vm16273_vm13, %v13670_v2, %v5642_v29  ;;  %v5662_v18 = vmul.f32 %v5656_v1, %v5646_v60  ;;  %v9336_v25 = vpack.c.bf16 %v5630_v57, %v5628_v34  ;;  %v5627_v61 = vmul.f32 %v5620_v55, %v5611_v46  ;;  %vm16275_vm13 = vmmov %vm16274_vm7  ;;  %v6370_v60 = vld [vmem:[%s16278_s30 + $0x8] sm:$0xff] }
 0x734   : > { %v5674_v20 = vpop.permute.xlu0 %5673  ;;  %5783 = vrot.lane.b32.xlu1 %v13783_v49, %s16076_s29  ;;  %16272 = vst [vmem:[#allocation11_spill] sm:$0xff] %v13918_v27  ;;  %v5652_v36 = vrot.slane %v8808_v62, %v16039_v45  ;;  %9335 = vmatpush1.bf16.msra.mxu0 %v9334_v42  ;;  %v5643_v13 = vsel %vm16271_vm11, %v13664_v47, %v5640_v38  ;;  %vm16276_vm11 = vmmov %vm16274_vm7 }
 0x735   : > { %v5678_v39 = vsel %vm16274_vm7, %v5674_v20, %v13684_v30  ;;  %v5660_v43 = vmul.f32 %v5656_v1, %v5645_v37  ;;  %v5688_v2 = vrot.slane %v8809_v10, %v16040_v24  ;;  %9337 = vmatprep.subr.bf16.mxu0 %v9336_v25  ;;  %v9338_v22 = vpack.c.bf16 %v5629_v32, %v5627_v61  ;;  %v5741_v37 = vld [vmem:[%s15777_s23] ss:$8 sm:$0x3] }
 0x736   : > { %5785 = vrot.lane.b32.xlu0 %v13918_v27, %s16076_s29  ;;  %v5677_v21 = vsel %vm16275_vm13, %v5672_v14, %v13668_v28  ;;  %v5661_v58 = vmul.f32 %v5652_v36, %v5644_v5  ;;  %v5416_v3 = vmul.f32 %v5402_v4, %v5388_v16  ;;  %v5676_v47 = vsel %vm16274_vm7, %v13684_v30, %v5674_v20 }
 0x737   : > { %v5694_v44 = vmul.f32 %v5688_v2, %v5678_v39  ;;  %v9340_v26 = vpack.c.bf16 %v5662_v18, %v5660_v43  ;;  %v5659_v8 = vmul.f32 %v5652_v36, %v5643_v13  ;;  %v5684_v54 = vrot.slane %v8809_v10, %v16039_v45  ;;  %6605 = vmatprep.mubr.f32.mxu0 %v6370_v60 }
 0x738   : > { %5947 = vrot.lane.b32.xlu1 %v13783_v49, %s16050_s10  ;;  %9339 = vmatpush1.bf16.msra.mxu0 %v9338_v22  ;;  %v5675_v40 = vsel %vm16276_vm11, %v13668_v28, %v5672_v14  ;;  %v5692_v48 = vmul.f32 %v5688_v2, %v5677_v21  ;;  %v13953_v30 = vadd.f32 %v5416_v3, %v13677_v35  ;;  %v5389_v28 = vld [vmem:[%s16263_s24 + $0x30] sm:$0xff]  ;;  %vm16297_vm13 = vcmp.lt.s32.totalorder %v10142_v12, 112  ;;  %s16332_s24 = sld [smem:[#allocation70_spill]] }
 0x739   : > { %9341 = vmatprep.subr.bf16.mxu0 %v9340_v26  ;;  %v9342_v38 = vpack.c.bf16 %v5661_v58, %v5659_v8  ;;  %v5693_v29 = vmul.f32 %v5684_v54, %v5676_v47  ;;  %v5403_v52 = vsub.f32 %v13736_v63, %v13672_v11  ;;  %v5691_v62 = vmul.f32 %v5684_v54, %v5675_v40  ;;  %vm16298_vm7 = vmmov %vm16297_vm13 }
 0x73a   : > { %5949 = vrot.lane.b32.xlu0 %v13918_v27, %s16050_s10  ;;  %v9344_v7 = vpack.c.bf16 %v5694_v44, %v5692_v48  ;;  %v5404_v57 = vsub.f32 %v13750_v41, %v13677_v35  ;;  %v14090_v10 = vrot.slane %v5741_v37, %v16039_v45  ;;  %v14093_v14 = vrot.slane %v5741_v37, %v16040_v24  ;;  %vm16299_vm11 = vmmov %vm16298_vm7 }
 0x73b   : > { %v9346_v15 = vpack.c.bf16 %v5693_v29, %v5691_v62  ;;  %v5417_v31 = vmul.f32 %v5403_v52, %v5389_v28  ;;  %vm16301_vm15 = vmmov %vm16298_vm7 }
 0x73c   : > { %5797 = vrot.lane.b32.xlu1 %v13855_v56, %s16076_s29  ;;  %9343 = vmatpush1.bf16.msra.mxu0 %v9342_v38  ;;  %v5418_v59 = vmul.f32 %v5404_v57, %v5390_v17 }
 0x73d   : > { %9345 = vmatprep.subr.bf16.mxu0 %v9344_v7  ;;  %v13969_v63 = vadd.f32 %v5417_v31, %v13672_v11 }
 0x73e   : > { %5799 = vrot.lane.b32.xlu0 %v13953_v30, %s16076_s29  ;;  %v13985_v11 = vadd.f32 %v5418_v59, %v13677_v35 }
 0x73f   : > { %16277 = vst [vmem:[#allocation39_spill] sm:$0xff] %v13969_v63 }
 0x740   : > { %5961 = vrot.lane.b32.xlu1 %v13855_v56, %s16050_s10  ;;  %9347 = vmatpush1.bf16.msra.mxu0 %v9346_v15 }
 0x742   : > { %5963 = vrot.lane.b32.xlu0 %v13953_v30, %s16050_s10 }
 0x744   : > { %5703 = vrot.lane.b32.xlu1 %v13918_v27, %s16070_s11 }
 0x746   : > { %5705 = vrot.lane.b32.xlu0 %v13969_v63, %s16070_s11 }
 0x748   : > { %5867 = vrot.lane.b32.xlu1 %v13918_v27, %s16077_s9 }
 0x74a   : > { %5869 = vrot.lane.b32.xlu0 %v13969_v63, %s16077_s9 }
 0x74c   : > { %5717 = vrot.lane.b32.xlu1 %v13953_v30, %s16070_s11 }
 0x74e   : > { %5719 = vrot.lane.b32.xlu0 %v13985_v11, %s16070_s11 }
 0x750   : > { %5881 = vrot.lane.b32.xlu1 %v13953_v30, %s16077_s9 }
 0x752   : > { %5883 = vrot.lane.b32.xlu0 %v13985_v11, %s16077_s9 }
 0x754   : > { %5787 = vrot.lane.b32.xlu1 %v13969_v63, %s16076_s29 }
 0x756   : > { %5789 = vrot.lane.b32.xlu0 %v13803_v19, %s16076_s29 }
 0x758   : > { %5951 = vrot.lane.b32.xlu1 %v13969_v63, %s16050_s10 }
 0x75a   : > { %5953 = vrot.lane.b32.xlu0 %v13803_v19, %s16050_s10 }
 0x75c   : > { %5801 = vrot.lane.b32.xlu1 %v13985_v11, %s16076_s29 }
 0x75e   : > { %5803 = vrot.lane.b32.xlu0 %v13813_v9, %s16076_s29 }
 0x760   : > { %5965 = vrot.lane.b32.xlu1 %v13985_v11, %s16050_s10 }
 0x762   : > { %5967 = vrot.lane.b32.xlu0 %v13813_v9, %s16050_s10 }
 0x764   : > { %5707 = vrot.lane.b32.xlu1 %v13803_v19, %s16070_s11 }
 0x766   : > { %5709 = vrot.lane.b32.xlu0 %v13827_v0, %s16070_s11 }
 0x768   : > { %5871 = vrot.lane.b32.xlu1 %v13803_v19, %s16077_s9 }
 0x76a   : > { %5873 = vrot.lane.b32.xlu0 %v13827_v0, %s16077_s9 }
 0x76c   : > { %5721 = vrot.lane.b32.xlu1 %v13813_v9, %s16070_s11 }
 0x76e   : > { %5723 = vrot.lane.b32.xlu0 %v13838_v50, %s16070_s11 }
 0x770   : > { %5885 = vrot.lane.b32.xlu1 %v13813_v9, %s16077_s9 }
 0x772   : > { %5887 = vrot.lane.b32.xlu0 %v13838_v50, %s16077_s9 }
 0x774   : > { %5791 = vrot.lane.b32.xlu1 %v13827_v0, %s16076_s29 }
 0x776   : > { %6045 = vrot.lane.b32.xlu0 %v13918_v27, %s16051_s3 }
 0x778   : > { %5955 = vrot.lane.b32.xlu1 %v13827_v0, %s16050_s10 }
 0x77a   : > { %6059 = vrot.lane.b32.xlu0 %v13953_v30, %s16051_s3 }
 0x77c   : > { %5805 = vrot.lane.b32.xlu1 %v13838_v50, %s16076_s29 }
 0x77e   : > { %5793 = vrot.lane.b32.xlu0 %v13866_v33, %s16076_s29 }
 0x780   : > { %5969 = vrot.lane.b32.xlu1 %v13838_v50, %s16050_s10 }
 0x782   : > { %5957 = vrot.lane.b32.xlu0 %v13866_v33, %s16050_s10 }
 0x784   : > { %5711 = vrot.lane.b32.xlu1 %v13866_v33, %s16070_s11 }
 0x786   : > { %5725 = vrot.lane.b32.xlu0 %v13876_v6, %s16070_s11 }
 0x788   : > { %6043 = vrot.lane.b32.xlu1 %v13783_v49, %s16051_s3 }
 0x78a   : > { %v5700_v35 = vpop.permute.xlu1 %5699  ;;  %6049 = vrot.lane.b32.xlu0 %v13803_v19, %s16051_s3 }
 0x78b   : > { %v14049_v41 = vpop.permute.xlu0 %5795 }
 0x78c   : > { %6057 = vrot.lane.b32.xlu1 %v13855_v56, %s16051_s3 }
 0x78e   : > { %v14053_v55 = vpop.permute.xlu1 %5781  ;;  %6063 = vrot.lane.b32.xlu0 %v13813_v9, %s16051_s3 }
 0x78f   : > { %v14060_v46 = vpop.permute.xlu0 %5959 }
 0x790   : > { %6047 = vrot.lane.b32.xlu1 %v13969_v63, %s16051_s3 }
 0x792   : > { %v14064_v34 = vpop.permute.xlu1 %5863  ;;  %5807 = vrot.lane.b32.xlu0 %v13876_v6, %s16076_s29 }
 0x793   : > { %v14070_v1 = vpop.permute.xlu0 %6055 }
 0x794   : > { %5875 = vrot.lane.b32.xlu1 %v13866_v33, %s16077_s9  ;;  %16279 = vst [vmem:[#allocation14_spill] sm:$0xff] %v14070_v1 }
 0x796   : > { %v14072_v20 = vpop.permute.xlu1 %5945  ;;  %6053 = vrot.lane.b32.xlu0 %v13866_v33, %s16051_s3 }
 0x797   : > { %v5702_v4 = vpop.permute.xlu0 %5701 }
 0x798   : > { %6061 = vrot.lane.b32.xlu1 %v13985_v11, %s16051_s3 }
 0x79a   : > { %v14078_v42 = vpop.permute.xlu1 %6041  ;;  %6125 = vrot.lane.b32.xlu0 %v13783_v49, %s16083_s0 }
 0x79b   : > { %v14087_v32 = vpop.permute.xlu0 %5865 }
 0x79c   : > { %6051 = vrot.lane.b32.xlu1 %v13827_v0, %s16051_s3 }
 0x79e   : > { %v5714_v5 = vpop.permute.xlu1 %5713  ;;  %6139 = vrot.lane.b32.xlu0 %v13855_v56, %s16083_s0 }
 0x79f   : > { %v5727_v18 = vsel %vm895_vm1, %v5700_v35, %v5714_v5  ;;  %v5734_v25 = vsel %vm895_vm1, %v5714_v5, %v5700_v35 }
 0x7a0   : > { %6065 = vrot.lane.b32.xlu1 %v13838_v50, %s16051_s3  ;;  %v5753_v16 = vmul.f32 %v14090_v10, %v5734_v25  ;;  %v5754_v61 = vmul.f32 %v14093_v14, %v5727_v18  ;;  %v5716_v36 = vpop.permute.xlu0 %5715 }
 0x7a1   : > { %v5728_v39 = vsel %vm895_vm1, %v5702_v4, %v5716_v36  ;;  %v5735_v13 = vsel %vm895_vm1, %v5716_v36, %v5702_v4 }
 0x7a2   : > { %v14109_v43 = vpop.permute.xlu1 %5877  ;;  %v5755_v2 = vmul.f32 %v14090_v10, %v5735_v13  ;;  %v5756_v22 = vmul.f32 %v14093_v14, %v5728_v39  ;;  %5889 = vrot.lane.b32.xlu0 %v13876_v6, %s16077_s9 }
 0x7a4   : > { %6123 = vrot.lane.b32.xlu1 %v13690_v51, %s16083_s0  ;;  %v9350_v21 = vpack.c.bf16 %v5755_v2, %v5753_v16  ;;  %v14117_v58 = vpop.permute.xlu0 %5879  ;;  %v9348_v3 = vpack.c.bf16 %v5756_v22, %v5754_v61 }
 0x7a6   : > { %v14119_v47 = vpop.permute.xlu1 %5783  ;;  %6129 = vrot.lane.b32.xlu0 %v13969_v63, %s16083_s0  ;;  %9349 = vmatprep.subr.bf16.mxu0 %v9348_v3 }
 0x7a7   : > { %9351 = vmatpush1.bf16.msra.mxu0 %v9350_v21 }
 0x7a8   : > { %6137 = vrot.lane.b32.xlu1 %v13695_v53, %s16083_s0  ;;  %v14125_v44 = vpop.permute.xlu0 %5785 }
 0x7aa   : > { %v14127_v26 = vpop.permute.xlu1 %5947  ;;  %6143 = vrot.lane.b32.xlu0 %v13985_v11, %s16083_s0 }
 0x7ac   : > { %6127 = vrot.lane.b32.xlu1 %v13918_v27, %s16083_s0  ;;  %v14133_v8 = vpop.permute.xlu0 %5949 }
 0x7ae   : > { %v14135_v54 = vpop.permute.xlu1 %5797  ;;  %5971 = vrot.lane.b32.xlu0 %v13876_v6, %s16050_s10 }
 0x7b0   : > { %6141 = vrot.lane.b32.xlu1 %v13953_v30, %s16083_s0  ;;  %v14141_v40 = vpop.permute.xlu0 %5799 }
 0x7b2   : > { %v14143_v48 = vpop.permute.xlu1 %5961  ;;  %6133 = vrot.lane.b32.xlu0 %v13827_v0, %s16083_s0 }
 0x7b4   : > { %6131 = vrot.lane.b32.xlu1 %v13803_v19, %s16083_s0  ;;  %v14149_v38 = vpop.permute.xlu0 %5963 }
 0x7b6   : > { %v5704_v29 = vpop.permute.xlu1 %5703  ;;  %6147 = vrot.lane.b32.xlu0 %v13838_v50, %s16083_s0 }
 0x7b8   : > { %6145 = vrot.lane.b32.xlu1 %v13813_v9, %s16083_s0  ;;  %v5706_v52 = vpop.permute.xlu0 %5705 }
 0x7ba   : > { %v14155_v7 = vpop.permute.xlu1 %5867  ;;  %6219 = vrot.lane.b32.xlu0 %v13695_v53, %s16085_s7 }
 0x7bc   : > { %6135 = vrot.lane.b32.xlu1 %v13866_v33, %s16083_s0  ;;  %v14161_v28 = vpop.permute.xlu0 %5869 }
 0x7be   : > { %v5718_v62 = vpop.permute.xlu1 %5717  ;;  %6209 = vrot.lane.b32.xlu0 %v13918_v27, %s16085_s7 }
 0x7bf   : > { %v5729_v15 = vsel %vm895_vm1, %v5704_v29, %v5718_v62  ;;  %v5736_v31 = vsel %vm895_vm1, %v5718_v62, %v5704_v29 }
 0x7c0   : > { %6205 = vrot.lane.b32.xlu1 %v13690_v51, %s16085_s7  ;;  %v5757_v57 = vmul.f32 %v14090_v10, %v5736_v31  ;;  %v5758_v17 = vmul.f32 %v14093_v14, %v5729_v15  ;;  %v5720_v59 = vpop.permute.xlu0 %5719 }
 0x7c1   : > { %v5730_v35 = vsel %vm895_vm1, %v5706_v52, %v5720_v59  ;;  %v5737_v60 = vsel %vm895_vm1, %v5720_v59, %v5706_v52 }
 0x7c2   : > { %v14177_v4 = vpop.permute.xlu1 %5881  ;;  %v5759_v37 = vmul.f32 %v14090_v10, %v5737_v60  ;;  %v5760_v5 = vmul.f32 %v14093_v14, %v5730_v35  ;;  %6223 = vrot.lane.b32.xlu0 %v13953_v30, %s16085_s7 }
 0x7c4   : > { %6207 = vrot.lane.b32.xlu1 %v13783_v49, %s16085_s7  ;;  %v9354_v18 = vpack.c.bf16 %v5759_v37, %v5757_v57  ;;  %v14185_v25 = vpop.permute.xlu0 %5883  ;;  %v9352_v16 = vpack.c.bf16 %v5760_v5, %v5758_v17 }
 0x7c6   : > { %v14187_v61 = vpop.permute.xlu1 %5787  ;;  %6213 = vrot.lane.b32.xlu0 %v13803_v19, %s16085_s7  ;;  %9353 = vmatprep.subr.bf16.mxu0 %v9352_v16 }
 0x7c7   : > { %9355 = vmatpush1.bf16.msra.mxu0 %v9354_v18 }
 0x7c8   : > { %6221 = vrot.lane.b32.xlu1 %v13855_v56, %s16085_s7  ;;  %v14193_v36 = vpop.permute.xlu0 %5789 }
 0x7ca   : > { %v14195_v39 = vpop.permute.xlu1 %5951  ;;  %6067 = vrot.lane.b32.xlu0 %v13876_v6, %s16051_s3 }
 0x7cc   : > { %6211 = vrot.lane.b32.xlu1 %v13969_v63, %s16085_s7  ;;  %v14201_v13 = vpop.permute.xlu0 %5953 }
 0x7ce   : > { %v14203_v2 = vpop.permute.xlu1 %5801  ;;  %6227 = vrot.lane.b32.xlu0 %v13813_v9, %s16085_s7 }
 0x7d0   : > { %6225 = vrot.lane.b32.xlu1 %v13985_v11, %s16085_s7  ;;  %v14209_v22 = vpop.permute.xlu0 %5803 }
 0x7d2   : > { %v14211_v21 = vpop.permute.xlu1 %5965  ;;  %6217 = vrot.lane.b32.xlu0 %v13866_v33, %s16085_s7 }
 0x7d4   : > { %6215 = vrot.lane.b32.xlu1 %v13827_v0, %s16085_s7  ;;  %v14217_v3 = vpop.permute.xlu0 %5967 }
 0x7d6   : > { %v5708_v29 = vpop.permute.xlu1 %5707  ;;  %6289 = vrot.lane.b32.xlu0 %v13783_v49, %s16115_s5 }
 0x7d8   : > { %6229 = vrot.lane.b32.xlu1 %v13838_v50, %s16085_s7  ;;  %v5710_v52 = vpop.permute.xlu0 %5709 }
 0x7da   : > { %v14223_v62 = vpop.permute.xlu1 %5871  ;;  %6149 = vrot.lane.b32.xlu0 %v13876_v6, %s16083_s0 }
 0x7dc   : > { %6287 = vrot.lane.b32.xlu1 %v13690_v51, %s16115_s5  ;;  %v14229_v15 = vpop.permute.xlu0 %5873 }
 0x7de   : > { %v5722_v31 = vpop.permute.xlu1 %5721  ;;  %6303 = vrot.lane.b32.xlu0 %v13855_v56, %s16115_s5 }
 0x7df   : > { %v5731_v57 = vsel %vm895_vm1, %v5708_v29, %v5722_v31  ;;  %v5738_v17 = vsel %vm895_vm1, %v5722_v31, %v5708_v29 }
 0x7e0   : > { %6301 = vrot.lane.b32.xlu1 %v13695_v53, %s16115_s5  ;;  %v5761_v59 = vmul.f32 %v14090_v10, %v5738_v17  ;;  %v5762_v35 = vmul.f32 %v14093_v14, %v5731_v57  ;;  %v5724_v60 = vpop.permute.xlu0 %5723 }
 0x7e1   : > { %v5732_v37 = vsel %vm895_vm1, %v5710_v52, %v5724_v60  ;;  %v5739_v5 = vsel %vm895_vm1, %v5724_v60, %v5710_v52 }
 0x7e2   : > { %v14245_v18 = vpop.permute.xlu1 %5885  ;;  %v5763_v16 = vmul.f32 %v14090_v10, %v5739_v5  ;;  %v5764_v29 = vmul.f32 %v14093_v14, %v5732_v37  ;;  %6293 = vrot.lane.b32.xlu0 %v13969_v63, %s16115_s5  ;;  %v8810_v5 = vld [vmem:[%s15777_s23 + $0x1] ss:$8 sm:$0x3] }
 0x7e4   : > { %6291 = vrot.lane.b32.xlu1 %v13918_v27, %s16115_s5  ;;  %v9358_v31 = vpack.c.bf16 %v5763_v16, %v5761_v59  ;;  %v14253_v57 = vpop.permute.xlu0 %5887  ;;  %v9356_v17 = vpack.c.bf16 %v5764_v29, %v5762_v35  ;;  %v14289_v29 = vrot.slane %v8810_v5, %v16039_v45 }
 0x7e6   : > { %v14255_v23 = vpop.permute.xlu1 %5791  ;;  %6231 = vrot.lane.b32.xlu0 %v13876_v6, %s16085_s7  ;;  %9357 = vmatprep.subr.bf16.mxu0 %v9356_v17 }
 0x7e7   : > { %9359 = vmatpush1.bf16.msra.mxu0 %v9358_v31  ;;  %v14292_v31 = vrot.slane %v8810_v5, %v16040_v24  ;;  %v5810_v5 = vsel %vm958_vm2, %v14119_v47, %v14135_v54 }
 0x7e8   : > { %6305 = vrot.lane.b32.xlu1 %v13953_v30, %s16115_s5  ;;  %v14261_v52 = vpop.permute.xlu0 %6045 }
 0x7e9   : > { %16280 = vst [vmem:[#allocation41_spill] sm:$0xff] %v14261_v52  ;;  %v5811_v52 = vsel %vm958_vm2, %v14125_v44, %v14141_v40  ;;  %v5838_v63 = vmul.f32 %v14292_v31, %v5810_v5 }
 0x7ea   : > { %v14263_v60 = vpop.permute.xlu1 %5955  ;;  %6307 = vrot.lane.b32.xlu0 %v13985_v11, %s16115_s5  ;;  %v5840_v27 = vmul.f32 %v14292_v31, %v5811_v52 }
 0x7ec   : > { %6295 = vrot.lane.b32.xlu1 %v13803_v19, %s16115_s5  ;;  %v14269_v59 = vpop.permute.xlu0 %6059  ;;  %v5809_v19 = vsel %vm958_vm2, %v14053_v55, %v14049_v41 }
 0x7ed   : > { %16281 = vst [vmem:[#allocation27_spill] sm:$0xff] %v14269_v59 }
 0x7ee   : > { %v14271_v35 = vpop.permute.xlu1 %5805  ;;  %6297 = vrot.lane.b32.xlu0 %v13827_v0, %s16115_s5  ;;  %v6754_v0 = vld [vmem:[%s16282_s12] sm:$0xff]  ;;  %s16355_s12 = smov 5  }
 0x7f0   : > { %6309 = vrot.lane.b32.xlu1 %v13813_v9, %s16115_s5  ;;  %v14277_v37 = vpop.permute.xlu0 %5793 }
 0x7f2   : > { %v14282_v16 = vpop.permute.xlu1 %5969  ;;  %6311 = vrot.lane.b32.xlu0 %v13838_v50, %s16115_s5  ;;  %v6762_v50 = vld [vmem:[%s16283_s13] sm:$0xff]  ;;  %s16339_s13 = sld [smem:[#allocation71_spill]] }
 0x7f4   : > { %6299 = vrot.lane.b32.xlu1 %v13866_v33, %s16115_s5  ;;  %v14294_v17 = vpop.permute.xlu0 %5957  ;;  %v5816_v33 = vsel %vm958_vm2, %v14049_v41, %v14053_v55  ;;  %v5836_v55 = vmul.f32 %v14292_v31, %v5809_v19  ;;  %v5818_v19 = vsel %vm958_vm2, %v14141_v40, %v14125_v44  ;;  %v5819_v44 = vsel %vm958_vm2, %v14203_v2, %v14187_v61 }
 0x7f5   : > { %v5835_v41 = vmul.f32 %v14289_v29, %v5816_v33  ;;  %v5817_v33 = vsel %vm958_vm2, %v14135_v54, %v14119_v47  ;;  %v5813_v47 = vsel %vm958_vm2, %v14193_v36, %v14209_v22 }
 0x7f6   : > { %v5712_v59 = vpop.permute.xlu1 %5711  ;;  %6313 = vrot.lane.b32.xlu0 %v13876_v6, %s16115_s5 }
 0x7f8   : > { %6757 = vperm.xlu1 %9651, %v6754_v0   ;;  %v5726_v9 = vpop.permute.xlu0 %5725 }
 0x7f9   : > { %v5733_v1 = vsel %vm895_vm1, %v5712_v59, %v5726_v9  ;;  %v5740_v6 = vsel %vm895_vm1, %v5726_v9, %v5712_v59  ;;  %v5812_v9 = vsel %vm958_vm2, %v14187_v61, %v14203_v2  ;;  %v5892_v61 = vsel %vm1022_vm3, %v14087_v32, %v14117_v58 }
 0x7fa   : > { %v14328_v0 = vpop.permute.xlu1 %6043  ;;  %v5765_v52 = vmul.f32 %v14090_v10, %v5740_v6  ;;  %v5766_v5 = vmul.f32 %v14093_v14, %v5733_v1  ;;  %6765 = vperm.xlu0 %9650, %v6762_v50   ;;  %v8811_v6 = vld [vmem:[%s15777_s23 + $0x2] ss:$8 sm:$0x3]  ;;  %v5837_v50 = vmul.f32 %v14289_v29, %v5817_v33  ;;  %v5839_v1 = vmul.f32 %v14289_v29, %v5818_v19 }
 0x7fb   : > { %16284 = vst [vmem:[#allocation30_spill] sm:$0xff] %v14328_v0  ;;  %v9364_v14 = vpack.c.bf16 %v5840_v27, %v5838_v63  ;;  %v5842_v40 = vmul.f32 %v14292_v31, %v5812_v9  ;;  %v14368_v33 = vrot.slane %v8811_v6, %v16040_v24  ;;  %v5891_v27 = vsel %vm1022_vm3, %v14064_v34, %v14109_v43 }
 0x7fc   : > { %v9362_v54 = vpack.c.bf16 %v5835_v41, %v5765_v52  ;;  %v14348_v59 = vpop.permute.xlu0 %6049  ;;  %v9360_v0 = vpack.c.bf16 %v5836_v55, %v5766_v5  ;;  %v5820_v41 = vsel %vm958_vm2, %v14209_v22, %v14193_v36  ;;  %v5844_v55 = vmul.f32 %v14292_v31, %v5813_v47 }
 0x7fd   : > { %v9366_v36 = vpack.c.bf16 %v5839_v1, %v5837_v50  ;;  %v5841_v2 = vmul.f32 %v14289_v29, %v5819_v44  ;;  %v5843_v22 = vmul.f32 %v14289_v29, %v5820_v41  ;;  %v14385_v52 = vrot.slane %v8811_v6, %v16039_v45 }
 0x7fe   : > { %v14355_v10 = vpop.permute.xlu1 %6057  ;;  %9361 = vmatprep.subr.bf16.mxu0 %v9360_v0  ;;  %v9368_v19 = vpack.c.bf16 %v5844_v55, %v5842_v40  ;;  %v5898_v5 = vsel %vm1022_vm3, %v14109_v43, %v14064_v34  ;;  %v5814_v9 = vsel %vm958_vm2, %v14255_v23, %v14271_v35  ;;  %v5821_v47 = vsel %vm958_vm2, %v14271_v35, %v14255_v23 }
 0x7ff   : > { %9363 = vmatpush1.bf16.msra.mxu0 %v9362_v54  ;;  %v5918_v54 = vmul.f32 %v14368_v33, %v5891_v27  ;;  %v5899_v6 = vsel %vm1022_vm3, %v14117_v58, %v14087_v32  ;;  %v5920_v34 = vmul.f32 %v14368_v33, %v5892_v61  ;;  %v5893_v43 = vsel %vm1022_vm3, %v14155_v7, %v14177_v4 }
 0x800   : > { %v14374_v63 = vpop.permute.xlu0 %6063  ;;  %9365 = vmatprep.subr.bf16.mxu0 %v9364_v14  ;;  %v5894_v23 = vsel %vm1022_vm3, %v14161_v28, %v14185_v25  ;;  %v9370_v35 = vpack.c.bf16 %v5843_v22, %v5841_v2  ;;  %v5845_v14 = vmul.f32 %v14289_v29, %v5821_v47  ;;  %v5846_v44 = vmul.f32 %v14292_v31, %v5814_v9 }
 0x801   : > { %v5919_v2 = vmul.f32 %v14385_v52, %v5899_v6  ;;  %v5924_v22 = vmul.f32 %v14368_v33, %v5894_v23  ;;  %v5895_v9 = vsel %vm1022_vm3, %v14223_v62, %v14245_v18  ;;  %v5896_v47 = vsel %vm1022_vm3, %v14229_v15, %v14253_v57 }
 0x802   : > { %v14382_v0 = vpop.permute.xlu1 %6047  ;;  %v5902_v23 = vsel %vm1022_vm3, %v14245_v18, %v14223_v62  ;;  %v5973_v62 = vsel %vm1086_vm4, %v14072_v20, %v14060_v46  ;;  %v5980_v18 = vsel %vm1086_vm4, %v14060_v46, %v14072_v20  ;;  %v5975_v46 = vsel %vm1086_vm4, %v14133_v8, %v14149_v38 }
 0x803   : > { %9367 = vmatpush1.bf16.msra.mxu0 %v9366_v36  ;;  %v5917_v36 = vmul.f32 %v14385_v52, %v5898_v5  ;;  %v9376_v5 = vpack.c.bf16 %v5920_v34, %v5918_v54 }
 0x804   : > { %v5808_v50 = vpop.permute.xlu0 %5807  ;;  %9369 = vmatprep.subr.bf16.mxu0 %v9368_v19 }
 0x805   : > { %v5815_v1 = vsel %vm958_vm2, %v14277_v37, %v5808_v50  ;;  %v5822_v32 = vsel %vm958_vm2, %v5808_v50, %v14277_v37  ;;  %v5922_v37 = vmul.f32 %v14368_v33, %v5893_v43  ;;  %v9378_v54 = vpack.c.bf16 %v5919_v2, %v5917_v36 }
 0x806   : > { %v5876_v58 = vpop.permute.xlu1 %5875  ;;  %v5847_v40 = vmul.f32 %v14289_v29, %v5822_v32  ;;  %v5848_v41 = vmul.f32 %v14292_v31, %v5815_v1  ;;  %v5900_v29 = vsel %vm1022_vm3, %v14177_v4, %v14155_v7  ;;  %v5901_v31 = vsel %vm1022_vm3, %v14185_v25, %v14161_v28  ;;  %v6369_v7 = vld [vmem:[%s16278_s30] sm:$0xff]  ;;  %v6372_v28 = vld [vmem:[%s16278_s30 + $0x18] sm:$0xff] }
 0x807   : > { %9371 = vmatpush1.bf16.msra.mxu0 %v9370_v35  ;;  %v8812_v25 = vld [vmem:[%s15777_s23 + $0x3] ss:$8 sm:$0x3]  ;;  %v5921_v6 = vmul.f32 %v14385_v52, %v5900_v29  ;;  %v5923_v34 = vmul.f32 %v14385_v52, %v5901_v31  ;;  %v9380_v50 = vpack.c.bf16 %v5924_v22, %v5922_v37  ;;  %v5926_v35 = vmul.f32 %v14368_v33, %v5895_v9 }
 0x808   : > { %v9374_v55 = vpack.c.bf16 %v5847_v40, %v5845_v14  ;;  %v14423_v27 = vpop.permute.xlu0 %6053  ;;  %v9372_v61 = vpack.c.bf16 %v5848_v41, %v5846_v44  ;;  %v5903_v1 = vsel %vm1022_vm3, %v14253_v57, %v14229_v15  ;;  %v5928_v32 = vmul.f32 %v14368_v33, %v5896_v47 }
 0x809   : > { %v5992_v14 = vrot.slane %v8812_v25, %v16039_v45  ;;  %v5996_v44 = vrot.slane %v8812_v25, %v16040_v24  ;;  %v5974_v57 = vsel %vm1086_vm4, %v14127_v26, %v14143_v48  ;;  %v9382_v40 = vpack.c.bf16 %v5923_v34, %v5921_v6 }
 0x80a   : > { %v14429_v19 = vpop.permute.xlu1 %6061  ;;  %9373 = vmatprep.subr.bf16.mxu0 %v9372_v61  ;;  %v5925_v41 = vmul.f32 %v14385_v52, %v5902_v23  ;;  %v9384_v20 = vpack.c.bf16 %v5928_v32, %v5926_v35  ;;  %v5977_v6 = vsel %vm1086_vm4, %v14201_v13, %v14217_v3  ;;  %v5984_v35 = vsel %vm1086_vm4, %v14217_v3, %v14201_v13 }
 0x80b   : > { %9375 = vmatpush1.bf16.msra.mxu0 %v9374_v55  ;;  %v5927_v55 = vmul.f32 %v14385_v52, %v5903_v1  ;;  %v5999_v36 = vmul.f32 %v5992_v14, %v5980_v18  ;;  %v6000_v2 = vmul.f32 %v5996_v44, %v5973_v62  ;;  %v6002_v37 = vmul.f32 %v5996_v44, %v5974_v57 }
 0x80c   : > { %v14450_v4 = vpop.permute.xlu0 %6125  ;;  %9377 = vmatprep.subr.bf16.mxu0 %v9376_v5  ;;  %v6004_v29 = vmul.f32 %v5996_v44, %v5975_v46  ;;  %v6008_v1 = vmul.f32 %v5996_v44, %v5977_v6  ;;  %v6007_v57 = vmul.f32 %v5992_v14, %v5984_v35  ;;  %v5985_v13 = vsel %vm1086_vm4, %v14282_v16, %v14263_v60  ;;  %v16291_v35 = vld [vmem:[#allocation41_spill] sm:$0xff] }
 0x80d   : > { %v9386_v31 = vpack.c.bf16 %v5927_v55, %v5925_v41 }
 0x80e   : > { %v14460_v43 = vpop.permute.xlu1 %6051  ;;  %6606 = vmatmul.mubr.f32.vlgmr.msra.gmra.mrb[16].mxu0 %v6369_v7  ;;  %v5981_v7 = vsel %vm1086_vm4, %v14143_v48, %v14127_v26 }
 0x80f   : > { %9379 = vmatpush1.bf16.msra.mxu0 %v9378_v54  ;;  %6676 = vmatprep.mubr.f32.mxu0 %v6372_v28  ;;  %v5982_v28 = vsel %vm1086_vm4, %v14149_v38, %v14133_v8  ;;  %v6001_v8 = vmul.f32 %v5992_v14, %v5981_v7 }
 0x810   : > { %v14482_v15 = vpop.permute.xlu0 %6139  ;;  %9381 = vmatprep.subr.bf16.mxu0 %v9380_v50  ;;  %v6003_v38 = vmul.f32 %v5992_v14, %v5982_v28  ;;  %v5983_v50 = vsel %vm1086_vm4, %v14211_v21, %v14195_v39  ;;  %v9408_v28 = vpack.c.bf16 %v13985_v11, %v13953_v30 }
 0x811   : > { %v6005_v18 = vmul.f32 %v5992_v14, %v5983_v50 }
 0x812   : > { %v14490_v61 = vpop.permute.xlu1 %6065  ;;  %v9394_v62 = vpack.c.bf16 %v6003_v38, %v6001_v8  ;;  %v16290_v38 = vld [vmem:[#allocation30_spill] sm:$0xff] }
 0x813   : > { %9383 = vmatpush1.bf16.msra.mxu0 %v9382_v40  ;;  %v9398_v3 = vpack.c.bf16 %v6007_v57, %v6005_v18  ;;  %v16293_v18 = vld [vmem:[#allocation16_spill] sm:$0xff]  ;;  %v16294_v57 = vld [vmem:[#allocation17_spill] sm:$0xff] }
 0x814   : > { %v5890_v22 = vpop.permute.xlu0 %5889  ;;  %9385 = vmatprep.subr.bf16.mxu0 %v9384_v20 }
 0x815   : > { %v5897_v5 = vsel %vm1022_vm3, %v5876_v58, %v5890_v22  ;;  %v5904_v9 = vsel %vm1022_vm3, %v5890_v22, %v5876_v58  ;;  %v5976_v58 = vsel %vm1086_vm4, %v14195_v39, %v14211_v21  ;;  %v5978_v39 = vsel %vm1086_vm4, %v14263_v60, %v14282_v16 }
 0x816   : > { %v14500_v47 = vpop.permute.xlu1 %6123  ;;  %v5929_v25 = vmul.f32 %v14385_v52, %v5904_v9  ;;  %v5930_v54 = vmul.f32 %v14368_v33, %v5897_v5  ;;  %v9392_v33 = vpack.c.bf16 %v6004_v29, %v6002_v37  ;;  %v6006_v23 = vmul.f32 %v5996_v44, %v5976_v58 }
 0x817   : > { %9387 = vmatpush1.bf16.msra.mxu0 %v9386_v31  ;;  %v9404_v5 = vpack.c.bf16 %v13855_v56, %v13695_v53  ;;  %v16285_v53 = vld [vmem:[#allocation14_spill] sm:$0xff] }
 0x818   : > { %v9390_v26 = vpack.c.bf16 %v5999_v36, %v5929_v25  ;;  %v14520_v48 = vpop.permute.xlu0 %6129  ;;  %v9388_v34 = vpack.c.bf16 %v6000_v2, %v5930_v54  ;;  %v9396_v41 = vpack.c.bf16 %v6008_v1, %v6006_v23  ;;  %v6009_v36 = vmul.f32 %v5992_v14, %v5985_v13  ;;  %v16292_v1 = vld [vmem:[#allocation27_spill] sm:$0xff] }
 0x819   : > { %v6010_v2 = vmul.f32 %v5996_v44, %v5978_v39  ;;  %v6076_v56 = vsel %vm1158_vm5, %v16285_v53, %v14078_v42  ;;  %v6069_v30 = vsel %vm1158_vm5, %v14078_v42, %v16285_v53  ;;  %v6078_v42 = vsel %vm1158_vm5, %v16292_v1, %v16291_v35 }
 0x81a   : > { %v14522_v52 = vpop.permute.xlu1 %6137  ;;  %9389 = vmatprep.subr.bf16.mxu0 %v9388_v34  ;;  %v16289_v34 = vld [vmem:[#allocation22_spill] sm:$0xff]  ;;  %v6070_v39 = vsel %vm1158_vm5, %v16290_v38, %v14355_v10  ;;  %v6073_v53 = vsel %vm1158_vm5, %v14348_v59, %v14374_v63 }
 0x81b   : > { %9391 = vmatpush1.bf16.msra.mxu0 %v9390_v26  ;;  %v16288_v26 = vld [vmem:[#allocation15_spill] sm:$0xff] }
 0x81c   : > { %v14532_v32 = vpop.permute.xlu0 %6143  ;;  %9393 = vmatprep.subr.bf16.mxu0 %v9392_v33  ;;  %v9412_v8 = vpack.c.bf16 %v16289_v34, %v16288_v26  ;;  %v6077_v33 = vsel %vm1158_vm5, %v14355_v10, %v16290_v38  ;;  %v16296_v10 = vld [vmem:[#allocation33_spill] sm:$0xff]  ;;  %v6158_v26 = vsel %vm1222_vm6, %v14522_v52, %v14500_v47  ;;  %v6159_v38 = vsel %vm1222_vm6, %v14482_v15, %v14450_v4 }
 0x81e   : > { %v14534_v40 = vpop.permute.xlu1 %6127 }
 0x81f   : > { %9395 = vmatpush1.bf16.msra.mxu0 %v9394_v62 }
 0x820   : > { %v5972_v21 = vpop.permute.xlu0 %5971  ;;  %9397 = vmatprep.subr.bf16.mxu0 %v9396_v41  ;;  %v9414_v41 = vpack.c.bf16 %v16294_v57, %v16293_v18 }
 0x821   : > { %v5979_v55 = vsel %vm1086_vm4, %v14294_v17, %v5972_v21  ;;  %v5986_v46 = vsel %vm1086_vm4, %v5972_v21, %v14294_v17  ;;  %v8813_v17 = vld [vmem:[%s15777_s23 + $0x5] ss:$8 sm:$0x3]  ;;  %v16295_v21 = vld [vmem:[#allocation29_spill] sm:$0xff] }
 0x822   : > { %v14550_v20 = vpop.permute.xlu1 %6141  ;;  %v6011_v37 = vmul.f32 %v5992_v14, %v5986_v46  ;;  %v6012_v22 = vmul.f32 %v5996_v44, %v5979_v55  ;;  %v9406_v44 = vpack.c.bf16 %v13783_v49, %v13690_v51  ;;  %v14568_v7 = vrot.slane %v8813_v17, %v16040_v24  ;;  %v16286_v51 = vld [vmem:[#allocation11_spill] sm:$0xff] }
 0x823   : > { %9399 = vmatpush1.bf16.msra.mxu0 %v9398_v3  ;;  %v6088_v54 = vrot.slane %v8813_v17, %v16039_v45  ;;  %v16287_v49 = vld [vmem:[#allocation39_spill] sm:$0xff]  ;;  %v6079_v55 = vsel %vm1158_vm5, %v14429_v19, %v14382_v0  ;;  %v6071_v46 = vsel %vm1158_vm5, %v16291_v35, %v16292_v1 }
 0x824   : > { %v9402_v60 = vpack.c.bf16 %v6011_v37, %v6009_v36  ;;  %v14552_v16 = vpop.permute.xlu0 %6133  ;;  %v9400_v29 = vpack.c.bf16 %v6012_v22, %v6010_v2  ;;  %v9410_v6 = vpack.c.bf16 %v16287_v49, %v16286_v51  ;;  %v6096_v11 = vmul.f32 %v14568_v7, %v6076_v56 }
 0x825   : > { %v6095_v23 = vmul.f32 %v6088_v54, %v6069_v30  ;;  %v6098_v13 = vmul.f32 %v14568_v7, %v6077_v33  ;;  %v6100_v36 = vmul.f32 %v14568_v7, %v6078_v42  ;;  %v6097_v22 = vmul.f32 %v6088_v54, %v6070_v39 }
 0x826   : > { %v14554_v31 = vpop.permute.xlu1 %6131  ;;  %9401 = vmatprep.subr.bf16.mxu0 %v9400_v29  ;;  %v9416_v3 = vpack.c.bf16 %v6096_v11, %v16295_v21  ;;  %v6072_v29 = vsel %vm1158_vm5, %v14382_v0, %v14429_v19  ;;  %v6102_v17 = vmul.f32 %v14568_v7, %v6079_v55  ;;  %v8814_v0 = vld [vmem:[%s15777_s23 + $0x6] ss:$8 sm:$0x3]  ;;  %v6103_v30 = vmul.f32 %v6088_v54, %v6073_v53 }
 0x827   : > { %9403 = vmatpush1.bf16.msra.mxu0 %v9402_v60  ;;  %v9418_v37 = vpack.c.bf16 %v6095_v23, %v16296_v10  ;;  %v6080_v60 = vsel %vm1158_vm5, %v14374_v63, %v14348_v59  ;;  %v6101_v51 = vmul.f32 %v6088_v54, %v6072_v29  ;;  %v6074_v59 = vsel %vm1158_vm5, %v14460_v43, %v14490_v61 }
 0x828   : > { %v14561_v9 = vpop.permute.xlu0 %6147  ;;  %9405 = vmatprep.subr.bf16.mxu0 %v9404_v5  ;;  %v6104_v56 = vmul.f32 %v14568_v7, %v6080_v60  ;;  %v6081_v63 = vsel %vm1158_vm5, %v14490_v61, %v14460_v43  ;;  %v6105_v23 = vmul.f32 %v6088_v54, %v6074_v59  ;;  %v6151_v42 = vsel %vm1222_vm6, %v14500_v47, %v14522_v52 }
 0x829   : > { %v9426_v34 = vpack.c.bf16 %v6103_v30, %v6101_v51  ;;  %v6106_v43 = vmul.f32 %v14568_v7, %v6081_v63  ;;  %v6170_v39 = vrot.slane %v8814_v0, %v16039_v45  ;;  %v6163_v29 = vsel %vm1222_vm6, %v14561_v9, %v14552_v16 }
 0x82a   : > { %v14563_v14 = vpop.permute.xlu1 %6145  ;;  %v9424_v11 = vpack.c.bf16 %v6104_v56, %v6102_v17  ;;  %v6156_v56 = vsel %vm1222_vm6, %v14552_v16, %v14561_v9 }
 0x82b   : > { %9407 = vmatpush1.bf16.msra.mxu0 %v9406_v44  ;;  %v9420_v44 = vpack.c.bf16 %v6100_v36, %v6098_v13  ;;  %v6160_v13 = vsel %vm1222_vm6, %v14550_v20, %v14534_v40  ;;  %v6162_v10 = vsel %vm1222_vm6, %v14563_v14, %v14554_v31  ;;  %v6155_v17 = vsel %vm1222_vm6, %v14554_v31, %v14563_v14 }
 0x82c   : > { %v14576_v25 = vpop.permute.xlu0 %6219  ;;  %9409 = vmatprep.subr.bf16.mxu0 %v9408_v28  ;;  %v6099_v28 = vmul.f32 %v6088_v54, %v6071_v46  ;;  %v6153_v46 = vsel %vm1222_vm6, %v14534_v40, %v14550_v20  ;;  %v6187_v9 = vmul.f32 %v6170_v39, %v6156_v56 }
 0x82d   : > { %v6181_v20 = vmul.f32 %v6170_v39, %v6153_v46 }
 0x82e   : > { %v14579_v58 = vpop.permute.xlu1 %6135 }
 0x82f   : > { %9411 = vmatpush1.bf16.msra.mxu0 %v9410_v6  ;;  %v9422_v6 = vpack.c.bf16 %v6099_v28, %v6097_v22 }
 0x830   : > { %v14594_v50 = vpop.permute.xlu0 %6209  ;;  %9413 = vmatprep.subr.bf16.mxu0 %v9412_v8  ;;  %v14658_v8 = vrot.slane %v8814_v0, %v16040_v24 }
 0x832   : > { %v14600_v62 = vpop.permute.xlu1 %6205  ;;  %v6178_v18 = vmul.f32 %v14658_v8, %v6158_v26  ;;  %v6180_v47 = vmul.f32 %v14658_v8, %v6159_v38  ;;  %v6188_v51 = vmul.f32 %v14658_v8, %v6163_v29 }
 0x833   : > { %9415 = vmatpush1.bf16.msra.mxu0 %v9414_v41  ;;  %v6233_v59 = vsel %vm16297_vm13, %v14600_v62, %v14576_v25  ;;  %v6240_v63 = vsel %vm16298_vm7, %v14576_v25, %v14600_v62  ;;  %v6374_v25 = vld [vmem:[%s16278_s30 + $0x28] sm:$0xff]  ;;  %vm6537_vm13 = vcmask 64512  }
 0x834   : > { %v14619_v2 = vpop.permute.xlu0 %6223  ;;  %9417 = vmatprep.subr.bf16.mxu0 %v9416_v3  ;;  %v6161_v3 = vsel %vm1222_vm6, %v14532_v32, %v14520_v48 }
 0x835   : > { %v6184_v22 = vmul.f32 %v14658_v8, %v6161_v3 }
 0x836   : > { %v14630_v5 = vpop.permute.xlu1 %6207 }
 0x837   : > { %9419 = vmatpush1.bf16.msra.mxu0 %v9418_v37  ;;  %v6154_v37 = vsel %vm1222_vm6, %v14520_v48, %v14532_v32  ;;  %v8815_v48 = vld [vmem:[%s15777_s23 + $0x7] ss:$8 sm:$0x3] }
 0x838   : > { %v14638_v49 = vpop.permute.xlu0 %6213  ;;  %9421 = vmatprep.subr.bf16.mxu0 %v9420_v44  ;;  %v6186_v44 = vmul.f32 %v14658_v8, %v6162_v10  ;;  %v6183_v53 = vmul.f32 %v6170_v39, %v6154_v37  ;;  %v14733_v31 = vrot.slane %v8815_v48, %v16039_v45  ;;  %v14738_v30 = vrot.slane %v8815_v48, %v16040_v24 }
 0x83a   : > { %v14643_v19 = vpop.permute.xlu1 %6221  ;;  %v9438_v0 = vpack.c.bf16 %v6183_v53, %v6181_v20  ;;  %v6260_v62 = vmul.f32 %v14738_v30, %v6240_v63 }
 0x83b   : > { %9423 = vmatpush1.bf16.msra.mxu0 %v9422_v6  ;;  %v6185_v6 = vmul.f32 %v6170_v39, %v6155_v17  ;;  %v6241_v26 = vsel %vm16299_vm11, %v14643_v19, %v14630_v5  ;;  %vm16300_vm11 = vmmov %vm16298_vm7 }
 0x83c   : > { %v6068_v33 = vpop.permute.xlu0 %6067  ;;  %9425 = vmatprep.subr.bf16.mxu0 %v9424_v11  ;;  %v9440_v11 = vpack.c.bf16 %v6188_v51, %v6186_v44 }
 0x83d   : > { %v6075_v61 = vsel %vm1158_vm5, %v14423_v27, %v6068_v33  ;;  %v6082_v35 = vsel %vm1158_vm5, %v6068_v33, %v14423_v27  ;;  %v6152_v27 = vsel %vm1222_vm6, %v14450_v4, %v14482_v15  ;;  %v6182_v4 = vmul.f32 %v14658_v8, %v6160_v13 }
 0x83e   : > { %v14671_v1 = vpop.permute.xlu1 %6211  ;;  %v6107_v57 = vmul.f32 %v6088_v54, %v6075_v61  ;;  %v6108_v41 = vmul.f32 %v14568_v7, %v6082_v35  ;;  %v6177_v7 = vmul.f32 %v6170_v39, %v6151_v42  ;;  %v9432_v15 = vpack.c.bf16 %v6180_v47, %v6178_v18 }
 0x83f   : > { %9427 = vmatpush1.bf16.msra.mxu0 %v9426_v34  ;;  %v6179_v36 = vmul.f32 %v6170_v39, %v6152_v27  ;;  %v9436_v28 = vpack.c.bf16 %v6184_v22, %v6182_v4  ;;  %v6371_v34 = vld [vmem:[%s16278_s30 + $0x10] sm:$0xff]  ;;  %v9442_v38 = vpack.c.bf16 %v6187_v9, %v6185_v6  ;;  %v6259_v33 = vmul.f32 %v14733_v31, %v6233_v59 }
 0x840   : > { %v9430_v52 = vpack.c.bf16 %v6107_v57, %v6105_v23  ;;  %v14689_v21 = vpop.permute.xlu0 %6227  ;;  %v9428_v54 = vpack.c.bf16 %v6108_v41, %v6106_v43  ;;  %v6242_v43 = vsel %vm16298_vm7, %v14619_v2, %v14594_v50  ;;  %v6234_v18 = vsel %vm16300_vm11, %v14630_v5, %v14643_v19  ;;  %vm16302_vm11 = vmmov %vm16298_vm7 }
 0x841   : > { %v9434_v40 = vpack.c.bf16 %v6179_v36, %v6177_v7  ;;  %v6262_v57 = vmul.f32 %v14738_v30, %v6241_v26  ;;  %v6264_v5 = vmul.f32 %v14738_v30, %v6242_v43 }
 0x842   : > { %v14695_v55 = vpop.permute.xlu1 %6225  ;;  %9429 = vmatprep.subr.bf16.mxu0 %v9428_v54 }
 0x843   : > { %9431 = vmatpush1.bf16.msra.mxu0 %v9430_v52  ;;  %v6243_v27 = vsel %vm16298_vm7, %v14695_v55, %v14671_v1  ;;  %v6244_v52 = vsel %vm16302_vm11, %v14689_v21, %v14638_v49  ;;  %vm16305_vm11 = vcmp.lt.s32.totalorder %v10142_v12, 111 }
 0x844   : > { %v14711_v60 = vpop.permute.xlu0 %6217  ;;  %9433 = vmatprep.subr.bf16.mxu0 %v9432_v15  ;;  %v6268_v4 = vmul.f32 %v14738_v30, %v6244_v52 }
 0x846   : > { %v14724_v32 = vpop.permute.xlu1 %6215 }
 0x847   : > { %9435 = vmatpush1.bf16.msra.mxu0 %v9434_v40 }
 0x848   : > { %v14735_v14 = vpop.permute.xlu0 %6289  ;;  %9437 = vmatprep.subr.bf16.mxu0 %v9436_v28 }
 0x84a   : > { %v6230_v16 = vpop.permute.xlu1 %6229 }
 0x84b   : > { %9439 = vmatpush1.bf16.msra.mxu0 %v9438_v0  ;;  %v6238_v22 = vsel %vm16298_vm7, %v14724_v32, %v6230_v16 }
 0x84c   : > { %v6150_v23 = vpop.permute.xlu0 %6149  ;;  %9441 = vmatprep.subr.bf16.mxu0 %v9440_v11  ;;  %v6269_v44 = vmul.f32 %v14733_v31, %v6238_v22 }
 0x84d   : > { %v6157_v61 = vsel %vm1222_vm6, %v14579_v58, %v6150_v23  ;;  %v6164_v35 = vsel %vm1222_vm6, %v6150_v23, %v14579_v58  ;;  %v6235_v58 = vsel %vm16301_vm15, %v14594_v50, %v14619_v2  ;;  %v6266_v50 = vmul.f32 %v14738_v30, %v6243_v27  ;;  %vm16304_vm15 = vmmov %vm16298_vm7 }
 0x84e   : > { %v6288_v42 = vpop.permute.xlu1 %6287  ;;  %v6189_v41 = vmul.f32 %v6170_v39, %v6157_v61  ;;  %v6190_v13 = vmul.f32 %v14658_v8, %v6164_v35  ;;  %6677 = vmatmul.mubr.f32.vlgmr.msra.gmra.mrb[16].mxu0 %v6371_v34  ;;  %v6261_v8 = vmul.f32 %v14733_v31, %v6234_v18  ;;  %v9448_v2 = vpack.c.bf16 %v6264_v5, %v6262_v57 }
 0x84f   : > { %9443 = vmatpush1.bf16.msra.mxu0 %v9442_v38  ;;  %8817 = vmatprep.mubr.msk.f32.mxu0 %vm6537_vm13, %v6374_v25  ;;  %vm16303_vm13 = vmmov %vm16298_vm7  ;;  %v6263_v3 = vmul.f32 %v14733_v31, %v6235_v58  ;;  %v6237_v46 = vsel %vm16304_vm15, %v14638_v49, %v14689_v21  ;;  %v9452_v21 = vpack.c.bf16 %v6268_v4, %v6266_v50 }
 0x850   : > { %v9446_v19 = vpack.c.bf16 %v6259_v33, %v6189_v41  ;;  %v6304_v47 = vpop.permute.xlu0 %6303  ;;  %v9444_v39 = vpack.c.bf16 %v6260_v62, %v6190_v13  ;;  %v6236_v54 = vsel %vm16303_vm13, %v14671_v1, %v14695_v55  ;;  %v8816_v1 = vld [vmem:[%s15777_s23 + $0x20] ss:$8 sm:$0x3]  ;;  %v6267_v37 = vmul.f32 %v14733_v31, %v6237_v46  ;;  %vm16306_vm13 = vmmov %vm16298_vm7 }
 0x851   : > { %v6265_v15 = vmul.f32 %v14733_v31, %v6236_v54  ;;  %v9450_v36 = vpack.c.bf16 %v6263_v3, %v6261_v8  ;;  %v6245_v40 = vsel %vm16306_vm13, %v6230_v16, %v14724_v32  ;;  %v6338_v20 = vrot.slane %v8816_v1, %v16040_v24  ;;  %vm16307_vm15 = vmmov %vm16305_vm11 }
 0x852   : > { %v6302_v7 = vpop.permute.xlu1 %6301  ;;  %9445 = vmatprep.subr.bf16.mxu0 %v9444_v39  ;;  %v6323_v17 = vsel %vm16307_vm15, %v6304_v47, %v14735_v14  ;;  %v6270_v51 = vmul.f32 %v14738_v30, %v6245_v40  ;;  %vm16309_vm13 = vmmov %vm16307_vm15  ;;  %v6334_v16 = vrot.slane %v8816_v1, %v16039_v45 }
 0x853   : > { %9447 = vmatpush1.bf16.msra.mxu0 %v9446_v19  ;;  %v6322_v49 = vsel %vm16305_vm11, %v6302_v7, %v6288_v42  ;;  %v9454_v29 = vpack.c.bf16 %v6267_v37, %v6265_v15  ;;  %vm16308_vm11 = vmmov %vm16298_vm7  ;;  %v6315_v6 = vsel %vm16309_vm13, %v6288_v42, %v6302_v7  ;;  %v6344_v9 = vmul.f32 %v6338_v20, %v6323_v17 }
 0x854   : > { %v6294_v55 = vpop.permute.xlu0 %6293  ;;  %9449 = vmatprep.subr.bf16.mxu0 %v9448_v2  ;;  %v6342_v28 = vmul.f32 %v6338_v20, %v6322_v49  ;;  %vm16310_vm15 = vmmov %vm16309_vm13  ;;  %v6341_v38 = vmul.f32 %v6334_v16, %v6315_v6  ;;  %v8819_v6 = vld [vmem:[%s15777_s23 + $0x22] ss:$8 sm:$0x3] }
 0x856   : > { %v6292_v10 = vpop.permute.xlu1 %6291 }
 0x857   : > { %9451 = vmatpush1.bf16.msra.mxu0 %v9450_v36  ;;  %v16319_v36 = vmov 0.0  }
 0x858   : > { %v6232_v48 = vpop.permute.xlu0 %6231  ;;  %9453 = vmatprep.subr.bf16.mxu0 %v9452_v21 }
 0x859   : > { %v6239_v53 = vsel %vm16298_vm7, %v14711_v60, %v6232_v48  ;;  %v6246_v32 = vsel %vm16308_vm11, %v6232_v48, %v14711_v60  ;;  %vm16311_vm7 = vmmov %vm16309_vm13 }
 0x85a   : > { %v6306_v56 = vpop.permute.xlu1 %6305  ;;  %v6271_v0 = vmul.f32 %v14733_v31, %v6239_v53  ;;  %v6272_v59 = vmul.f32 %v14738_v30, %v6246_v32  ;;  %v6316_v60 = vsel %vm16311_vm7, %v14735_v14, %v6304_v47  ;;  %vm16312_vm11 = vmmov %vm16311_vm7  ;;  %v9460_v30 = vpack.c.bf16 %v6344_v9, %v6342_v28  ;;  %v7056_v53 = vld [vmem:[%s15769_s15] sm:$0xff] }
 0x85b   : > { %v6324_v63 = vsel %vm16310_vm15, %v6306_v56, %v6292_v10  ;;  %9455 = vmatpush1.bf16.msra.mxu0 %v9454_v29  ;;  %vm16313_vm13 = vmmov %vm16311_vm7  ;;  %v6343_v61 = vmul.f32 %v6334_v16, %v6316_v60  ;;  %v7064_v32 = vld [vmem:[%s15770_s16] sm:$0xff]  ;;  %v6811_v9 = vrot.slane %v8819_v6, %v16039_v45 }
 0x85c   : > { %v9458_v11 = vpack.c.bf16 %v6271_v0, %v6269_v44  ;;  %v6308_v26 = vpop.permute.xlu0 %6307  ;;  %v9456_v34 = vpack.c.bf16 %v6272_v59, %v6270_v51  ;;  %v6317_v23 = vsel %vm16313_vm13, %v6292_v10, %v6306_v56  ;;  %v6346_v25 = vmul.f32 %v6338_v20, %v6324_v63  ;;  %vm16314_vm15 = vmmov %vm16311_vm7  ;;  %v8818_v51 = vld [vmem:[%s15777_s23 + $0x21] ss:$8 sm:$0x3] }
 0x85d   : > { %v6325_v31 = vsel %vm16312_vm11, %v6308_v26, %v6294_v55  ;;  %v6318_v62 = vsel %vm16314_vm15, %v6294_v55, %v6308_v26  ;;  %v9462_v35 = vpack.c.bf16 %v6343_v61, %v6341_v38  ;;  %v6345_v42 = vmul.f32 %v6334_v16, %v6317_v23  ;;  %vm16315_vm11 = vmmov %vm16311_vm7  ;;  %v6373_v55 = vld [vmem:[%s16278_s30 + $0x20] sm:$0xff] }
 0x85e   : > { %v6296_v33 = vpop.permute.xlu1 %6295  ;;  %v6348_v43 = vmul.f32 %v6338_v20, %v6325_v31  ;;  %9457 = vmatprep.subr.bf16.mxu0 %v9456_v34  ;;  %v6347_v18 = vmul.f32 %v6334_v16, %v6318_v62  ;;  %vm16316_vm13 = vmmov %vm16311_vm7  ;;  %v6789_v59 = vrot.slane %v8818_v51, %v16039_v45  ;;  %v6815_v63 = vrot.slane %v8819_v6, %v16040_v24  ;;  %v8821_v61 = vld [vmem:[%s15777_s23 + $0x24] ss:$8 sm:$0x3] }
 0x85f   : > { %9459 = vmatpush1.bf16.msra.mxu0 %v9458_v11  ;;  %vm16317_vm15 = vmmov %vm16311_vm7 }
 0x860   : > { %v6298_v14 = vpop.permute.xlu0 %6297  ;;  %9461 = vmatprep.subr.bf16.mxu0 %v9460_v30  ;;  %v9464_v27 = vpack.c.bf16 %v6348_v43, %v6346_v25  ;;  %v9466_v47 = vpack.c.bf16 %v6347_v18, %v6345_v42  ;;  %v8820_v43 = vld [vmem:[%s15777_s23 + $0x23] ss:$8 sm:$0x3] }
 0x861   : > { %v6835_v18 = vrot.slane %v8820_v43, %v16039_v45 }
 0x862   : > { %v6310_v57 = vpop.permute.xlu1 %6309 }
 0x863   : > { %v6319_v41 = vsel %vm16311_vm7, %v6296_v33, %v6310_v57  ;;  %v6326_v13 = vsel %vm16315_vm11, %v6310_v57, %v6296_v33  ;;  %9463 = vmatpush1.bf16.msra.mxu0 %v9462_v35  ;;  %vm16318_vm11 = vmmov %vm16311_vm7  ;;  %v6839_v57 = vrot.slane %v8820_v43, %v16040_v24 }
 0x864   : > { %v6349_v58 = vmul.f32 %v6334_v16, %v6319_v41  ;;  %v6350_v5 = vmul.f32 %v6338_v20, %v6326_v13  ;;  %v6312_v19 = vpop.permute.xlu0 %6311  ;;  %9465 = vmatprep.subr.bf16.mxu0 %v9464_v27  ;;  %v6857_v41 = vrot.slane %v8821_v61, %v16039_v45  ;;  %v6861_v13 = vrot.slane %v8821_v61, %v16040_v24  ;;  %v8822_v27 = vld [vmem:[%s15777_s23 + $0x25] ss:$8 sm:$0x3] }
 0x865   : > { %v6320_v39 = vsel %vm16316_vm13, %v6298_v14, %v6312_v19  ;;  %v6327_v8 = vsel %vm16317_vm15, %v6312_v19, %v6298_v14  ;;  %v6962_v61 = vld [vmem:[%s15768_s14] sm:$0xff] }
 0x866   : > { %v6351_v52 = vmul.f32 %v6334_v16, %v6320_v39  ;;  %v6352_v54 = vmul.f32 %v6338_v20, %v6327_v8  ;;  %v6300_v7 = vpop.permute.xlu1 %6299 }
 0x867   : > { %9467 = vmatpush1.bf16.msra.mxu0 %v9466_v47 }
 0x868   : > { %v9470_v50 = vpack.c.bf16 %v6351_v52, %v6349_v58  ;;  %v6314_v2 = vpop.permute.xlu0 %6313  ;;  %v9468_v3 = vpack.c.bf16 %v6352_v54, %v6350_v5  ;;  %v6881_v52 = vrot.slane %v8822_v27, %v16039_v45  ;;  %v6885_v54 = vrot.slane %v8822_v27, %v16040_v24 }
 0x869   : > { %v6328_v46 = vsel %vm16311_vm7, %v6314_v2, %v6300_v7  ;;  %v6321_v4 = vsel %vm16318_vm11, %v6300_v7, %v6314_v2  ;;  %vm6780_vm7 = vcmp.lt.s32.totalorder %v10142_v12, 34  ;;  %vm16324_vm11 = vcmp.lt.s32.totalorder %v10142_v12, 32 }
 0x86a   : > { %v6354_v15 = vmul.f32 %v6338_v20, %v6328_v46  ;;  %9469 = vmatprep.subr.bf16.mxu0 %v9468_v3  ;;  %v6353_v1 = vmul.f32 %v6334_v16, %v6321_v4  ;;  %v6793_v16 = vrot.slane %v8818_v51, %v16040_v24  ;;  %v8825_v51 = vld [vmem:[%s15777_s23 + $0x40] ss:$8 sm:$0x3] }
 0x86b   : > { %9471 = vmatpush1.bf16.msra.mxu0 %v9470_v50 }
 0x86c   : > { %6715 = vmatprep.subr.mxu0 %v6354_v15 }
 0x86f   : > { %6716 = vmatpush1.msra.mxu0 %v6353_v1 }
 0x870   : > { %6748 = vmatmul.mubr.f32.vlgmr.msra.gmra.mrb[16].mxu0 %v6373_v55 }
 0x871   : > { %7049 = vmatprep.mubr.f32.mxu0 %v16319_v36 }
 0x877   : > { %v6758_v10 = vpop.permute.xlu1 %6757 }
 0x879   : > { %v6766_v21 = vpop.permute.xlu0 %6765 }
 0x943   : > { %v6749_v37 = vpop.f32.mrb[16].mxu0 }
 0x944   : > { %v6760_v22 = vmul.f32 %v6758_v10, %v6749_v37  ;;  %v6751_v49 = vpop.f32.mrb[17].mxu0 }
 0x945   : > { %v6761_v40 = vmul.f32 %v6758_v10, %v6751_v49 }
 0x946   : > { %v6768_v29 = vadd.f32 %v6766_v21, %v6760_v22 }
 0x947   : > { %v6769_v20 = vadd.f32 %v6766_v21, %v6761_v40  ;;  %v8823_v21 = vld [vmem:[%s15777_s23 + $0x26] ss:$8 sm:$0x3]  ;;  %v8824_v40 = vld [vmem:[%s15777_s23 + $0x27] ss:$8 sm:$0x3] }
 0x948   : > { %vm6770_vm13 = vcmp.ge.f32.partialorder %v6768_v29, 0.0  ;;  %v6772_v17 = vmul.f32 0.1, %v6768_v29 }
 0x949   : > { %vm6771_vm15 = vcmp.ge.f32.partialorder %v6769_v20, 0.0  ;;  %v6773_v48 = vmul.f32 0.1, %v6769_v20 }
 0x94a   : > { %v14858_v44 = vsel %vm6770_vm13, %v6768_v29, %v6772_v17  ;;  %vm16325_vm13 = vmmov %vm16324_vm11 }
 0x94b   : > { %v14860_v28 = vsel %vm6771_vm15, %v6769_v20, %v6773_v48  ;;  %6776 = vrot.lane.b32.xlu1 %v14858_v44, %s9765_s4  ;;  %vm6826_vm15 = vcmp.lt.s32.totalorder %v10142_v12, 30  ;;  %v6905_v48 = vrot.slane %v8823_v21, %v16039_v45 }
 0x94c   : > { %6778 = vrot.lane.b32.xlu0 %v14860_v28, %s9765_s4  ;;  %s16329_s4 = smov 60  }
 0x94f   : > { %6800 = vrot.lane.b32.xlu1 %v14858_v44, %s16320_s27 }
 0x950   : > { %6802 = vrot.lane.b32.xlu0 %v14860_v28, %s16320_s27 }
 0x953   : > { %6822 = vrot.lane.b32.xlu1 %v14858_v44, %s9766_s17 }
 0x954   : > { %6824 = vrot.lane.b32.xlu0 %v14860_v28, %s9766_s17 }
 0x957   : > { %6846 = vrot.lane.b32.xlu1 %v14858_v44, %s16321_s21 }
 0x958   : > { %6848 = vrot.lane.b32.xlu0 %v14860_v28, %s16321_s21 }
 0x95b   : > { %6870 = vrot.lane.b32.xlu1 %v14858_v44, %s16322_s20 }
 0x95c   : > { %6872 = vrot.lane.b32.xlu0 %v14860_v28, %s16322_s20 }
 0x95f   : > { %6892 = vrot.lane.b32.xlu1 %v14858_v44, %s9767_s1 }
 0x960   : > { %6894 = vrot.lane.b32.xlu0 %v14860_v28, %s9767_s1  ;;  %s16354_s1 = smov 6  }
 0x963   : > { %6916 = vrot.lane.b32.xlu1 %v14858_v44, %s16323_s6 }
 0x964   : > { %6918 = vrot.lane.b32.xlu0 %v14860_v28, %s16323_s6 }
 0x967   : > { %6938 = vrot.lane.b32.xlu1 %v14858_v44, %s9768_s22 }
 0x968   : > { %6940 = vrot.lane.b32.xlu0 %v14860_v28, %s9768_s22 }
 0x96b   : > { %7059 = vperm.xlu1 %9651, %v7056_v53   ;;  %v6909_v53 = vrot.slane %v8823_v21, %v16040_v24 }
 0x96c   : > { %7067 = vperm.xlu0 %9650, %v7064_v32   ;;  %v6927_v32 = vrot.slane %v8824_v40, %v16039_v45 }
 0x9bd   : > { %v6777_v56 = vpop.permute.xlu1 %6776 }
 0x9be   : > { %v6779_v0 = vpop.permute.xlu0 %6778 }
 0x9bf   : > { %v6781_v60 = vsel %vm6780_vm7, %v6777_v56, %v6779_v0  ;;  %v6782_v11 = vsel %vm6780_vm7, %v6779_v0, %v6777_v56  ;;  %vm6896_vm7 = vcmp.lt.s32.totalorder %v10142_v12, 98  ;;  %v6931_v56 = vrot.slane %v8824_v40, %v16040_v24 }
 0x9c0   : > { %v6796_v33 = vmul.f32 %v6789_v59, %v6782_v11  ;;  %v6797_v30 = vmul.f32 %v6793_v16, %v6781_v60 }
 0x9c1   : > { %v6801_v26 = vpop.permute.xlu1 %6800 }
 0x9c2   : > { %v6803_v34 = vpop.permute.xlu0 %6802 }
 0x9c3   : > { %v6804_v38 = vsel %vm16324_vm11, %v6801_v26, %v6803_v34  ;;  %v6805_v31 = vsel %vm16325_vm13, %v6803_v34, %v6801_v26  ;;  %vm16326_vm11 = vcmp.lt.s32.totalorder %v10142_v12, 96 }
 0x9c4   : > { %v6818_v23 = vmul.f32 %v6811_v9, %v6805_v31  ;;  %v6819_v25 = vmul.f32 %v6815_v63, %v6804_v38  ;;  %vm16327_vm13 = vmmov %vm16326_vm11  ;;  %v6955_v9 = vrot.slane %v8825_v51, %v16040_v24 }
 0x9c5   : > { %v6823_v62 = vpop.permute.xlu1 %6822 }
 0x9c6   : > { %v9474_v14 = vpack.c.bf16 %v6818_v23, %v6796_v33  ;;  %v6825_v35 = vpop.permute.xlu0 %6824  ;;  %v9472_v42 = vpack.c.bf16 %v6819_v25, %v6797_v30  ;;  %v6951_v30 = vrot.slane %v8825_v51, %v16039_v45  ;;  %v8833_v51 = vld [vmem:[%s15777_s23 + $0x47] ss:$8 sm:$0x3] }
 0x9c7   : > { %v6827_v58 = vsel %vm6826_vm15, %v6823_v62, %v6825_v35  ;;  %v6828_v5 = vsel %vm6826_vm15, %v6825_v35, %v6823_v62  ;;  %vm6942_vm15 = vcmp.lt.s32.totalorder %v10142_v12, 94 }
 0x9c8   : > { %9473 = vmatprep.subr.bf16.mxu0 %v9472_v42  ;;  %v6842_v7 = vmul.f32 %v6835_v18, %v6828_v5  ;;  %v6843_v50 = vmul.f32 %v6839_v57, %v6827_v58 }
 0x9c9   : > { %v6847_v19 = vpop.permute.xlu1 %6846  ;;  %9475 = vmatpush1.bf16.msra.mxu0 %v9474_v14 }
 0x9ca   : > { %v6849_v47 = vpop.permute.xlu0 %6848 }
 0x9cb   : > { %v6850_v39 = vsel %vm3783_vm14, %v6847_v19, %v6849_v47  ;;  %v6851_v8 = vsel %vm3783_vm14, %v6849_v47, %v6847_v19 }
 0x9cc   : > { %v6864_v2 = vmul.f32 %v6857_v41, %v6851_v8  ;;  %v6865_v3 = vmul.f32 %v6861_v13, %v6850_v39  ;;  %v7335_v39 = vld [vmem:[%s15772_s18] sm:$0xff] }
 0x9cd   : > { %v6871_v46 = vpop.permute.xlu1 %6870  ;;  %v7343_v8 = vld [vmem:[%s15773_s19] sm:$0xff] }
 0x9ce   : > { %v9478_v4 = vpack.c.bf16 %v6864_v2, %v6842_v7  ;;  %v6873_v15 = vpop.permute.xlu0 %6872  ;;  %v9476_v1 = vpack.c.bf16 %v6865_v3, %v6843_v50  ;;  %v8828_v7 = vld [vmem:[%s15777_s23 + $0x42] ss:$8 sm:$0x3] }
 0x9cf   : > { %v6874_v55 = vsel %vm3901_vm0, %v6871_v46, %v6873_v15  ;;  %v6875_v10 = vsel %vm3901_vm0, %v6873_v15, %v6871_v46  ;;  %v7112_v46 = vrot.slane %v8828_v7, %v16039_v45 }
 0x9d0   : > { %v6888_v37 = vmul.f32 %v6881_v52, %v6874_v55  ;;  %v6889_v22 = vmul.f32 %v6885_v54, %v6875_v10  ;;  %9477 = vmatprep.subr.bf16.mxu0 %v9476_v1  ;;  %v8827_v54 = vld [vmem:[%s15777_s23 + $0x41] ss:$8 sm:$0x3] }
 0x9d1   : > { %v6893_v49 = vpop.permute.xlu1 %6892  ;;  %9479 = vmatpush1.bf16.msra.mxu0 %v9478_v4  ;;  %v7090_v2 = vrot.slane %v8827_v54, %v16039_v45  ;;  %v7094_v3 = vrot.slane %v8827_v54, %v16040_v24  ;;  %v7116_v4 = vrot.slane %v8828_v7, %v16040_v24 }
 0x9d2   : > { %v9482_v29 = vpack.c.bf16 %v6888_v37, %v14858_v44  ;;  %v6895_v20 = vpop.permute.xlu0 %6894  ;;  %v9480_v17 = vpack.c.bf16 %v6889_v22, %v14860_v28 }
 0x9d3   : > { %v6897_v6 = vsel %vm6896_vm7, %v6893_v49, %v6895_v20  ;;  %v6898_v44 = vsel %vm6896_vm7, %v6895_v20, %v6893_v49  ;;  %vm6981_vm7 = vcmask 588800  }
 0x9d4   : > { %9481 = vmatprep.subr.bf16.mxu0 %v9480_v17  ;;  %v6912_v63 = vmul.f32 %v6905_v48, %v6897_v6  ;;  %v6913_v60 = vmul.f32 %v6909_v53, %v6898_v44  ;;  %v8829_v17 = vld [vmem:[%s15777_s23 + $0x43] ss:$8 sm:$0x3]  ;;  %v8830_v48 = vld [vmem:[%s15777_s23 + $0x44] ss:$8 sm:$0x3] }
 0x9d5   : > { %v6917_v0 = vpop.permute.xlu1 %6916  ;;  %9483 = vmatpush1.bf16.msra.mxu0 %v9482_v29  ;;  %v7135_v6 = vrot.slane %v8829_v17, %v16039_v45  ;;  %v7139_v44 = vrot.slane %v8829_v17, %v16040_v24 }
 0x9d6   : > { %v6919_v59 = vpop.permute.xlu0 %6918 }
 0x9d7   : > { %v6920_v28 = vsel %vm16326_vm11, %v6917_v0, %v6919_v59  ;;  %v6921_v16 = vsel %vm16327_vm13, %v6919_v59, %v6917_v0  ;;  %v7157_v0 = vrot.slane %v8830_v48, %v16039_v45  ;;  %v7161_v59 = vrot.slane %v8830_v48, %v16040_v24 }
 0x9d8   : > { %v6934_v11 = vmul.f32 %v6927_v32, %v6920_v28  ;;  %v6935_v26 = vmul.f32 %v6931_v56, %v6921_v16  ;;  %v8831_v28 = vld [vmem:[%s15777_s23 + $0x45] ss:$8 sm:$0x3] }
 0x9d9   : > { %v6939_v34 = vpop.permute.xlu1 %6938 }
 0x9da   : > { %v9486_v38 = vpack.c.bf16 %v6934_v11, %v6912_v63  ;;  %v6941_v31 = vpop.permute.xlu0 %6940  ;;  %v9484_v33 = vpack.c.bf16 %v6935_v26, %v6913_v60  ;;  %v7218_v60 = vrot.slane %v8833_v51, %v16040_v24  ;;  %v8832_v26 = vld [vmem:[%s15777_s23 + $0x46] ss:$8 sm:$0x3] }
 0x9db   : > { %v6944_v23 = vsel %vm6942_vm15, %v6941_v31, %v6939_v34  ;;  %v6943_v25 = vsel %vm6942_vm15, %v6939_v34, %v6941_v31  ;;  %vm16330_vm15 = vcmp.lt.s32.totalorder %v10142_v12, 64  ;;  %v7181_v31 = vrot.slane %v8831_v28, %v16039_v45 }
 0x9dc   : > { %v6959_v62 = vmul.f32 %v6955_v9, %v6944_v23  ;;  %9485 = vmatprep.subr.bf16.mxu0 %v9484_v33  ;;  %v6958_v43 = vmul.f32 %v6951_v30, %v6943_v25  ;;  %v7185_v33 = vrot.slane %v8831_v28, %v16040_v24 }
 0x9dd   : > { %9487 = vmatpush1.bf16.msra.mxu0 %v9486_v38 }
 0x9de   : > { %7001 = vmatprep.subr.mxu0 %v6959_v62 }
 0x9e1   : > { %7002 = vmatpush1.msra.mxu0 %v6958_v43 }
 0x9e2   : > { %8826 = vmatmul.mubr.msk.f32.vlgmr.msra.gmra.mrb[18].mxu0 %vm6981_vm7, %v6962_v61  ;;  %v7202_v61 = vrot.slane %v8832_v26, %v16040_v24 }
 0x9e3   : > { %7328 = vmatprep.mubr.f32.mxu0 %v16319_v36 }
 0x9ea   : > { %v7060_v14 = vpop.permute.xlu1 %7059 }
 0x9eb   : > { %v7068_v57 = vpop.permute.xlu0 %7067 }
 0xab5   : > { %v7051_v35 = vpop.f32.mrb[18].mxu0 }
 0xab6   : > { %v7062_v42 = vmul.f32 %v7060_v14, %v7051_v35  ;;  %v7053_v18 = vpop.f32.mrb[19].mxu0 }
 0xab7   : > { %v7063_v41 = vmul.f32 %v7060_v14, %v7053_v18  ;;  %v7214_v18 = vrot.slane %v8833_v51, %v16039_v45  ;;  %v8836_v51 = vld [vmem:[%s15777_s23 + $0x1] ss:$8 sm:$0x3] }
 0xab8   : > { %v7070_v13 = vadd.f32 %v7068_v57, %v7062_v42  ;;  %v7394_v28 = vrot.slane %v8836_v51, %v16040_v24 }
 0xab9   : > { %v7071_v27 = vadd.f32 %v7068_v57, %v7063_v41 }
 0xaba   : > { %vm7072_vm11 = vcmp.ge.f32.partialorder %v7070_v13, 0.0  ;;  %v7074_v58 = vmul.f32 0.1, %v7070_v13 }
 0xabb   : > { %vm7073_vm13 = vcmp.ge.f32.partialorder %v7071_v27, 0.0  ;;  %v7075_v5 = vmul.f32 0.1, %v7071_v27 }
 0xabc   : > { %v14959_v19 = vsel %vm7072_vm11, %v7070_v13, %v7074_v58  ;;  %vm16331_vm11 = vmmov %vm16330_vm15 }
 0xabd   : > { %v14961_v47 = vsel %vm7073_vm13, %v7071_v27, %v7075_v5  ;;  %7078 = vrot.lane.b32.xlu1 %v14959_v19, %s16328_s2  ;;  %v7198_v5 = vrot.slane %v8832_v26, %v16039_v45 }
 0xabe   : > { %7080 = vrot.lane.b32.xlu0 %v14961_v47, %s16328_s2 }
 0xac1   : > { %7101 = vrot.lane.b32.xlu1 %v14959_v19, %s16041_s26 }
 0xac2   : > { %7103 = vrot.lane.b32.xlu0 %v14961_v47, %s16041_s26 }
 0xac5   : > { %7123 = vrot.lane.b32.xlu1 %v14959_v19, %s16329_s4 }
 0xac6   : > { %7125 = vrot.lane.b32.xlu0 %v14961_v47, %s16329_s4  ;;  %s16334_s4 = sld [smem:[#allocation73_spill]] }
 0xac9   : > { %7146 = vrot.lane.b32.xlu1 %v14959_v19, %s16106_s28 }
 0xaca   : > { %7148 = vrot.lane.b32.xlu0 %v14961_v47, %s16106_s28 }
 0xacd   : > { %7170 = vrot.lane.b32.xlu1 %v14959_v19, %s16109_s8 }
 0xace   : > { %7172 = vrot.lane.b32.xlu0 %v14961_v47, %s16109_s8 }
 0xad1   : > { %7338 = vperm.xlu1 %9651, %v7335_v39   ;;  %v8834_v39 = vld [vmem:[%s15777_s23 + $0x60] ss:$8 sm:$0x3] }
 0xad2   : > { %7346 = vperm.xlu0 %9650, %v7343_v8  }
 0xb2f   : > { %v7079_v52 = vpop.permute.xlu1 %7078 }
 0xb30   : > { %v7081_v50 = vpop.permute.xlu0 %7080 }
 0xb31   : > { %v7082_v15 = vsel %vm4161_vm12, %v7079_v52, %v7081_v50  ;;  %v7083_v1 = vsel %vm4161_vm12, %v7081_v50, %v7079_v52  ;;  %v7235_v50 = vrot.slane %v8834_v39, %v16040_v24 }
 0xb32   : > { %v7097_v49 = vmul.f32 %v7090_v2, %v7083_v1  ;;  %v7098_v21 = vmul.f32 %v7094_v3, %v7082_v15  ;;  %v7206_v8 = vmul.f32 %v7202_v61, %v7083_v1  ;;  %v7205_v3 = vmul.f32 %v7198_v5, %v7082_v15 }
 0xb33   : > { %v7102_v55 = vpop.permute.xlu1 %7101 }
 0xb34   : > { %v7104_v10 = vpop.permute.xlu0 %7103 }
 0xb35   : > { %v7105_v37 = vsel %vm16330_vm15, %v7102_v55, %v7104_v10  ;;  %v7106_v22 = vsel %vm16331_vm11, %v7104_v10, %v7102_v55  ;;  %vm16344_vm11 = vcmp.lt.s32.totalorder %v10142_v12, 96 }
 0xb36   : > { %v7119_v40 = vmul.f32 %v7112_v46, %v7106_v22  ;;  %v7120_v29 = vmul.f32 %v7116_v4, %v7105_v37  ;;  %v7222_v13 = vmul.f32 %v7218_v60, %v7106_v22  ;;  %v7221_v7 = vmul.f32 %v7214_v18, %v7105_v37 }
 0xb37   : > { %v7124_v20 = vpop.permute.xlu1 %7123  ;;  %v7231_v4 = vrot.slane %v8834_v39, %v16039_v45 }
 0xb38   : > { %v9490_v53 = vpack.c.bf16 %v7119_v40, %v7097_v49  ;;  %v7126_v32 = vpop.permute.xlu0 %7125  ;;  %v9488_v56 = vpack.c.bf16 %v7120_v29, %v7098_v21  ;;  %v9500_v2 = vpack.c.bf16 %v7222_v13, %v7206_v8  ;;  %v9502_v46 = vpack.c.bf16 %v7221_v7, %v7205_v3 }
 0xb39   : > { %v7127_v16 = vsel %vm4210_vm9, %v7124_v20, %v7126_v32  ;;  %v7128_v9 = vsel %vm4210_vm9, %v7126_v32, %v7124_v20 }
 0xb3a   : > { %9489 = vmatprep.subr.bf16.mxu0 %v9488_v56  ;;  %v7142_v30 = vmul.f32 %v7135_v6, %v7128_v9  ;;  %v7143_v23 = vmul.f32 %v7139_v44, %v7127_v16  ;;  %v7239_v55 = vmul.f32 %v7235_v50, %v7128_v9  ;;  %v7238_v10 = vmul.f32 %v7231_v4, %v7127_v16  ;;  %v7363_v56 = vld [vmem:[%s15777_s23] ss:$8 sm:$0x3] }
 0xb3b   : > { %9491 = vmatpush1.bf16.msra.mxu0 %v9490_v53  ;;  %v7147_v63 = vpop.permute.xlu1 %7146  ;;  %v7636_v53 = vld [vmem:[%s16334_s4] sm:$0x3]  ;;  %v7368_v44 = vrot.slane %v7363_v56, %v16039_v45 }
 0xb3c   : > { %v7149_v11 = vpop.permute.xlu0 %7148 }
 0xb3d   : > { %v7150_v34 = vsel %vm3707_vm10, %v7147_v63, %v7149_v11  ;;  %v7151_v38 = vsel %vm3707_vm10, %v7149_v11, %v7147_v63 }
 0xb3e   : > { %v7164_v25 = vmul.f32 %v7157_v0, %v7151_v38  ;;  %v7165_v62 = vmul.f32 %v7161_v59, %v7150_v34  ;;  %v7372_v0 = vrot.slane %v7363_v56, %v16040_v24  ;;  %v7390_v59 = vrot.slane %v8836_v51, %v16039_v45 }
 0xb3f   : > { %v7171_v43 = vpop.permute.xlu1 %7170 }
 0xb40   : > { %v9494_v14 = vpack.c.bf16 %v7164_v25, %v7142_v30  ;;  %v7173_v35 = vpop.permute.xlu0 %7172  ;;  %v9492_v42 = vpack.c.bf16 %v7165_v62, %v7143_v23  ;;  %v8837_v23 = vld [vmem:[%s15777_s23 + $0x2] ss:$8 sm:$0x3]  ;;  %v8838_v25 = vld [vmem:[%s15777_s23 + $0x3] ss:$8 sm:$0x3] }
 0xb41   : > { %v7174_v57 = vsel %vm3977_vm8, %v7171_v43, %v7173_v35  ;;  %v7175_v41 = vsel %vm3977_vm8, %v7173_v35, %v7171_v43  ;;  %v7416_v35 = vrot.slane %v8837_v23, %v16040_v24  ;;  %v7438_v18 = vrot.slane %v8838_v25, %v16040_v24 }
 0xb42   : > { %v7188_v27 = vmul.f32 %v7181_v31, %v7174_v57  ;;  %v7189_v58 = vmul.f32 %v7185_v33, %v7175_v41  ;;  %9493 = vmatprep.subr.bf16.mxu0 %v9492_v42  ;;  %v7434_v42 = vrot.slane %v8838_v25, %v16039_v45  ;;  %v8839_v57 = vld [vmem:[%s15777_s23 + $0x5] ss:$8 sm:$0x3] }
 0xb43   : > { %9495 = vmatpush1.bf16.msra.mxu0 %v9494_v14  ;;  %v7412_v14 = vrot.slane %v8837_v23, %v16039_v45  ;;  %v7458_v8 = vrot.slane %v8839_v57, %v16039_v45  ;;  %v7535_v23 = vld [vmem:[%s16339_s13] sm:$0x3]  ;;  %s16360_s13 = sld [smem:[#allocation76_spill]] }
 0xb44   : > { %v9498_v52 = vpack.c.bf16 %v7188_v27, %v14959_v19  ;;  %v9496_v54 = vpack.c.bf16 %v7189_v58, %v14961_v47  ;;  %v7242_v19 = vld [vmem:[%s16332_s24] sm:$0xff]  ;;  %s16340_s24 = smov 80  }
 0xb46   : > { %9497 = vmatprep.subr.bf16.mxu0 %v9496_v54 }
 0xb47   : > { %9499 = vmatpush1.bf16.msra.mxu0 %v9498_v52  ;;  %v7462_v52 = vrot.slane %v8839_v57, %v16040_v24 }
 0xb48   : > { %9501 = vmatprep.subr.bf16.mxu0 %v9500_v2 }
 0xb4b   : > { %9503 = vmatpush1.bf16.msra.mxu0 %v9502_v46 }
 0xb4c   : > { %7280 = vmatprep.subr.mxu0 %v7239_v55 }
 0xb4f   : > { %7281 = vmatpush1.msra.mxu0 %v7238_v10 }
 0xb50   : > { %8835 = vmatmul.mubr.msk.f32.vlgmr.msra.gmra.mrb[20].mxu0 %vm6981_vm7, %v7242_v19  ;;  %v7339_v47 = vpop.permute.xlu1 %7338 }
 0xb51   : > { %7621 = vmatprep.mubr.f32.mxu0 %v16319_v36  ;;  %v7347_v22 = vpop.permute.xlu0 %7346  ;;  %v7628_v36 = vld [vmem:[%s16333_s25] sm:$0x3] }
 0xc23   : > { %v7330_v15 = vpop.f32.mrb[20].mxu0 }
 0xc24   : > { %v7341_v1 = vmul.f32 %v7339_v47, %v7330_v15  ;;  %v7332_v37 = vpop.f32.mrb[21].mxu0 }
 0xc25   : > { %v7342_v49 = vmul.f32 %v7339_v47, %v7332_v37  ;;  %v8840_v37 = vld [vmem:[%s15777_s23 + $0x6] ss:$8 sm:$0x3] }
 0xc26   : > { %v7349_v21 = vadd.f32 %v7347_v22, %v7341_v1 }
 0xc27   : > { %v7350_v40 = vadd.f32 %v7347_v22, %v7342_v49  ;;  %v8841_v22 = vld [vmem:[%s15777_s23 + $0x7] ss:$8 sm:$0x3] }
 0xc28   : > { %vm7351_vm12 = vcmp.ge.f32.partialorder %v7349_v21, 0.0  ;;  %v7353_v29 = vmul.f32 0.1, %v7349_v21 }
 0xc29   : > { %vm7352_vm9 = vcmp.ge.f32.partialorder %v7350_v40, 0.0  ;;  %v7354_v20 = vmul.f32 0.1, %v7350_v40 }
 0xc2a   : > { %v15056_v17 = vsel %vm7351_vm12, %v7349_v21, %v7353_v29  ;;  %v7480_v29 = vrot.slane %v8840_v37, %v16039_v45  ;;  %vm16345_vm12 = vmmov %vm16344_vm11 }
 0xc2b   : > { %v15058_v48 = vsel %vm7352_vm9, %v7350_v40, %v7354_v20  ;;  %7357 = vrot.lane.b32.xlu1 %v15056_v17, %s16070_s11  ;;  %v7484_v20 = vrot.slane %v8840_v37, %v16040_v24  ;;  %vm16346_vm9 = vcmp.lt.s32.totalorder %v10142_v12, 64 }
 0xc2c   : > { %7359 = vrot.lane.b32.xlu0 %v15058_v48, %s16070_s11  ;;  %s16341_s11 = smov 48  }
 0xc2f   : > { %7379 = vrot.lane.b32.xlu1 %v15056_v17, %s16076_s29 }
 0xc30   : > { %7381 = vrot.lane.b32.xlu0 %v15058_v48, %s16076_s29 }
 0xc33   : > { %7401 = vrot.lane.b32.xlu1 %v15056_v17, %s16077_s9 }
 0xc34   : > { %7403 = vrot.lane.b32.xlu0 %v15058_v48, %s16077_s9 }
 0xc37   : > { %7423 = vrot.lane.b32.xlu1 %v15056_v17, %s16050_s10 }
 0xc38   : > { %7425 = vrot.lane.b32.xlu0 %v15058_v48, %s16050_s10 }
 0xc3b   : > { %7447 = vrot.lane.b32.xlu1 %v15056_v17, %s16051_s3 }
 0xc3c   : > { %7449 = vrot.lane.b32.xlu0 %v15058_v48, %s16051_s3 }
 0xc3f   : > { %7469 = vrot.lane.b32.xlu1 %v15056_v17, %s16083_s0 }
 0xc40   : > { %7471 = vrot.lane.b32.xlu0 %v15058_v48, %s16083_s0 }
 0xc43   : > { %7491 = vrot.lane.b32.xlu1 %v15056_v17, %s16085_s7 }
 0xc44   : > { %7493 = vrot.lane.b32.xlu0 %v15058_v48, %s16085_s7 }
 0xc47   : > { %7513 = vrot.lane.b32.xlu1 %v15056_v17, %s16115_s5 }
 0xc48   : > { %7515 = vrot.lane.b32.xlu0 %v15058_v48, %s16115_s5  ;;  %s16356_s5 = smov 3  }
 0xc4b   : > { %7631 = vperm.xlu1 %9651, %v7628_v36   ;;  %v7502_v36 = vrot.slane %v8841_v22, %v16039_v45 }
 0xc4c   : > { %7639 = vperm.xlu0 %9650, %v7636_v53   ;;  %v7506_v53 = vrot.slane %v8841_v22, %v16040_v24 }
 0xc9d   : > { %v7358_v32 = vpop.permute.xlu1 %7357 }
 0xc9e   : > { %v7360_v6 = vpop.permute.xlu0 %7359 }
 0xc9f   : > { %v7361_v16 = vsel %vm895_vm1, %v7358_v32, %v7360_v6  ;;  %v7362_v9 = vsel %vm895_vm1, %v7360_v6, %v7358_v32  ;;  %v8842_v32 = vld [vmem:[%s15777_s23 + $0x20] ss:$8 sm:$0x3]  ;;  %vm16335_vm1 = vcmp.lt.s32.totalorder %v10142_v12, 112 }
 0xca0   : > { %v7375_v34 = vmul.f32 %v7368_v44, %v7362_v9  ;;  %v7376_v38 = vmul.f32 %v7372_v0, %v7361_v16  ;;  %v7528_v0 = vrot.slane %v8842_v32, %v16040_v24 }
 0xca1   : > { %v7380_v63 = vpop.permute.xlu1 %7379 }
 0xca2   : > { %v7382_v60 = vpop.permute.xlu0 %7381 }
 0xca3   : > { %v7383_v11 = vsel %vm958_vm2, %v7380_v63, %v7382_v60  ;;  %v7384_v26 = vsel %vm958_vm2, %v7382_v60, %v7380_v63 }
 0xca4   : > { %v7397_v31 = vmul.f32 %v7390_v59, %v7384_v26  ;;  %v7398_v33 = vmul.f32 %v7394_v28, %v7383_v11 }
 0xca5   : > { %v7402_v30 = vpop.permute.xlu1 %7401 }
 0xca6   : > { %v9506_v62 = vpack.c.bf16 %v7397_v31, %v7375_v34  ;;  %v7404_v43 = vpop.permute.xlu0 %7403  ;;  %v9504_v61 = vpack.c.bf16 %v7398_v33, %v7376_v38  ;;  %v7524_v34 = vrot.slane %v8842_v32, %v16039_v45 }
 0xca7   : > { %v7405_v41 = vsel %vm1022_vm3, %v7402_v30, %v7404_v43  ;;  %v7406_v13 = vsel %vm1022_vm3, %v7404_v43, %v7402_v30  ;;  %vm16336_vm3 = vmmov %vm16335_vm1 }
 0xca8   : > { %9505 = vmatprep.subr.bf16.mxu0 %v9504_v61  ;;  %v7419_v54 = vmul.f32 %v7412_v14, %v7406_v13  ;;  %v7420_v7 = vmul.f32 %v7416_v35, %v7405_v41  ;;  %v8845_v13 = vld [vmem:[%s15777_s23 + $0x63] ss:$8 sm:$0x3] }
 0xca9   : > { %9507 = vmatpush1.bf16.msra.mxu0 %v9506_v62  ;;  %v7424_v27 = vpop.permute.xlu1 %7423 }
 0xcaa   : > { %v7426_v58 = vpop.permute.xlu0 %7425 }
 0xcab   : > { %v7427_v5 = vsel %vm1086_vm4, %v7424_v27, %v7426_v58  ;;  %v7428_v39 = vsel %vm1086_vm4, %v7426_v58, %v7424_v27  ;;  %v8844_v58 = vld [vmem:[%s15777_s23 + $0x61] ss:$8 sm:$0x3] }
 0xcac   : > { %v7441_v50 = vmul.f32 %v7434_v42, %v7428_v39  ;;  %v7442_v2 = vmul.f32 %v7438_v18, %v7427_v5  ;;  %v7679_v39 = vrot.slane %v8845_v13, %v16039_v45 }
 0xcad   : > { %v7448_v3 = vpop.permute.xlu1 %7447 }
 0xcae   : > { %v9510_v46 = vpack.c.bf16 %v7441_v50, %v7419_v54  ;;  %v7450_v4 = vpop.permute.xlu0 %7449  ;;  %v9508_v55 = vpack.c.bf16 %v7442_v2, %v7420_v7  ;;  %v7655_v50 = vrot.slane %v8844_v58, %v16039_v45  ;;  %v7659_v2 = vrot.slane %v8844_v58, %v16040_v24 }
 0xcaf   : > { %v7451_v10 = vsel %vm1158_vm5, %v7448_v3, %v7450_v4  ;;  %v7452_v19 = vsel %vm1158_vm5, %v7450_v4, %v7448_v3 }
 0xcb0   : > { %v7465_v47 = vmul.f32 %v7458_v8, %v7451_v10  ;;  %v7466_v15 = vmul.f32 %v7462_v52, %v7452_v19  ;;  %9509 = vmatprep.subr.bf16.mxu0 %v9508_v55  ;;  %v7683_v8 = vrot.slane %v8845_v13, %v16040_v24  ;;  %v8846_v52 = vld [vmem:[%s15777_s23 + $0x42] ss:$8 sm:$0x3] }
 0xcb1   : > { %9511 = vmatpush1.bf16.msra.mxu0 %v9510_v46  ;;  %v7470_v1 = vpop.permute.xlu1 %7469  ;;  %v8847_v46 = vld [vmem:[%s15777_s23 + $0x65] ss:$8 sm:$0x3]  ;;  %v7703_v10 = vrot.slane %v8846_v52, %v16039_v45  ;;  %v7707_v19 = vrot.slane %v8846_v52, %v16040_v24 }
 0xcb2   : > { %v9514_v49 = vpack.c.bf16 %v7465_v47, %v15056_v17  ;;  %v7472_v21 = vpop.permute.xlu0 %7471  ;;  %v9512_v40 = vpack.c.bf16 %v7466_v15, %v15058_v48 }
 0xcb3   : > { %v7473_v56 = vsel %vm1222_vm6, %v7470_v1, %v7472_v21  ;;  %v7474_v17 = vsel %vm1222_vm6, %v7472_v21, %v7470_v1  ;;  %vm16337_vm6 = vcmp.lt.s32.totalorder %v10142_v12, 111  ;;  %v7731_v21 = vrot.slane %v8847_v46, %v16040_v24 }
 0xcb4   : > { %9513 = vmatprep.subr.bf16.mxu0 %v9512_v40  ;;  %v7487_v59 = vmul.f32 %v7480_v29, %v7473_v56  ;;  %v7488_v28 = vmul.f32 %v7484_v20, %v7474_v17  ;;  %vm16338_vm13 = vmmov %vm16337_vm6  ;;  %v8849_v17 = vld [vmem:[%s15777_s23 + $0x1] ss:$8 sm:$0x3] }
 0xcb5   : > { %9515 = vmatpush1.bf16.msra.mxu0 %v9514_v49  ;;  %v7492_v48 = vpop.permute.xlu1 %7491  ;;  %v7727_v49 = vrot.slane %v8847_v46, %v16039_v45 }
 0xcb6   : > { %v7494_v51 = vpop.permute.xlu0 %7493 }
 0xcb7   : > { %v7495_v6 = vsel %vm16335_vm1, %v7492_v48, %v7494_v51  ;;  %v7496_v44 = vsel %vm16336_vm3, %v7494_v51, %v7492_v48  ;;  %vm16347_vm1 = vmmov %vm16346_vm9  ;;  %vm16348_vm3 = vcmp.lt.s32.totalorder %v10142_v12, 48 }
 0xcb8   : > { %v7509_v16 = vmul.f32 %v7502_v36, %v7495_v6  ;;  %v7510_v9 = vmul.f32 %v7506_v53, %v7496_v44  ;;  %v8848_v36 = vld [vmem:[%s15777_s23 + $0x22] ss:$8 sm:$0x3] }
 0xcb9   : > { %v7514_v63 = vpop.permute.xlu1 %7513 }
 0xcba   : > { %v9518_v60 = vpack.c.bf16 %v7509_v16, %v7487_v59  ;;  %v7516_v11 = vpop.permute.xlu0 %7515  ;;  %v9516_v26 = vpack.c.bf16 %v7510_v9, %v7488_v28  ;;  %v15278_v59 = vld [vmem:[%s15777_s23 + $0x67] ss:$8 sm:$0x3]  ;;  %v7751_v9 = vrot.slane %v8848_v36, %v16039_v45 }
 0xcbb   : > { %v7518_v38 = vsel %vm16337_vm6, %v7516_v11, %v7514_v63  ;;  %v7517_v31 = vsel %vm16338_vm13, %v7514_v63, %v7516_v11  ;;  %vm16349_vm6 = vmmov %vm16348_vm3  ;;  %v7755_v63 = vrot.slane %v8848_v36, %v16040_v24  ;;  %vm16350_vm13 = vcmp.lt.s32.totalorder %v10142_v12, 32 }
 0xcbc   : > { %v7532_v33 = vmul.f32 %v7528_v0, %v7518_v38  ;;  %9517 = vmatprep.subr.bf16.mxu0 %v9516_v26  ;;  %v7531_v30 = vmul.f32 %v7524_v34, %v7517_v31  ;;  %v8851_v0 = vld [vmem:[%s15777_s23 + $0x27] ss:$8 sm:$0x3]  ;;  %v7839_v58 = vrot.slane %v15278_v59, %v16039_v45 }
 0xcbd   : > { %9519 = vmatpush1.bf16.msra.mxu0 %v9518_v60  ;;  %v7821_v13 = vrot.slane %v8851_v0, %v16039_v45 }
 0xcbe   : > { %7573 = vmatprep.subr.mxu0 %v7532_v33  ;;  %v7775_v33 = vrot.slane %v8849_v17, %v16039_v45 }
 0xcc1   : > { %7574 = vmatpush1.msra.mxu0 %v7531_v30  ;;  %v7779_v30 = vrot.slane %v8849_v17, %v16040_v24 }
 0xcc2   : > { %8843 = vmatmul.mubr.msk.f32.vlgmr.msra.gmra.mrb[22].mxu0 %vm6981_vm7, %v7535_v23  ;;  %vm16342_vm7 = vcmp.lt.s32.totalorder %v10142_v12, 80 }
 0xcc3   : > { %vm16343_vm15 = vmmov %vm16342_vm7 }
 0xcca   : > { %v7632_v25 = vpop.permute.xlu1 %7631 }
 0xccb   : > { %v7640_v14 = vpop.permute.xlu0 %7639 }
 0xd95   : > { %v7623_v62 = vpop.f32.mrb[22].mxu0 }
 0xd96   : > { %v7634_v43 = vmul.f32 %v7632_v25, %v7623_v62  ;;  %v7625_v61 = vpop.f32.mrb[23].mxu0 }
 0xd97   : > { %v7635_v35 = vmul.f32 %v7632_v25, %v7625_v61  ;;  %v8850_v61 = vld [vmem:[%s15777_s23 + $0x7] ss:$8 sm:$0x3] }
 0xd98   : > { %v15176_v42 = vadd.f32 %v7640_v14, %v7634_v43 }
 0xd99   : > { %v15178_v18 = vadd.f32 %v7640_v14, %v7635_v35 }
 0xd9a   : > { %7644 = vrot.lane.b32.xlu1 %v15176_v42, %s16323_s6 }
 0xd9b   : > { %7646 = vrot.lane.b32.xlu0 %v15178_v18, %s16323_s6  ;;  %s16374_s6 = sld [smem:[#allocation77_spill]] }
 0xd9e   : > { %7668 = vrot.lane.b32.xlu1 %v15176_v42, %s16340_s24 }
 0xd9f   : > { %7670 = vrot.lane.b32.xlu0 %v15178_v18, %s16340_s24 }
 0xda2   : > { %7692 = vrot.lane.b32.xlu1 %v15176_v42, %s16041_s26 }
 0xda3   : > { %7694 = vrot.lane.b32.xlu0 %v15178_v18, %s16041_s26 }
 0xda6   : > { %7716 = vrot.lane.b32.xlu1 %v15176_v42, %s16341_s11 }
 0xda7   : > { %7718 = vrot.lane.b32.xlu0 %v15178_v18, %s16341_s11 }
 0xdaa   : > { %7740 = vrot.lane.b32.xlu1 %v15176_v42, %s16320_s27 }
 0xdab   : > { %7742 = vrot.lane.b32.xlu0 %v15178_v18, %s16320_s27 }
 0xdae   : > { %7764 = vrot.lane.b32.xlu1 %v15176_v42, %s16076_s29 }
 0xdaf   : > { %7766 = vrot.lane.b32.xlu0 %v15178_v18, %s16076_s29 }
 0xdb2   : > { %7792 = vrot.lane.b32.xlu1 %v15176_v42, %s16085_s7 }
 0xdb3   : > { %7794 = vrot.lane.b32.xlu0 %v15178_v18, %s16085_s7 }
 0xe0c   : > { %v7645_v57 = vpop.permute.xlu1 %7644 }
 0xe0d   : > { %v7647_v41 = vpop.permute.xlu0 %7646 }
 0xe0e   : > { %v15234_v4 = vsel %vm16344_vm11, %v7645_v57, %v7647_v41  ;;  %v15238_v55 = vsel %vm16345_vm12, %v7647_v41, %v7645_v57  ;;  %vm16361_vm11 = vcmp.lt.s32.totalorder %v10142_v12, 5 }
 0xe0f   : > { %v7662_v40 = vmul.f32 %v7655_v50, %v15238_v55  ;;  %v7663_v29 = vmul.f32 %v7659_v2, %v15234_v4  ;;  %vm16362_vm12 = vmmov %vm16361_vm11 }
 0xe10   : > { %v7669_v27 = vpop.permute.xlu1 %7668 }
 0xe11   : > { %v7671_v5 = vpop.permute.xlu0 %7670  ;;  %v7664_v60 = vmul.f32 0.018544022, %v7662_v40  ;;  %v7665_v11 = vmul.f32 0.018544022, %v7663_v29  ;;  %v7843_v29 = vrot.slane %v15278_v59, %v16040_v24 }
 0xe12   : > { %v15221_v54 = vsel %vm16342_vm7, %v7669_v27, %v7671_v5  ;;  %v15225_v7 = vsel %vm16343_vm15, %v7671_v5, %v7669_v27  ;;  %vm16351_vm7 = vmmov %vm16350_vm13  ;;  %v7825_v27 = vrot.slane %v8851_v0, %v16040_v24  ;;  %v8853_v5 = vld [vmem:[%s15777_s23 + $0x47] ss:$8 sm:$0x3] }
 0xe13   : > { %v7686_v15 = vmul.f32 %v7679_v39, %v15225_v7  ;;  %v7687_v1 = vmul.f32 %v7683_v8, %v15221_v54  ;;  %v7788_v8 = vmul.f32 0.13702282, %v15176_v42  ;;  %v7861_v36 = vrot.slane %v8853_v5, %v16040_v24 }
 0xe14   : > { %v7693_v3 = vpop.permute.xlu1 %7692  ;;  %v7829_v59 = vmul.f32 %v7825_v27, %v15238_v55 }
 0xe15   : > { %v7695_v47 = vpop.permute.xlu0 %7694  ;;  %v7688_v48 = vmul.f32 0.034166943, %v7686_v15  ;;  %v7689_v51 = vmul.f32 0.034166943, %v7687_v1  ;;  %v7807_v15 = vrot.slane %v8850_v61, %v16040_v24 }
 0xe16   : > { %v15246_v37 = vsel %vm16346_vm9, %v7693_v3, %v7695_v47  ;;  %v15250_v22 = vsel %vm16347_vm1, %v7695_v47, %v7693_v3  ;;  %v7803_v47 = vrot.slane %v8850_v61, %v16039_v45  ;;  %vm16363_vm9 = vcmp.lt.s32.totalorder %v10142_v12, 6 }
 0xe17   : > { %v7710_v53 = vmul.f32 %v7703_v10, %v15250_v22  ;;  %v7711_v32 = vmul.f32 %v7707_v19, %v15246_v37  ;;  %v7690_v23 = vadd.f32 %v7688_v48, %v7664_v60  ;;  %v7691_v25 = vadd.f32 %v7689_v51, %v7665_v11  ;;  %v8855_v60 = vld [vmem:[%s15777_s23 + $0x83] ss:$8 sm:$0x3]  ;;  %vm16364_vm1 = vmmov %vm16363_vm9 }
 0xe18   : > { %v7717_v20 = vpop.permute.xlu1 %7716  ;;  %v7897_v27 = vrot.slane %v8855_v60, %v16040_v24 }
 0xe19   : > { %v7719_v56 = vpop.permute.xlu0 %7718  ;;  %v7712_v34 = vmul.f32 0.056331765, %v7710_v53  ;;  %v7713_v38 = vmul.f32 0.056331765, %v7711_v32 }
 0xe1a   : > { %v15266_v6 = vsel %vm16348_vm3, %v7717_v20, %v7719_v56  ;;  %v15270_v44 = vsel %vm16349_vm6, %v7719_v56, %v7717_v20  ;;  %v7857_v20 = vrot.slane %v8853_v5, %v16039_v45  ;;  %v8854_v53 = vld [vmem:[%s15777_s23 + $0x81] ss:$8 sm:$0x3]  ;;  %v7789_v56 = vmul.f32 0.13702282, %v15178_v18 }
 0xe1b   : > { %v7734_v28 = vmul.f32 %v7727_v49, %v15270_v44  ;;  %v7735_v16 = vmul.f32 %v7731_v21, %v15266_v6  ;;  %v7714_v52 = vadd.f32 %v7712_v34, %v7690_v23  ;;  %v7715_v50 = vadd.f32 %v7713_v38, %v7691_v25 }
 0xe1c   : > { %v7741_v26 = vpop.permute.xlu1 %7740  ;;  %v7879_v23 = vrot.slane %v8854_v53, %v16040_v24 }
 0xe1d   : > { %v7743_v31 = vpop.permute.xlu0 %7742  ;;  %v7736_v14 = vmul.f32 0.08310854, %v7734_v28  ;;  %v7737_v35 = vmul.f32 0.08310854, %v7735_v16  ;;  %v7828_v16 = vmul.f32 %v7821_v13, %v15234_v4  ;;  %v7893_v13 = vrot.slane %v8855_v60, %v16039_v45 }
 0xe1e   : > { %v15288_v62 = vsel %vm16350_vm13, %v7741_v26, %v7743_v31  ;;  %v15292_v43 = vsel %vm16351_vm7, %v7743_v31, %v7741_v26  ;;  %v7846_v31 = vmul.f32 %v7839_v58, %v15221_v54  ;;  %v7831_v58 = vmul.f32 0.10971929, %v7829_v59 }
 0xe1f   : > { %v7758_v57 = vmul.f32 %v7751_v9, %v15292_v43  ;;  %v7759_v41 = vmul.f32 %v7755_v63, %v15288_v62  ;;  %v7738_v1 = vadd.f32 %v7736_v14, %v7714_v52  ;;  %v7739_v49 = vadd.f32 %v7737_v35, %v7715_v50 }
 0xe20   : > { %v7765_v39 = vpop.permute.xlu1 %7764  ;;  %v7830_v5 = vmul.f32 0.10971929, %v7828_v16  ;;  %v7848_v50 = vmul.f32 0.08310854, %v7846_v31 }
 0xe21   : > { %v7760_v2 = vmul.f32 0.10971929, %v7758_v57  ;;  %v7761_v3 = vmul.f32 0.10971929, %v7759_v41  ;;  %v7767_v46 = vpop.permute.xlu0 %7766  ;;  %v7864_v57 = vmul.f32 %v7857_v20, %v15246_v37  ;;  %v7865_v41 = vmul.f32 %v7861_v36, %v15250_v22 }
 0xe22   : > { %v15309_v10 = vsel %vm958_vm2, %v7765_v39, %v7767_v46  ;;  %v15313_v19 = vsel %vm958_vm2, %v7767_v46, %v7765_v39  ;;  %vm16352_vm2 = vcmp.lt.s32.totalorder %v10142_v12, 112  ;;  %v8856_v46 = vld [vmem:[%s15777_s23 + $0x85] ss:$8 sm:$0x3] }
 0xe23   : > { %v7782_v21 = vmul.f32 %v7775_v33, %v15313_v19  ;;  %v7783_v40 = vmul.f32 %v7779_v30, %v15309_v10  ;;  %v7762_v17 = vadd.f32 %v7760_v2, %v7738_v1  ;;  %v7763_v48 = vadd.f32 %v7761_v3, %v7739_v49  ;;  %vm16353_vm15 = vmmov %vm16352_vm2 }
 0xe24   : > { %v7793_v32 = vpop.permute.xlu1 %7792  ;;  %v7847_v33 = vmul.f32 %v7843_v29, %v15225_v7  ;;  %v7875_v30 = vrot.slane %v8854_v53, %v16039_v45  ;;  %v7866_v1 = vmul.f32 0.056331765, %v7864_v57  ;;  %v7867_v49 = vmul.f32 0.056331765, %v7865_v41 }
 0xe25   : > { %v7784_v51 = vmul.f32 0.12961803, %v7782_v21  ;;  %v7785_v0 = vmul.f32 0.12961803, %v7783_v40  ;;  %v7795_v28 = vpop.permute.xlu0 %7794  ;;  %v7900_v21 = vmul.f32 %v7893_v13, %v15288_v62  ;;  %v7901_v40 = vmul.f32 %v7897_v27, %v15292_v43 }
 0xe26   : > { %v15331_v9 = vsel %vm16352_vm2, %v7793_v32, %v7795_v28  ;;  %v15335_v63 = vsel %vm16353_vm15, %v7795_v28, %v7793_v32  ;;  %v7849_v2 = vmul.f32 0.08310854, %v7847_v33  ;;  %v7882_v3 = vmul.f32 %v7875_v30, %v15266_v6  ;;  %v8857_v29 = vld [vmem:[%s15777_s23 + $0x86] ss:$8 sm:$0x3] }
 0xe27   : > { %v7786_v11 = vadd.f32 %v7784_v51, %v7762_v17  ;;  %v7787_v26 = vadd.f32 %v7785_v0, %v7763_v48  ;;  %v7810_v34 = vmul.f32 %v7803_v47, %v15331_v9  ;;  %v7811_v38 = vmul.f32 %v7807_v15, %v15335_v63  ;;  %v8859_v0 = vld [vmem:[%s15777_s23 + $0xa0] ss:$8 sm:$0x3]  ;;  %v8858_v28 = vld [vmem:[%s15777_s23 + $0x87] ss:$8 sm:$0x3] }
 0xe28   : > { %v7912_v53 = vrot.slane %v8856_v46, %v16039_v45  ;;  %v7916_v32 = vrot.slane %v8856_v46, %v16040_v24  ;;  %v7929_v16 = vrot.slane %v8857_v29, %v16039_v45  ;;  %v7933_v59 = vrot.slane %v8857_v29, %v16040_v24  ;;  %v8860_v33 = vld [vmem:[%s15777_s23 + $0xa1] ss:$8 sm:$0x3]  ;;  %v8861_v57 = vld [vmem:[%s15777_s23 + $0xa2] ss:$8 sm:$0x3] }
 0xe29   : > { %v7790_v25 = vadd.f32 %v7788_v8, %v7786_v11  ;;  %v7791_v61 = vadd.f32 %v7789_v56, %v7787_v26  ;;  %v7812_v14 = vmul.f32 0.12961803, %v7810_v34  ;;  %v7813_v35 = vmul.f32 0.12961803, %v7811_v38 }
 0xe2a   : > { %v7883_v8 = vmul.f32 %v7879_v23, %v15270_v44  ;;  %v7884_v56 = vmul.f32 0.034166943, %v7882_v3  ;;  %v7902_v60 = vmul.f32 0.018544022, %v7900_v21  ;;  %v7903_v11 = vmul.f32 0.018544022, %v7901_v40 }
 0xe2b   : > { %v7814_v39 = vadd.f32 %v7812_v14, %v7790_v25  ;;  %v7815_v52 = vadd.f32 %v7813_v35, %v7791_v61  ;;  %v7919_v38 = vmul.f32 %v7912_v53, %v15176_v42  ;;  %v7920_v31 = vmul.f32 %v7916_v32, %v15178_v18  ;;  %v8863_v46 = vld [vmem:[%s15777_s23 + $0xa4] ss:$8 sm:$0x3]  ;;  %v8864_v21 = vld [vmem:[%s15777_s23 + $0xa5] ss:$8 sm:$0x3] }
 0xe2c   : > { %v7885_v17 = vmul.f32 0.034166943, %v7883_v8  ;;  %v7946_v30 = vrot.slane %v8858_v28, %v16039_v45  ;;  %v7950_v23 = vrot.slane %v8858_v28, %v16040_v24  ;;  %v7963_v14 = vrot.slane %v8859_v0, %v16039_v45 }
 0xe2d   : > { %v7832_v47 = vadd.f32 %v7830_v5, %v7814_v39  ;;  %v7833_v15 = vadd.f32 %v7831_v58, %v7815_v52  ;;  %v7967_v35 = vrot.slane %v8859_v0, %v16040_v24  ;;  %v7936_v41 = vmul.f32 %v7929_v16, %v15313_v19  ;;  %v8862_v52 = vld [vmem:[%s15777_s23 + $0xa3] ss:$8 sm:$0x3] }
 0xe2e   : > { %v7937_v13 = vmul.f32 %v7933_v59, %v15309_v10  ;;  %v7980_v58 = vrot.slane %v8860_v33, %v16039_v45  ;;  %v7984_v39 = vrot.slane %v8860_v33, %v16040_v24  ;;  %v7997_v19 = vrot.slane %v8861_v57, %v16039_v45 }
 0xe2f   : > { %v7850_v20 = vadd.f32 %v7848_v50, %v7832_v47  ;;  %v7851_v36 = vadd.f32 %v7849_v2, %v7833_v15  ;;  %v7953_v50 = vmul.f32 %v7946_v30, %v15292_v43  ;;  %v7954_v2 = vmul.f32 %v7950_v23, %v15288_v62 }
 0xe30   : > { %v8001_v10 = vrot.slane %v8861_v57, %v16040_v24  ;;  %v7970_v47 = vmul.f32 %v7963_v14, %v15270_v44  ;;  %v7971_v15 = vmul.f32 %v7967_v35, %v15266_v6  ;;  %v8014_v43 = vrot.slane %v8862_v52, %v16039_v45 }
 0xe31   : > { %v7868_v48 = vadd.f32 %v7866_v1, %v7850_v20  ;;  %v7869_v51 = vadd.f32 %v7867_v49, %v7851_v36  ;;  %v8018_v62 = vrot.slane %v8862_v52, %v16040_v24  ;;  %v7987_v40 = vmul.f32 %v7980_v58, %v15250_v22 }
 0xe32   : > { %v7988_v29 = vmul.f32 %v7984_v39, %v15246_v37  ;;  %v8031_v53 = vrot.slane %v8863_v46, %v16039_v45  ;;  %v8035_v32 = vrot.slane %v8863_v46, %v16040_v24  ;;  %v8048_v28 = vrot.slane %v8864_v21, %v16039_v45  ;;  %v8868_v46 = vld [vmem:[%s15777_s23 + $0x62] ss:$8 sm:$0x3] }
 0xe33   : > { %v7886_v26 = vadd.f32 %v7884_v56, %v7868_v48  ;;  %v7887_v34 = vadd.f32 %v7885_v17, %v7869_v51  ;;  %v8865_v56 = vld [vmem:[%s15777_s23 + $0xa6] ss:$8 sm:$0x3]  ;;  %v8004_v17 = vmul.f32 %v7997_v19, %v15225_v7  ;;  %v8005_v48 = vmul.f32 %v8001_v10, %v15221_v54 }
 0xe34   : > { %v8052_v16 = vrot.slane %v8864_v21, %v16040_v24  ;;  %v8021_v59 = vmul.f32 %v8014_v43, %v15266_v6  ;;  %v8038_v33 = vmul.f32 %v8031_v53, %v15246_v37  ;;  %v8039_v30 = vmul.f32 %v8035_v32, %v15250_v22  ;;  %v8867_v6 = vld [vmem:[%s15777_s23 + $0xc0] ss:$8 sm:$0x3] }
 0xe35   : > { %v7904_v25 = vadd.f32 %v7902_v60, %v7886_v26  ;;  %v7905_v61 = vadd.f32 %v7903_v11, %v7887_v34  ;;  %v8022_v60 = vmul.f32 %v8018_v62, %v15270_v44  ;;  %v8866_v11 = vld [vmem:[%s15777_s23 + $0xa7] ss:$8 sm:$0x3]  ;;  %v8055_v14 = vmul.f32 %v8048_v28, %v15221_v54 }
 0xe36   : > { %v8056_v35 = vmul.f32 %v8052_v16, %v15225_v7  ;;  %v8099_v37 = vrot.slane %v8867_v6, %v16039_v45  ;;  %v8103_v22 = vrot.slane %v8867_v6, %v16040_v24  ;;  %v8121_v62 = vrot.slane %v8868_v46, %v16039_v45 }
 0xe37   : > { %v7921_v27 = vadd.f32 %v7919_v38, %v7904_v25  ;;  %v7922_v5 = vadd.f32 %v7920_v31, %v7905_v61  ;;  %v8065_v38 = vrot.slane %v8865_v56, %v16039_v45  ;;  %v8069_v31 = vrot.slane %v8865_v56, %v16040_v24 }
 0xe38   : > { %v8082_v25 = vrot.slane %v8866_v11, %v16039_v45  ;;  %v8086_v61 = vrot.slane %v8866_v11, %v16040_v24  ;;  %v8125_v21 = vrot.slane %v8868_v46, %v16040_v24 }
 0xe39   : > { %v7938_v3 = vadd.f32 %v7936_v41, %v7921_v27  ;;  %v7939_v8 = vadd.f32 %v7937_v13, %v7922_v5  ;;  %v8072_v13 = vmul.f32 %v8065_v38, %v15234_v4  ;;  %v8073_v27 = vmul.f32 %v8069_v31, %v15238_v55 }
 0xe3a   : > { %v8090_v54 = vmul.f32 %v8086_v61, %v15335_v63  ;;  %v8869_v63 = vld [vmem:[%s15777_s23 + $0x64] ss:$8 sm:$0x3] }
 0xe3b   : > { %v7955_v1 = vadd.f32 %v7953_v50, %v7938_v3  ;;  %v7956_v49 = vadd.f32 %v7954_v2, %v7939_v8  ;;  %v8089_v50 = vmul.f32 %v8082_v25, %v15331_v9  ;;  %v8106_v3 = vmul.f32 %v8099_v37, %v15176_v42  ;;  %v8610_v42 = vld [vmem:[%s16360_s13] sm:$0x3] }
 0xe3c   : > { %v8107_v8 = vmul.f32 %v8103_v22, %v15178_v18  ;;  %v8149_v43 = vrot.slane %v8869_v63, %v16040_v24 }
 0xe3d   : > { %v7972_v20 = vadd.f32 %v7970_v47, %v7955_v1  ;;  %v7973_v36 = vadd.f32 %v7971_v15, %v7956_v49  ;;  %v8870_v1 = vld [vmem:[%s15777_s23 + $0x44] ss:$8 sm:$0x3]  ;;  %v8145_v49 = vrot.slane %v8869_v63, %v16039_v45 }
 0xe3e   : > { %v8169_v53 = vrot.slane %v8870_v1, %v16039_v45  ;;  %v8173_v32 = vrot.slane %v8870_v1, %v16040_v24 }
 0xe3f   : > { %v7989_v51 = vadd.f32 %v7987_v40, %v7972_v20  ;;  %v7990_v0 = vadd.f32 %v7988_v29, %v7973_v36 }
 0xe41   : > { %v8006_v26 = vadd.f32 %v8004_v17, %v7989_v51  ;;  %v8007_v34 = vadd.f32 %v8005_v48, %v7990_v0  ;;  %v8871_v17 = vld [vmem:[%s15777_s23 + $0x66] ss:$8 sm:$0x3] }
 0xe42   : > { %v8197_v38 = vrot.slane %v8871_v17, %v16040_v24 }
 0xe43   : > { %v8023_v23 = vadd.f32 %v8021_v59, %v8006_v26  ;;  %v8024_v44 = vadd.f32 %v8022_v60, %v8007_v34  ;;  %v8872_v59 = vld [vmem:[%s15777_s23 + $0x24] ss:$8 sm:$0x3]  ;;  %v8873_v60 = vld [vmem:[%s15777_s23 + $0x3] ss:$8 sm:$0x3]  ;;  %v8193_v34 = vrot.slane %v8871_v17, %v16039_v45 }
 0xe44   : > { %v8217_v25 = vrot.slane %v8872_v59, %v16039_v45  ;;  %v8221_v61 = vrot.slane %v8872_v59, %v16040_v24 }
 0xe45   : > { %v8040_v57 = vadd.f32 %v8038_v33, %v8023_v23  ;;  %v8041_v41 = vadd.f32 %v8039_v30, %v8024_v44 }
 0xe47   : > { %v8057_v5 = vadd.f32 %v8055_v14, %v8040_v57  ;;  %v8058_v58 = vadd.f32 %v8056_v35, %v8041_v41  ;;  %v8241_v14 = vrot.slane %v8873_v60, %v16039_v45 }
 0xe49   : > { %v8074_v39 = vadd.f32 %v8072_v13, %v8057_v5  ;;  %v8075_v52 = vadd.f32 %v8073_v27, %v8058_v58  ;;  %v8245_v5 = vrot.slane %v8873_v60, %v16040_v24 }
 0xe4b   : > { %v8091_v2 = vadd.f32 %v8089_v50, %v8074_v39  ;;  %v8092_v7 = vadd.f32 %v8090_v54, %v8075_v52 }
 0xe4d   : > { %v15438_v19 = vadd.f32 %v8106_v3, %v8091_v2  ;;  %v15440_v10 = vadd.f32 %v8107_v8, %v8092_v7 }
 0xe4f   : > { %8112 = vrot.lane.b32.xlu0 %v15440_v10, %s16354_s1  ;;  %8110 = vrot.lane.b32.xlu1 %v15438_v19, %s16354_s1 }
 0xe53   : > { %8136 = vrot.lane.b32.xlu0 %v15440_v10, %s16355_s12  ;;  %8134 = vrot.lane.b32.xlu1 %v15438_v19, %s16355_s12 }
 0xe57   : > { %8160 = vrot.lane.b32.xlu0 %v15440_v10, %s16106_s28  ;;  %8158 = vrot.lane.b32.xlu1 %v15438_v19, %s16106_s28  ;;  %s16357_s28 = smov 125  }
 0xe5b   : > { %8184 = vrot.lane.b32.xlu0 %v15440_v10, %s16356_s5  ;;  %8182 = vrot.lane.b32.xlu1 %v15438_v19, %s16356_s5 }
 0xe5f   : > { %8208 = vrot.lane.b32.xlu0 %v15440_v10, %s16321_s21  ;;  %8206 = vrot.lane.b32.xlu1 %v15438_v19, %s16321_s21 }
 0xe63   : > { %8232 = vrot.lane.b32.xlu0 %v15440_v10, %s16050_s10  ;;  %8230 = vrot.lane.b32.xlu1 %v15438_v19, %s16050_s10  ;;  %s16358_s10 = smov 123  }
 0xe67   : > { %8260 = vrot.lane.b32.xlu0 %v15440_v10, %s16051_s3  ;;  %8258 = vrot.lane.b32.xlu1 %v15438_v19, %s16051_s3  ;;  %s16359_s3 = smov 122  }
 0xe6b   : > { %8284 = vrot.lane.b32.xlu0 %v15440_v10, %s16322_s20  ;;  %8282 = vrot.lane.b32.xlu1 %v15438_v19, %s16322_s20 }
 0xe6f   : > { %8308 = vrot.lane.b32.xlu0 %v15440_v10, %s16357_s28  ;;  %8306 = vrot.lane.b32.xlu1 %v15438_v19, %s16357_s28 }
 0xe73   : > { %8332 = vrot.lane.b32.xlu0 %v15440_v10, %s16109_s8  ;;  %8330 = vrot.lane.b32.xlu1 %v15438_v19, %s16109_s8  ;;  %s16373_s8 = sld [smem:[#allocation10_spill]] }
 0xe77   : > { %8356 = vrot.lane.b32.xlu0 %v15440_v10, %s16358_s10  ;;  %8354 = vrot.lane.b32.xlu1 %v15438_v19, %s16358_s10 }
 0xe79   : > { %s8899_s24 = sshll.u32 %s16373_s8, 2 }
 0xe7a   : > { %s868_s27 = scalar_lea.vmem %s16374_s6, %s8899_s24 }
 0xe7b   : > { %8380 = vrot.lane.b32.xlu0 %v15440_v10, %s16359_s3  ;;  %8378 = vrot.lane.b32.xlu1 %v15438_v19, %s16359_s3 }
 0xe7f   : > { %8613 = vperm.xlu1 %9651, %v8610_v42  }
 0xec1   : > { %v8113_v18 = vpop.permute.xlu0 %8112  ;;  %v8111_v4 = vpop.permute.xlu1 %8110 }
 0xec2   : > { %v8114_v20 = vsel %vm16363_vm9, %v8111_v4, %v8113_v18  ;;  %v8115_v36 = vsel %vm16364_vm1, %v8113_v18, %v8111_v4  ;;  %v8874_v4 = vld [vmem:[%s15777_s23 + $0x5] ss:$8 sm:$0x3] }
 0xec3   : > { %v8128_v11 = vmul.f32 %v8121_v62, %v8115_v36  ;;  %v8129_v26 = vmul.f32 %v8125_v21, %v8114_v20  ;;  %v8269_v21 = vrot.slane %v8874_v4, %v16039_v45  ;;  %v8273_v20 = vrot.slane %v8874_v4, %v16040_v24  ;;  %v8875_v36 = vld [vmem:[%s15777_s23 + $0x25] ss:$8 sm:$0x3] }
 0xec5   : > { %v8137_v55 = vpop.permute.xlu0 %8136  ;;  %v8135_v9 = vpop.permute.xlu1 %8134  ;;  %v8130_v22 = vmul.f32 0.018544022, %v8128_v11  ;;  %v8131_v58 = vmul.f32 0.018544022, %v8129_v26  ;;  %v8293_v26 = vrot.slane %v8875_v36, %v16039_v45 }
 0xec6   : > { %v15508_v40 = vsel %vm16361_vm11, %v8135_v9, %v8137_v55  ;;  %v15512_v29 = vsel %vm16362_vm12, %v8137_v55, %v8135_v9 }
 0xec7   : > { %v8152_v28 = vmul.f32 %v8145_v49, %v15512_v29  ;;  %v8153_v16 = vmul.f32 %v8149_v43, %v15508_v40 }
 0xec9   : > { %v8161_v47 = vpop.permute.xlu0 %8160  ;;  %v8159_v15 = vpop.permute.xlu1 %8158  ;;  %v8154_v35 = vmul.f32 0.034166943, %v8152_v28  ;;  %v8155_v57 = vmul.f32 0.034166943, %v8153_v16 }
 0xeca   : > { %v15525_v51 = vsel %vm3707_vm10, %v8159_v15, %v8161_v47  ;;  %v15529_v0 = vsel %vm3707_vm10, %v8161_v47, %v8159_v15  ;;  %vm16365_vm10 = vcmp.lt.s32.totalorder %v10142_v12, 3 }
 0xecb   : > { %v8176_v31 = vmul.f32 %v8169_v53, %v15529_v0  ;;  %v8177_v33 = vmul.f32 %v8173_v32, %v15525_v51  ;;  %vm16366_vm3 = vmmov %vm16365_vm10  ;;  %v8156_v42 = vadd.f32 %v8154_v35, %v8130_v22  ;;  %v8157_v18 = vadd.f32 %v8155_v57, %v8131_v58 }
 0xecc   : > { %v8255_v35 = vmul.f32 0.13702282, %v15440_v10  ;;  %v8254_v57 = vmul.f32 0.13702282, %v15438_v19 }
 0xecd   : > { %v8185_v56 = vpop.permute.xlu0 %8184  ;;  %v8183_v48 = vpop.permute.xlu1 %8182  ;;  %v8178_v39 = vmul.f32 0.056331765, %v8176_v31  ;;  %v8179_v52 = vmul.f32 0.056331765, %v8177_v33 }
 0xece   : > { %v15545_v30 = vsel %vm16365_vm10, %v8183_v48, %v8185_v56  ;;  %v15549_v6 = vsel %vm16366_vm3, %v8185_v56, %v8183_v48 }
 0xecf   : > { %v8200_v13 = vmul.f32 %v8193_v34, %v15549_v6  ;;  %v8201_v27 = vmul.f32 %v8197_v38, %v15545_v30  ;;  %v8180_v1 = vadd.f32 %v8178_v39, %v8156_v42  ;;  %v8181_v49 = vadd.f32 %v8179_v52, %v8157_v18  ;;  %v8876_v38 = vld [vmem:[%s15777_s23 + $0x80] ss:$8 sm:$0x3] }
 0xed0   : > { %v8297_v34 = vrot.slane %v8875_v36, %v16040_v24 }
 0xed1   : > { %v8209_v23 = vpop.permute.xlu0 %8208  ;;  %v8207_v44 = vpop.permute.xlu1 %8206  ;;  %v8202_v55 = vmul.f32 0.08310854, %v8200_v13  ;;  %v8203_v9 = vmul.f32 0.08310854, %v8201_v27  ;;  %v8317_v13 = vrot.slane %v8876_v38, %v16039_v45  ;;  %v8321_v27 = vrot.slane %v8876_v38, %v16040_v24 }
 0xed2   : > { %v15556_v41 = vsel %vm3783_vm14, %v8207_v44, %v8209_v23  ;;  %v15560_v37 = vsel %vm3783_vm14, %v8209_v23, %v8207_v44  ;;  %vm16371_vm14 = vcmp.lt.s32.totalorder %v10142_v12, 122 }
 0xed3   : > { %v8224_v2 = vmul.f32 %v8217_v25, %v15560_v37  ;;  %v8225_v7 = vmul.f32 %v8221_v61, %v15556_v41  ;;  %v8204_v53 = vadd.f32 %v8202_v55, %v8180_v1  ;;  %v8205_v32 = vadd.f32 %v8203_v9, %v8181_v49  ;;  %vm16372_vm6 = vmmov %vm16371_vm14 }
 0xed5   : > { %v8233_v50 = vpop.permute.xlu0 %8232  ;;  %v8231_v54 = vpop.permute.xlu1 %8230  ;;  %v8226_v43 = vmul.f32 0.10971929, %v8224_v2  ;;  %v8227_v62 = vmul.f32 0.10971929, %v8225_v7 }
 0xed6   : > { %v15569_v3 = vsel %vm1086_vm4, %v8231_v54, %v8233_v50  ;;  %v15573_v8 = vsel %vm1086_vm4, %v8233_v50, %v8231_v54  ;;  %v8878_v7 = vld [vmem:[%s15777_s23 + $0x82] ss:$8 sm:$0x3] }
 0xed7   : > { %v8248_v63 = vmul.f32 %v8241_v14, %v15573_v8  ;;  %v8249_v46 = vmul.f32 %v8245_v5, %v15569_v3  ;;  %v8228_v60 = vadd.f32 %v8226_v43, %v8204_v53  ;;  %v8229_v11 = vadd.f32 %v8227_v62, %v8205_v32  ;;  %v8877_v14 = vld [vmem:[%s15777_s23 + $0x45] ss:$8 sm:$0x3] }
 0xed8   : > { %v8341_v54 = vrot.slane %v8877_v14, %v16039_v45  ;;  %v8345_v2 = vrot.slane %v8877_v14, %v16040_v24  ;;  %v8365_v36 = vrot.slane %v8878_v7, %v16039_v45  ;;  %v8369_v53 = vrot.slane %v8878_v7, %v16040_v24 }
 0xed9   : > { %v8261_v47 = vpop.permute.xlu0 %8260  ;;  %v8259_v15 = vpop.permute.xlu1 %8258  ;;  %v8250_v56 = vmul.f32 0.12961803, %v8248_v63  ;;  %v8251_v17 = vmul.f32 0.12961803, %v8249_v46 }
 0xeda   : > { %v15587_v48 = vsel %vm1158_vm5, %v8259_v15, %v8261_v47  ;;  %v15591_v28 = vsel %vm1158_vm5, %v8261_v47, %v8259_v15  ;;  %v8879_v15 = vld [vmem:[%s15777_s23 + $0x84] ss:$8 sm:$0x3]  ;;  %vm16369_vm5 = vcmp.lt.s32.totalorder %v10142_v12, 123 }
 0xedb   : > { %v8252_v23 = vadd.f32 %v8250_v56, %v8228_v60  ;;  %v8253_v44 = vadd.f32 %v8251_v17, %v8229_v11  ;;  %v8276_v25 = vmul.f32 %v8269_v21, %v15587_v48  ;;  %v8277_v61 = vmul.f32 %v8273_v20, %v15591_v28 }
 0xedc   : > { %v8389_v11 = vrot.slane %v8879_v15, %v16039_v45 }
 0xedd   : > { %v8285_v16 = vpop.permute.xlu0 %8284  ;;  %v8283_v59 = vpop.permute.xlu1 %8282  ;;  %v8257_v42 = vadd.f32 %v8255_v35, %v8253_v44  ;;  %v8256_v18 = vadd.f32 %v8254_v57, %v8252_v23  ;;  %v8278_v4 = vmul.f32 0.12961803, %v8276_v25  ;;  %v8279_v55 = vmul.f32 0.12961803, %v8277_v61 }
 0xede   : > { %v15600_v31 = vsel %vm3901_vm0, %v8283_v59, %v8285_v16  ;;  %v15604_v33 = vsel %vm3901_vm0, %v8285_v16, %v8283_v59  ;;  %vm16367_vm0 = vcmp.lt.s32.totalorder %v10142_v12, 125  ;;  %v8880_v25 = vld [vmem:[%s15777_s23 + $0xc1] ss:$8 sm:$0x3] }
 0xedf   : > { %v8300_v58 = vmul.f32 %v8293_v26, %v15600_v31  ;;  %v8301_v39 = vmul.f32 %v8297_v34, %v15604_v33  ;;  %vm16368_vm4 = vmmov %vm16367_vm0  ;;  %v8280_v32 = vadd.f32 %v8278_v4, %v8256_v18  ;;  %v8281_v56 = vadd.f32 %v8279_v55, %v8257_v42 }
 0xee0   : > { %v8393_v26 = vrot.slane %v8879_v15, %v16040_v24  ;;  %v8412_v7 = vrot.slane %v8880_v25, %v16040_v24 }
 0xee1   : > { %v8309_v22 = vpop.permute.xlu0 %8308  ;;  %v8307_v5 = vpop.permute.xlu1 %8306  ;;  %v8302_v1 = vmul.f32 0.10971929, %v8300_v58  ;;  %v8303_v49 = vmul.f32 0.10971929, %v8301_v39 }
 0xee2   : > { %v15619_v52 = vsel %vm16367_vm0, %v8307_v5, %v8309_v22  ;;  %v15623_v50 = vsel %vm16368_vm4, %v8309_v22, %v8307_v5  ;;  %v8881_v22 = vld [vmem:[%s15777_s23 + $0xc2] ss:$8 sm:$0x3] }
 0xee3   : > { %v8324_v9 = vmul.f32 %v8317_v13, %v15619_v52  ;;  %v8325_v63 = vmul.f32 %v8321_v27, %v15623_v50  ;;  %v8304_v34 = vadd.f32 %v8302_v1, %v8280_v32  ;;  %v8305_v38 = vadd.f32 %v8303_v49, %v8281_v56  ;;  %v8884_v32 = vld [vmem:[%s15777_s23 + $0xc5] ss:$8 sm:$0x3] }
 0xee4   : > { %v8425_v15 = vrot.slane %v8881_v22, %v16039_v45  ;;  %v8429_v1 = vrot.slane %v8881_v22, %v16040_v24 }
 0xee5   : > { %v8333_v46 = vpop.permute.xlu0 %8332  ;;  %v8331_v47 = vpop.permute.xlu1 %8330  ;;  %v8326_v17 = vmul.f32 0.08310854, %v8324_v9  ;;  %v8327_v16 = vmul.f32 0.08310854, %v8325_v63 }
 0xee6   : > { %v15637_v43 = vsel %vm3977_vm8, %v8331_v47, %v8333_v46  ;;  %v15641_v62 = vsel %vm3977_vm8, %v8333_v46, %v8331_v47  ;;  %vm16370_vm8 = vmmov %vm16369_vm5  ;;  %v8883_v46 = vld [vmem:[%s15777_s23 + $0xc4] ss:$8 sm:$0x3]  ;;  %v8882_v47 = vld [vmem:[%s15777_s23 + $0xc3] ss:$8 sm:$0x3] }
 0xee7   : > { %v8348_v21 = vmul.f32 %v8341_v54, %v15637_v43  ;;  %v8349_v20 = vmul.f32 %v8345_v2, %v15641_v62  ;;  %v8328_v13 = vadd.f32 %v8326_v17, %v8304_v34  ;;  %v8329_v27 = vadd.f32 %v8327_v16, %v8305_v38 }
 0xee8   : > { %v8408_v2 = vrot.slane %v8880_v25, %v16039_v45  ;;  %v8442_v56 = vrot.slane %v8882_v47, %v16039_v45  ;;  %v8446_v17 = vrot.slane %v8882_v47, %v16040_v24  ;;  %v8432_v34 = vmul.f32 %v8425_v15, %v15573_v8 }
 0xee9   : > { %v8357_v59 = vpop.permute.xlu0 %8356  ;;  %v8355_v60 = vpop.permute.xlu1 %8354  ;;  %v8350_v61 = vmul.f32 0.056331765, %v8348_v21  ;;  %v8351_v14 = vmul.f32 0.056331765, %v8349_v20  ;;  %v8433_v38 = vmul.f32 %v8429_v1, %v15569_v3 }
 0xeea   : > { %v15651_v23 = vsel %vm16369_vm5, %v8355_v60, %v8357_v59  ;;  %v15655_v44 = vsel %vm16370_vm8, %v8357_v59, %v8355_v60  ;;  %v8459_v60 = vrot.slane %v8883_v46, %v16039_v45  ;;  %v8450_v22 = vmul.f32 %v8446_v17, %v15556_v41  ;;  %v8891_v17 = vld [vmem:[%s15777_s23 + $0xe4] ss:$8 sm:$0x3] }
 0xeeb   : > { %v8372_v35 = vmul.f32 %v8365_v36, %v15651_v23  ;;  %v8373_v57 = vmul.f32 %v8369_v53, %v15655_v44  ;;  %v8352_v4 = vadd.f32 %v8350_v61, %v8328_v13  ;;  %v8353_v55 = vadd.f32 %v8351_v14, %v8329_v27  ;;  %v8886_v13 = vld [vmem:[%s15777_s23 + $0xc7] ss:$8 sm:$0x3] }
 0xeec   : > { %v8416_v36 = vmul.f32 %v8412_v7, %v15440_v10  ;;  %v8415_v53 = vmul.f32 %v8408_v2, %v15438_v19  ;;  %v8476_v14 = vrot.slane %v8884_v32, %v16039_v45  ;;  %v8510_v2 = vrot.slane %v8886_v13, %v16039_v45 }
 0xeed   : > { %v8374_v5 = vmul.f32 0.034166943, %v8372_v35  ;;  %v8375_v58 = vmul.f32 0.034166943, %v8373_v57  ;;  %v8381_v39 = vpop.permute.xlu0 %8380  ;;  %v8379_v54 = vpop.permute.xlu1 %8378  ;;  %v8480_v35 = vrot.slane %v8884_v32, %v16040_v24  ;;  %v8449_v57 = vmul.f32 %v8442_v56, %v15560_v37 }
 0xeee   : > { %v8382_v42 = vsel %vm16371_vm14, %v8379_v54, %v8381_v39  ;;  %v8383_v18 = vsel %vm16372_vm6, %v8381_v39, %v8379_v54  ;;  %v8887_v37 = vld [vmem:[%s15777_s23 + $0xe0] ss:$8 sm:$0x3]  ;;  %v8514_v7 = vrot.slane %v8886_v13, %v16040_v24 }
 0xeef   : > { %v8396_v9 = vmul.f32 %v8389_v11, %v8382_v42  ;;  %v8397_v63 = vmul.f32 %v8393_v26, %v8383_v18  ;;  %v8376_v49 = vadd.f32 %v8374_v5, %v8352_v4  ;;  %v8377_v21 = vadd.f32 %v8375_v58, %v8353_v55  ;;  %v8885_v26 = vld [vmem:[%s15777_s23 + $0xc6] ss:$8 sm:$0x3] }
 0xef0   : > { %v8463_v11 = vrot.slane %v8883_v46, %v16040_v24  ;;  %v8493_v8 = vrot.slane %v8885_v26, %v16039_v45  ;;  %v8497_v3 = vrot.slane %v8885_v26, %v16040_v24  ;;  %v8466_v58 = vmul.f32 %v8459_v60, %v15549_v6  ;;  %v8888_v6 = vld [vmem:[%s15777_s23 + $0xe1] ss:$8 sm:$0x3] }
 0xef1   : > { %v8398_v12 = vmul.f32 0.018544022, %v8396_v9  ;;  %v8399_v20 = vmul.f32 0.018544022, %v8397_v63  ;;  %v8483_v42 = vmul.f32 %v8476_v14, %v15529_v0  ;;  %v8484_v18 = vmul.f32 %v8480_v35, %v15525_v51 }
 0xef2   : > { %v8467_v39 = vmul.f32 %v8463_v11, %v15545_v30  ;;  %v8527_v55 = vrot.slane %v8887_v37, %v16039_v45  ;;  %v8531_v9 = vrot.slane %v8887_v37, %v16040_v24  ;;  %v8500_v63 = vmul.f32 %v8493_v8, %v15512_v29  ;;  %v8889_v0 = vld [vmem:[%s15777_s23 + $0xe2] ss:$8 sm:$0x3] }
 0xef3   : > { %v8400_v16 = vadd.f32 %v8398_v12, %v8376_v49  ;;  %v8401_v59 = vadd.f32 %v8399_v20, %v8377_v21  ;;  %v8501_v46 = vmul.f32 %v8497_v3, %v15508_v40  ;;  %v8544_v15 = vrot.slane %v8888_v6, %v16039_v45  ;;  %v8890_v49 = vld [vmem:[%s15777_s23 + $0xe3] ss:$8 sm:$0x3] }
 0xef4   : > { %v8548_v1 = vrot.slane %v8888_v6, %v16040_v24  ;;  %v8517_v21 = vmul.f32 %v8510_v2, %v15651_v23  ;;  %v8518_v29 = vmul.f32 %v8514_v7, %v15655_v44  ;;  %v8561_v20 = vrot.slane %v8889_v0, %v16039_v45 }
 0xef5   : > { %v8417_v25 = vadd.f32 %v8415_v53, %v8400_v16  ;;  %v8418_v61 = vadd.f32 %v8416_v36, %v8401_v59  ;;  %v8565_v36 = vrot.slane %v8889_v0, %v16040_v24  ;;  %v8534_v53 = vmul.f32 %v8527_v55, %v15637_v43 }
 0xef6   : > { %v8535_v32 = vmul.f32 %v8531_v9, %v15641_v62  ;;  %v8578_v23 = vrot.slane %v8890_v49, %v16039_v45  ;;  %v8582_v44 = vrot.slane %v8890_v49, %v16040_v24  ;;  %v8551_v59 = vmul.f32 %v8544_v15, %v15619_v52 }
 0xef7   : > { %v8434_v27 = vadd.f32 %v8432_v34, %v8417_v25  ;;  %v8435_v5 = vadd.f32 %v8433_v38, %v8418_v61  ;;  %v8552_v60 = vmul.f32 %v8548_v1, %v15623_v50  ;;  %v8595_v43 = vrot.slane %v8891_v17, %v16039_v45 }
 0xef8   : > { %v8599_v62 = vrot.slane %v8891_v17, %v16040_v24  ;;  %v8568_v34 = vmul.f32 %v8561_v20, %v15600_v31  ;;  %v8569_v38 = vmul.f32 %v8565_v36, %v15604_v33  ;;  %v8585_v14 = vmul.f32 %v8578_v23, %v15587_v48 }
 0xef9   : > { %v8451_v54 = vadd.f32 %v8449_v57, %v8434_v27  ;;  %v8452_v41 = vadd.f32 %v8450_v22, %v8435_v5  ;;  %v8586_v35 = vmul.f32 %v8582_v44, %v15591_v28  ;;  %v8602_v45 = vmul.f32 %v8595_v43, %v15438_v19 }
 0xefa   : > { %v8603_v22 = vmul.f32 %v8599_v62, %v15440_v10 }
 0xefb   : > { %v8468_v4 = vadd.f32 %v8466_v58, %v8451_v54  ;;  %v8469_v30 = vadd.f32 %v8467_v39, %v8452_v41 }
 0xefd   : > { %v8485_v47 = vadd.f32 %v8483_v42, %v8468_v4  ;;  %v8486_v51 = vadd.f32 %v8484_v18, %v8469_v30 }
 0xefe   : > { %v8614_v33 = vpop.permute.xlu1 %8613 }
 0xeff   : > { %v8503_v12 = vadd.f32 %v8501_v46, %v8486_v51  ;;  %v8502_v40 = vadd.f32 %v8500_v63, %v8485_v47 }
 0xf01   : > { %v8520_v56 = vadd.f32 %v8518_v29, %v8503_v12  ;;  %v8519_v16 = vadd.f32 %v8517_v21, %v8502_v40 }
 0xf03   : > { %v8537_v11 = vadd.f32 %v8535_v32, %v8520_v56  ;;  %v8536_v26 = vadd.f32 %v8534_v53, %v8519_v16 }
 0xf05   : > { %v8554_v25 = vadd.f32 %v8552_v60, %v8537_v11  ;;  %v8553_v61 = vadd.f32 %v8551_v59, %v8536_v26 }
 0xf07   : > { %v8571_v52 = vadd.f32 %v8569_v38, %v8554_v25  ;;  %v8570_v57 = vadd.f32 %v8568_v34, %v8553_v61 }
 0xf09   : > { %v8588_v50 = vadd.f32 %v8586_v35, %v8571_v52  ;;  %v8587_v13 = vadd.f32 %v8585_v14, %v8570_v57 }
 0xf0b   : > { %v8605_v27 = vadd.f32 %v8603_v22, %v8588_v50  ;;  %v8604_v24 = vadd.f32 %v8602_v45, %v8587_v13 }
 0xf0d   : > { %v8893_v31 = vclamps-f32 %v8605_v27, 300.0  ;;  %v8892_v5 = vclamps-f32 %v8604_v24, 300.0 }
 0xf0f   : > { %v8616_v8 = vmul.f32 %v8892_v5, %v8614_v33  ;;  %v8617_v3 = vmul.f32 %v8893_v31, %v8614_v33 }
 0xf11   : > { %v8620_v48 = vcombine.low %v8616_v8, %v8617_v3 }
 0xf13   : > { %8894 = vst.sshfl [vmem:[%s868_s27] sm:$0x33 pattern:$0x76325410] %v8620_v48 }
 0xf14 PF: > { %s16375_s9 = sld [smem:[#allocation9_spill]] }
 0xf1a   : > { %s39_s7 = sadd.s32 1, %s16375_s9  }
 0xf1b   : > { %p36_p5 = scmp.ge.s32.totalorder %s39_s7, 4  }
 0xf1d   :  { %38 = sbr.rel (!%p36_p5) target bundleno = 25 (0x19), region = 229 }
 0xf24   :  { %8651 = vsyncpa [#allocation4], 1 }
 0xf25   :  { %8653 = vsyncpa [#allocation4 + $0x1], 1 }
 0xf26   :  { %8654 = vsyncpa [#allocation6], 1 }

</bundles_post_ra>
